<compile_context>
chip_gen: v6e
topology: v6e:2x2x1
jax: 0.10.0
libtpu: 0.0.40
codegen_flags: <defaults>
</compile_context>

<pallas_src>
import jax
import jax.numpy as jnp
from jax.experimental import pallas as pl
from jax.experimental.pallas import tpu as pltpu

# ----------------------------- model dims -----------------------------------
B = 2                      # batch
STATS = 5                  # first 5 input columns
WAVE_LEN = 100             # waveform length (forced by fc = Linear(32*50, ...))
CONV_CH = 32               # Conv1d output channels
POOL_LEN = WAVE_LEN // 2   # 50
FLAT = CONV_CH * POOL_LEN  # 1600 flat CNN features (lane = ch*50 + j, PyTorch flatten order)
SNN_HID = 32
NN_HID = 32                # must equal SNN_HID for the fused layer-1 pack
CNN_OUT = 16
OUT = 8                    # output_size

BETA = 0.95
THRESH = 1.0               # snntorch Leaky default
NUM_STEPS = 100
CHUNK = 4                  # SNN time steps per chunk (CHUNK*B = 8 rows per matmul)
NUM_CHUNKS = NUM_STEPS // CHUNK


# ------------------------------- kernel -------------------------------------
def hybrid_kernel(stats_ref, shifts_ref, cnnw_ref, p64_ref, p8_ref, wc8_ref,
                  out_ref):
    f32 = jnp.float32
    stats = stats_ref[...]                                      # [B, 5]

    # -------- fused first layer of SNN + NN branches: [B,5] @ [5,64] --------
    lin1 = (jnp.dot(stats, p64_ref[0:STATS, :], preferred_element_type=f32)
            + p64_ref[STATS:STATS + 1, :])                      # [B, 64]
    cur1 = lin1[:, :SNN_HID]                                    # SNN fc1 (constant per step)
    nn_h = jnp.maximum(lin1[:, SNN_HID:], 0.0)                  # NN hidden after ReLU

    # -------- width-8 parameter pack -----------------------------------------
    ws2 = p8_ref[0:SNN_HID, :]                                  # snn fc2 weight   [32, 8]
    wn_f = p8_ref[SNN_HID:2 * SNN_HID, :]                       # nn_w2 @ comb_w   [32, 8]
    ws_f = p8_ref[2 * SNN_HID:2 * SNN_HID + OUT, :]             # comb_w[:8]/100   [8, 8]
    bs2 = p8_ref[2 * SNN_HID + OUT:2 * SNN_HID + OUT + 1, :]    # snn fc2 bias     [1, 8]
    b_all = p8_ref[2 * SNN_HID + OUT + 1:2 * SNN_HID + OUT + 2, :]  # folded bias  [1, 8]

    # ============ fused SNN recurrence (both layers), fully unrolled =========
    # snntorch Leaky defaults: threshold=1.0, beta=0.95, reset-by-subtraction
    # computed from the incoming membrane, Heaviside spike on the new membrane,
    # membranes initialised to 0.
    mem1 = jnp.zeros((B, SNN_HID), f32)
    mem2 = jnp.zeros((B, OUT), f32)
    acc = jnp.zeros((B, OUT), f32)

    for _ in range(NUM_CHUNKS):
        # ---- layer-1 LIF for CHUNK steps (serial chain #1) ----
        spikes = []
        for _ in range(CHUNK):
            t1 = BETA * mem1 + cur1
            mem1 = jnp.where(mem1 > THRESH, t1 - THRESH, t1)
            spikes.append((mem1 > THRESH).astype(f32))
        spk_block = jnp.concatenate(spikes, axis=0)             # [CHUNK*B, 32]

        # ---- layer-2 input currents for this chunk: one tiny MXU matmul ----
        cur2_block = (jnp.dot(spk_block, ws2, preferred_element_type=f32)
                      + bs2)                                    # [CHUNK*B, 8]

        # ---- layer-2 LIF + spike-count (serial chain #2, independent of #1's
        #      future steps, so the scheduler interleaves both chains) ----
        for s in range(CHUNK):
            cur2 = cur2_block[s * B:(s + 1) * B, :]
            t2 = BETA * mem2 + cur2
            mem2 = jnp.where(mem2 > THRESH, t2 - THRESH, t2)
            acc = acc + (mem2 > THRESH).astype(f32)

    # ==================== Waveform CNN branch =================================
    # Conv activations live flat on the lane axis (lane = ch*50 + j), so
    # conv / max-pool / ReLU are pure VPU ops (filler under the LIF chain) and
    # the fc is one lane-dense MXU matmul.  shifts_ref[d][b, ch*50+j] =
    # padded_waveform[b, 2j + d] for d = parity + tap (deduped: 4 planes).
    w0 = jnp.broadcast_to(cnnw_ref[0:1, :], (B, FLAT))
    w1 = jnp.broadcast_to(cnnw_ref[1:2, :], (B, FLAT))
    w2 = jnp.broadcast_to(cnnw_ref[2:3, :], (B, FLAT))
    cb = cnnw_ref[3:4, :]                                       # conv bias, [1, FLAT]
    s0 = shifts_ref[0]
    s1 = shifts_ref[1]
    s2 = shifts_ref[2]
    s3 = shifts_ref[3]
    pre0 = s0 * w0 + s1 * w1 + s2 * w2                          # parity-0 pre-activation
    pre1 = s1 * w0 + s2 * w1 + s3 * w2                          # parity-1 pre-activation
    # max(a+b, c+b) = max(a,c)+b ; ReLU-then-MaxPool == MaxPool-then-ReLU (monotone)
    pooled = jnp.maximum(jnp.maximum(pre0, pre1) + cb, 0.0)     # [B, FLAT]

    # ==================== folded output linears ===============================
    out_ref[...] = (jnp.dot(acc, ws_f, preferred_element_type=f32)
                    + jnp.dot(nn_h, wn_f, preferred_element_type=f32)
                    + jnp.dot(pooled, wc8_ref[...], preferred_element_type=f32)
                    + b_all)


# --------------------- one-time constant parameter packing -------------------
def pack_params(params):
    """Input-independent packing; call ONCE at model init, not per forward."""
    comb_w = params["comb_w"]                                   # [32, 8]
    cw_s = comb_w[0:OUT, :]                                     # rows hitting snn_out
    cw_n = comb_w[OUT:2 * OUT, :]                               # rows hitting nn_out
    cw_c = comb_w[2 * OUT:, :]                                  # rows hitting cnn_out

    ws_fold = cw_s * (1.0 / NUM_STEPS)                          # fold mean over steps
    wn_fold = params["nn_w2"] @ cw_n                            # [32, 8]
    wc_fold = params["cnn_fc_w"] @ cw_c                         # [1600, 8]
    b_all = (params["comb_b"] + params["nn_b2"] @ cw_n
             + params["cnn_fc_b"] @ cw_c)                       # [1, 8]

    p64 = jnp.concatenate([
        jnp.concatenate([params["snn_w1"], params["nn_w1"]], axis=1),   # [5, 64]
        jnp.concatenate([params["snn_b1"], params["nn_b1"]], axis=1),   # [1, 64]
    ], axis=0)                                                          # [6, 64]

    p8 = jnp.concatenate([params["snn_w2"], wn_fold, ws_fold,
                          params["snn_b2"], b_all], axis=0)             # [74, 8]

    # conv weight/bias broadcast to the flat lane layout (lane = ch*50 + j)
    w_flat = jnp.broadcast_to(params["conv_w"].T[:, :, None],
                              (3, CONV_CH, POOL_LEN)).reshape(3, FLAT)
    b_flat = jnp.broadcast_to(params["conv_b"][:, None],
                              (CONV_CH, POOL_LEN)).reshape(1, FLAT)
    cnnw = jnp.concatenate([w_flat, b_flat], axis=0)                    # [4, FLAT]

    return {"p64": p64, "p8": p8, "cnnw": cnnw, "wc8": wc_fold}


# ------------------------------- wrapper -------------------------------------
def _vmem_spec():
    return pl.BlockSpec(memory_space=pltpu.MemorySpace.VMEM)


def hybrid_forward(x, packed):
    assert x.shape == (B, STATS + WAVE_LEN)
    stats = x[:, :STATS]                                        # [B, 5]
    wave = x[:, STATS:]                                         # [B, 100]
    padded = jnp.pad(wave, ((0, 0), (1, 1)))                    # Conv1d padding=1 -> [B, 102]

    # taps[d, b, j] = padded[b, 2j + d], d = parity + conv tap (4 distinct planes)
    taps = jnp.stack([padded[:, d:d + 2 * POOL_LEN - 1:2] for d in range(4)],
                     axis=0)                                    # [4, B, 50]
    # tile over the 32 conv channels so lane index = ch*50 + j
    shifts = jnp.broadcast_to(taps[:, :, None, :],
                              (4, B, CONV_CH, POOL_LEN)).reshape(4, B, FLAT)

    inputs = (stats, shifts, packed["cnnw"], packed["p64"], packed["p8"],
              packed["wc8"])
    in_bytes = sum(int(a.size) * 4 for a in inputs)
    flops = (2 * (B * STATS * 64                   # fused fc1
                  + NUM_STEPS * B * SNN_HID * OUT  # snn fc2 over all steps
                  + B * FLAT * OUT                 # cnn fc (folded)
                  + B * SNN_HID * OUT              # nn path (folded)
                  + B * OUT * OUT)                 # snn combine (folded)
             + 13 * B * FLAT                       # conv / pool / relu
             + 12 * NUM_STEPS * B * (SNN_HID + OUT) // CHUNK * CHUNK)  # LIF
    cost = pl.CostEstimate(flops=flops, transcendentals=0,
                           bytes_accessed=in_bytes + B * OUT * 4)

    return pl.pallas_call(
        hybrid_kernel,
        out_shape=jax.ShapeDtypeStruct((B, OUT), jnp.float32),
        in_specs=[_vmem_spec() for _ in inputs],
        out_specs=_vmem_spec(),
        cost_estimate=cost,
    )(*inputs)


# --------------------------- parameter init ----------------------------------
def init_params(key):
    ks = jax.random.split(key, 14)

    def uni(k, shape, fan_in):
        bound = float(fan_in) ** -0.5
        return jax.random.uniform(k, shape, jnp.float32, -bound, bound)

    return {
        # SNNComponent: fc1 = Linear(5, SNN_HID), fc2 = Linear(SNN_HID, OUT)
        "snn_w1": uni(ks[0], (STATS, SNN_HID), STATS),
        "snn_b1": uni(ks[1], (1, SNN_HID), STATS),
        "snn_w2": uni(ks[2], (SNN_HID, OUT), SNN_HID),
        "snn_b2": uni(ks[3], (1, OUT), SNN_HID),
        # TraditionalNN: fc1 = Linear(5, NN_HID), fc2 = Linear(NN_HID, OUT)
        "nn_w1": uni(ks[4], (STATS, NN_HID), STATS),
        "nn_b1": uni(ks[5], (1, NN_HID), STATS),
        "nn_w2": uni(ks[6], (NN_HID, OUT), NN_HID),
        "nn_b2": uni(ks[7], (1, OUT), NN_HID),
        # WaveformCNN: Conv1d(1, 32, k=3, pad=1) weight stored as [out_ch, tap]
        "conv_w": uni(ks[8], (CONV_CH, 3), 3),
        "conv_b": uni(ks[9], (CONV_CH,), 3),
        # WaveformCNN fc: Linear(32*50, CNN_OUT), math orientation [in, out]
        "cnn_fc_w": uni(ks[10], (FLAT, CNN_OUT), FLAT),
        "cnn_fc_b": uni(ks[11], (1, CNN_OUT), FLAT),
        # fc_combine: Linear(2*OUT + CNN_OUT, OUT)
        "comb_w": uni(ks[12], (2 * OUT + CNN_OUT, OUT), 2 * OUT + CNN_OUT),
        "comb_b": uni(ks[13], (1, OUT), 2 * OUT + CNN_OUT),
    }


if __name__ == "__main__":
    key = jax.random.PRNGKey(0)
    k_params, k_x = jax.random.split(key)
    params = init_params(k_params)
    packed = pack_params(params)        # one-time constant packing (hoisted)

    # x = [stats(5) | waveform(100)]
    x = jax.random.normal(k_x, (B, STATS + WAVE_LEN), dtype=jnp.float32)

    fwd = jax.jit(hybrid_forward)
    out = fwd(x, packed)
    jax.block_until_ready(out)
    assert out.shape == (B, OUT) and out.dtype == jnp.float32
    assert bool(jnp.all(jnp.isfinite(out)))
    print("KERNEL_OK")
</pallas_src>

<mosaic_0001>
module attributes {stable_mosaic.version = 11 : i64} {
  func.func @hybrid_kernel(%arg0: memref<2x5xf32, #tpu.memory_space<vmem>>, %arg1: memref<4x2x1600xf32, #tpu.memory_space<vmem>>, %arg2: memref<4x1600xf32, #tpu.memory_space<vmem>>, %arg3: memref<6x64xf32, #tpu.memory_space<vmem>>, %arg4: memref<74x8xf32, #tpu.memory_space<vmem>>, %arg5: memref<1600x8xf32, #tpu.memory_space<vmem>>, %arg6: memref<2x8xf32, #tpu.memory_space<vmem>>) attributes {dimension_semantics = [], scalar_prefetch = 0 : i64, scratch_operands = 0 : i64, tpu.core_type = #tpu.core_type<tc>} {
    %c0 = arith.constant 0 : index
    %c0_0 = arith.constant 0 : index
    %0 = vector.load %arg0[%c0, %c0_0] : memref<2x5xf32, #tpu.memory_space<vmem>>, vector<2x5xf32>
    %c0_1 = arith.constant 0 : index
    %c0_2 = arith.constant 0 : index
    %1 = vector.load %arg3[%c0_1, %c0_2] : memref<6x64xf32, #tpu.memory_space<vmem>>, vector<5x64xf32>
    %cst = arith.constant dense<0.000000e+00> : vector<2x64xf32>
    %2 = tpu.matmul %0, %1, %cst {dimension_numbers = #tpu.dot_dimension_numbers<[1], [0], [0], [1], [0, 0, 1, 1], [], []>} : vector<2x5xf32>, vector<5x64xf32>, vector<2x64xf32> -> vector<2x64xf32>
    %c5 = arith.constant 5 : index
    %c0_3 = arith.constant 0 : index
    %3 = vector.load %arg3[%c5, %c0_3] : memref<6x64xf32, #tpu.memory_space<vmem>>, vector<1x64xf32>
    %4 = vector.broadcast %3 : vector<1x64xf32> to vector<2x64xf32>
    %5 = arith.addf %2, %4 : vector<2x64xf32>
    %6 = vector.extract_strided_slice %5 {offsets = [0, 0], sizes = [2, 32], strides = [1, 1]} : vector<2x64xf32> to vector<2x32xf32>
    %7 = vector.extract_strided_slice %5 {offsets = [0, 32], sizes = [2, 32], strides = [1, 1]} : vector<2x64xf32> to vector<2x32xf32>
    %cst_4 = arith.constant 0.000000e+00 : f32
    %8 = vector.broadcast %cst_4 : f32 to vector<2x32xf32>
    %9 = arith.maximumf %7, %8 : vector<2x32xf32>
    %c0_5 = arith.constant 0 : index
    %c0_6 = arith.constant 0 : index
    %10 = vector.load %arg4[%c0_5, %c0_6] : memref<74x8xf32, #tpu.memory_space<vmem>>, vector<32x8xf32>
    %c32 = arith.constant 32 : index
    %c0_7 = arith.constant 0 : index
    %11 = vector.load %arg4[%c32, %c0_7] : memref<74x8xf32, #tpu.memory_space<vmem>>, vector<32x8xf32>
    %c64 = arith.constant 64 : index
    %c0_8 = arith.constant 0 : index
    %12 = vector.load %arg4[%c64, %c0_8] : memref<74x8xf32, #tpu.memory_space<vmem>>, vector<8x8xf32>
    %c72 = arith.constant 72 : index
    %c0_9 = arith.constant 0 : index
    %13 = vector.load %arg4[%c72, %c0_9] : memref<74x8xf32, #tpu.memory_space<vmem>>, vector<1x8xf32>
    %c73 = arith.constant 73 : index
    %c0_10 = arith.constant 0 : index
    %14 = vector.load %arg4[%c73, %c0_10] : memref<74x8xf32, #tpu.memory_space<vmem>>, vector<1x8xf32>
    %cst_11 = arith.constant 0.000000e+00 : f32
    %15 = vector.broadcast %cst_11 : f32 to vector<2x32xf32>
    %cst_12 = arith.constant 0.000000e+00 : f32
    %16 = vector.broadcast %cst_12 : f32 to vector<2x8xf32>
    %cst_13 = arith.constant 0.000000e+00 : f32
    %17 = vector.broadcast %cst_13 : f32 to vector<2x8xf32>
    %cst_14 = arith.constant 0.949999988 : f32
    %18 = vector.broadcast %cst_14 : f32 to vector<2x32xf32>
    %19 = arith.mulf %18, %15 : vector<2x32xf32>
    %20 = arith.addf %19, %6 : vector<2x32xf32>
    %cst_15 = arith.constant 1.000000e+00 : f32
    %21 = vector.broadcast %cst_15 : f32 to vector<2x32xf32>
    %22 = arith.cmpf ogt, %15, %21 : vector<2x32xf32>
    %cst_16 = arith.constant 1.000000e+00 : f32
    %23 = vector.broadcast %cst_16 : f32 to vector<2x32xf32>
    %24 = arith.subf %20, %23 : vector<2x32xf32>
    %25 = arith.select %22, %24, %20 : vector<2x32xi1>, vector<2x32xf32>
    %cst_17 = arith.constant 1.000000e+00 : f32
    %26 = vector.broadcast %cst_17 : f32 to vector<2x32xf32>
    %27 = arith.cmpf ogt, %25, %26 : vector<2x32xf32>
    %28 = arith.extui %27 : vector<2x32xi1> to vector<2x32xi32>
    %29 = arith.sitofp %28 : vector<2x32xi32> to vector<2x32xf32>
    %cst_18 = arith.constant 0.949999988 : f32
    %30 = vector.broadcast %cst_18 : f32 to vector<2x32xf32>
    %31 = arith.mulf %30, %25 : vector<2x32xf32>
    %32 = arith.addf %31, %6 : vector<2x32xf32>
    %cst_19 = arith.constant 1.000000e+00 : f32
    %33 = vector.broadcast %cst_19 : f32 to vector<2x32xf32>
    %34 = arith.cmpf ogt, %25, %33 : vector<2x32xf32>
    %cst_20 = arith.constant 1.000000e+00 : f32
    %35 = vector.broadcast %cst_20 : f32 to vector<2x32xf32>
    %36 = arith.subf %32, %35 : vector<2x32xf32>
    %37 = arith.select %34, %36, %32 : vector<2x32xi1>, vector<2x32xf32>
    %cst_21 = arith.constant 1.000000e+00 : f32
    %38 = vector.broadcast %cst_21 : f32 to vector<2x32xf32>
    %39 = arith.cmpf ogt, %37, %38 : vector<2x32xf32>
    %40 = arith.extui %39 : vector<2x32xi1> to vector<2x32xi32>
    %41 = arith.sitofp %40 : vector<2x32xi32> to vector<2x32xf32>
    %cst_22 = arith.constant 0.949999988 : f32
    %42 = vector.broadcast %cst_22 : f32 to vector<2x32xf32>
    %43 = arith.mulf %42, %37 : vector<2x32xf32>
    %44 = arith.addf %43, %6 : vector<2x32xf32>
    %cst_23 = arith.constant 1.000000e+00 : f32
    %45 = vector.broadcast %cst_23 : f32 to vector<2x32xf32>
    %46 = arith.cmpf ogt, %37, %45 : vector<2x32xf32>
    %cst_24 = arith.constant 1.000000e+00 : f32
    %47 = vector.broadcast %cst_24 : f32 to vector<2x32xf32>
    %48 = arith.subf %44, %47 : vector<2x32xf32>
    %49 = arith.select %46, %48, %44 : vector<2x32xi1>, vector<2x32xf32>
    %cst_25 = arith.constant 1.000000e+00 : f32
    %50 = vector.broadcast %cst_25 : f32 to vector<2x32xf32>
    %51 = arith.cmpf ogt, %49, %50 : vector<2x32xf32>
    %52 = arith.extui %51 : vector<2x32xi1> to vector<2x32xi32>
    %53 = arith.sitofp %52 : vector<2x32xi32> to vector<2x32xf32>
    %cst_26 = arith.constant 0.949999988 : f32
    %54 = vector.broadcast %cst_26 : f32 to vector<2x32xf32>
    %55 = arith.mulf %54, %49 : vector<2x32xf32>
    %56 = arith.addf %55, %6 : vector<2x32xf32>
    %cst_27 = arith.constant 1.000000e+00 : f32
    %57 = vector.broadcast %cst_27 : f32 to vector<2x32xf32>
    %58 = arith.cmpf ogt, %49, %57 : vector<2x32xf32>
    %cst_28 = arith.constant 1.000000e+00 : f32
    %59 = vector.broadcast %cst_28 : f32 to vector<2x32xf32>
    %60 = arith.subf %56, %59 : vector<2x32xf32>
    %61 = arith.select %58, %60, %56 : vector<2x32xi1>, vector<2x32xf32>
    %cst_29 = arith.constant 1.000000e+00 : f32
    %62 = vector.broadcast %cst_29 : f32 to vector<2x32xf32>
    %63 = arith.cmpf ogt, %61, %62 : vector<2x32xf32>
    %64 = arith.extui %63 : vector<2x32xi1> to vector<2x32xi32>
    %65 = arith.sitofp %64 : vector<2x32xi32> to vector<2x32xf32>
    %66 = tpu.concatenate %29, %41, %53, %65 in 0 : vector<2x32xf32>, vector<2x32xf32>, vector<2x32xf32>, vector<2x32xf32> -> vector<8x32xf32>
    %cst_30 = arith.constant dense<0.000000e+00> : vector<8x8xf32>
    %67 = tpu.matmul %66, %10, %cst_30 {dimension_numbers = #tpu.dot_dimension_numbers<[1], [0], [0], [1], [0, 0, 1, 1], [], []>} : vector<8x32xf32>, vector<32x8xf32>, vector<8x8xf32> -> vector<8x8xf32>
    %68 = vector.broadcast %13 : vector<1x8xf32> to vector<8x8xf32>
    %69 = arith.addf %67, %68 : vector<8x8xf32>
    %70 = vector.extract_strided_slice %69 {offsets = [0, 0], sizes = [2, 8], strides = [1, 1]} : vector<8x8xf32> to vector<2x8xf32>
    %cst_31 = arith.constant 0.949999988 : f32
    %71 = vector.broadcast %cst_31 : f32 to vector<2x8xf32>
    %72 = arith.mulf %71, %16 : vector<2x8xf32>
    %73 = arith.addf %72, %70 : vector<2x8xf32>
    %cst_32 = arith.constant 1.000000e+00 : f32
    %74 = vector.broadcast %cst_32 : f32 to vector<2x8xf32>
    %75 = arith.cmpf ogt, %16, %74 : vector<2x8xf32>
    %cst_33 = arith.constant 1.000000e+00 : f32
    %76 = vector.broadcast %cst_33 : f32 to vector<2x8xf32>
    %77 = arith.subf %73, %76 : vector<2x8xf32>
    %78 = arith.select %75, %77, %73 : vector<2x8xi1>, vector<2x8xf32>
    %cst_34 = arith.constant 1.000000e+00 : f32
    %79 = vector.broadcast %cst_34 : f32 to vector<2x8xf32>
    %80 = arith.cmpf ogt, %78, %79 : vector<2x8xf32>
    %81 = arith.extui %80 : vector<2x8xi1> to vector<2x8xi32>
    %82 = arith.sitofp %81 : vector<2x8xi32> to vector<2x8xf32>
    %83 = arith.addf %17, %82 : vector<2x8xf32>
    %84 = vector.extract_strided_slice %69 {offsets = [2, 0], sizes = [2, 8], strides = [1, 1]} : vector<8x8xf32> to vector<2x8xf32>
    %cst_35 = arith.constant 0.949999988 : f32
    %85 = vector.broadcast %cst_35 : f32 to vector<2x8xf32>
    %86 = arith.mulf %85, %78 : vector<2x8xf32>
    %87 = arith.addf %86, %84 : vector<2x8xf32>
    %cst_36 = arith.constant 1.000000e+00 : f32
    %88 = vector.broadcast %cst_36 : f32 to vector<2x8xf32>
    %89 = arith.cmpf ogt, %78, %88 : vector<2x8xf32>
    %cst_37 = arith.constant 1.000000e+00 : f32
    %90 = vector.broadcast %cst_37 : f32 to vector<2x8xf32>
    %91 = arith.subf %87, %90 : vector<2x8xf32>
    %92 = arith.select %89, %91, %87 : vector<2x8xi1>, vector<2x8xf32>
    %cst_38 = arith.constant 1.000000e+00 : f32
    %93 = vector.broadcast %cst_38 : f32 to vector<2x8xf32>
    %94 = arith.cmpf ogt, %92, %93 : vector<2x8xf32>
    %95 = arith.extui %94 : vector<2x8xi1> to vector<2x8xi32>
    %96 = arith.sitofp %95 : vector<2x8xi32> to vector<2x8xf32>
    %97 = arith.addf %83, %96 : vector<2x8xf32>
    %98 = vector.extract_strided_slice %69 {offsets = [4, 0], sizes = [2, 8], strides = [1, 1]} : vector<8x8xf32> to vector<2x8xf32>
    %cst_39 = arith.constant 0.949999988 : f32
    %99 = vector.broadcast %cst_39 : f32 to vector<2x8xf32>
    %100 = arith.mulf %99, %92 : vector<2x8xf32>
    %101 = arith.addf %100, %98 : vector<2x8xf32>
    %cst_40 = arith.constant 1.000000e+00 : f32
    %102 = vector.broadcast %cst_40 : f32 to vector<2x8xf32>
    %103 = arith.cmpf ogt, %92, %102 : vector<2x8xf32>
    %cst_41 = arith.constant 1.000000e+00 : f32
    %104 = vector.broadcast %cst_41 : f32 to vector<2x8xf32>
    %105 = arith.subf %101, %104 : vector<2x8xf32>
    %106 = arith.select %103, %105, %101 : vector<2x8xi1>, vector<2x8xf32>
    %cst_42 = arith.constant 1.000000e+00 : f32
    %107 = vector.broadcast %cst_42 : f32 to vector<2x8xf32>
    %108 = arith.cmpf ogt, %106, %107 : vector<2x8xf32>
    %109 = arith.extui %108 : vector<2x8xi1> to vector<2x8xi32>
    %110 = arith.sitofp %109 : vector<2x8xi32> to vector<2x8xf32>
    %111 = arith.addf %97, %110 : vector<2x8xf32>
    %112 = vector.extract_strided_slice %69 {offsets = [6, 0], sizes = [2, 8], strides = [1, 1]} : vector<8x8xf32> to vector<2x8xf32>
    %cst_43 = arith.constant 0.949999988 : f32
    %113 = vector.broadcast %cst_43 : f32 to vector<2x8xf32>
    %114 = arith.mulf %113, %106 : vector<2x8xf32>
    %115 = arith.addf %114, %112 : vector<2x8xf32>
    %cst_44 = arith.constant 1.000000e+00 : f32
    %116 = vector.broadcast %cst_44 : f32 to vector<2x8xf32>
    %117 = arith.cmpf ogt, %106, %116 : vector<2x8xf32>
    %cst_45 = arith.constant 1.000000e+00 : f32
    %118 = vector.broadcast %cst_45 : f32 to vector<2x8xf32>
    %119 = arith.subf %115, %118 : vector<2x8xf32>
    %120 = arith.select %117, %119, %115 : vector<2x8xi1>, vector<2x8xf32>
    %cst_46 = arith.constant 1.000000e+00 : f32
    %121 = vector.broadcast %cst_46 : f32 to vector<2x8xf32>
    %122 = arith.cmpf ogt, %120, %121 : vector<2x8xf32>
    %123 = arith.extui %122 : vector<2x8xi1> to vector<2x8xi32>
    %124 = arith.sitofp %123 : vector<2x8xi32> to vector<2x8xf32>
    %125 = arith.addf %111, %124 : vector<2x8xf32>
    %cst_47 = arith.constant 0.949999988 : f32
    %126 = vector.broadcast %cst_47 : f32 to vector<2x32xf32>
    %127 = arith.mulf %126, %61 : vector<2x32xf32>
    %128 = arith.addf %127, %6 : vector<2x32xf32>
    %cst_48 = arith.constant 1.000000e+00 : f32
    %129 = vector.broadcast %cst_48 : f32 to vector<2x32xf32>
    %130 = arith.cmpf ogt, %61, %129 : vector<2x32xf32>
    %cst_49 = arith.constant 1.000000e+00 : f32
    %131 = vector.broadcast %cst_49 : f32 to vector<2x32xf32>
    %132 = arith.subf %128, %131 : vector<2x32xf32>
    %133 = arith.select %130, %132, %128 : vector<2x32xi1>, vector<2x32xf32>
    %cst_50 = arith.constant 1.000000e+00 : f32
    %134 = vector.broadcast %cst_50 : f32 to vector<2x32xf32>
    %135 = arith.cmpf ogt, %133, %134 : vector<2x32xf32>
    %136 = arith.extui %135 : vector<2x32xi1> to vector<2x32xi32>
    %137 = arith.sitofp %136 : vector<2x32xi32> to vector<2x32xf32>
    %cst_51 = arith.constant 0.949999988 : f32
    %138 = vector.broadcast %cst_51 : f32 to vector<2x32xf32>
    %139 = arith.mulf %138, %133 : vector<2x32xf32>
    %140 = arith.addf %139, %6 : vector<2x32xf32>
    %cst_52 = arith.constant 1.000000e+00 : f32
    %141 = vector.broadcast %cst_52 : f32 to vector<2x32xf32>
    %142 = arith.cmpf ogt, %133, %141 : vector<2x32xf32>
    %cst_53 = arith.constant 1.000000e+00 : f32
    %143 = vector.broadcast %cst_53 : f32 to vector<2x32xf32>
    %144 = arith.subf %140, %143 : vector<2x32xf32>
    %145 = arith.select %142, %144, %140 : vector<2x32xi1>, vector<2x32xf32>
    %cst_54 = arith.constant 1.000000e+00 : f32
    %146 = vector.broadcast %cst_54 : f32 to vector<2x32xf32>
    %147 = arith.cmpf ogt, %145, %146 : vector<2x32xf32>
    %148 = arith.extui %147 : vector<2x32xi1> to vector<2x32xi32>
    %149 = arith.sitofp %148 : vector<2x32xi32> to vector<2x32xf32>
    %cst_55 = arith.constant 0.949999988 : f32
    %150 = vector.broadcast %cst_55 : f32 to vector<2x32xf32>
    %151 = arith.mulf %150, %145 : vector<2x32xf32>
    %152 = arith.addf %151, %6 : vector<2x32xf32>
    %cst_56 = arith.constant 1.000000e+00 : f32
    %153 = vector.broadcast %cst_56 : f32 to vector<2x32xf32>
    %154 = arith.cmpf ogt, %145, %153 : vector<2x32xf32>
    %cst_57 = arith.constant 1.000000e+00 : f32
    %155 = vector.broadcast %cst_57 : f32 to vector<2x32xf32>
    %156 = arith.subf %152, %155 : vector<2x32xf32>
    %157 = arith.select %154, %156, %152 : vector<2x32xi1>, vector<2x32xf32>
    %cst_58 = arith.constant 1.000000e+00 : f32
    %158 = vector.broadcast %cst_58 : f32 to vector<2x32xf32>
    %159 = arith.cmpf ogt, %157, %158 : vector<2x32xf32>
    %160 = arith.extui %159 : vector<2x32xi1> to vector<2x32xi32>
    %161 = arith.sitofp %160 : vector<2x32xi32> to vector<2x32xf32>
    %cst_59 = arith.constant 0.949999988 : f32
    %162 = vector.broadcast %cst_59 : f32 to vector<2x32xf32>
    %163 = arith.mulf %162, %157 : vector<2x32xf32>
    %164 = arith.addf %163, %6 : vector<2x32xf32>
    %cst_60 = arith.constant 1.000000e+00 : f32
    %165 = vector.broadcast %cst_60 : f32 to vector<2x32xf32>
    %166 = arith.cmpf ogt, %157, %165 : vector<2x32xf32>
    %cst_61 = arith.constant 1.000000e+00 : f32
    %167 = vector.broadcast %cst_61 : f32 to vector<2x32xf32>
    %168 = arith.subf %164, %167 : vector<2x32xf32>
    %169 = arith.select %166, %168, %164 : vector<2x32xi1>, vector<2x32xf32>
    %cst_62 = arith.constant 1.000000e+00 : f32
    %170 = vector.broadcast %cst_62 : f32 to vector<2x32xf32>
    %171 = arith.cmpf ogt, %169, %170 : vector<2x32xf32>
    %172 = arith.extui %171 : vector<2x32xi1> to vector<2x32xi32>
    %173 = arith.sitofp %172 : vector<2x32xi32> to vector<2x32xf32>
    %174 = tpu.concatenate %137, %149, %161, %173 in 0 : vector<2x32xf32>, vector<2x32xf32>, vector<2x32xf32>, vector<2x32xf32> -> vector<8x32xf32>
    %cst_63 = arith.constant dense<0.000000e+00> : vector<8x8xf32>
    %175 = tpu.matmul %174, %10, %cst_63 {dimension_numbers = #tpu.dot_dimension_numbers<[1], [0], [0], [1], [0, 0, 1, 1], [], []>} : vector<8x32xf32>, vector<32x8xf32>, vector<8x8xf32> -> vector<8x8xf32>
    %176 = vector.broadcast %13 : vector<1x8xf32> to vector<8x8xf32>
    %177 = arith.addf %175, %176 : vector<8x8xf32>
    %178 = vector.extract_strided_slice %177 {offsets = [0, 0], sizes = [2, 8], strides = [1, 1]} : vector<8x8xf32> to vector<2x8xf32>
    %cst_64 = arith.constant 0.949999988 : f32
    %179 = vector.broadcast %cst_64 : f32 to vector<2x8xf32>
    %180 = arith.mulf %179, %120 : vector<2x8xf32>
    %181 = arith.addf %180, %178 : vector<2x8xf32>
    %cst_65 = arith.constant 1.000000e+00 : f32
    %182 = vector.broadcast %cst_65 : f32 to vector<2x8xf32>
    %183 = arith.cmpf ogt, %120, %182 : vector<2x8xf32>
    %cst_66 = arith.constant 1.000000e+00 : f32
    %184 = vector.broadcast %cst_66 : f32 to vector<2x8xf32>
    %185 = arith.subf %181, %184 : vector<2x8xf32>
    %186 = arith.select %183, %185, %181 : vector<2x8xi1>, vector<2x8xf32>
    %cst_67 = arith.constant 1.000000e+00 : f32
    %187 = vector.broadcast %cst_67 : f32 to vector<2x8xf32>
    %188 = arith.cmpf ogt, %186, %187 : vector<2x8xf32>
    %189 = arith.extui %188 : vector<2x8xi1> to vector<2x8xi32>
    %190 = arith.sitofp %189 : vector<2x8xi32> to vector<2x8xf32>
    %191 = arith.addf %125, %190 : vector<2x8xf32>
    %192 = vector.extract_strided_slice %177 {offsets = [2, 0], sizes = [2, 8], strides = [1, 1]} : vector<8x8xf32> to vector<2x8xf32>
    %cst_68 = arith.constant 0.949999988 : f32
    %193 = vector.broadcast %cst_68 : f32 to vector<2x8xf32>
    %194 = arith.mulf %193, %186 : vector<2x8xf32>
    %195 = arith.addf %194, %192 : vector<2x8xf32>
    %cst_69 = arith.constant 1.000000e+00 : f32
    %196 = vector.broadcast %cst_69 : f32 to vector<2x8xf32>
    %197 = arith.cmpf ogt, %186, %196 : vector<2x8xf32>
    %cst_70 = arith.constant 1.000000e+00 : f32
    %198 = vector.broadcast %cst_70 : f32 to vector<2x8xf32>
    %199 = arith.subf %195, %198 : vector<2x8xf32>
    %200 = arith.select %197, %199, %195 : vector<2x8xi1>, vector<2x8xf32>
    %cst_71 = arith.constant 1.000000e+00 : f32
    %201 = vector.broadcast %cst_71 : f32 to vector<2x8xf32>
    %202 = arith.cmpf ogt, %200, %201 : vector<2x8xf32>
    %203 = arith.extui %202 : vector<2x8xi1> to vector<2x8xi32>
    %204 = arith.sitofp %203 : vector<2x8xi32> to vector<2x8xf32>
    %205 = arith.addf %191, %204 : vector<2x8xf32>
    %206 = vector.extract_strided_slice %177 {offsets = [4, 0], sizes = [2, 8], strides = [1, 1]} : vector<8x8xf32> to vector<2x8xf32>
    %cst_72 = arith.constant 0.949999988 : f32
    %207 = vector.broadcast %cst_72 : f32 to vector<2x8xf32>
    %208 = arith.mulf %207, %200 : vector<2x8xf32>
    %209 = arith.addf %208, %206 : vector<2x8xf32>
    %cst_73 = arith.constant 1.000000e+00 : f32
    %210 = vector.broadcast %cst_73 : f32 to vector<2x8xf32>
    %211 = arith.cmpf ogt, %200, %210 : vector<2x8xf32>
    %cst_74 = arith.constant 1.000000e+00 : f32
    %212 = vector.broadcast %cst_74 : f32 to vector<2x8xf32>
    %213 = arith.subf %209, %212 : vector<2x8xf32>
    %214 = arith.select %211, %213, %209 : vector<2x8xi1>, vector<2x8xf32>
    %cst_75 = arith.constant 1.000000e+00 : f32
    %215 = vector.broadcast %cst_75 : f32 to vector<2x8xf32>
    %216 = arith.cmpf ogt, %214, %215 : vector<2x8xf32>
    %217 = arith.extui %216 : vector<2x8xi1> to vector<2x8xi32>
    %218 = arith.sitofp %217 : vector<2x8xi32> to vector<2x8xf32>
    %219 = arith.addf %205, %218 : vector<2x8xf32>
    %220 = vector.extract_strided_slice %177 {offsets = [6, 0], sizes = [2, 8], strides = [1, 1]} : vector<8x8xf32> to vector<2x8xf32>
    %cst_76 = arith.constant 0.949999988 : f32
    %221 = vector.broadcast %cst_76 : f32 to vector<2x8xf32>
    %222 = arith.mulf %221, %214 : vector<2x8xf32>
    %223 = arith.addf %222, %220 : vector<2x8xf32>
    %cst_77 = arith.constant 1.000000e+00 : f32
    %224 = vector.broadcast %cst_77 : f32 to vector<2x8xf32>
    %225 = arith.cmpf ogt, %214, %224 : vector<2x8xf32>
    %cst_78 = arith.constant 1.000000e+00 : f32
    %226 = vector.broadcast %cst_78 : f32 to vector<2x8xf32>
    %227 = arith.subf %223, %226 : vector<2x8xf32>
    %228 = arith.select %225, %227, %223 : vector<2x8xi1>, vector<2x8xf32>
    %cst_79 = arith.constant 1.000000e+00 : f32
    %229 = vector.broadcast %cst_79 : f32 to vector<2x8xf32>
    %230 = arith.cmpf ogt, %228, %229 : vector<2x8xf32>
    %231 = arith.extui %230 : vector<2x8xi1> to vector<2x8xi32>
    %232 = arith.sitofp %231 : vector<2x8xi32> to vector<2x8xf32>
    %233 = arith.addf %219, %232 : vector<2x8xf32>
    %cst_80 = arith.constant 0.949999988 : f32
    %234 = vector.broadcast %cst_80 : f32 to vector<2x32xf32>
    %235 = arith.mulf %234, %169 : vector<2x32xf32>
    %236 = arith.addf %235, %6 : vector<2x32xf32>
    %cst_81 = arith.constant 1.000000e+00 : f32
    %237 = vector.broadcast %cst_81 : f32 to vector<2x32xf32>
    %238 = arith.cmpf ogt, %169, %237 : vector<2x32xf32>
    %cst_82 = arith.constant 1.000000e+00 : f32
    %239 = vector.broadcast %cst_82 : f32 to vector<2x32xf32>
    %240 = arith.subf %236, %239 : vector<2x32xf32>
    %241 = arith.select %238, %240, %236 : vector<2x32xi1>, vector<2x32xf32>
    %cst_83 = arith.constant 1.000000e+00 : f32
    %242 = vector.broadcast %cst_83 : f32 to vector<2x32xf32>
    %243 = arith.cmpf ogt, %241, %242 : vector<2x32xf32>
    %244 = arith.extui %243 : vector<2x32xi1> to vector<2x32xi32>
    %245 = arith.sitofp %244 : vector<2x32xi32> to vector<2x32xf32>
    %cst_84 = arith.constant 0.949999988 : f32
    %246 = vector.broadcast %cst_84 : f32 to vector<2x32xf32>
    %247 = arith.mulf %246, %241 : vector<2x32xf32>
    %248 = arith.addf %247, %6 : vector<2x32xf32>
    %cst_85 = arith.constant 1.000000e+00 : f32
    %249 = vector.broadcast %cst_85 : f32 to vector<2x32xf32>
    %250 = arith.cmpf ogt, %241, %249 : vector<2x32xf32>
    %cst_86 = arith.constant 1.000000e+00 : f32
    %251 = vector.broadcast %cst_86 : f32 to vector<2x32xf32>
    %252 = arith.subf %248, %251 : vector<2x32xf32>
    %253 = arith.select %250, %252, %248 : vector<2x32xi1>, vector<2x32xf32>
    %cst_87 = arith.constant 1.000000e+00 : f32
    %254 = vector.broadcast %cst_87 : f32 to vector<2x32xf32>
    %255 = arith.cmpf ogt, %253, %254 : vector<2x32xf32>
    %256 = arith.extui %255 : vector<2x32xi1> to vector<2x32xi32>
    %257 = arith.sitofp %256 : vector<2x32xi32> to vector<2x32xf32>
    %cst_88 = arith.constant 0.949999988 : f32
    %258 = vector.broadcast %cst_88 : f32 to vector<2x32xf32>
    %259 = arith.mulf %258, %253 : vector<2x32xf32>
    %260 = arith.addf %259, %6 : vector<2x32xf32>
    %cst_89 = arith.constant 1.000000e+00 : f32
    %261 = vector.broadcast %cst_89 : f32 to vector<2x32xf32>
    %262 = arith.cmpf ogt, %253, %261 : vector<2x32xf32>
    %cst_90 = arith.constant 1.000000e+00 : f32
    %263 = vector.broadcast %cst_90 : f32 to vector<2x32xf32>
    %264 = arith.subf %260, %263 : vector<2x32xf32>
    %265 = arith.select %262, %264, %260 : vector<2x32xi1>, vector<2x32xf32>
    %cst_91 = arith.constant 1.000000e+00 : f32
    %266 = vector.broadcast %cst_91 : f32 to vector<2x32xf32>
    %267 = arith.cmpf ogt, %265, %266 : vector<2x32xf32>
    %268 = arith.extui %267 : vector<2x32xi1> to vector<2x32xi32>
    %269 = arith.sitofp %268 : vector<2x32xi32> to vector<2x32xf32>
    %cst_92 = arith.constant 0.949999988 : f32
    %270 = vector.broadcast %cst_92 : f32 to vector<2x32xf32>
    %271 = arith.mulf %270, %265 : vector<2x32xf32>
    %272 = arith.addf %271, %6 : vector<2x32xf32>
    %cst_93 = arith.constant 1.000000e+00 : f32
    %273 = vector.broadcast %cst_93 : f32 to vector<2x32xf32>
    %274 = arith.cmpf ogt, %265, %273 : vector<2x32xf32>
    %cst_94 = arith.constant 1.000000e+00 : f32
    %275 = vector.broadcast %cst_94 : f32 to vector<2x32xf32>
    %276 = arith.subf %272, %275 : vector<2x32xf32>
    %277 = arith.select %274, %276, %272 : vector<2x32xi1>, vector<2x32xf32>
    %cst_95 = arith.constant 1.000000e+00 : f32
    %278 = vector.broadcast %cst_95 : f32 to vector<2x32xf32>
    %279 = arith.cmpf ogt, %277, %278 : vector<2x32xf32>
    %280 = arith.extui %279 : vector<2x32xi1> to vector<2x32xi32>
    %281 = arith.sitofp %280 : vector<2x32xi32> to vector<2x32xf32>
    %282 = tpu.concatenate %245, %257, %269, %281 in 0 : vector<2x32xf32>, vector<2x32xf32>, vector<2x32xf32>, vector<2x32xf32> -> vector<8x32xf32>
    %cst_96 = arith.constant dense<0.000000e+00> : vector<8x8xf32>
    %283 = tpu.matmul %282, %10, %cst_96 {dimension_numbers = #tpu.dot_dimension_numbers<[1], [0], [0], [1], [0, 0, 1, 1], [], []>} : vector<8x32xf32>, vector<32x8xf32>, vector<8x8xf32> -> vector<8x8xf32>
    %284 = vector.broadcast %13 : vector<1x8xf32> to vector<8x8xf32>
    %285 = arith.addf %283, %284 : vector<8x8xf32>
    %286 = vector.extract_strided_slice %285 {offsets = [0, 0], sizes = [2, 8], strides = [1, 1]} : vector<8x8xf32> to vector<2x8xf32>
    %cst_97 = arith.constant 0.949999988 : f32
    %287 = vector.broadcast %cst_97 : f32 to vector<2x8xf32>
    %288 = arith.mulf %287, %228 : vector<2x8xf32>
    %289 = arith.addf %288, %286 : vector<2x8xf32>
    %cst_98 = arith.constant 1.000000e+00 : f32
    %290 = vector.broadcast %cst_98 : f32 to vector<2x8xf32>
    %291 = arith.cmpf ogt, %228, %290 : vector<2x8xf32>
    %cst_99 = arith.constant 1.000000e+00 : f32
    %292 = vector.broadcast %cst_99 : f32 to vector<2x8xf32>
    %293 = arith.subf %289, %292 : vector<2x8xf32>
    %294 = arith.select %291, %293, %289 : vector<2x8xi1>, vector<2x8xf32>
    %cst_100 = arith.constant 1.000000e+00 : f32
    %295 = vector.broadcast %cst_100 : f32 to vector<2x8xf32>
    %296 = arith.cmpf ogt, %294, %295 : vector<2x8xf32>
    %297 = arith.extui %296 : vector<2x8xi1> to vector<2x8xi32>
    %298 = arith.sitofp %297 : vector<2x8xi32> to vector<2x8xf32>
    %299 = arith.addf %233, %298 : vector<2x8xf32>
    %300 = vector.extract_strided_slice %285 {offsets = [2, 0], sizes = [2, 8], strides = [1, 1]} : vector<8x8xf32> to vector<2x8xf32>
    %cst_101 = arith.constant 0.949999988 : f32
    %301 = vector.broadcast %cst_101 : f32 to vector<2x8xf32>
    %302 = arith.mulf %301, %294 : vector<2x8xf32>
    %303 = arith.addf %302, %300 : vector<2x8xf32>
    %cst_102 = arith.constant 1.000000e+00 : f32
    %304 = vector.broadcast %cst_102 : f32 to vector<2x8xf32>
    %305 = arith.cmpf ogt, %294, %304 : vector<2x8xf32>
    %cst_103 = arith.constant 1.000000e+00 : f32
    %306 = vector.broadcast %cst_103 : f32 to vector<2x8xf32>
    %307 = arith.subf %303, %306 : vector<2x8xf32>
    %308 = arith.select %305, %307, %303 : vector<2x8xi1>, vector<2x8xf32>
    %cst_104 = arith.constant 1.000000e+00 : f32
    %309 = vector.broadcast %cst_104 : f32 to vector<2x8xf32>
    %310 = arith.cmpf ogt, %308, %309 : vector<2x8xf32>
    %311 = arith.extui %310 : vector<2x8xi1> to vector<2x8xi32>
    %312 = arith.sitofp %311 : vector<2x8xi32> to vector<2x8xf32>
    %313 = arith.addf %299, %312 : vector<2x8xf32>
    %314 = vector.extract_strided_slice %285 {offsets = [4, 0], sizes = [2, 8], strides = [1, 1]} : vector<8x8xf32> to vector<2x8xf32>
    %cst_105 = arith.constant 0.949999988 : f32
    %315 = vector.broadcast %cst_105 : f32 to vector<2x8xf32>
    %316 = arith.mulf %315, %308 : vector<2x8xf32>
    %317 = arith.addf %316, %314 : vector<2x8xf32>
    %cst_106 = arith.constant 1.000000e+00 : f32
    %318 = vector.broadcast %cst_106 : f32 to vector<2x8xf32>
    %319 = arith.cmpf ogt, %308, %318 : vector<2x8xf32>
    %cst_107 = arith.constant 1.000000e+00 : f32
    %320 = vector.broadcast %cst_107 : f32 to vector<2x8xf32>
    %321 = arith.subf %317, %320 : vector<2x8xf32>
    %322 = arith.select %319, %321, %317 : vector<2x8xi1>, vector<2x8xf32>
    %cst_108 = arith.constant 1.000000e+00 : f32
    %323 = vector.broadcast %cst_108 : f32 to vector<2x8xf32>
    %324 = arith.cmpf ogt, %322, %323 : vector<2x8xf32>
    %325 = arith.extui %324 : vector<2x8xi1> to vector<2x8xi32>
    %326 = arith.sitofp %325 : vector<2x8xi32> to vector<2x8xf32>
    %327 = arith.addf %313, %326 : vector<2x8xf32>
    %328 = vector.extract_strided_slice %285 {offsets = [6, 0], sizes = [2, 8], strides = [1, 1]} : vector<8x8xf32> to vector<2x8xf32>
    %cst_109 = arith.constant 0.949999988 : f32
    %329 = vector.broadcast %cst_109 : f32 to vector<2x8xf32>
    %330 = arith.mulf %329, %322 : vector<2x8xf32>
    %331 = arith.addf %330, %328 : vector<2x8xf32>
    %cst_110 = arith.constant 1.000000e+00 : f32
    %332 = vector.broadcast %cst_110 : f32 to vector<2x8xf32>
    %333 = arith.cmpf ogt, %322, %332 : vector<2x8xf32>
    %cst_111 = arith.constant 1.000000e+00 : f32
    %334 = vector.broadcast %cst_111 : f32 to vector<2x8xf32>
    %335 = arith.subf %331, %334 : vector<2x8xf32>
    %336 = arith.select %333, %335, %331 : vector<2x8xi1>, vector<2x8xf32>
    %cst_112 = arith.constant 1.000000e+00 : f32
    %337 = vector.broadcast %cst_112 : f32 to vector<2x8xf32>
    %338 = arith.cmpf ogt, %336, %337 : vector<2x8xf32>
    %339 = arith.extui %338 : vector<2x8xi1> to vector<2x8xi32>
    %340 = arith.sitofp %339 : vector<2x8xi32> to vector<2x8xf32>
    %341 = arith.addf %327, %340 : vector<2x8xf32>
    %cst_113 = arith.constant 0.949999988 : f32
    %342 = vector.broadcast %cst_113 : f32 to vector<2x32xf32>
    %343 = arith.mulf %342, %277 : vector<2x32xf32>
    %344 = arith.addf %343, %6 : vector<2x32xf32>
    %cst_114 = arith.constant 1.000000e+00 : f32
    %345 = vector.broadcast %cst_114 : f32 to vector<2x32xf32>
    %346 = arith.cmpf ogt, %277, %345 : vector<2x32xf32>
    %cst_115 = arith.constant 1.000000e+00 : f32
    %347 = vector.broadcast %cst_115 : f32 to vector<2x32xf32>
    %348 = arith.subf %344, %347 : vector<2x32xf32>
    %349 = arith.select %346, %348, %344 : vector<2x32xi1>, vector<2x32xf32>
    %cst_116 = arith.constant 1.000000e+00 : f32
    %350 = vector.broadcast %cst_116 : f32 to vector<2x32xf32>
    %351 = arith.cmpf ogt, %349, %350 : vector<2x32xf32>
    %352 = arith.extui %351 : vector<2x32xi1> to vector<2x32xi32>
    %353 = arith.sitofp %352 : vector<2x32xi32> to vector<2x32xf32>
    %cst_117 = arith.constant 0.949999988 : f32
    %354 = vector.broadcast %cst_117 : f32 to vector<2x32xf32>
    %355 = arith.mulf %354, %349 : vector<2x32xf32>
    %356 = arith.addf %355, %6 : vector<2x32xf32>
    %cst_118 = arith.constant 1.000000e+00 : f32
    %357 = vector.broadcast %cst_118 : f32 to vector<2x32xf32>
    %358 = arith.cmpf ogt, %349, %357 : vector<2x32xf32>
    %cst_119 = arith.constant 1.000000e+00 : f32
    %359 = vector.broadcast %cst_119 : f32 to vector<2x32xf32>
    %360 = arith.subf %356, %359 : vector<2x32xf32>
    %361 = arith.select %358, %360, %356 : vector<2x32xi1>, vector<2x32xf32>
    %cst_120 = arith.constant 1.000000e+00 : f32
    %362 = vector.broadcast %cst_120 : f32 to vector<2x32xf32>
    %363 = arith.cmpf ogt, %361, %362 : vector<2x32xf32>
    %364 = arith.extui %363 : vector<2x32xi1> to vector<2x32xi32>
    %365 = arith.sitofp %364 : vector<2x32xi32> to vector<2x32xf32>
    %cst_121 = arith.constant 0.949999988 : f32
    %366 = vector.broadcast %cst_121 : f32 to vector<2x32xf32>
    %367 = arith.mulf %366, %361 : vector<2x32xf32>
    %368 = arith.addf %367, %6 : vector<2x32xf32>
    %cst_122 = arith.constant 1.000000e+00 : f32
    %369 = vector.broadcast %cst_122 : f32 to vector<2x32xf32>
    %370 = arith.cmpf ogt, %361, %369 : vector<2x32xf32>
    %cst_123 = arith.constant 1.000000e+00 : f32
    %371 = vector.broadcast %cst_123 : f32 to vector<2x32xf32>
    %372 = arith.subf %368, %371 : vector<2x32xf32>
    %373 = arith.select %370, %372, %368 : vector<2x32xi1>, vector<2x32xf32>
    %cst_124 = arith.constant 1.000000e+00 : f32
    %374 = vector.broadcast %cst_124 : f32 to vector<2x32xf32>
    %375 = arith.cmpf ogt, %373, %374 : vector<2x32xf32>
    %376 = arith.extui %375 : vector<2x32xi1> to vector<2x32xi32>
    %377 = arith.sitofp %376 : vector<2x32xi32> to vector<2x32xf32>
    %cst_125 = arith.constant 0.949999988 : f32
    %378 = vector.broadcast %cst_125 : f32 to vector<2x32xf32>
    %379 = arith.mulf %378, %373 : vector<2x32xf32>
    %380 = arith.addf %379, %6 : vector<2x32xf32>
    %cst_126 = arith.constant 1.000000e+00 : f32
    %381 = vector.broadcast %cst_126 : f32 to vector<2x32xf32>
    %382 = arith.cmpf ogt, %373, %381 : vector<2x32xf32>
    %cst_127 = arith.constant 1.000000e+00 : f32
    %383 = vector.broadcast %cst_127 : f32 to vector<2x32xf32>
    %384 = arith.subf %380, %383 : vector<2x32xf32>
    %385 = arith.select %382, %384, %380 : vector<2x32xi1>, vector<2x32xf32>
    %cst_128 = arith.constant 1.000000e+00 : f32
    %386 = vector.broadcast %cst_128 : f32 to vector<2x32xf32>
    %387 = arith.cmpf ogt, %385, %386 : vector<2x32xf32>
    %388 = arith.extui %387 : vector<2x32xi1> to vector<2x32xi32>
    %389 = arith.sitofp %388 : vector<2x32xi32> to vector<2x32xf32>
    %390 = tpu.concatenate %353, %365, %377, %389 in 0 : vector<2x32xf32>, vector<2x32xf32>, vector<2x32xf32>, vector<2x32xf32> -> vector<8x32xf32>
    %cst_129 = arith.constant dense<0.000000e+00> : vector<8x8xf32>
    %391 = tpu.matmul %390, %10, %cst_129 {dimension_numbers = #tpu.dot_dimension_numbers<[1], [0], [0], [1], [0, 0, 1, 1], [], []>} : vector<8x32xf32>, vector<32x8xf32>, vector<8x8xf32> -> vector<8x8xf32>
    %392 = vector.broadcast %13 : vector<1x8xf32> to vector<8x8xf32>
    %393 = arith.addf %391, %392 : vector<8x8xf32>
    %394 = vector.extract_strided_slice %393 {offsets = [0, 0], sizes = [2, 8], strides = [1, 1]} : vector<8x8xf32> to vector<2x8xf32>
    %cst_130 = arith.constant 0.949999988 : f32
    %395 = vector.broadcast %cst_130 : f32 to vector<2x8xf32>
    %396 = arith.mulf %395, %336 : vector<2x8xf32>
    %397 = arith.addf %396, %394 : vector<2x8xf32>
    %cst_131 = arith.constant 1.000000e+00 : f32
    %398 = vector.broadcast %cst_131 : f32 to vector<2x8xf32>
    %399 = arith.cmpf ogt, %336, %398 : vector<2x8xf32>
    %cst_132 = arith.constant 1.000000e+00 : f32
    %400 = vector.broadcast %cst_132 : f32 to vector<2x8xf32>
    %401 = arith.subf %397, %400 : vector<2x8xf32>
    %402 = arith.select %399, %401, %397 : vector<2x8xi1>, vector<2x8xf32>
    %cst_133 = arith.constant 1.000000e+00 : f32
    %403 = vector.broadcast %cst_133 : f32 to vector<2x8xf32>
    %404 = arith.cmpf ogt, %402, %403 : vector<2x8xf32>
    %405 = arith.extui %404 : vector<2x8xi1> to vector<2x8xi32>
    %406 = arith.sitofp %405 : vector<2x8xi32> to vector<2x8xf32>
    %407 = arith.addf %341, %406 : vector<2x8xf32>
    %408 = vector.extract_strided_slice %393 {offsets = [2, 0], sizes = [2, 8], strides = [1, 1]} : vector<8x8xf32> to vector<2x8xf32>
    %cst_134 = arith.constant 0.949999988 : f32
    %409 = vector.broadcast %cst_134 : f32 to vector<2x8xf32>
    %410 = arith.mulf %409, %402 : vector<2x8xf32>
    %411 = arith.addf %410, %408 : vector<2x8xf32>
    %cst_135 = arith.constant 1.000000e+00 : f32
    %412 = vector.broadcast %cst_135 : f32 to vector<2x8xf32>
    %413 = arith.cmpf ogt, %402, %412 : vector<2x8xf32>
    %cst_136 = arith.constant 1.000000e+00 : f32
    %414 = vector.broadcast %cst_136 : f32 to vector<2x8xf32>
    %415 = arith.subf %411, %414 : vector<2x8xf32>
    %416 = arith.select %413, %415, %411 : vector<2x8xi1>, vector<2x8xf32>
    %cst_137 = arith.constant 1.000000e+00 : f32
    %417 = vector.broadcast %cst_137 : f32 to vector<2x8xf32>
    %418 = arith.cmpf ogt, %416, %417 : vector<2x8xf32>
    %419 = arith.extui %418 : vector<2x8xi1> to vector<2x8xi32>
    %420 = arith.sitofp %419 : vector<2x8xi32> to vector<2x8xf32>
    %421 = arith.addf %407, %420 : vector<2x8xf32>
    %422 = vector.extract_strided_slice %393 {offsets = [4, 0], sizes = [2, 8], strides = [1, 1]} : vector<8x8xf32> to vector<2x8xf32>
    %cst_138 = arith.constant 0.949999988 : f32
    %423 = vector.broadcast %cst_138 : f32 to vector<2x8xf32>
    %424 = arith.mulf %423, %416 : vector<2x8xf32>
    %425 = arith.addf %424, %422 : vector<2x8xf32>
    %cst_139 = arith.constant 1.000000e+00 : f32
    %426 = vector.broadcast %cst_139 : f32 to vector<2x8xf32>
    %427 = arith.cmpf ogt, %416, %426 : vector<2x8xf32>
    %cst_140 = arith.constant 1.000000e+00 : f32
    %428 = vector.broadcast %cst_140 : f32 to vector<2x8xf32>
    %429 = arith.subf %425, %428 : vector<2x8xf32>
    %430 = arith.select %427, %429, %425 : vector<2x8xi1>, vector<2x8xf32>
    %cst_141 = arith.constant 1.000000e+00 : f32
    %431 = vector.broadcast %cst_141 : f32 to vector<2x8xf32>
    %432 = arith.cmpf ogt, %430, %431 : vector<2x8xf32>
    %433 = arith.extui %432 : vector<2x8xi1> to vector<2x8xi32>
    %434 = arith.sitofp %433 : vector<2x8xi32> to vector<2x8xf32>
    %435 = arith.addf %421, %434 : vector<2x8xf32>
    %436 = vector.extract_strided_slice %393 {offsets = [6, 0], sizes = [2, 8], strides = [1, 1]} : vector<8x8xf32> to vector<2x8xf32>
    %cst_142 = arith.constant 0.949999988 : f32
    %437 = vector.broadcast %cst_142 : f32 to vector<2x8xf32>
    %438 = arith.mulf %437, %430 : vector<2x8xf32>
    %439 = arith.addf %438, %436 : vector<2x8xf32>
    %cst_143 = arith.constant 1.000000e+00 : f32
    %440 = vector.broadcast %cst_143 : f32 to vector<2x8xf32>
    %441 = arith.cmpf ogt, %430, %440 : vector<2x8xf32>
    %cst_144 = arith.constant 1.000000e+00 : f32
    %442 = vector.broadcast %cst_144 : f32 to vector<2x8xf32>
    %443 = arith.subf %439, %442 : vector<2x8xf32>
    %444 = arith.select %441, %443, %439 : vector<2x8xi1>, vector<2x8xf32>
    %cst_145 = arith.constant 1.000000e+00 : f32
    %445 = vector.broadcast %cst_145 : f32 to vector<2x8xf32>
    %446 = arith.cmpf ogt, %444, %445 : vector<2x8xf32>
    %447 = arith.extui %446 : vector<2x8xi1> to vector<2x8xi32>
    %448 = arith.sitofp %447 : vector<2x8xi32> to vector<2x8xf32>
    %449 = arith.addf %435, %448 : vector<2x8xf32>
    %cst_146 = arith.constant 0.949999988 : f32
    %450 = vector.broadcast %cst_146 : f32 to vector<2x32xf32>
    %451 = arith.mulf %450, %385 : vector<2x32xf32>
    %452 = arith.addf %451, %6 : vector<2x32xf32>
    %cst_147 = arith.constant 1.000000e+00 : f32
    %453 = vector.broadcast %cst_147 : f32 to vector<2x32xf32>
    %454 = arith.cmpf ogt, %385, %453 : vector<2x32xf32>
    %cst_148 = arith.constant 1.000000e+00 : f32
    %455 = vector.broadcast %cst_148 : f32 to vector<2x32xf32>
    %456 = arith.subf %452, %455 : vector<2x32xf32>
    %457 = arith.select %454, %456, %452 : vector<2x32xi1>, vector<2x32xf32>
    %cst_149 = arith.constant 1.000000e+00 : f32
    %458 = vector.broadcast %cst_149 : f32 to vector<2x32xf32>
    %459 = arith.cmpf ogt, %457, %458 : vector<2x32xf32>
    %460 = arith.extui %459 : vector<2x32xi1> to vector<2x32xi32>
    %461 = arith.sitofp %460 : vector<2x32xi32> to vector<2x32xf32>
    %cst_150 = arith.constant 0.949999988 : f32
    %462 = vector.broadcast %cst_150 : f32 to vector<2x32xf32>
    %463 = arith.mulf %462, %457 : vector<2x32xf32>
    %464 = arith.addf %463, %6 : vector<2x32xf32>
    %cst_151 = arith.constant 1.000000e+00 : f32
    %465 = vector.broadcast %cst_151 : f32 to vector<2x32xf32>
    %466 = arith.cmpf ogt, %457, %465 : vector<2x32xf32>
    %cst_152 = arith.constant 1.000000e+00 : f32
    %467 = vector.broadcast %cst_152 : f32 to vector<2x32xf32>
    %468 = arith.subf %464, %467 : vector<2x32xf32>
    %469 = arith.select %466, %468, %464 : vector<2x32xi1>, vector<2x32xf32>
    %cst_153 = arith.constant 1.000000e+00 : f32
    %470 = vector.broadcast %cst_153 : f32 to vector<2x32xf32>
    %471 = arith.cmpf ogt, %469, %470 : vector<2x32xf32>
    %472 = arith.extui %471 : vector<2x32xi1> to vector<2x32xi32>
    %473 = arith.sitofp %472 : vector<2x32xi32> to vector<2x32xf32>
    %cst_154 = arith.constant 0.949999988 : f32
    %474 = vector.broadcast %cst_154 : f32 to vector<2x32xf32>
    %475 = arith.mulf %474, %469 : vector<2x32xf32>
    %476 = arith.addf %475, %6 : vector<2x32xf32>
    %cst_155 = arith.constant 1.000000e+00 : f32
    %477 = vector.broadcast %cst_155 : f32 to vector<2x32xf32>
    %478 = arith.cmpf ogt, %469, %477 : vector<2x32xf32>
    %cst_156 = arith.constant 1.000000e+00 : f32
    %479 = vector.broadcast %cst_156 : f32 to vector<2x32xf32>
    %480 = arith.subf %476, %479 : vector<2x32xf32>
    %481 = arith.select %478, %480, %476 : vector<2x32xi1>, vector<2x32xf32>
    %cst_157 = arith.constant 1.000000e+00 : f32
    %482 = vector.broadcast %cst_157 : f32 to vector<2x32xf32>
    %483 = arith.cmpf ogt, %481, %482 : vector<2x32xf32>
    %484 = arith.extui %483 : vector<2x32xi1> to vector<2x32xi32>
    %485 = arith.sitofp %484 : vector<2x32xi32> to vector<2x32xf32>
    %cst_158 = arith.constant 0.949999988 : f32
    %486 = vector.broadcast %cst_158 : f32 to vector<2x32xf32>
    %487 = arith.mulf %486, %481 : vector<2x32xf32>
    %488 = arith.addf %487, %6 : vector<2x32xf32>
    %cst_159 = arith.constant 1.000000e+00 : f32
    %489 = vector.broadcast %cst_159 : f32 to vector<2x32xf32>
    %490 = arith.cmpf ogt, %481, %489 : vector<2x32xf32>
    %cst_160 = arith.constant 1.000000e+00 : f32
    %491 = vector.broadcast %cst_160 : f32 to vector<2x32xf32>
    %492 = arith.subf %488, %491 : vector<2x32xf32>
    %493 = arith.select %490, %492, %488 : vector<2x32xi1>, vector<2x32xf32>
    %cst_161 = arith.constant 1.000000e+00 : f32
    %494 = vector.broadcast %cst_161 : f32 to vector<2x32xf32>
    %495 = arith.cmpf ogt, %493, %494 : vector<2x32xf32>
    %496 = arith.extui %495 : vector<2x32xi1> to vector<2x32xi32>
    %497 = arith.sitofp %496 : vector<2x32xi32> to vector<2x32xf32>
    %498 = tpu.concatenate %461, %473, %485, %497 in 0 : vector<2x32xf32>, vector<2x32xf32>, vector<2x32xf32>, vector<2x32xf32> -> vector<8x32xf32>
    %cst_162 = arith.constant dense<0.000000e+00> : vector<8x8xf32>
    %499 = tpu.matmul %498, %10, %cst_162 {dimension_numbers = #tpu.dot_dimension_numbers<[1], [0], [0], [1], [0, 0, 1, 1], [], []>} : vector<8x32xf32>, vector<32x8xf32>, vector<8x8xf32> -> vector<8x8xf32>
    %500 = vector.broadcast %13 : vector<1x8xf32> to vector<8x8xf32>
    %501 = arith.addf %499, %500 : vector<8x8xf32>
    %502 = vector.extract_strided_slice %501 {offsets = [0, 0], sizes = [2, 8], strides = [1, 1]} : vector<8x8xf32> to vector<2x8xf32>
    %cst_163 = arith.constant 0.949999988 : f32
    %503 = vector.broadcast %cst_163 : f32 to vector<2x8xf32>
    %504 = arith.mulf %503, %444 : vector<2x8xf32>
    %505 = arith.addf %504, %502 : vector<2x8xf32>
    %cst_164 = arith.constant 1.000000e+00 : f32
    %506 = vector.broadcast %cst_164 : f32 to vector<2x8xf32>
    %507 = arith.cmpf ogt, %444, %506 : vector<2x8xf32>
    %cst_165 = arith.constant 1.000000e+00 : f32
    %508 = vector.broadcast %cst_165 : f32 to vector<2x8xf32>
    %509 = arith.subf %505, %508 : vector<2x8xf32>
    %510 = arith.select %507, %509, %505 : vector<2x8xi1>, vector<2x8xf32>
    %cst_166 = arith.constant 1.000000e+00 : f32
    %511 = vector.broadcast %cst_166 : f32 to vector<2x8xf32>
    %512 = arith.cmpf ogt, %510, %511 : vector<2x8xf32>
    %513 = arith.extui %512 : vector<2x8xi1> to vector<2x8xi32>
    %514 = arith.sitofp %513 : vector<2x8xi32> to vector<2x8xf32>
    %515 = arith.addf %449, %514 : vector<2x8xf32>
    %516 = vector.extract_strided_slice %501 {offsets = [2, 0], sizes = [2, 8], strides = [1, 1]} : vector<8x8xf32> to vector<2x8xf32>
    %cst_167 = arith.constant 0.949999988 : f32
    %517 = vector.broadcast %cst_167 : f32 to vector<2x8xf32>
    %518 = arith.mulf %517, %510 : vector<2x8xf32>
    %519 = arith.addf %518, %516 : vector<2x8xf32>
    %cst_168 = arith.constant 1.000000e+00 : f32
    %520 = vector.broadcast %cst_168 : f32 to vector<2x8xf32>
    %521 = arith.cmpf ogt, %510, %520 : vector<2x8xf32>
    %cst_169 = arith.constant 1.000000e+00 : f32
    %522 = vector.broadcast %cst_169 : f32 to vector<2x8xf32>
    %523 = arith.subf %519, %522 : vector<2x8xf32>
    %524 = arith.select %521, %523, %519 : vector<2x8xi1>, vector<2x8xf32>
    %cst_170 = arith.constant 1.000000e+00 : f32
    %525 = vector.broadcast %cst_170 : f32 to vector<2x8xf32>
    %526 = arith.cmpf ogt, %524, %525 : vector<2x8xf32>
    %527 = arith.extui %526 : vector<2x8xi1> to vector<2x8xi32>
    %528 = arith.sitofp %527 : vector<2x8xi32> to vector<2x8xf32>
    %529 = arith.addf %515, %528 : vector<2x8xf32>
    %530 = vector.extract_strided_slice %501 {offsets = [4, 0], sizes = [2, 8], strides = [1, 1]} : vector<8x8xf32> to vector<2x8xf32>
    %cst_171 = arith.constant 0.949999988 : f32
    %531 = vector.broadcast %cst_171 : f32 to vector<2x8xf32>
    %532 = arith.mulf %531, %524 : vector<2x8xf32>
    %533 = arith.addf %532, %530 : vector<2x8xf32>
    %cst_172 = arith.constant 1.000000e+00 : f32
    %534 = vector.broadcast %cst_172 : f32 to vector<2x8xf32>
    %535 = arith.cmpf ogt, %524, %534 : vector<2x8xf32>
    %cst_173 = arith.constant 1.000000e+00 : f32
    %536 = vector.broadcast %cst_173 : f32 to vector<2x8xf32>
    %537 = arith.subf %533, %536 : vector<2x8xf32>
    %538 = arith.select %535, %537, %533 : vector<2x8xi1>, vector<2x8xf32>
    %cst_174 = arith.constant 1.000000e+00 : f32
    %539 = vector.broadcast %cst_174 : f32 to vector<2x8xf32>
    %540 = arith.cmpf ogt, %538, %539 : vector<2x8xf32>
    %541 = arith.extui %540 : vector<2x8xi1> to vector<2x8xi32>
    %542 = arith.sitofp %541 : vector<2x8xi32> to vector<2x8xf32>
    %543 = arith.addf %529, %542 : vector<2x8xf32>
    %544 = vector.extract_strided_slice %501 {offsets = [6, 0], sizes = [2, 8], strides = [1, 1]} : vector<8x8xf32> to vector<2x8xf32>
    %cst_175 = arith.constant 0.949999988 : f32
    %545 = vector.broadcast %cst_175 : f32 to vector<2x8xf32>
    %546 = arith.mulf %545, %538 : vector<2x8xf32>
    %547 = arith.addf %546, %544 : vector<2x8xf32>
    %cst_176 = arith.constant 1.000000e+00 : f32
    %548 = vector.broadcast %cst_176 : f32 to vector<2x8xf32>
    %549 = arith.cmpf ogt, %538, %548 : vector<2x8xf32>
    %cst_177 = arith.constant 1.000000e+00 : f32
    %550 = vector.broadcast %cst_177 : f32 to vector<2x8xf32>
    %551 = arith.subf %547, %550 : vector<2x8xf32>
    %552 = arith.select %549, %551, %547 : vector<2x8xi1>, vector<2x8xf32>
    %cst_178 = arith.constant 1.000000e+00 : f32
    %553 = vector.broadcast %cst_178 : f32 to vector<2x8xf32>
    %554 = arith.cmpf ogt, %552, %553 : vector<2x8xf32>
    %555 = arith.extui %554 : vector<2x8xi1> to vector<2x8xi32>
    %556 = arith.sitofp %555 : vector<2x8xi32> to vector<2x8xf32>
    %557 = arith.addf %543, %556 : vector<2x8xf32>
    %cst_179 = arith.constant 0.949999988 : f32
    %558 = vector.broadcast %cst_179 : f32 to vector<2x32xf32>
    %559 = arith.mulf %558, %493 : vector<2x32xf32>
    %560 = arith.addf %559, %6 : vector<2x32xf32>
    %cst_180 = arith.constant 1.000000e+00 : f32
    %561 = vector.broadcast %cst_180 : f32 to vector<2x32xf32>
    %562 = arith.cmpf ogt, %493, %561 : vector<2x32xf32>
    %cst_181 = arith.constant 1.000000e+00 : f32
    %563 = vector.broadcast %cst_181 : f32 to vector<2x32xf32>
    %564 = arith.subf %560, %563 : vector<2x32xf32>
    %565 = arith.select %562, %564, %560 : vector<2x32xi1>, vector<2x32xf32>
    %cst_182 = arith.constant 1.000000e+00 : f32
    %566 = vector.broadcast %cst_182 : f32 to vector<2x32xf32>
    %567 = arith.cmpf ogt, %565, %566 : vector<2x32xf32>
    %568 = arith.extui %567 : vector<2x32xi1> to vector<2x32xi32>
    %569 = arith.sitofp %568 : vector<2x32xi32> to vector<2x32xf32>
    %cst_183 = arith.constant 0.949999988 : f32
    %570 = vector.broadcast %cst_183 : f32 to vector<2x32xf32>
    %571 = arith.mulf %570, %565 : vector<2x32xf32>
    %572 = arith.addf %571, %6 : vector<2x32xf32>
    %cst_184 = arith.constant 1.000000e+00 : f32
    %573 = vector.broadcast %cst_184 : f32 to vector<2x32xf32>
    %574 = arith.cmpf ogt, %565, %573 : vector<2x32xf32>
    %cst_185 = arith.constant 1.000000e+00 : f32
    %575 = vector.broadcast %cst_185 : f32 to vector<2x32xf32>
    %576 = arith.subf %572, %575 : vector<2x32xf32>
    %577 = arith.select %574, %576, %572 : vector<2x32xi1>, vector<2x32xf32>
    %cst_186 = arith.constant 1.000000e+00 : f32
    %578 = vector.broadcast %cst_186 : f32 to vector<2x32xf32>
    %579 = arith.cmpf ogt, %577, %578 : vector<2x32xf32>
    %580 = arith.extui %579 : vector<2x32xi1> to vector<2x32xi32>
    %581 = arith.sitofp %580 : vector<2x32xi32> to vector<2x32xf32>
    %cst_187 = arith.constant 0.949999988 : f32
    %582 = vector.broadcast %cst_187 : f32 to vector<2x32xf32>
    %583 = arith.mulf %582, %577 : vector<2x32xf32>
    %584 = arith.addf %583, %6 : vector<2x32xf32>
    %cst_188 = arith.constant 1.000000e+00 : f32
    %585 = vector.broadcast %cst_188 : f32 to vector<2x32xf32>
    %586 = arith.cmpf ogt, %577, %585 : vector<2x32xf32>
    %cst_189 = arith.constant 1.000000e+00 : f32
    %587 = vector.broadcast %cst_189 : f32 to vector<2x32xf32>
    %588 = arith.subf %584, %587 : vector<2x32xf32>
    %589 = arith.select %586, %588, %584 : vector<2x32xi1>, vector<2x32xf32>
    %cst_190 = arith.constant 1.000000e+00 : f32
    %590 = vector.broadcast %cst_190 : f32 to vector<2x32xf32>
    %591 = arith.cmpf ogt, %589, %590 : vector<2x32xf32>
    %592 = arith.extui %591 : vector<2x32xi1> to vector<2x32xi32>
    %593 = arith.sitofp %592 : vector<2x32xi32> to vector<2x32xf32>
    %cst_191 = arith.constant 0.949999988 : f32
    %594 = vector.broadcast %cst_191 : f32 to vector<2x32xf32>
    %595 = arith.mulf %594, %589 : vector<2x32xf32>
    %596 = arith.addf %595, %6 : vector<2x32xf32>
    %cst_192 = arith.constant 1.000000e+00 : f32
    %597 = vector.broadcast %cst_192 : f32 to vector<2x32xf32>
    %598 = arith.cmpf ogt, %589, %597 : vector<2x32xf32>
    %cst_193 = arith.constant 1.000000e+00 : f32
    %599 = vector.broadcast %cst_193 : f32 to vector<2x32xf32>
    %600 = arith.subf %596, %599 : vector<2x32xf32>
    %601 = arith.select %598, %600, %596 : vector<2x32xi1>, vector<2x32xf32>
    %cst_194 = arith.constant 1.000000e+00 : f32
    %602 = vector.broadcast %cst_194 : f32 to vector<2x32xf32>
    %603 = arith.cmpf ogt, %601, %602 : vector<2x32xf32>
    %604 = arith.extui %603 : vector<2x32xi1> to vector<2x32xi32>
    %605 = arith.sitofp %604 : vector<2x32xi32> to vector<2x32xf32>
    %606 = tpu.concatenate %569, %581, %593, %605 in 0 : vector<2x32xf32>, vector<2x32xf32>, vector<2x32xf32>, vector<2x32xf32> -> vector<8x32xf32>
    %cst_195 = arith.constant dense<0.000000e+00> : vector<8x8xf32>
    %607 = tpu.matmul %606, %10, %cst_195 {dimension_numbers = #tpu.dot_dimension_numbers<[1], [0], [0], [1], [0, 0, 1, 1], [], []>} : vector<8x32xf32>, vector<32x8xf32>, vector<8x8xf32> -> vector<8x8xf32>
    %608 = vector.broadcast %13 : vector<1x8xf32> to vector<8x8xf32>
    %609 = arith.addf %607, %608 : vector<8x8xf32>
    %610 = vector.extract_strided_slice %609 {offsets = [0, 0], sizes = [2, 8], strides = [1, 1]} : vector<8x8xf32> to vector<2x8xf32>
    %cst_196 = arith.constant 0.949999988 : f32
    %611 = vector.broadcast %cst_196 : f32 to vector<2x8xf32>
    %612 = arith.mulf %611, %552 : vector<2x8xf32>
    %613 = arith.addf %612, %610 : vector<2x8xf32>
    %cst_197 = arith.constant 1.000000e+00 : f32
    %614 = vector.broadcast %cst_197 : f32 to vector<2x8xf32>
    %615 = arith.cmpf ogt, %552, %614 : vector<2x8xf32>
    %cst_198 = arith.constant 1.000000e+00 : f32
    %616 = vector.broadcast %cst_198 : f32 to vector<2x8xf32>
    %617 = arith.subf %613, %616 : vector<2x8xf32>
    %618 = arith.select %615, %617, %613 : vector<2x8xi1>, vector<2x8xf32>
    %cst_199 = arith.constant 1.000000e+00 : f32
    %619 = vector.broadcast %cst_199 : f32 to vector<2x8xf32>
    %620 = arith.cmpf ogt, %618, %619 : vector<2x8xf32>
    %621 = arith.extui %620 : vector<2x8xi1> to vector<2x8xi32>
    %622 = arith.sitofp %621 : vector<2x8xi32> to vector<2x8xf32>
    %623 = arith.addf %557, %622 : vector<2x8xf32>
    %624 = vector.extract_strided_slice %609 {offsets = [2, 0], sizes = [2, 8], strides = [1, 1]} : vector<8x8xf32> to vector<2x8xf32>
    %cst_200 = arith.constant 0.949999988 : f32
    %625 = vector.broadcast %cst_200 : f32 to vector<2x8xf32>
    %626 = arith.mulf %625, %618 : vector<2x8xf32>
    %627 = arith.addf %626, %624 : vector<2x8xf32>
    %cst_201 = arith.constant 1.000000e+00 : f32
    %628 = vector.broadcast %cst_201 : f32 to vector<2x8xf32>
    %629 = arith.cmpf ogt, %618, %628 : vector<2x8xf32>
    %cst_202 = arith.constant 1.000000e+00 : f32
    %630 = vector.broadcast %cst_202 : f32 to vector<2x8xf32>
    %631 = arith.subf %627, %630 : vector<2x8xf32>
    %632 = arith.select %629, %631, %627 : vector<2x8xi1>, vector<2x8xf32>
    %cst_203 = arith.constant 1.000000e+00 : f32
    %633 = vector.broadcast %cst_203 : f32 to vector<2x8xf32>
    %634 = arith.cmpf ogt, %632, %633 : vector<2x8xf32>
    %635 = arith.extui %634 : vector<2x8xi1> to vector<2x8xi32>
    %636 = arith.sitofp %635 : vector<2x8xi32> to vector<2x8xf32>
    %637 = arith.addf %623, %636 : vector<2x8xf32>
    %638 = vector.extract_strided_slice %609 {offsets = [4, 0], sizes = [2, 8], strides = [1, 1]} : vector<8x8xf32> to vector<2x8xf32>
    %cst_204 = arith.constant 0.949999988 : f32
    %639 = vector.broadcast %cst_204 : f32 to vector<2x8xf32>
    %640 = arith.mulf %639, %632 : vector<2x8xf32>
    %641 = arith.addf %640, %638 : vector<2x8xf32>
    %cst_205 = arith.constant 1.000000e+00 : f32
    %642 = vector.broadcast %cst_205 : f32 to vector<2x8xf32>
    %643 = arith.cmpf ogt, %632, %642 : vector<2x8xf32>
    %cst_206 = arith.constant 1.000000e+00 : f32
    %644 = vector.broadcast %cst_206 : f32 to vector<2x8xf32>
    %645 = arith.subf %641, %644 : vector<2x8xf32>
    %646 = arith.select %643, %645, %641 : vector<2x8xi1>, vector<2x8xf32>
    %cst_207 = arith.constant 1.000000e+00 : f32
    %647 = vector.broadcast %cst_207 : f32 to vector<2x8xf32>
    %648 = arith.cmpf ogt, %646, %647 : vector<2x8xf32>
    %649 = arith.extui %648 : vector<2x8xi1> to vector<2x8xi32>
    %650 = arith.sitofp %649 : vector<2x8xi32> to vector<2x8xf32>
    %651 = arith.addf %637, %650 : vector<2x8xf32>
    %652 = vector.extract_strided_slice %609 {offsets = [6, 0], sizes = [2, 8], strides = [1, 1]} : vector<8x8xf32> to vector<2x8xf32>
    %cst_208 = arith.constant 0.949999988 : f32
    %653 = vector.broadcast %cst_208 : f32 to vector<2x8xf32>
    %654 = arith.mulf %653, %646 : vector<2x8xf32>
    %655 = arith.addf %654, %652 : vector<2x8xf32>
    %cst_209 = arith.constant 1.000000e+00 : f32
    %656 = vector.broadcast %cst_209 : f32 to vector<2x8xf32>
    %657 = arith.cmpf ogt, %646, %656 : vector<2x8xf32>
    %cst_210 = arith.constant 1.000000e+00 : f32
    %658 = vector.broadcast %cst_210 : f32 to vector<2x8xf32>
    %659 = arith.subf %655, %658 : vector<2x8xf32>
    %660 = arith.select %657, %659, %655 : vector<2x8xi1>, vector<2x8xf32>
    %cst_211 = arith.constant 1.000000e+00 : f32
    %661 = vector.broadcast %cst_211 : f32 to vector<2x8xf32>
    %662 = arith.cmpf ogt, %660, %661 : vector<2x8xf32>
    %663 = arith.extui %662 : vector<2x8xi1> to vector<2x8xi32>
    %664 = arith.sitofp %663 : vector<2x8xi32> to vector<2x8xf32>
    %665 = arith.addf %651, %664 : vector<2x8xf32>
    %cst_212 = arith.constant 0.949999988 : f32
    %666 = vector.broadcast %cst_212 : f32 to vector<2x32xf32>
    %667 = arith.mulf %666, %601 : vector<2x32xf32>
    %668 = arith.addf %667, %6 : vector<2x32xf32>
    %cst_213 = arith.constant 1.000000e+00 : f32
    %669 = vector.broadcast %cst_213 : f32 to vector<2x32xf32>
    %670 = arith.cmpf ogt, %601, %669 : vector<2x32xf32>
    %cst_214 = arith.constant 1.000000e+00 : f32
    %671 = vector.broadcast %cst_214 : f32 to vector<2x32xf32>
    %672 = arith.subf %668, %671 : vector<2x32xf32>
    %673 = arith.select %670, %672, %668 : vector<2x32xi1>, vector<2x32xf32>
    %cst_215 = arith.constant 1.000000e+00 : f32
    %674 = vector.broadcast %cst_215 : f32 to vector<2x32xf32>
    %675 = arith.cmpf ogt, %673, %674 : vector<2x32xf32>
    %676 = arith.extui %675 : vector<2x32xi1> to vector<2x32xi32>
    %677 = arith.sitofp %676 : vector<2x32xi32> to vector<2x32xf32>
    %cst_216 = arith.constant 0.949999988 : f32
    %678 = vector.broadcast %cst_216 : f32 to vector<2x32xf32>
    %679 = arith.mulf %678, %673 : vector<2x32xf32>
    %680 = arith.addf %679, %6 : vector<2x32xf32>
    %cst_217 = arith.constant 1.000000e+00 : f32
    %681 = vector.broadcast %cst_217 : f32 to vector<2x32xf32>
    %682 = arith.cmpf ogt, %673, %681 : vector<2x32xf32>
    %cst_218 = arith.constant 1.000000e+00 : f32
    %683 = vector.broadcast %cst_218 : f32 to vector<2x32xf32>
    %684 = arith.subf %680, %683 : vector<2x32xf32>
    %685 = arith.select %682, %684, %680 : vector<2x32xi1>, vector<2x32xf32>
    %cst_219 = arith.constant 1.000000e+00 : f32
    %686 = vector.broadcast %cst_219 : f32 to vector<2x32xf32>
    %687 = arith.cmpf ogt, %685, %686 : vector<2x32xf32>
    %688 = arith.extui %687 : vector<2x32xi1> to vector<2x32xi32>
    %689 = arith.sitofp %688 : vector<2x32xi32> to vector<2x32xf32>
    %cst_220 = arith.constant 0.949999988 : f32
    %690 = vector.broadcast %cst_220 : f32 to vector<2x32xf32>
    %691 = arith.mulf %690, %685 : vector<2x32xf32>
    %692 = arith.addf %691, %6 : vector<2x32xf32>
    %cst_221 = arith.constant 1.000000e+00 : f32
    %693 = vector.broadcast %cst_221 : f32 to vector<2x32xf32>
    %694 = arith.cmpf ogt, %685, %693 : vector<2x32xf32>
    %cst_222 = arith.constant 1.000000e+00 : f32
    %695 = vector.broadcast %cst_222 : f32 to vector<2x32xf32>
    %696 = arith.subf %692, %695 : vector<2x32xf32>
    %697 = arith.select %694, %696, %692 : vector<2x32xi1>, vector<2x32xf32>
    %cst_223 = arith.constant 1.000000e+00 : f32
    %698 = vector.broadcast %cst_223 : f32 to vector<2x32xf32>
    %699 = arith.cmpf ogt, %697, %698 : vector<2x32xf32>
    %700 = arith.extui %699 : vector<2x32xi1> to vector<2x32xi32>
    %701 = arith.sitofp %700 : vector<2x32xi32> to vector<2x32xf32>
    %cst_224 = arith.constant 0.949999988 : f32
    %702 = vector.broadcast %cst_224 : f32 to vector<2x32xf32>
    %703 = arith.mulf %702, %697 : vector<2x32xf32>
    %704 = arith.addf %703, %6 : vector<2x32xf32>
    %cst_225 = arith.constant 1.000000e+00 : f32
    %705 = vector.broadcast %cst_225 : f32 to vector<2x32xf32>
    %706 = arith.cmpf ogt, %697, %705 : vector<2x32xf32>
    %cst_226 = arith.constant 1.000000e+00 : f32
    %707 = vector.broadcast %cst_226 : f32 to vector<2x32xf32>
    %708 = arith.subf %704, %707 : vector<2x32xf32>
    %709 = arith.select %706, %708, %704 : vector<2x32xi1>, vector<2x32xf32>
    %cst_227 = arith.constant 1.000000e+00 : f32
    %710 = vector.broadcast %cst_227 : f32 to vector<2x32xf32>
    %711 = arith.cmpf ogt, %709, %710 : vector<2x32xf32>
    %712 = arith.extui %711 : vector<2x32xi1> to vector<2x32xi32>
    %713 = arith.sitofp %712 : vector<2x32xi32> to vector<2x32xf32>
    %714 = tpu.concatenate %677, %689, %701, %713 in 0 : vector<2x32xf32>, vector<2x32xf32>, vector<2x32xf32>, vector<2x32xf32> -> vector<8x32xf32>
    %cst_228 = arith.constant dense<0.000000e+00> : vector<8x8xf32>
    %715 = tpu.matmul %714, %10, %cst_228 {dimension_numbers = #tpu.dot_dimension_numbers<[1], [0], [0], [1], [0, 0, 1, 1], [], []>} : vector<8x32xf32>, vector<32x8xf32>, vector<8x8xf32> -> vector<8x8xf32>
    %716 = vector.broadcast %13 : vector<1x8xf32> to vector<8x8xf32>
    %717 = arith.addf %715, %716 : vector<8x8xf32>
    %718 = vector.extract_strided_slice %717 {offsets = [0, 0], sizes = [2, 8], strides = [1, 1]} : vector<8x8xf32> to vector<2x8xf32>
    %cst_229 = arith.constant 0.949999988 : f32
    %719 = vector.broadcast %cst_229 : f32 to vector<2x8xf32>
    %720 = arith.mulf %719, %660 : vector<2x8xf32>
    %721 = arith.addf %720, %718 : vector<2x8xf32>
    %cst_230 = arith.constant 1.000000e+00 : f32
    %722 = vector.broadcast %cst_230 : f32 to vector<2x8xf32>
    %723 = arith.cmpf ogt, %660, %722 : vector<2x8xf32>
    %cst_231 = arith.constant 1.000000e+00 : f32
    %724 = vector.broadcast %cst_231 : f32 to vector<2x8xf32>
    %725 = arith.subf %721, %724 : vector<2x8xf32>
    %726 = arith.select %723, %725, %721 : vector<2x8xi1>, vector<2x8xf32>
    %cst_232 = arith.constant 1.000000e+00 : f32
    %727 = vector.broadcast %cst_232 : f32 to vector<2x8xf32>
    %728 = arith.cmpf ogt, %726, %727 : vector<2x8xf32>
    %729 = arith.extui %728 : vector<2x8xi1> to vector<2x8xi32>
    %730 = arith.sitofp %729 : vector<2x8xi32> to vector<2x8xf32>
    %731 = arith.addf %665, %730 : vector<2x8xf32>
    %732 = vector.extract_strided_slice %717 {offsets = [2, 0], sizes = [2, 8], strides = [1, 1]} : vector<8x8xf32> to vector<2x8xf32>
    %cst_233 = arith.constant 0.949999988 : f32
    %733 = vector.broadcast %cst_233 : f32 to vector<2x8xf32>
    %734 = arith.mulf %733, %726 : vector<2x8xf32>
    %735 = arith.addf %734, %732 : vector<2x8xf32>
    %cst_234 = arith.constant 1.000000e+00 : f32
    %736 = vector.broadcast %cst_234 : f32 to vector<2x8xf32>
    %737 = arith.cmpf ogt, %726, %736 : vector<2x8xf32>
    %cst_235 = arith.constant 1.000000e+00 : f32
    %738 = vector.broadcast %cst_235 : f32 to vector<2x8xf32>
    %739 = arith.subf %735, %738 : vector<2x8xf32>
    %740 = arith.select %737, %739, %735 : vector<2x8xi1>, vector<2x8xf32>
    %cst_236 = arith.constant 1.000000e+00 : f32
    %741 = vector.broadcast %cst_236 : f32 to vector<2x8xf32>
    %742 = arith.cmpf ogt, %740, %741 : vector<2x8xf32>
    %743 = arith.extui %742 : vector<2x8xi1> to vector<2x8xi32>
    %744 = arith.sitofp %743 : vector<2x8xi32> to vector<2x8xf32>
    %745 = arith.addf %731, %744 : vector<2x8xf32>
    %746 = vector.extract_strided_slice %717 {offsets = [4, 0], sizes = [2, 8], strides = [1, 1]} : vector<8x8xf32> to vector<2x8xf32>
    %cst_237 = arith.constant 0.949999988 : f32
    %747 = vector.broadcast %cst_237 : f32 to vector<2x8xf32>
    %748 = arith.mulf %747, %740 : vector<2x8xf32>
    %749 = arith.addf %748, %746 : vector<2x8xf32>
    %cst_238 = arith.constant 1.000000e+00 : f32
    %750 = vector.broadcast %cst_238 : f32 to vector<2x8xf32>
    %751 = arith.cmpf ogt, %740, %750 : vector<2x8xf32>
    %cst_239 = arith.constant 1.000000e+00 : f32
    %752 = vector.broadcast %cst_239 : f32 to vector<2x8xf32>
    %753 = arith.subf %749, %752 : vector<2x8xf32>
    %754 = arith.select %751, %753, %749 : vector<2x8xi1>, vector<2x8xf32>
    %cst_240 = arith.constant 1.000000e+00 : f32
    %755 = vector.broadcast %cst_240 : f32 to vector<2x8xf32>
    %756 = arith.cmpf ogt, %754, %755 : vector<2x8xf32>
    %757 = arith.extui %756 : vector<2x8xi1> to vector<2x8xi32>
    %758 = arith.sitofp %757 : vector<2x8xi32> to vector<2x8xf32>
    %759 = arith.addf %745, %758 : vector<2x8xf32>
    %760 = vector.extract_strided_slice %717 {offsets = [6, 0], sizes = [2, 8], strides = [1, 1]} : vector<8x8xf32> to vector<2x8xf32>
    %cst_241 = arith.constant 0.949999988 : f32
    %761 = vector.broadcast %cst_241 : f32 to vector<2x8xf32>
    %762 = arith.mulf %761, %754 : vector<2x8xf32>
    %763 = arith.addf %762, %760 : vector<2x8xf32>
    %cst_242 = arith.constant 1.000000e+00 : f32
    %764 = vector.broadcast %cst_242 : f32 to vector<2x8xf32>
    %765 = arith.cmpf ogt, %754, %764 : vector<2x8xf32>
    %cst_243 = arith.constant 1.000000e+00 : f32
    %766 = vector.broadcast %cst_243 : f32 to vector<2x8xf32>
    %767 = arith.subf %763, %766 : vector<2x8xf32>
    %768 = arith.select %765, %767, %763 : vector<2x8xi1>, vector<2x8xf32>
    %cst_244 = arith.constant 1.000000e+00 : f32
    %769 = vector.broadcast %cst_244 : f32 to vector<2x8xf32>
    %770 = arith.cmpf ogt, %768, %769 : vector<2x8xf32>
    %771 = arith.extui %770 : vector<2x8xi1> to vector<2x8xi32>
    %772 = arith.sitofp %771 : vector<2x8xi32> to vector<2x8xf32>
    %773 = arith.addf %759, %772 : vector<2x8xf32>
    %cst_245 = arith.constant 0.949999988 : f32
    %774 = vector.broadcast %cst_245 : f32 to vector<2x32xf32>
    %775 = arith.mulf %774, %709 : vector<2x32xf32>
    %776 = arith.addf %775, %6 : vector<2x32xf32>
    %cst_246 = arith.constant 1.000000e+00 : f32
    %777 = vector.broadcast %cst_246 : f32 to vector<2x32xf32>
    %778 = arith.cmpf ogt, %709, %777 : vector<2x32xf32>
    %cst_247 = arith.constant 1.000000e+00 : f32
    %779 = vector.broadcast %cst_247 : f32 to vector<2x32xf32>
    %780 = arith.subf %776, %779 : vector<2x32xf32>
    %781 = arith.select %778, %780, %776 : vector<2x32xi1>, vector<2x32xf32>
    %cst_248 = arith.constant 1.000000e+00 : f32
    %782 = vector.broadcast %cst_248 : f32 to vector<2x32xf32>
    %783 = arith.cmpf ogt, %781, %782 : vector<2x32xf32>
    %784 = arith.extui %783 : vector<2x32xi1> to vector<2x32xi32>
    %785 = arith.sitofp %784 : vector<2x32xi32> to vector<2x32xf32>
    %cst_249 = arith.constant 0.949999988 : f32
    %786 = vector.broadcast %cst_249 : f32 to vector<2x32xf32>
    %787 = arith.mulf %786, %781 : vector<2x32xf32>
    %788 = arith.addf %787, %6 : vector<2x32xf32>
    %cst_250 = arith.constant 1.000000e+00 : f32
    %789 = vector.broadcast %cst_250 : f32 to vector<2x32xf32>
    %790 = arith.cmpf ogt, %781, %789 : vector<2x32xf32>
    %cst_251 = arith.constant 1.000000e+00 : f32
    %791 = vector.broadcast %cst_251 : f32 to vector<2x32xf32>
    %792 = arith.subf %788, %791 : vector<2x32xf32>
    %793 = arith.select %790, %792, %788 : vector<2x32xi1>, vector<2x32xf32>
    %cst_252 = arith.constant 1.000000e+00 : f32
    %794 = vector.broadcast %cst_252 : f32 to vector<2x32xf32>
    %795 = arith.cmpf ogt, %793, %794 : vector<2x32xf32>
    %796 = arith.extui %795 : vector<2x32xi1> to vector<2x32xi32>
    %797 = arith.sitofp %796 : vector<2x32xi32> to vector<2x32xf32>
    %cst_253 = arith.constant 0.949999988 : f32
    %798 = vector.broadcast %cst_253 : f32 to vector<2x32xf32>
    %799 = arith.mulf %798, %793 : vector<2x32xf32>
    %800 = arith.addf %799, %6 : vector<2x32xf32>
    %cst_254 = arith.constant 1.000000e+00 : f32
    %801 = vector.broadcast %cst_254 : f32 to vector<2x32xf32>
    %802 = arith.cmpf ogt, %793, %801 : vector<2x32xf32>
    %cst_255 = arith.constant 1.000000e+00 : f32
    %803 = vector.broadcast %cst_255 : f32 to vector<2x32xf32>
    %804 = arith.subf %800, %803 : vector<2x32xf32>
    %805 = arith.select %802, %804, %800 : vector<2x32xi1>, vector<2x32xf32>
    %cst_256 = arith.constant 1.000000e+00 : f32
    %806 = vector.broadcast %cst_256 : f32 to vector<2x32xf32>
    %807 = arith.cmpf ogt, %805, %806 : vector<2x32xf32>
    %808 = arith.extui %807 : vector<2x32xi1> to vector<2x32xi32>
    %809 = arith.sitofp %808 : vector<2x32xi32> to vector<2x32xf32>
    %cst_257 = arith.constant 0.949999988 : f32
    %810 = vector.broadcast %cst_257 : f32 to vector<2x32xf32>
    %811 = arith.mulf %810, %805 : vector<2x32xf32>
    %812 = arith.addf %811, %6 : vector<2x32xf32>
    %cst_258 = arith.constant 1.000000e+00 : f32
    %813 = vector.broadcast %cst_258 : f32 to vector<2x32xf32>
    %814 = arith.cmpf ogt, %805, %813 : vector<2x32xf32>
    %cst_259 = arith.constant 1.000000e+00 : f32
    %815 = vector.broadcast %cst_259 : f32 to vector<2x32xf32>
    %816 = arith.subf %812, %815 : vector<2x32xf32>
    %817 = arith.select %814, %816, %812 : vector<2x32xi1>, vector<2x32xf32>
    %cst_260 = arith.constant 1.000000e+00 : f32
    %818 = vector.broadcast %cst_260 : f32 to vector<2x32xf32>
    %819 = arith.cmpf ogt, %817, %818 : vector<2x32xf32>
    %820 = arith.extui %819 : vector<2x32xi1> to vector<2x32xi32>
    %821 = arith.sitofp %820 : vector<2x32xi32> to vector<2x32xf32>
    %822 = tpu.concatenate %785, %797, %809, %821 in 0 : vector<2x32xf32>, vector<2x32xf32>, vector<2x32xf32>, vector<2x32xf32> -> vector<8x32xf32>
    %cst_261 = arith.constant dense<0.000000e+00> : vector<8x8xf32>
    %823 = tpu.matmul %822, %10, %cst_261 {dimension_numbers = #tpu.dot_dimension_numbers<[1], [0], [0], [1], [0, 0, 1, 1], [], []>} : vector<8x32xf32>, vector<32x8xf32>, vector<8x8xf32> -> vector<8x8xf32>
    %824 = vector.broadcast %13 : vector<1x8xf32> to vector<8x8xf32>
    %825 = arith.addf %823, %824 : vector<8x8xf32>
    %826 = vector.extract_strided_slice %825 {offsets = [0, 0], sizes = [2, 8], strides = [1, 1]} : vector<8x8xf32> to vector<2x8xf32>
    %cst_262 = arith.constant 0.949999988 : f32
    %827 = vector.broadcast %cst_262 : f32 to vector<2x8xf32>
    %828 = arith.mulf %827, %768 : vector<2x8xf32>
    %829 = arith.addf %828, %826 : vector<2x8xf32>
    %cst_263 = arith.constant 1.000000e+00 : f32
    %830 = vector.broadcast %cst_263 : f32 to vector<2x8xf32>
    %831 = arith.cmpf ogt, %768, %830 : vector<2x8xf32>
    %cst_264 = arith.constant 1.000000e+00 : f32
    %832 = vector.broadcast %cst_264 : f32 to vector<2x8xf32>
    %833 = arith.subf %829, %832 : vector<2x8xf32>
    %834 = arith.select %831, %833, %829 : vector<2x8xi1>, vector<2x8xf32>
    %cst_265 = arith.constant 1.000000e+00 : f32
    %835 = vector.broadcast %cst_265 : f32 to vector<2x8xf32>
    %836 = arith.cmpf ogt, %834, %835 : vector<2x8xf32>
    %837 = arith.extui %836 : vector<2x8xi1> to vector<2x8xi32>
    %838 = arith.sitofp %837 : vector<2x8xi32> to vector<2x8xf32>
    %839 = arith.addf %773, %838 : vector<2x8xf32>
    %840 = vector.extract_strided_slice %825 {offsets = [2, 0], sizes = [2, 8], strides = [1, 1]} : vector<8x8xf32> to vector<2x8xf32>
    %cst_266 = arith.constant 0.949999988 : f32
    %841 = vector.broadcast %cst_266 : f32 to vector<2x8xf32>
    %842 = arith.mulf %841, %834 : vector<2x8xf32>
    %843 = arith.addf %842, %840 : vector<2x8xf32>
    %cst_267 = arith.constant 1.000000e+00 : f32
    %844 = vector.broadcast %cst_267 : f32 to vector<2x8xf32>
    %845 = arith.cmpf ogt, %834, %844 : vector<2x8xf32>
    %cst_268 = arith.constant 1.000000e+00 : f32
    %846 = vector.broadcast %cst_268 : f32 to vector<2x8xf32>
    %847 = arith.subf %843, %846 : vector<2x8xf32>
    %848 = arith.select %845, %847, %843 : vector<2x8xi1>, vector<2x8xf32>
    %cst_269 = arith.constant 1.000000e+00 : f32
    %849 = vector.broadcast %cst_269 : f32 to vector<2x8xf32>
    %850 = arith.cmpf ogt, %848, %849 : vector<2x8xf32>
    %851 = arith.extui %850 : vector<2x8xi1> to vector<2x8xi32>
    %852 = arith.sitofp %851 : vector<2x8xi32> to vector<2x8xf32>
    %853 = arith.addf %839, %852 : vector<2x8xf32>
    %854 = vector.extract_strided_slice %825 {offsets = [4, 0], sizes = [2, 8], strides = [1, 1]} : vector<8x8xf32> to vector<2x8xf32>
    %cst_270 = arith.constant 0.949999988 : f32
    %855 = vector.broadcast %cst_270 : f32 to vector<2x8xf32>
    %856 = arith.mulf %855, %848 : vector<2x8xf32>
    %857 = arith.addf %856, %854 : vector<2x8xf32>
    %cst_271 = arith.constant 1.000000e+00 : f32
    %858 = vector.broadcast %cst_271 : f32 to vector<2x8xf32>
    %859 = arith.cmpf ogt, %848, %858 : vector<2x8xf32>
    %cst_272 = arith.constant 1.000000e+00 : f32
    %860 = vector.broadcast %cst_272 : f32 to vector<2x8xf32>
    %861 = arith.subf %857, %860 : vector<2x8xf32>
    %862 = arith.select %859, %861, %857 : vector<2x8xi1>, vector<2x8xf32>
    %cst_273 = arith.constant 1.000000e+00 : f32
    %863 = vector.broadcast %cst_273 : f32 to vector<2x8xf32>
    %864 = arith.cmpf ogt, %862, %863 : vector<2x8xf32>
    %865 = arith.extui %864 : vector<2x8xi1> to vector<2x8xi32>
    %866 = arith.sitofp %865 : vector<2x8xi32> to vector<2x8xf32>
    %867 = arith.addf %853, %866 : vector<2x8xf32>
    %868 = vector.extract_strided_slice %825 {offsets = [6, 0], sizes = [2, 8], strides = [1, 1]} : vector<8x8xf32> to vector<2x8xf32>
    %cst_274 = arith.constant 0.949999988 : f32
    %869 = vector.broadcast %cst_274 : f32 to vector<2x8xf32>
    %870 = arith.mulf %869, %862 : vector<2x8xf32>
    %871 = arith.addf %870, %868 : vector<2x8xf32>
    %cst_275 = arith.constant 1.000000e+00 : f32
    %872 = vector.broadcast %cst_275 : f32 to vector<2x8xf32>
    %873 = arith.cmpf ogt, %862, %872 : vector<2x8xf32>
    %cst_276 = arith.constant 1.000000e+00 : f32
    %874 = vector.broadcast %cst_276 : f32 to vector<2x8xf32>
    %875 = arith.subf %871, %874 : vector<2x8xf32>
    %876 = arith.select %873, %875, %871 : vector<2x8xi1>, vector<2x8xf32>
    %cst_277 = arith.constant 1.000000e+00 : f32
    %877 = vector.broadcast %cst_277 : f32 to vector<2x8xf32>
    %878 = arith.cmpf ogt, %876, %877 : vector<2x8xf32>
    %879 = arith.extui %878 : vector<2x8xi1> to vector<2x8xi32>
    %880 = arith.sitofp %879 : vector<2x8xi32> to vector<2x8xf32>
    %881 = arith.addf %867, %880 : vector<2x8xf32>
    %cst_278 = arith.constant 0.949999988 : f32
    %882 = vector.broadcast %cst_278 : f32 to vector<2x32xf32>
    %883 = arith.mulf %882, %817 : vector<2x32xf32>
    %884 = arith.addf %883, %6 : vector<2x32xf32>
    %cst_279 = arith.constant 1.000000e+00 : f32
    %885 = vector.broadcast %cst_279 : f32 to vector<2x32xf32>
    %886 = arith.cmpf ogt, %817, %885 : vector<2x32xf32>
    %cst_280 = arith.constant 1.000000e+00 : f32
    %887 = vector.broadcast %cst_280 : f32 to vector<2x32xf32>
    %888 = arith.subf %884, %887 : vector<2x32xf32>
    %889 = arith.select %886, %888, %884 : vector<2x32xi1>, vector<2x32xf32>
    %cst_281 = arith.constant 1.000000e+00 : f32
    %890 = vector.broadcast %cst_281 : f32 to vector<2x32xf32>
    %891 = arith.cmpf ogt, %889, %890 : vector<2x32xf32>
    %892 = arith.extui %891 : vector<2x32xi1> to vector<2x32xi32>
    %893 = arith.sitofp %892 : vector<2x32xi32> to vector<2x32xf32>
    %cst_282 = arith.constant 0.949999988 : f32
    %894 = vector.broadcast %cst_282 : f32 to vector<2x32xf32>
    %895 = arith.mulf %894, %889 : vector<2x32xf32>
    %896 = arith.addf %895, %6 : vector<2x32xf32>
    %cst_283 = arith.constant 1.000000e+00 : f32
    %897 = vector.broadcast %cst_283 : f32 to vector<2x32xf32>
    %898 = arith.cmpf ogt, %889, %897 : vector<2x32xf32>
    %cst_284 = arith.constant 1.000000e+00 : f32
    %899 = vector.broadcast %cst_284 : f32 to vector<2x32xf32>
    %900 = arith.subf %896, %899 : vector<2x32xf32>
    %901 = arith.select %898, %900, %896 : vector<2x32xi1>, vector<2x32xf32>
    %cst_285 = arith.constant 1.000000e+00 : f32
    %902 = vector.broadcast %cst_285 : f32 to vector<2x32xf32>
    %903 = arith.cmpf ogt, %901, %902 : vector<2x32xf32>
    %904 = arith.extui %903 : vector<2x32xi1> to vector<2x32xi32>
    %905 = arith.sitofp %904 : vector<2x32xi32> to vector<2x32xf32>
    %cst_286 = arith.constant 0.949999988 : f32
    %906 = vector.broadcast %cst_286 : f32 to vector<2x32xf32>
    %907 = arith.mulf %906, %901 : vector<2x32xf32>
    %908 = arith.addf %907, %6 : vector<2x32xf32>
    %cst_287 = arith.constant 1.000000e+00 : f32
    %909 = vector.broadcast %cst_287 : f32 to vector<2x32xf32>
    %910 = arith.cmpf ogt, %901, %909 : vector<2x32xf32>
    %cst_288 = arith.constant 1.000000e+00 : f32
    %911 = vector.broadcast %cst_288 : f32 to vector<2x32xf32>
    %912 = arith.subf %908, %911 : vector<2x32xf32>
    %913 = arith.select %910, %912, %908 : vector<2x32xi1>, vector<2x32xf32>
    %cst_289 = arith.constant 1.000000e+00 : f32
    %914 = vector.broadcast %cst_289 : f32 to vector<2x32xf32>
    %915 = arith.cmpf ogt, %913, %914 : vector<2x32xf32>
    %916 = arith.extui %915 : vector<2x32xi1> to vector<2x32xi32>
    %917 = arith.sitofp %916 : vector<2x32xi32> to vector<2x32xf32>
    %cst_290 = arith.constant 0.949999988 : f32
    %918 = vector.broadcast %cst_290 : f32 to vector<2x32xf32>
    %919 = arith.mulf %918, %913 : vector<2x32xf32>
    %920 = arith.addf %919, %6 : vector<2x32xf32>
    %cst_291 = arith.constant 1.000000e+00 : f32
    %921 = vector.broadcast %cst_291 : f32 to vector<2x32xf32>
    %922 = arith.cmpf ogt, %913, %921 : vector<2x32xf32>
    %cst_292 = arith.constant 1.000000e+00 : f32
    %923 = vector.broadcast %cst_292 : f32 to vector<2x32xf32>
    %924 = arith.subf %920, %923 : vector<2x32xf32>
    %925 = arith.select %922, %924, %920 : vector<2x32xi1>, vector<2x32xf32>
    %cst_293 = arith.constant 1.000000e+00 : f32
    %926 = vector.broadcast %cst_293 : f32 to vector<2x32xf32>
    %927 = arith.cmpf ogt, %925, %926 : vector<2x32xf32>
    %928 = arith.extui %927 : vector<2x32xi1> to vector<2x32xi32>
    %929 = arith.sitofp %928 : vector<2x32xi32> to vector<2x32xf32>
    %930 = tpu.concatenate %893, %905, %917, %929 in 0 : vector<2x32xf32>, vector<2x32xf32>, vector<2x32xf32>, vector<2x32xf32> -> vector<8x32xf32>
    %cst_294 = arith.constant dense<0.000000e+00> : vector<8x8xf32>
    %931 = tpu.matmul %930, %10, %cst_294 {dimension_numbers = #tpu.dot_dimension_numbers<[1], [0], [0], [1], [0, 0, 1, 1], [], []>} : vector<8x32xf32>, vector<32x8xf32>, vector<8x8xf32> -> vector<8x8xf32>
    %932 = vector.broadcast %13 : vector<1x8xf32> to vector<8x8xf32>
    %933 = arith.addf %931, %932 : vector<8x8xf32>
    %934 = vector.extract_strided_slice %933 {offsets = [0, 0], sizes = [2, 8], strides = [1, 1]} : vector<8x8xf32> to vector<2x8xf32>
    %cst_295 = arith.constant 0.949999988 : f32
    %935 = vector.broadcast %cst_295 : f32 to vector<2x8xf32>
    %936 = arith.mulf %935, %876 : vector<2x8xf32>
    %937 = arith.addf %936, %934 : vector<2x8xf32>
    %cst_296 = arith.constant 1.000000e+00 : f32
    %938 = vector.broadcast %cst_296 : f32 to vector<2x8xf32>
    %939 = arith.cmpf ogt, %876, %938 : vector<2x8xf32>
    %cst_297 = arith.constant 1.000000e+00 : f32
    %940 = vector.broadcast %cst_297 : f32 to vector<2x8xf32>
    %941 = arith.subf %937, %940 : vector<2x8xf32>
    %942 = arith.select %939, %941, %937 : vector<2x8xi1>, vector<2x8xf32>
    %cst_298 = arith.constant 1.000000e+00 : f32
    %943 = vector.broadcast %cst_298 : f32 to vector<2x8xf32>
    %944 = arith.cmpf ogt, %942, %943 : vector<2x8xf32>
    %945 = arith.extui %944 : vector<2x8xi1> to vector<2x8xi32>
    %946 = arith.sitofp %945 : vector<2x8xi32> to vector<2x8xf32>
    %947 = arith.addf %881, %946 : vector<2x8xf32>
    %948 = vector.extract_strided_slice %933 {offsets = [2, 0], sizes = [2, 8], strides = [1, 1]} : vector<8x8xf32> to vector<2x8xf32>
    %cst_299 = arith.constant 0.949999988 : f32
    %949 = vector.broadcast %cst_299 : f32 to vector<2x8xf32>
    %950 = arith.mulf %949, %942 : vector<2x8xf32>
    %951 = arith.addf %950, %948 : vector<2x8xf32>
    %cst_300 = arith.constant 1.000000e+00 : f32
    %952 = vector.broadcast %cst_300 : f32 to vector<2x8xf32>
    %953 = arith.cmpf ogt, %942, %952 : vector<2x8xf32>
    %cst_301 = arith.constant 1.000000e+00 : f32
    %954 = vector.broadcast %cst_301 : f32 to vector<2x8xf32>
    %955 = arith.subf %951, %954 : vector<2x8xf32>
    %956 = arith.select %953, %955, %951 : vector<2x8xi1>, vector<2x8xf32>
    %cst_302 = arith.constant 1.000000e+00 : f32
    %957 = vector.broadcast %cst_302 : f32 to vector<2x8xf32>
    %958 = arith.cmpf ogt, %956, %957 : vector<2x8xf32>
    %959 = arith.extui %958 : vector<2x8xi1> to vector<2x8xi32>
    %960 = arith.sitofp %959 : vector<2x8xi32> to vector<2x8xf32>
    %961 = arith.addf %947, %960 : vector<2x8xf32>
    %962 = vector.extract_strided_slice %933 {offsets = [4, 0], sizes = [2, 8], strides = [1, 1]} : vector<8x8xf32> to vector<2x8xf32>
    %cst_303 = arith.constant 0.949999988 : f32
    %963 = vector.broadcast %cst_303 : f32 to vector<2x8xf32>
    %964 = arith.mulf %963, %956 : vector<2x8xf32>
    %965 = arith.addf %964, %962 : vector<2x8xf32>
    %cst_304 = arith.constant 1.000000e+00 : f32
    %966 = vector.broadcast %cst_304 : f32 to vector<2x8xf32>
    %967 = arith.cmpf ogt, %956, %966 : vector<2x8xf32>
    %cst_305 = arith.constant 1.000000e+00 : f32
    %968 = vector.broadcast %cst_305 : f32 to vector<2x8xf32>
    %969 = arith.subf %965, %968 : vector<2x8xf32>
    %970 = arith.select %967, %969, %965 : vector<2x8xi1>, vector<2x8xf32>
    %cst_306 = arith.constant 1.000000e+00 : f32
    %971 = vector.broadcast %cst_306 : f32 to vector<2x8xf32>
    %972 = arith.cmpf ogt, %970, %971 : vector<2x8xf32>
    %973 = arith.extui %972 : vector<2x8xi1> to vector<2x8xi32>
    %974 = arith.sitofp %973 : vector<2x8xi32> to vector<2x8xf32>
    %975 = arith.addf %961, %974 : vector<2x8xf32>
    %976 = vector.extract_strided_slice %933 {offsets = [6, 0], sizes = [2, 8], strides = [1, 1]} : vector<8x8xf32> to vector<2x8xf32>
    %cst_307 = arith.constant 0.949999988 : f32
    %977 = vector.broadcast %cst_307 : f32 to vector<2x8xf32>
    %978 = arith.mulf %977, %970 : vector<2x8xf32>
    %979 = arith.addf %978, %976 : vector<2x8xf32>
    %cst_308 = arith.constant 1.000000e+00 : f32
    %980 = vector.broadcast %cst_308 : f32 to vector<2x8xf32>
    %981 = arith.cmpf ogt, %970, %980 : vector<2x8xf32>
    %cst_309 = arith.constant 1.000000e+00 : f32
    %982 = vector.broadcast %cst_309 : f32 to vector<2x8xf32>
    %983 = arith.subf %979, %982 : vector<2x8xf32>
    %984 = arith.select %981, %983, %979 : vector<2x8xi1>, vector<2x8xf32>
    %cst_310 = arith.constant 1.000000e+00 : f32
    %985 = vector.broadcast %cst_310 : f32 to vector<2x8xf32>
    %986 = arith.cmpf ogt, %984, %985 : vector<2x8xf32>
    %987 = arith.extui %986 : vector<2x8xi1> to vector<2x8xi32>
    %988 = arith.sitofp %987 : vector<2x8xi32> to vector<2x8xf32>
    %989 = arith.addf %975, %988 : vector<2x8xf32>
    %cst_311 = arith.constant 0.949999988 : f32
    %990 = vector.broadcast %cst_311 : f32 to vector<2x32xf32>
    %991 = arith.mulf %990, %925 : vector<2x32xf32>
    %992 = arith.addf %991, %6 : vector<2x32xf32>
    %cst_312 = arith.constant 1.000000e+00 : f32
    %993 = vector.broadcast %cst_312 : f32 to vector<2x32xf32>
    %994 = arith.cmpf ogt, %925, %993 : vector<2x32xf32>
    %cst_313 = arith.constant 1.000000e+00 : f32
    %995 = vector.broadcast %cst_313 : f32 to vector<2x32xf32>
    %996 = arith.subf %992, %995 : vector<2x32xf32>
    %997 = arith.select %994, %996, %992 : vector<2x32xi1>, vector<2x32xf32>
    %cst_314 = arith.constant 1.000000e+00 : f32
    %998 = vector.broadcast %cst_314 : f32 to vector<2x32xf32>
    %999 = arith.cmpf ogt, %997, %998 : vector<2x32xf32>
    %1000 = arith.extui %999 : vector<2x32xi1> to vector<2x32xi32>
    %1001 = arith.sitofp %1000 : vector<2x32xi32> to vector<2x32xf32>
    %cst_315 = arith.constant 0.949999988 : f32
    %1002 = vector.broadcast %cst_315 : f32 to vector<2x32xf32>
    %1003 = arith.mulf %1002, %997 : vector<2x32xf32>
    %1004 = arith.addf %1003, %6 : vector<2x32xf32>
    %cst_316 = arith.constant 1.000000e+00 : f32
    %1005 = vector.broadcast %cst_316 : f32 to vector<2x32xf32>
    %1006 = arith.cmpf ogt, %997, %1005 : vector<2x32xf32>
    %cst_317 = arith.constant 1.000000e+00 : f32
    %1007 = vector.broadcast %cst_317 : f32 to vector<2x32xf32>
    %1008 = arith.subf %1004, %1007 : vector<2x32xf32>
    %1009 = arith.select %1006, %1008, %1004 : vector<2x32xi1>, vector<2x32xf32>
    %cst_318 = arith.constant 1.000000e+00 : f32
    %1010 = vector.broadcast %cst_318 : f32 to vector<2x32xf32>
    %1011 = arith.cmpf ogt, %1009, %1010 : vector<2x32xf32>
    %1012 = arith.extui %1011 : vector<2x32xi1> to vector<2x32xi32>
    %1013 = arith.sitofp %1012 : vector<2x32xi32> to vector<2x32xf32>
    %cst_319 = arith.constant 0.949999988 : f32
    %1014 = vector.broadcast %cst_319 : f32 to vector<2x32xf32>
    %1015 = arith.mulf %1014, %1009 : vector<2x32xf32>
    %1016 = arith.addf %1015, %6 : vector<2x32xf32>
    %cst_320 = arith.constant 1.000000e+00 : f32
    %1017 = vector.broadcast %cst_320 : f32 to vector<2x32xf32>
    %1018 = arith.cmpf ogt, %1009, %1017 : vector<2x32xf32>
    %cst_321 = arith.constant 1.000000e+00 : f32
    %1019 = vector.broadcast %cst_321 : f32 to vector<2x32xf32>
    %1020 = arith.subf %1016, %1019 : vector<2x32xf32>
    %1021 = arith.select %1018, %1020, %1016 : vector<2x32xi1>, vector<2x32xf32>
    %cst_322 = arith.constant 1.000000e+00 : f32
    %1022 = vector.broadcast %cst_322 : f32 to vector<2x32xf32>
    %1023 = arith.cmpf ogt, %1021, %1022 : vector<2x32xf32>
    %1024 = arith.extui %1023 : vector<2x32xi1> to vector<2x32xi32>
    %1025 = arith.sitofp %1024 : vector<2x32xi32> to vector<2x32xf32>
    %cst_323 = arith.constant 0.949999988 : f32
    %1026 = vector.broadcast %cst_323 : f32 to vector<2x32xf32>
    %1027 = arith.mulf %1026, %1021 : vector<2x32xf32>
    %1028 = arith.addf %1027, %6 : vector<2x32xf32>
    %cst_324 = arith.constant 1.000000e+00 : f32
    %1029 = vector.broadcast %cst_324 : f32 to vector<2x32xf32>
    %1030 = arith.cmpf ogt, %1021, %1029 : vector<2x32xf32>
    %cst_325 = arith.constant 1.000000e+00 : f32
    %1031 = vector.broadcast %cst_325 : f32 to vector<2x32xf32>
    %1032 = arith.subf %1028, %1031 : vector<2x32xf32>
    %1033 = arith.select %1030, %1032, %1028 : vector<2x32xi1>, vector<2x32xf32>
    %cst_326 = arith.constant 1.000000e+00 : f32
    %1034 = vector.broadcast %cst_326 : f32 to vector<2x32xf32>
    %1035 = arith.cmpf ogt, %1033, %1034 : vector<2x32xf32>
    %1036 = arith.extui %1035 : vector<2x32xi1> to vector<2x32xi32>
    %1037 = arith.sitofp %1036 : vector<2x32xi32> to vector<2x32xf32>
    %1038 = tpu.concatenate %1001, %1013, %1025, %1037 in 0 : vector<2x32xf32>, vector<2x32xf32>, vector<2x32xf32>, vector<2x32xf32> -> vector<8x32xf32>
    %cst_327 = arith.constant dense<0.000000e+00> : vector<8x8xf32>
    %1039 = tpu.matmul %1038, %10, %cst_327 {dimension_numbers = #tpu.dot_dimension_numbers<[1], [0], [0], [1], [0, 0, 1, 1], [], []>} : vector<8x32xf32>, vector<32x8xf32>, vector<8x8xf32> -> vector<8x8xf32>
    %1040 = vector.broadcast %13 : vector<1x8xf32> to vector<8x8xf32>
    %1041 = arith.addf %1039, %1040 : vector<8x8xf32>
    %1042 = vector.extract_strided_slice %1041 {offsets = [0, 0], sizes = [2, 8], strides = [1, 1]} : vector<8x8xf32> to vector<2x8xf32>
    %cst_328 = arith.constant 0.949999988 : f32
    %1043 = vector.broadcast %cst_328 : f32 to vector<2x8xf32>
    %1044 = arith.mulf %1043, %984 : vector<2x8xf32>
    %1045 = arith.addf %1044, %1042 : vector<2x8xf32>
    %cst_329 = arith.constant 1.000000e+00 : f32
    %1046 = vector.broadcast %cst_329 : f32 to vector<2x8xf32>
    %1047 = arith.cmpf ogt, %984, %1046 : vector<2x8xf32>
    %cst_330 = arith.constant 1.000000e+00 : f32
    %1048 = vector.broadcast %cst_330 : f32 to vector<2x8xf32>
    %1049 = arith.subf %1045, %1048 : vector<2x8xf32>
    %1050 = arith.select %1047, %1049, %1045 : vector<2x8xi1>, vector<2x8xf32>
    %cst_331 = arith.constant 1.000000e+00 : f32
    %1051 = vector.broadcast %cst_331 : f32 to vector<2x8xf32>
    %1052 = arith.cmpf ogt, %1050, %1051 : vector<2x8xf32>
    %1053 = arith.extui %1052 : vector<2x8xi1> to vector<2x8xi32>
    %1054 = arith.sitofp %1053 : vector<2x8xi32> to vector<2x8xf32>
    %1055 = arith.addf %989, %1054 : vector<2x8xf32>
    %1056 = vector.extract_strided_slice %1041 {offsets = [2, 0], sizes = [2, 8], strides = [1, 1]} : vector<8x8xf32> to vector<2x8xf32>
    %cst_332 = arith.constant 0.949999988 : f32
    %1057 = vector.broadcast %cst_332 : f32 to vector<2x8xf32>
    %1058 = arith.mulf %1057, %1050 : vector<2x8xf32>
    %1059 = arith.addf %1058, %1056 : vector<2x8xf32>
    %cst_333 = arith.constant 1.000000e+00 : f32
    %1060 = vector.broadcast %cst_333 : f32 to vector<2x8xf32>
    %1061 = arith.cmpf ogt, %1050, %1060 : vector<2x8xf32>
    %cst_334 = arith.constant 1.000000e+00 : f32
    %1062 = vector.broadcast %cst_334 : f32 to vector<2x8xf32>
    %1063 = arith.subf %1059, %1062 : vector<2x8xf32>
    %1064 = arith.select %1061, %1063, %1059 : vector<2x8xi1>, vector<2x8xf32>
    %cst_335 = arith.constant 1.000000e+00 : f32
    %1065 = vector.broadcast %cst_335 : f32 to vector<2x8xf32>
    %1066 = arith.cmpf ogt, %1064, %1065 : vector<2x8xf32>
    %1067 = arith.extui %1066 : vector<2x8xi1> to vector<2x8xi32>
    %1068 = arith.sitofp %1067 : vector<2x8xi32> to vector<2x8xf32>
    %1069 = arith.addf %1055, %1068 : vector<2x8xf32>
    %1070 = vector.extract_strided_slice %1041 {offsets = [4, 0], sizes = [2, 8], strides = [1, 1]} : vector<8x8xf32> to vector<2x8xf32>
    %cst_336 = arith.constant 0.949999988 : f32
    %1071 = vector.broadcast %cst_336 : f32 to vector<2x8xf32>
    %1072 = arith.mulf %1071, %1064 : vector<2x8xf32>
    %1073 = arith.addf %1072, %1070 : vector<2x8xf32>
    %cst_337 = arith.constant 1.000000e+00 : f32
    %1074 = vector.broadcast %cst_337 : f32 to vector<2x8xf32>
    %1075 = arith.cmpf ogt, %1064, %1074 : vector<2x8xf32>
    %cst_338 = arith.constant 1.000000e+00 : f32
    %1076 = vector.broadcast %cst_338 : f32 to vector<2x8xf32>
    %1077 = arith.subf %1073, %1076 : vector<2x8xf32>
    %1078 = arith.select %1075, %1077, %1073 : vector<2x8xi1>, vector<2x8xf32>
    %cst_339 = arith.constant 1.000000e+00 : f32
    %1079 = vector.broadcast %cst_339 : f32 to vector<2x8xf32>
    %1080 = arith.cmpf ogt, %1078, %1079 : vector<2x8xf32>
    %1081 = arith.extui %1080 : vector<2x8xi1> to vector<2x8xi32>
    %1082 = arith.sitofp %1081 : vector<2x8xi32> to vector<2x8xf32>
    %1083 = arith.addf %1069, %1082 : vector<2x8xf32>
    %1084 = vector.extract_strided_slice %1041 {offsets = [6, 0], sizes = [2, 8], strides = [1, 1]} : vector<8x8xf32> to vector<2x8xf32>
    %cst_340 = arith.constant 0.949999988 : f32
    %1085 = vector.broadcast %cst_340 : f32 to vector<2x8xf32>
    %1086 = arith.mulf %1085, %1078 : vector<2x8xf32>
    %1087 = arith.addf %1086, %1084 : vector<2x8xf32>
    %cst_341 = arith.constant 1.000000e+00 : f32
    %1088 = vector.broadcast %cst_341 : f32 to vector<2x8xf32>
    %1089 = arith.cmpf ogt, %1078, %1088 : vector<2x8xf32>
    %cst_342 = arith.constant 1.000000e+00 : f32
    %1090 = vector.broadcast %cst_342 : f32 to vector<2x8xf32>
    %1091 = arith.subf %1087, %1090 : vector<2x8xf32>
    %1092 = arith.select %1089, %1091, %1087 : vector<2x8xi1>, vector<2x8xf32>
    %cst_343 = arith.constant 1.000000e+00 : f32
    %1093 = vector.broadcast %cst_343 : f32 to vector<2x8xf32>
    %1094 = arith.cmpf ogt, %1092, %1093 : vector<2x8xf32>
    %1095 = arith.extui %1094 : vector<2x8xi1> to vector<2x8xi32>
    %1096 = arith.sitofp %1095 : vector<2x8xi32> to vector<2x8xf32>
    %1097 = arith.addf %1083, %1096 : vector<2x8xf32>
    %cst_344 = arith.constant 0.949999988 : f32
    %1098 = vector.broadcast %cst_344 : f32 to vector<2x32xf32>
    %1099 = arith.mulf %1098, %1033 : vector<2x32xf32>
    %1100 = arith.addf %1099, %6 : vector<2x32xf32>
    %cst_345 = arith.constant 1.000000e+00 : f32
    %1101 = vector.broadcast %cst_345 : f32 to vector<2x32xf32>
    %1102 = arith.cmpf ogt, %1033, %1101 : vector<2x32xf32>
    %cst_346 = arith.constant 1.000000e+00 : f32
    %1103 = vector.broadcast %cst_346 : f32 to vector<2x32xf32>
    %1104 = arith.subf %1100, %1103 : vector<2x32xf32>
    %1105 = arith.select %1102, %1104, %1100 : vector<2x32xi1>, vector<2x32xf32>
    %cst_347 = arith.constant 1.000000e+00 : f32
    %1106 = vector.broadcast %cst_347 : f32 to vector<2x32xf32>
    %1107 = arith.cmpf ogt, %1105, %1106 : vector<2x32xf32>
    %1108 = arith.extui %1107 : vector<2x32xi1> to vector<2x32xi32>
    %1109 = arith.sitofp %1108 : vector<2x32xi32> to vector<2x32xf32>
    %cst_348 = arith.constant 0.949999988 : f32
    %1110 = vector.broadcast %cst_348 : f32 to vector<2x32xf32>
    %1111 = arith.mulf %1110, %1105 : vector<2x32xf32>
    %1112 = arith.addf %1111, %6 : vector<2x32xf32>
    %cst_349 = arith.constant 1.000000e+00 : f32
    %1113 = vector.broadcast %cst_349 : f32 to vector<2x32xf32>
    %1114 = arith.cmpf ogt, %1105, %1113 : vector<2x32xf32>
    %cst_350 = arith.constant 1.000000e+00 : f32
    %1115 = vector.broadcast %cst_350 : f32 to vector<2x32xf32>
    %1116 = arith.subf %1112, %1115 : vector<2x32xf32>
    %1117 = arith.select %1114, %1116, %1112 : vector<2x32xi1>, vector<2x32xf32>
    %cst_351 = arith.constant 1.000000e+00 : f32
    %1118 = vector.broadcast %cst_351 : f32 to vector<2x32xf32>
    %1119 = arith.cmpf ogt, %1117, %1118 : vector<2x32xf32>
    %1120 = arith.extui %1119 : vector<2x32xi1> to vector<2x32xi32>
    %1121 = arith.sitofp %1120 : vector<2x32xi32> to vector<2x32xf32>
    %cst_352 = arith.constant 0.949999988 : f32
    %1122 = vector.broadcast %cst_352 : f32 to vector<2x32xf32>
    %1123 = arith.mulf %1122, %1117 : vector<2x32xf32>
    %1124 = arith.addf %1123, %6 : vector<2x32xf32>
    %cst_353 = arith.constant 1.000000e+00 : f32
    %1125 = vector.broadcast %cst_353 : f32 to vector<2x32xf32>
    %1126 = arith.cmpf ogt, %1117, %1125 : vector<2x32xf32>
    %cst_354 = arith.constant 1.000000e+00 : f32
    %1127 = vector.broadcast %cst_354 : f32 to vector<2x32xf32>
    %1128 = arith.subf %1124, %1127 : vector<2x32xf32>
    %1129 = arith.select %1126, %1128, %1124 : vector<2x32xi1>, vector<2x32xf32>
    %cst_355 = arith.constant 1.000000e+00 : f32
    %1130 = vector.broadcast %cst_355 : f32 to vector<2x32xf32>
    %1131 = arith.cmpf ogt, %1129, %1130 : vector<2x32xf32>
    %1132 = arith.extui %1131 : vector<2x32xi1> to vector<2x32xi32>
    %1133 = arith.sitofp %1132 : vector<2x32xi32> to vector<2x32xf32>
    %cst_356 = arith.constant 0.949999988 : f32
    %1134 = vector.broadcast %cst_356 : f32 to vector<2x32xf32>
    %1135 = arith.mulf %1134, %1129 : vector<2x32xf32>
    %1136 = arith.addf %1135, %6 : vector<2x32xf32>
    %cst_357 = arith.constant 1.000000e+00 : f32
    %1137 = vector.broadcast %cst_357 : f32 to vector<2x32xf32>
    %1138 = arith.cmpf ogt, %1129, %1137 : vector<2x32xf32>
    %cst_358 = arith.constant 1.000000e+00 : f32
    %1139 = vector.broadcast %cst_358 : f32 to vector<2x32xf32>
    %1140 = arith.subf %1136, %1139 : vector<2x32xf32>
    %1141 = arith.select %1138, %1140, %1136 : vector<2x32xi1>, vector<2x32xf32>
    %cst_359 = arith.constant 1.000000e+00 : f32
    %1142 = vector.broadcast %cst_359 : f32 to vector<2x32xf32>
    %1143 = arith.cmpf ogt, %1141, %1142 : vector<2x32xf32>
    %1144 = arith.extui %1143 : vector<2x32xi1> to vector<2x32xi32>
    %1145 = arith.sitofp %1144 : vector<2x32xi32> to vector<2x32xf32>
    %1146 = tpu.concatenate %1109, %1121, %1133, %1145 in 0 : vector<2x32xf32>, vector<2x32xf32>, vector<2x32xf32>, vector<2x32xf32> -> vector<8x32xf32>
    %cst_360 = arith.constant dense<0.000000e+00> : vector<8x8xf32>
    %1147 = tpu.matmul %1146, %10, %cst_360 {dimension_numbers = #tpu.dot_dimension_numbers<[1], [0], [0], [1], [0, 0, 1, 1], [], []>} : vector<8x32xf32>, vector<32x8xf32>, vector<8x8xf32> -> vector<8x8xf32>
    %1148 = vector.broadcast %13 : vector<1x8xf32> to vector<8x8xf32>
    %1149 = arith.addf %1147, %1148 : vector<8x8xf32>
    %1150 = vector.extract_strided_slice %1149 {offsets = [0, 0], sizes = [2, 8], strides = [1, 1]} : vector<8x8xf32> to vector<2x8xf32>
    %cst_361 = arith.constant 0.949999988 : f32
    %1151 = vector.broadcast %cst_361 : f32 to vector<2x8xf32>
    %1152 = arith.mulf %1151, %1092 : vector<2x8xf32>
    %1153 = arith.addf %1152, %1150 : vector<2x8xf32>
    %cst_362 = arith.constant 1.000000e+00 : f32
    %1154 = vector.broadcast %cst_362 : f32 to vector<2x8xf32>
    %1155 = arith.cmpf ogt, %1092, %1154 : vector<2x8xf32>
    %cst_363 = arith.constant 1.000000e+00 : f32
    %1156 = vector.broadcast %cst_363 : f32 to vector<2x8xf32>
    %1157 = arith.subf %1153, %1156 : vector<2x8xf32>
    %1158 = arith.select %1155, %1157, %1153 : vector<2x8xi1>, vector<2x8xf32>
    %cst_364 = arith.constant 1.000000e+00 : f32
    %1159 = vector.broadcast %cst_364 : f32 to vector<2x8xf32>
    %1160 = arith.cmpf ogt, %1158, %1159 : vector<2x8xf32>
    %1161 = arith.extui %1160 : vector<2x8xi1> to vector<2x8xi32>
    %1162 = arith.sitofp %1161 : vector<2x8xi32> to vector<2x8xf32>
    %1163 = arith.addf %1097, %1162 : vector<2x8xf32>
    %1164 = vector.extract_strided_slice %1149 {offsets = [2, 0], sizes = [2, 8], strides = [1, 1]} : vector<8x8xf32> to vector<2x8xf32>
    %cst_365 = arith.constant 0.949999988 : f32
    %1165 = vector.broadcast %cst_365 : f32 to vector<2x8xf32>
    %1166 = arith.mulf %1165, %1158 : vector<2x8xf32>
    %1167 = arith.addf %1166, %1164 : vector<2x8xf32>
    %cst_366 = arith.constant 1.000000e+00 : f32
    %1168 = vector.broadcast %cst_366 : f32 to vector<2x8xf32>
    %1169 = arith.cmpf ogt, %1158, %1168 : vector<2x8xf32>
    %cst_367 = arith.constant 1.000000e+00 : f32
    %1170 = vector.broadcast %cst_367 : f32 to vector<2x8xf32>
    %1171 = arith.subf %1167, %1170 : vector<2x8xf32>
    %1172 = arith.select %1169, %1171, %1167 : vector<2x8xi1>, vector<2x8xf32>
    %cst_368 = arith.constant 1.000000e+00 : f32
    %1173 = vector.broadcast %cst_368 : f32 to vector<2x8xf32>
    %1174 = arith.cmpf ogt, %1172, %1173 : vector<2x8xf32>
    %1175 = arith.extui %1174 : vector<2x8xi1> to vector<2x8xi32>
    %1176 = arith.sitofp %1175 : vector<2x8xi32> to vector<2x8xf32>
    %1177 = arith.addf %1163, %1176 : vector<2x8xf32>
    %1178 = vector.extract_strided_slice %1149 {offsets = [4, 0], sizes = [2, 8], strides = [1, 1]} : vector<8x8xf32> to vector<2x8xf32>
    %cst_369 = arith.constant 0.949999988 : f32
    %1179 = vector.broadcast %cst_369 : f32 to vector<2x8xf32>
    %1180 = arith.mulf %1179, %1172 : vector<2x8xf32>
    %1181 = arith.addf %1180, %1178 : vector<2x8xf32>
    %cst_370 = arith.constant 1.000000e+00 : f32
    %1182 = vector.broadcast %cst_370 : f32 to vector<2x8xf32>
    %1183 = arith.cmpf ogt, %1172, %1182 : vector<2x8xf32>
    %cst_371 = arith.constant 1.000000e+00 : f32
    %1184 = vector.broadcast %cst_371 : f32 to vector<2x8xf32>
    %1185 = arith.subf %1181, %1184 : vector<2x8xf32>
    %1186 = arith.select %1183, %1185, %1181 : vector<2x8xi1>, vector<2x8xf32>
    %cst_372 = arith.constant 1.000000e+00 : f32
    %1187 = vector.broadcast %cst_372 : f32 to vector<2x8xf32>
    %1188 = arith.cmpf ogt, %1186, %1187 : vector<2x8xf32>
    %1189 = arith.extui %1188 : vector<2x8xi1> to vector<2x8xi32>
    %1190 = arith.sitofp %1189 : vector<2x8xi32> to vector<2x8xf32>
    %1191 = arith.addf %1177, %1190 : vector<2x8xf32>
    %1192 = vector.extract_strided_slice %1149 {offsets = [6, 0], sizes = [2, 8], strides = [1, 1]} : vector<8x8xf32> to vector<2x8xf32>
    %cst_373 = arith.constant 0.949999988 : f32
    %1193 = vector.broadcast %cst_373 : f32 to vector<2x8xf32>
    %1194 = arith.mulf %1193, %1186 : vector<2x8xf32>
    %1195 = arith.addf %1194, %1192 : vector<2x8xf32>
    %cst_374 = arith.constant 1.000000e+00 : f32
    %1196 = vector.broadcast %cst_374 : f32 to vector<2x8xf32>
    %1197 = arith.cmpf ogt, %1186, %1196 : vector<2x8xf32>
    %cst_375 = arith.constant 1.000000e+00 : f32
    %1198 = vector.broadcast %cst_375 : f32 to vector<2x8xf32>
    %1199 = arith.subf %1195, %1198 : vector<2x8xf32>
    %1200 = arith.select %1197, %1199, %1195 : vector<2x8xi1>, vector<2x8xf32>
    %cst_376 = arith.constant 1.000000e+00 : f32
    %1201 = vector.broadcast %cst_376 : f32 to vector<2x8xf32>
    %1202 = arith.cmpf ogt, %1200, %1201 : vector<2x8xf32>
    %1203 = arith.extui %1202 : vector<2x8xi1> to vector<2x8xi32>
    %1204 = arith.sitofp %1203 : vector<2x8xi32> to vector<2x8xf32>
    %1205 = arith.addf %1191, %1204 : vector<2x8xf32>
    %cst_377 = arith.constant 0.949999988 : f32
    %1206 = vector.broadcast %cst_377 : f32 to vector<2x32xf32>
    %1207 = arith.mulf %1206, %1141 : vector<2x32xf32>
    %1208 = arith.addf %1207, %6 : vector<2x32xf32>
    %cst_378 = arith.constant 1.000000e+00 : f32
    %1209 = vector.broadcast %cst_378 : f32 to vector<2x32xf32>
    %1210 = arith.cmpf ogt, %1141, %1209 : vector<2x32xf32>
    %cst_379 = arith.constant 1.000000e+00 : f32
    %1211 = vector.broadcast %cst_379 : f32 to vector<2x32xf32>
    %1212 = arith.subf %1208, %1211 : vector<2x32xf32>
    %1213 = arith.select %1210, %1212, %1208 : vector<2x32xi1>, vector<2x32xf32>
    %cst_380 = arith.constant 1.000000e+00 : f32
    %1214 = vector.broadcast %cst_380 : f32 to vector<2x32xf32>
    %1215 = arith.cmpf ogt, %1213, %1214 : vector<2x32xf32>
    %1216 = arith.extui %1215 : vector<2x32xi1> to vector<2x32xi32>
    %1217 = arith.sitofp %1216 : vector<2x32xi32> to vector<2x32xf32>
    %cst_381 = arith.constant 0.949999988 : f32
    %1218 = vector.broadcast %cst_381 : f32 to vector<2x32xf32>
    %1219 = arith.mulf %1218, %1213 : vector<2x32xf32>
    %1220 = arith.addf %1219, %6 : vector<2x32xf32>
    %cst_382 = arith.constant 1.000000e+00 : f32
    %1221 = vector.broadcast %cst_382 : f32 to vector<2x32xf32>
    %1222 = arith.cmpf ogt, %1213, %1221 : vector<2x32xf32>
    %cst_383 = arith.constant 1.000000e+00 : f32
    %1223 = vector.broadcast %cst_383 : f32 to vector<2x32xf32>
    %1224 = arith.subf %1220, %1223 : vector<2x32xf32>
    %1225 = arith.select %1222, %1224, %1220 : vector<2x32xi1>, vector<2x32xf32>
    %cst_384 = arith.constant 1.000000e+00 : f32
    %1226 = vector.broadcast %cst_384 : f32 to vector<2x32xf32>
    %1227 = arith.cmpf ogt, %1225, %1226 : vector<2x32xf32>
    %1228 = arith.extui %1227 : vector<2x32xi1> to vector<2x32xi32>
    %1229 = arith.sitofp %1228 : vector<2x32xi32> to vector<2x32xf32>
    %cst_385 = arith.constant 0.949999988 : f32
    %1230 = vector.broadcast %cst_385 : f32 to vector<2x32xf32>
    %1231 = arith.mulf %1230, %1225 : vector<2x32xf32>
    %1232 = arith.addf %1231, %6 : vector<2x32xf32>
    %cst_386 = arith.constant 1.000000e+00 : f32
    %1233 = vector.broadcast %cst_386 : f32 to vector<2x32xf32>
    %1234 = arith.cmpf ogt, %1225, %1233 : vector<2x32xf32>
    %cst_387 = arith.constant 1.000000e+00 : f32
    %1235 = vector.broadcast %cst_387 : f32 to vector<2x32xf32>
    %1236 = arith.subf %1232, %1235 : vector<2x32xf32>
    %1237 = arith.select %1234, %1236, %1232 : vector<2x32xi1>, vector<2x32xf32>
    %cst_388 = arith.constant 1.000000e+00 : f32
    %1238 = vector.broadcast %cst_388 : f32 to vector<2x32xf32>
    %1239 = arith.cmpf ogt, %1237, %1238 : vector<2x32xf32>
    %1240 = arith.extui %1239 : vector<2x32xi1> to vector<2x32xi32>
    %1241 = arith.sitofp %1240 : vector<2x32xi32> to vector<2x32xf32>
    %cst_389 = arith.constant 0.949999988 : f32
    %1242 = vector.broadcast %cst_389 : f32 to vector<2x32xf32>
    %1243 = arith.mulf %1242, %1237 : vector<2x32xf32>
    %1244 = arith.addf %1243, %6 : vector<2x32xf32>
    %cst_390 = arith.constant 1.000000e+00 : f32
    %1245 = vector.broadcast %cst_390 : f32 to vector<2x32xf32>
    %1246 = arith.cmpf ogt, %1237, %1245 : vector<2x32xf32>
    %cst_391 = arith.constant 1.000000e+00 : f32
    %1247 = vector.broadcast %cst_391 : f32 to vector<2x32xf32>
    %1248 = arith.subf %1244, %1247 : vector<2x32xf32>
    %1249 = arith.select %1246, %1248, %1244 : vector<2x32xi1>, vector<2x32xf32>
    %cst_392 = arith.constant 1.000000e+00 : f32
    %1250 = vector.broadcast %cst_392 : f32 to vector<2x32xf32>
    %1251 = arith.cmpf ogt, %1249, %1250 : vector<2x32xf32>
    %1252 = arith.extui %1251 : vector<2x32xi1> to vector<2x32xi32>
    %1253 = arith.sitofp %1252 : vector<2x32xi32> to vector<2x32xf32>
    %1254 = tpu.concatenate %1217, %1229, %1241, %1253 in 0 : vector<2x32xf32>, vector<2x32xf32>, vector<2x32xf32>, vector<2x32xf32> -> vector<8x32xf32>
    %cst_393 = arith.constant dense<0.000000e+00> : vector<8x8xf32>
    %1255 = tpu.matmul %1254, %10, %cst_393 {dimension_numbers = #tpu.dot_dimension_numbers<[1], [0], [0], [1], [0, 0, 1, 1], [], []>} : vector<8x32xf32>, vector<32x8xf32>, vector<8x8xf32> -> vector<8x8xf32>
    %1256 = vector.broadcast %13 : vector<1x8xf32> to vector<8x8xf32>
    %1257 = arith.addf %1255, %1256 : vector<8x8xf32>
    %1258 = vector.extract_strided_slice %1257 {offsets = [0, 0], sizes = [2, 8], strides = [1, 1]} : vector<8x8xf32> to vector<2x8xf32>
    %cst_394 = arith.constant 0.949999988 : f32
    %1259 = vector.broadcast %cst_394 : f32 to vector<2x8xf32>
    %1260 = arith.mulf %1259, %1200 : vector<2x8xf32>
    %1261 = arith.addf %1260, %1258 : vector<2x8xf32>
    %cst_395 = arith.constant 1.000000e+00 : f32
    %1262 = vector.broadcast %cst_395 : f32 to vector<2x8xf32>
    %1263 = arith.cmpf ogt, %1200, %1262 : vector<2x8xf32>
    %cst_396 = arith.constant 1.000000e+00 : f32
    %1264 = vector.broadcast %cst_396 : f32 to vector<2x8xf32>
    %1265 = arith.subf %1261, %1264 : vector<2x8xf32>
    %1266 = arith.select %1263, %1265, %1261 : vector<2x8xi1>, vector<2x8xf32>
    %cst_397 = arith.constant 1.000000e+00 : f32
    %1267 = vector.broadcast %cst_397 : f32 to vector<2x8xf32>
    %1268 = arith.cmpf ogt, %1266, %1267 : vector<2x8xf32>
    %1269 = arith.extui %1268 : vector<2x8xi1> to vector<2x8xi32>
    %1270 = arith.sitofp %1269 : vector<2x8xi32> to vector<2x8xf32>
    %1271 = arith.addf %1205, %1270 : vector<2x8xf32>
    %1272 = vector.extract_strided_slice %1257 {offsets = [2, 0], sizes = [2, 8], strides = [1, 1]} : vector<8x8xf32> to vector<2x8xf32>
    %cst_398 = arith.constant 0.949999988 : f32
    %1273 = vector.broadcast %cst_398 : f32 to vector<2x8xf32>
    %1274 = arith.mulf %1273, %1266 : vector<2x8xf32>
    %1275 = arith.addf %1274, %1272 : vector<2x8xf32>
    %cst_399 = arith.constant 1.000000e+00 : f32
    %1276 = vector.broadcast %cst_399 : f32 to vector<2x8xf32>
    %1277 = arith.cmpf ogt, %1266, %1276 : vector<2x8xf32>
    %cst_400 = arith.constant 1.000000e+00 : f32
    %1278 = vector.broadcast %cst_400 : f32 to vector<2x8xf32>
    %1279 = arith.subf %1275, %1278 : vector<2x8xf32>
    %1280 = arith.select %1277, %1279, %1275 : vector<2x8xi1>, vector<2x8xf32>
    %cst_401 = arith.constant 1.000000e+00 : f32
    %1281 = vector.broadcast %cst_401 : f32 to vector<2x8xf32>
    %1282 = arith.cmpf ogt, %1280, %1281 : vector<2x8xf32>
    %1283 = arith.extui %1282 : vector<2x8xi1> to vector<2x8xi32>
    %1284 = arith.sitofp %1283 : vector<2x8xi32> to vector<2x8xf32>
    %1285 = arith.addf %1271, %1284 : vector<2x8xf32>
    %1286 = vector.extract_strided_slice %1257 {offsets = [4, 0], sizes = [2, 8], strides = [1, 1]} : vector<8x8xf32> to vector<2x8xf32>
    %cst_402 = arith.constant 0.949999988 : f32
    %1287 = vector.broadcast %cst_402 : f32 to vector<2x8xf32>
    %1288 = arith.mulf %1287, %1280 : vector<2x8xf32>
    %1289 = arith.addf %1288, %1286 : vector<2x8xf32>
    %cst_403 = arith.constant 1.000000e+00 : f32
    %1290 = vector.broadcast %cst_403 : f32 to vector<2x8xf32>
    %1291 = arith.cmpf ogt, %1280, %1290 : vector<2x8xf32>
    %cst_404 = arith.constant 1.000000e+00 : f32
    %1292 = vector.broadcast %cst_404 : f32 to vector<2x8xf32>
    %1293 = arith.subf %1289, %1292 : vector<2x8xf32>
    %1294 = arith.select %1291, %1293, %1289 : vector<2x8xi1>, vector<2x8xf32>
    %cst_405 = arith.constant 1.000000e+00 : f32
    %1295 = vector.broadcast %cst_405 : f32 to vector<2x8xf32>
    %1296 = arith.cmpf ogt, %1294, %1295 : vector<2x8xf32>
    %1297 = arith.extui %1296 : vector<2x8xi1> to vector<2x8xi32>
    %1298 = arith.sitofp %1297 : vector<2x8xi32> to vector<2x8xf32>
    %1299 = arith.addf %1285, %1298 : vector<2x8xf32>
    %1300 = vector.extract_strided_slice %1257 {offsets = [6, 0], sizes = [2, 8], strides = [1, 1]} : vector<8x8xf32> to vector<2x8xf32>
    %cst_406 = arith.constant 0.949999988 : f32
    %1301 = vector.broadcast %cst_406 : f32 to vector<2x8xf32>
    %1302 = arith.mulf %1301, %1294 : vector<2x8xf32>
    %1303 = arith.addf %1302, %1300 : vector<2x8xf32>
    %cst_407 = arith.constant 1.000000e+00 : f32
    %1304 = vector.broadcast %cst_407 : f32 to vector<2x8xf32>
    %1305 = arith.cmpf ogt, %1294, %1304 : vector<2x8xf32>
    %cst_408 = arith.constant 1.000000e+00 : f32
    %1306 = vector.broadcast %cst_408 : f32 to vector<2x8xf32>
    %1307 = arith.subf %1303, %1306 : vector<2x8xf32>
    %1308 = arith.select %1305, %1307, %1303 : vector<2x8xi1>, vector<2x8xf32>
    %cst_409 = arith.constant 1.000000e+00 : f32
    %1309 = vector.broadcast %cst_409 : f32 to vector<2x8xf32>
    %1310 = arith.cmpf ogt, %1308, %1309 : vector<2x8xf32>
    %1311 = arith.extui %1310 : vector<2x8xi1> to vector<2x8xi32>
    %1312 = arith.sitofp %1311 : vector<2x8xi32> to vector<2x8xf32>
    %1313 = arith.addf %1299, %1312 : vector<2x8xf32>
    %cst_410 = arith.constant 0.949999988 : f32
    %1314 = vector.broadcast %cst_410 : f32 to vector<2x32xf32>
    %1315 = arith.mulf %1314, %1249 : vector<2x32xf32>
    %1316 = arith.addf %1315, %6 : vector<2x32xf32>
    %cst_411 = arith.constant 1.000000e+00 : f32
    %1317 = vector.broadcast %cst_411 : f32 to vector<2x32xf32>
    %1318 = arith.cmpf ogt, %1249, %1317 : vector<2x32xf32>
    %cst_412 = arith.constant 1.000000e+00 : f32
    %1319 = vector.broadcast %cst_412 : f32 to vector<2x32xf32>
    %1320 = arith.subf %1316, %1319 : vector<2x32xf32>
    %1321 = arith.select %1318, %1320, %1316 : vector<2x32xi1>, vector<2x32xf32>
    %cst_413 = arith.constant 1.000000e+00 : f32
    %1322 = vector.broadcast %cst_413 : f32 to vector<2x32xf32>
    %1323 = arith.cmpf ogt, %1321, %1322 : vector<2x32xf32>
    %1324 = arith.extui %1323 : vector<2x32xi1> to vector<2x32xi32>
    %1325 = arith.sitofp %1324 : vector<2x32xi32> to vector<2x32xf32>
    %cst_414 = arith.constant 0.949999988 : f32
    %1326 = vector.broadcast %cst_414 : f32 to vector<2x32xf32>
    %1327 = arith.mulf %1326, %1321 : vector<2x32xf32>
    %1328 = arith.addf %1327, %6 : vector<2x32xf32>
    %cst_415 = arith.constant 1.000000e+00 : f32
    %1329 = vector.broadcast %cst_415 : f32 to vector<2x32xf32>
    %1330 = arith.cmpf ogt, %1321, %1329 : vector<2x32xf32>
    %cst_416 = arith.constant 1.000000e+00 : f32
    %1331 = vector.broadcast %cst_416 : f32 to vector<2x32xf32>
    %1332 = arith.subf %1328, %1331 : vector<2x32xf32>
    %1333 = arith.select %1330, %1332, %1328 : vector<2x32xi1>, vector<2x32xf32>
    %cst_417 = arith.constant 1.000000e+00 : f32
    %1334 = vector.broadcast %cst_417 : f32 to vector<2x32xf32>
    %1335 = arith.cmpf ogt, %1333, %1334 : vector<2x32xf32>
    %1336 = arith.extui %1335 : vector<2x32xi1> to vector<2x32xi32>
    %1337 = arith.sitofp %1336 : vector<2x32xi32> to vector<2x32xf32>
    %cst_418 = arith.constant 0.949999988 : f32
    %1338 = vector.broadcast %cst_418 : f32 to vector<2x32xf32>
    %1339 = arith.mulf %1338, %1333 : vector<2x32xf32>
    %1340 = arith.addf %1339, %6 : vector<2x32xf32>
    %cst_419 = arith.constant 1.000000e+00 : f32
    %1341 = vector.broadcast %cst_419 : f32 to vector<2x32xf32>
    %1342 = arith.cmpf ogt, %1333, %1341 : vector<2x32xf32>
    %cst_420 = arith.constant 1.000000e+00 : f32
    %1343 = vector.broadcast %cst_420 : f32 to vector<2x32xf32>
    %1344 = arith.subf %1340, %1343 : vector<2x32xf32>
    %1345 = arith.select %1342, %1344, %1340 : vector<2x32xi1>, vector<2x32xf32>
    %cst_421 = arith.constant 1.000000e+00 : f32
    %1346 = vector.broadcast %cst_421 : f32 to vector<2x32xf32>
    %1347 = arith.cmpf ogt, %1345, %1346 : vector<2x32xf32>
    %1348 = arith.extui %1347 : vector<2x32xi1> to vector<2x32xi32>
    %1349 = arith.sitofp %1348 : vector<2x32xi32> to vector<2x32xf32>
    %cst_422 = arith.constant 0.949999988 : f32
    %1350 = vector.broadcast %cst_422 : f32 to vector<2x32xf32>
    %1351 = arith.mulf %1350, %1345 : vector<2x32xf32>
    %1352 = arith.addf %1351, %6 : vector<2x32xf32>
    %cst_423 = arith.constant 1.000000e+00 : f32
    %1353 = vector.broadcast %cst_423 : f32 to vector<2x32xf32>
    %1354 = arith.cmpf ogt, %1345, %1353 : vector<2x32xf32>
    %cst_424 = arith.constant 1.000000e+00 : f32
    %1355 = vector.broadcast %cst_424 : f32 to vector<2x32xf32>
    %1356 = arith.subf %1352, %1355 : vector<2x32xf32>
    %1357 = arith.select %1354, %1356, %1352 : vector<2x32xi1>, vector<2x32xf32>
    %cst_425 = arith.constant 1.000000e+00 : f32
    %1358 = vector.broadcast %cst_425 : f32 to vector<2x32xf32>
    %1359 = arith.cmpf ogt, %1357, %1358 : vector<2x32xf32>
    %1360 = arith.extui %1359 : vector<2x32xi1> to vector<2x32xi32>
    %1361 = arith.sitofp %1360 : vector<2x32xi32> to vector<2x32xf32>
    %1362 = tpu.concatenate %1325, %1337, %1349, %1361 in 0 : vector<2x32xf32>, vector<2x32xf32>, vector<2x32xf32>, vector<2x32xf32> -> vector<8x32xf32>
    %cst_426 = arith.constant dense<0.000000e+00> : vector<8x8xf32>
    %1363 = tpu.matmul %1362, %10, %cst_426 {dimension_numbers = #tpu.dot_dimension_numbers<[1], [0], [0], [1], [0, 0, 1, 1], [], []>} : vector<8x32xf32>, vector<32x8xf32>, vector<8x8xf32> -> vector<8x8xf32>
    %1364 = vector.broadcast %13 : vector<1x8xf32> to vector<8x8xf32>
    %1365 = arith.addf %1363, %1364 : vector<8x8xf32>
    %1366 = vector.extract_strided_slice %1365 {offsets = [0, 0], sizes = [2, 8], strides = [1, 1]} : vector<8x8xf32> to vector<2x8xf32>
    %cst_427 = arith.constant 0.949999988 : f32
    %1367 = vector.broadcast %cst_427 : f32 to vector<2x8xf32>
    %1368 = arith.mulf %1367, %1308 : vector<2x8xf32>
    %1369 = arith.addf %1368, %1366 : vector<2x8xf32>
    %cst_428 = arith.constant 1.000000e+00 : f32
    %1370 = vector.broadcast %cst_428 : f32 to vector<2x8xf32>
    %1371 = arith.cmpf ogt, %1308, %1370 : vector<2x8xf32>
    %cst_429 = arith.constant 1.000000e+00 : f32
    %1372 = vector.broadcast %cst_429 : f32 to vector<2x8xf32>
    %1373 = arith.subf %1369, %1372 : vector<2x8xf32>
    %1374 = arith.select %1371, %1373, %1369 : vector<2x8xi1>, vector<2x8xf32>
    %cst_430 = arith.constant 1.000000e+00 : f32
    %1375 = vector.broadcast %cst_430 : f32 to vector<2x8xf32>
    %1376 = arith.cmpf ogt, %1374, %1375 : vector<2x8xf32>
    %1377 = arith.extui %1376 : vector<2x8xi1> to vector<2x8xi32>
    %1378 = arith.sitofp %1377 : vector<2x8xi32> to vector<2x8xf32>
    %1379 = arith.addf %1313, %1378 : vector<2x8xf32>
    %1380 = vector.extract_strided_slice %1365 {offsets = [2, 0], sizes = [2, 8], strides = [1, 1]} : vector<8x8xf32> to vector<2x8xf32>
    %cst_431 = arith.constant 0.949999988 : f32
    %1381 = vector.broadcast %cst_431 : f32 to vector<2x8xf32>
    %1382 = arith.mulf %1381, %1374 : vector<2x8xf32>
    %1383 = arith.addf %1382, %1380 : vector<2x8xf32>
    %cst_432 = arith.constant 1.000000e+00 : f32
    %1384 = vector.broadcast %cst_432 : f32 to vector<2x8xf32>
    %1385 = arith.cmpf ogt, %1374, %1384 : vector<2x8xf32>
    %cst_433 = arith.constant 1.000000e+00 : f32
    %1386 = vector.broadcast %cst_433 : f32 to vector<2x8xf32>
    %1387 = arith.subf %1383, %1386 : vector<2x8xf32>
    %1388 = arith.select %1385, %1387, %1383 : vector<2x8xi1>, vector<2x8xf32>
    %cst_434 = arith.constant 1.000000e+00 : f32
    %1389 = vector.broadcast %cst_434 : f32 to vector<2x8xf32>
    %1390 = arith.cmpf ogt, %1388, %1389 : vector<2x8xf32>
    %1391 = arith.extui %1390 : vector<2x8xi1> to vector<2x8xi32>
    %1392 = arith.sitofp %1391 : vector<2x8xi32> to vector<2x8xf32>
    %1393 = arith.addf %1379, %1392 : vector<2x8xf32>
    %1394 = vector.extract_strided_slice %1365 {offsets = [4, 0], sizes = [2, 8], strides = [1, 1]} : vector<8x8xf32> to vector<2x8xf32>
    %cst_435 = arith.constant 0.949999988 : f32
    %1395 = vector.broadcast %cst_435 : f32 to vector<2x8xf32>
    %1396 = arith.mulf %1395, %1388 : vector<2x8xf32>
    %1397 = arith.addf %1396, %1394 : vector<2x8xf32>
    %cst_436 = arith.constant 1.000000e+00 : f32
    %1398 = vector.broadcast %cst_436 : f32 to vector<2x8xf32>
    %1399 = arith.cmpf ogt, %1388, %1398 : vector<2x8xf32>
    %cst_437 = arith.constant 1.000000e+00 : f32
    %1400 = vector.broadcast %cst_437 : f32 to vector<2x8xf32>
    %1401 = arith.subf %1397, %1400 : vector<2x8xf32>
    %1402 = arith.select %1399, %1401, %1397 : vector<2x8xi1>, vector<2x8xf32>
    %cst_438 = arith.constant 1.000000e+00 : f32
    %1403 = vector.broadcast %cst_438 : f32 to vector<2x8xf32>
    %1404 = arith.cmpf ogt, %1402, %1403 : vector<2x8xf32>
    %1405 = arith.extui %1404 : vector<2x8xi1> to vector<2x8xi32>
    %1406 = arith.sitofp %1405 : vector<2x8xi32> to vector<2x8xf32>
    %1407 = arith.addf %1393, %1406 : vector<2x8xf32>
    %1408 = vector.extract_strided_slice %1365 {offsets = [6, 0], sizes = [2, 8], strides = [1, 1]} : vector<8x8xf32> to vector<2x8xf32>
    %cst_439 = arith.constant 0.949999988 : f32
    %1409 = vector.broadcast %cst_439 : f32 to vector<2x8xf32>
    %1410 = arith.mulf %1409, %1402 : vector<2x8xf32>
    %1411 = arith.addf %1410, %1408 : vector<2x8xf32>
    %cst_440 = arith.constant 1.000000e+00 : f32
    %1412 = vector.broadcast %cst_440 : f32 to vector<2x8xf32>
    %1413 = arith.cmpf ogt, %1402, %1412 : vector<2x8xf32>
    %cst_441 = arith.constant 1.000000e+00 : f32
    %1414 = vector.broadcast %cst_441 : f32 to vector<2x8xf32>
    %1415 = arith.subf %1411, %1414 : vector<2x8xf32>
    %1416 = arith.select %1413, %1415, %1411 : vector<2x8xi1>, vector<2x8xf32>
    %cst_442 = arith.constant 1.000000e+00 : f32
    %1417 = vector.broadcast %cst_442 : f32 to vector<2x8xf32>
    %1418 = arith.cmpf ogt, %1416, %1417 : vector<2x8xf32>
    %1419 = arith.extui %1418 : vector<2x8xi1> to vector<2x8xi32>
    %1420 = arith.sitofp %1419 : vector<2x8xi32> to vector<2x8xf32>
    %1421 = arith.addf %1407, %1420 : vector<2x8xf32>
    %cst_443 = arith.constant 0.949999988 : f32
    %1422 = vector.broadcast %cst_443 : f32 to vector<2x32xf32>
    %1423 = arith.mulf %1422, %1357 : vector<2x32xf32>
    %1424 = arith.addf %1423, %6 : vector<2x32xf32>
    %cst_444 = arith.constant 1.000000e+00 : f32
    %1425 = vector.broadcast %cst_444 : f32 to vector<2x32xf32>
    %1426 = arith.cmpf ogt, %1357, %1425 : vector<2x32xf32>
    %cst_445 = arith.constant 1.000000e+00 : f32
    %1427 = vector.broadcast %cst_445 : f32 to vector<2x32xf32>
    %1428 = arith.subf %1424, %1427 : vector<2x32xf32>
    %1429 = arith.select %1426, %1428, %1424 : vector<2x32xi1>, vector<2x32xf32>
    %cst_446 = arith.constant 1.000000e+00 : f32
    %1430 = vector.broadcast %cst_446 : f32 to vector<2x32xf32>
    %1431 = arith.cmpf ogt, %1429, %1430 : vector<2x32xf32>
    %1432 = arith.extui %1431 : vector<2x32xi1> to vector<2x32xi32>
    %1433 = arith.sitofp %1432 : vector<2x32xi32> to vector<2x32xf32>
    %cst_447 = arith.constant 0.949999988 : f32
    %1434 = vector.broadcast %cst_447 : f32 to vector<2x32xf32>
    %1435 = arith.mulf %1434, %1429 : vector<2x32xf32>
    %1436 = arith.addf %1435, %6 : vector<2x32xf32>
    %cst_448 = arith.constant 1.000000e+00 : f32
    %1437 = vector.broadcast %cst_448 : f32 to vector<2x32xf32>
    %1438 = arith.cmpf ogt, %1429, %1437 : vector<2x32xf32>
    %cst_449 = arith.constant 1.000000e+00 : f32
    %1439 = vector.broadcast %cst_449 : f32 to vector<2x32xf32>
    %1440 = arith.subf %1436, %1439 : vector<2x32xf32>
    %1441 = arith.select %1438, %1440, %1436 : vector<2x32xi1>, vector<2x32xf32>
    %cst_450 = arith.constant 1.000000e+00 : f32
    %1442 = vector.broadcast %cst_450 : f32 to vector<2x32xf32>
    %1443 = arith.cmpf ogt, %1441, %1442 : vector<2x32xf32>
    %1444 = arith.extui %1443 : vector<2x32xi1> to vector<2x32xi32>
    %1445 = arith.sitofp %1444 : vector<2x32xi32> to vector<2x32xf32>
    %cst_451 = arith.constant 0.949999988 : f32
    %1446 = vector.broadcast %cst_451 : f32 to vector<2x32xf32>
    %1447 = arith.mulf %1446, %1441 : vector<2x32xf32>
    %1448 = arith.addf %1447, %6 : vector<2x32xf32>
    %cst_452 = arith.constant 1.000000e+00 : f32
    %1449 = vector.broadcast %cst_452 : f32 to vector<2x32xf32>
    %1450 = arith.cmpf ogt, %1441, %1449 : vector<2x32xf32>
    %cst_453 = arith.constant 1.000000e+00 : f32
    %1451 = vector.broadcast %cst_453 : f32 to vector<2x32xf32>
    %1452 = arith.subf %1448, %1451 : vector<2x32xf32>
    %1453 = arith.select %1450, %1452, %1448 : vector<2x32xi1>, vector<2x32xf32>
    %cst_454 = arith.constant 1.000000e+00 : f32
    %1454 = vector.broadcast %cst_454 : f32 to vector<2x32xf32>
    %1455 = arith.cmpf ogt, %1453, %1454 : vector<2x32xf32>
    %1456 = arith.extui %1455 : vector<2x32xi1> to vector<2x32xi32>
    %1457 = arith.sitofp %1456 : vector<2x32xi32> to vector<2x32xf32>
    %cst_455 = arith.constant 0.949999988 : f32
    %1458 = vector.broadcast %cst_455 : f32 to vector<2x32xf32>
    %1459 = arith.mulf %1458, %1453 : vector<2x32xf32>
    %1460 = arith.addf %1459, %6 : vector<2x32xf32>
    %cst_456 = arith.constant 1.000000e+00 : f32
    %1461 = vector.broadcast %cst_456 : f32 to vector<2x32xf32>
    %1462 = arith.cmpf ogt, %1453, %1461 : vector<2x32xf32>
    %cst_457 = arith.constant 1.000000e+00 : f32
    %1463 = vector.broadcast %cst_457 : f32 to vector<2x32xf32>
    %1464 = arith.subf %1460, %1463 : vector<2x32xf32>
    %1465 = arith.select %1462, %1464, %1460 : vector<2x32xi1>, vector<2x32xf32>
    %cst_458 = arith.constant 1.000000e+00 : f32
    %1466 = vector.broadcast %cst_458 : f32 to vector<2x32xf32>
    %1467 = arith.cmpf ogt, %1465, %1466 : vector<2x32xf32>
    %1468 = arith.extui %1467 : vector<2x32xi1> to vector<2x32xi32>
    %1469 = arith.sitofp %1468 : vector<2x32xi32> to vector<2x32xf32>
    %1470 = tpu.concatenate %1433, %1445, %1457, %1469 in 0 : vector<2x32xf32>, vector<2x32xf32>, vector<2x32xf32>, vector<2x32xf32> -> vector<8x32xf32>
    %cst_459 = arith.constant dense<0.000000e+00> : vector<8x8xf32>
    %1471 = tpu.matmul %1470, %10, %cst_459 {dimension_numbers = #tpu.dot_dimension_numbers<[1], [0], [0], [1], [0, 0, 1, 1], [], []>} : vector<8x32xf32>, vector<32x8xf32>, vector<8x8xf32> -> vector<8x8xf32>
    %1472 = vector.broadcast %13 : vector<1x8xf32> to vector<8x8xf32>
    %1473 = arith.addf %1471, %1472 : vector<8x8xf32>
    %1474 = vector.extract_strided_slice %1473 {offsets = [0, 0], sizes = [2, 8], strides = [1, 1]} : vector<8x8xf32> to vector<2x8xf32>
    %cst_460 = arith.constant 0.949999988 : f32
    %1475 = vector.broadcast %cst_460 : f32 to vector<2x8xf32>
    %1476 = arith.mulf %1475, %1416 : vector<2x8xf32>
    %1477 = arith.addf %1476, %1474 : vector<2x8xf32>
    %cst_461 = arith.constant 1.000000e+00 : f32
    %1478 = vector.broadcast %cst_461 : f32 to vector<2x8xf32>
    %1479 = arith.cmpf ogt, %1416, %1478 : vector<2x8xf32>
    %cst_462 = arith.constant 1.000000e+00 : f32
    %1480 = vector.broadcast %cst_462 : f32 to vector<2x8xf32>
    %1481 = arith.subf %1477, %1480 : vector<2x8xf32>
    %1482 = arith.select %1479, %1481, %1477 : vector<2x8xi1>, vector<2x8xf32>
    %cst_463 = arith.constant 1.000000e+00 : f32
    %1483 = vector.broadcast %cst_463 : f32 to vector<2x8xf32>
    %1484 = arith.cmpf ogt, %1482, %1483 : vector<2x8xf32>
    %1485 = arith.extui %1484 : vector<2x8xi1> to vector<2x8xi32>
    %1486 = arith.sitofp %1485 : vector<2x8xi32> to vector<2x8xf32>
    %1487 = arith.addf %1421, %1486 : vector<2x8xf32>
    %1488 = vector.extract_strided_slice %1473 {offsets = [2, 0], sizes = [2, 8], strides = [1, 1]} : vector<8x8xf32> to vector<2x8xf32>
    %cst_464 = arith.constant 0.949999988 : f32
    %1489 = vector.broadcast %cst_464 : f32 to vector<2x8xf32>
    %1490 = arith.mulf %1489, %1482 : vector<2x8xf32>
    %1491 = arith.addf %1490, %1488 : vector<2x8xf32>
    %cst_465 = arith.constant 1.000000e+00 : f32
    %1492 = vector.broadcast %cst_465 : f32 to vector<2x8xf32>
    %1493 = arith.cmpf ogt, %1482, %1492 : vector<2x8xf32>
    %cst_466 = arith.constant 1.000000e+00 : f32
    %1494 = vector.broadcast %cst_466 : f32 to vector<2x8xf32>
    %1495 = arith.subf %1491, %1494 : vector<2x8xf32>
    %1496 = arith.select %1493, %1495, %1491 : vector<2x8xi1>, vector<2x8xf32>
    %cst_467 = arith.constant 1.000000e+00 : f32
    %1497 = vector.broadcast %cst_467 : f32 to vector<2x8xf32>
    %1498 = arith.cmpf ogt, %1496, %1497 : vector<2x8xf32>
    %1499 = arith.extui %1498 : vector<2x8xi1> to vector<2x8xi32>
    %1500 = arith.sitofp %1499 : vector<2x8xi32> to vector<2x8xf32>
    %1501 = arith.addf %1487, %1500 : vector<2x8xf32>
    %1502 = vector.extract_strided_slice %1473 {offsets = [4, 0], sizes = [2, 8], strides = [1, 1]} : vector<8x8xf32> to vector<2x8xf32>
    %cst_468 = arith.constant 0.949999988 : f32
    %1503 = vector.broadcast %cst_468 : f32 to vector<2x8xf32>
    %1504 = arith.mulf %1503, %1496 : vector<2x8xf32>
    %1505 = arith.addf %1504, %1502 : vector<2x8xf32>
    %cst_469 = arith.constant 1.000000e+00 : f32
    %1506 = vector.broadcast %cst_469 : f32 to vector<2x8xf32>
    %1507 = arith.cmpf ogt, %1496, %1506 : vector<2x8xf32>
    %cst_470 = arith.constant 1.000000e+00 : f32
    %1508 = vector.broadcast %cst_470 : f32 to vector<2x8xf32>
    %1509 = arith.subf %1505, %1508 : vector<2x8xf32>
    %1510 = arith.select %1507, %1509, %1505 : vector<2x8xi1>, vector<2x8xf32>
    %cst_471 = arith.constant 1.000000e+00 : f32
    %1511 = vector.broadcast %cst_471 : f32 to vector<2x8xf32>
    %1512 = arith.cmpf ogt, %1510, %1511 : vector<2x8xf32>
    %1513 = arith.extui %1512 : vector<2x8xi1> to vector<2x8xi32>
    %1514 = arith.sitofp %1513 : vector<2x8xi32> to vector<2x8xf32>
    %1515 = arith.addf %1501, %1514 : vector<2x8xf32>
    %1516 = vector.extract_strided_slice %1473 {offsets = [6, 0], sizes = [2, 8], strides = [1, 1]} : vector<8x8xf32> to vector<2x8xf32>
    %cst_472 = arith.constant 0.949999988 : f32
    %1517 = vector.broadcast %cst_472 : f32 to vector<2x8xf32>
    %1518 = arith.mulf %1517, %1510 : vector<2x8xf32>
    %1519 = arith.addf %1518, %1516 : vector<2x8xf32>
    %cst_473 = arith.constant 1.000000e+00 : f32
    %1520 = vector.broadcast %cst_473 : f32 to vector<2x8xf32>
    %1521 = arith.cmpf ogt, %1510, %1520 : vector<2x8xf32>
    %cst_474 = arith.constant 1.000000e+00 : f32
    %1522 = vector.broadcast %cst_474 : f32 to vector<2x8xf32>
    %1523 = arith.subf %1519, %1522 : vector<2x8xf32>
    %1524 = arith.select %1521, %1523, %1519 : vector<2x8xi1>, vector<2x8xf32>
    %cst_475 = arith.constant 1.000000e+00 : f32
    %1525 = vector.broadcast %cst_475 : f32 to vector<2x8xf32>
    %1526 = arith.cmpf ogt, %1524, %1525 : vector<2x8xf32>
    %1527 = arith.extui %1526 : vector<2x8xi1> to vector<2x8xi32>
    %1528 = arith.sitofp %1527 : vector<2x8xi32> to vector<2x8xf32>
    %1529 = arith.addf %1515, %1528 : vector<2x8xf32>
    %cst_476 = arith.constant 0.949999988 : f32
    %1530 = vector.broadcast %cst_476 : f32 to vector<2x32xf32>
    %1531 = arith.mulf %1530, %1465 : vector<2x32xf32>
    %1532 = arith.addf %1531, %6 : vector<2x32xf32>
    %cst_477 = arith.constant 1.000000e+00 : f32
    %1533 = vector.broadcast %cst_477 : f32 to vector<2x32xf32>
    %1534 = arith.cmpf ogt, %1465, %1533 : vector<2x32xf32>
    %cst_478 = arith.constant 1.000000e+00 : f32
    %1535 = vector.broadcast %cst_478 : f32 to vector<2x32xf32>
    %1536 = arith.subf %1532, %1535 : vector<2x32xf32>
    %1537 = arith.select %1534, %1536, %1532 : vector<2x32xi1>, vector<2x32xf32>
    %cst_479 = arith.constant 1.000000e+00 : f32
    %1538 = vector.broadcast %cst_479 : f32 to vector<2x32xf32>
    %1539 = arith.cmpf ogt, %1537, %1538 : vector<2x32xf32>
    %1540 = arith.extui %1539 : vector<2x32xi1> to vector<2x32xi32>
    %1541 = arith.sitofp %1540 : vector<2x32xi32> to vector<2x32xf32>
    %cst_480 = arith.constant 0.949999988 : f32
    %1542 = vector.broadcast %cst_480 : f32 to vector<2x32xf32>
    %1543 = arith.mulf %1542, %1537 : vector<2x32xf32>
    %1544 = arith.addf %1543, %6 : vector<2x32xf32>
    %cst_481 = arith.constant 1.000000e+00 : f32
    %1545 = vector.broadcast %cst_481 : f32 to vector<2x32xf32>
    %1546 = arith.cmpf ogt, %1537, %1545 : vector<2x32xf32>
    %cst_482 = arith.constant 1.000000e+00 : f32
    %1547 = vector.broadcast %cst_482 : f32 to vector<2x32xf32>
    %1548 = arith.subf %1544, %1547 : vector<2x32xf32>
    %1549 = arith.select %1546, %1548, %1544 : vector<2x32xi1>, vector<2x32xf32>
    %cst_483 = arith.constant 1.000000e+00 : f32
    %1550 = vector.broadcast %cst_483 : f32 to vector<2x32xf32>
    %1551 = arith.cmpf ogt, %1549, %1550 : vector<2x32xf32>
    %1552 = arith.extui %1551 : vector<2x32xi1> to vector<2x32xi32>
    %1553 = arith.sitofp %1552 : vector<2x32xi32> to vector<2x32xf32>
    %cst_484 = arith.constant 0.949999988 : f32
    %1554 = vector.broadcast %cst_484 : f32 to vector<2x32xf32>
    %1555 = arith.mulf %1554, %1549 : vector<2x32xf32>
    %1556 = arith.addf %1555, %6 : vector<2x32xf32>
    %cst_485 = arith.constant 1.000000e+00 : f32
    %1557 = vector.broadcast %cst_485 : f32 to vector<2x32xf32>
    %1558 = arith.cmpf ogt, %1549, %1557 : vector<2x32xf32>
    %cst_486 = arith.constant 1.000000e+00 : f32
    %1559 = vector.broadcast %cst_486 : f32 to vector<2x32xf32>
    %1560 = arith.subf %1556, %1559 : vector<2x32xf32>
    %1561 = arith.select %1558, %1560, %1556 : vector<2x32xi1>, vector<2x32xf32>
    %cst_487 = arith.constant 1.000000e+00 : f32
    %1562 = vector.broadcast %cst_487 : f32 to vector<2x32xf32>
    %1563 = arith.cmpf ogt, %1561, %1562 : vector<2x32xf32>
    %1564 = arith.extui %1563 : vector<2x32xi1> to vector<2x32xi32>
    %1565 = arith.sitofp %1564 : vector<2x32xi32> to vector<2x32xf32>
    %cst_488 = arith.constant 0.949999988 : f32
    %1566 = vector.broadcast %cst_488 : f32 to vector<2x32xf32>
    %1567 = arith.mulf %1566, %1561 : vector<2x32xf32>
    %1568 = arith.addf %1567, %6 : vector<2x32xf32>
    %cst_489 = arith.constant 1.000000e+00 : f32
    %1569 = vector.broadcast %cst_489 : f32 to vector<2x32xf32>
    %1570 = arith.cmpf ogt, %1561, %1569 : vector<2x32xf32>
    %cst_490 = arith.constant 1.000000e+00 : f32
    %1571 = vector.broadcast %cst_490 : f32 to vector<2x32xf32>
    %1572 = arith.subf %1568, %1571 : vector<2x32xf32>
    %1573 = arith.select %1570, %1572, %1568 : vector<2x32xi1>, vector<2x32xf32>
    %cst_491 = arith.constant 1.000000e+00 : f32
    %1574 = vector.broadcast %cst_491 : f32 to vector<2x32xf32>
    %1575 = arith.cmpf ogt, %1573, %1574 : vector<2x32xf32>
    %1576 = arith.extui %1575 : vector<2x32xi1> to vector<2x32xi32>
    %1577 = arith.sitofp %1576 : vector<2x32xi32> to vector<2x32xf32>
    %1578 = tpu.concatenate %1541, %1553, %1565, %1577 in 0 : vector<2x32xf32>, vector<2x32xf32>, vector<2x32xf32>, vector<2x32xf32> -> vector<8x32xf32>
    %cst_492 = arith.constant dense<0.000000e+00> : vector<8x8xf32>
    %1579 = tpu.matmul %1578, %10, %cst_492 {dimension_numbers = #tpu.dot_dimension_numbers<[1], [0], [0], [1], [0, 0, 1, 1], [], []>} : vector<8x32xf32>, vector<32x8xf32>, vector<8x8xf32> -> vector<8x8xf32>
    %1580 = vector.broadcast %13 : vector<1x8xf32> to vector<8x8xf32>
    %1581 = arith.addf %1579, %1580 : vector<8x8xf32>
    %1582 = vector.extract_strided_slice %1581 {offsets = [0, 0], sizes = [2, 8], strides = [1, 1]} : vector<8x8xf32> to vector<2x8xf32>
    %cst_493 = arith.constant 0.949999988 : f32
    %1583 = vector.broadcast %cst_493 : f32 to vector<2x8xf32>
    %1584 = arith.mulf %1583, %1524 : vector<2x8xf32>
    %1585 = arith.addf %1584, %1582 : vector<2x8xf32>
    %cst_494 = arith.constant 1.000000e+00 : f32
    %1586 = vector.broadcast %cst_494 : f32 to vector<2x8xf32>
    %1587 = arith.cmpf ogt, %1524, %1586 : vector<2x8xf32>
    %cst_495 = arith.constant 1.000000e+00 : f32
    %1588 = vector.broadcast %cst_495 : f32 to vector<2x8xf32>
    %1589 = arith.subf %1585, %1588 : vector<2x8xf32>
    %1590 = arith.select %1587, %1589, %1585 : vector<2x8xi1>, vector<2x8xf32>
    %cst_496 = arith.constant 1.000000e+00 : f32
    %1591 = vector.broadcast %cst_496 : f32 to vector<2x8xf32>
    %1592 = arith.cmpf ogt, %1590, %1591 : vector<2x8xf32>
    %1593 = arith.extui %1592 : vector<2x8xi1> to vector<2x8xi32>
    %1594 = arith.sitofp %1593 : vector<2x8xi32> to vector<2x8xf32>
    %1595 = arith.addf %1529, %1594 : vector<2x8xf32>
    %1596 = vector.extract_strided_slice %1581 {offsets = [2, 0], sizes = [2, 8], strides = [1, 1]} : vector<8x8xf32> to vector<2x8xf32>
    %cst_497 = arith.constant 0.949999988 : f32
    %1597 = vector.broadcast %cst_497 : f32 to vector<2x8xf32>
    %1598 = arith.mulf %1597, %1590 : vector<2x8xf32>
    %1599 = arith.addf %1598, %1596 : vector<2x8xf32>
    %cst_498 = arith.constant 1.000000e+00 : f32
    %1600 = vector.broadcast %cst_498 : f32 to vector<2x8xf32>
    %1601 = arith.cmpf ogt, %1590, %1600 : vector<2x8xf32>
    %cst_499 = arith.constant 1.000000e+00 : f32
    %1602 = vector.broadcast %cst_499 : f32 to vector<2x8xf32>
    %1603 = arith.subf %1599, %1602 : vector<2x8xf32>
    %1604 = arith.select %1601, %1603, %1599 : vector<2x8xi1>, vector<2x8xf32>
    %cst_500 = arith.constant 1.000000e+00 : f32
    %1605 = vector.broadcast %cst_500 : f32 to vector<2x8xf32>
    %1606 = arith.cmpf ogt, %1604, %1605 : vector<2x8xf32>
    %1607 = arith.extui %1606 : vector<2x8xi1> to vector<2x8xi32>
    %1608 = arith.sitofp %1607 : vector<2x8xi32> to vector<2x8xf32>
    %1609 = arith.addf %1595, %1608 : vector<2x8xf32>
    %1610 = vector.extract_strided_slice %1581 {offsets = [4, 0], sizes = [2, 8], strides = [1, 1]} : vector<8x8xf32> to vector<2x8xf32>
    %cst_501 = arith.constant 0.949999988 : f32
    %1611 = vector.broadcast %cst_501 : f32 to vector<2x8xf32>
    %1612 = arith.mulf %1611, %1604 : vector<2x8xf32>
    %1613 = arith.addf %1612, %1610 : vector<2x8xf32>
    %cst_502 = arith.constant 1.000000e+00 : f32
    %1614 = vector.broadcast %cst_502 : f32 to vector<2x8xf32>
    %1615 = arith.cmpf ogt, %1604, %1614 : vector<2x8xf32>
    %cst_503 = arith.constant 1.000000e+00 : f32
    %1616 = vector.broadcast %cst_503 : f32 to vector<2x8xf32>
    %1617 = arith.subf %1613, %1616 : vector<2x8xf32>
    %1618 = arith.select %1615, %1617, %1613 : vector<2x8xi1>, vector<2x8xf32>
    %cst_504 = arith.constant 1.000000e+00 : f32
    %1619 = vector.broadcast %cst_504 : f32 to vector<2x8xf32>
    %1620 = arith.cmpf ogt, %1618, %1619 : vector<2x8xf32>
    %1621 = arith.extui %1620 : vector<2x8xi1> to vector<2x8xi32>
    %1622 = arith.sitofp %1621 : vector<2x8xi32> to vector<2x8xf32>
    %1623 = arith.addf %1609, %1622 : vector<2x8xf32>
    %1624 = vector.extract_strided_slice %1581 {offsets = [6, 0], sizes = [2, 8], strides = [1, 1]} : vector<8x8xf32> to vector<2x8xf32>
    %cst_505 = arith.constant 0.949999988 : f32
    %1625 = vector.broadcast %cst_505 : f32 to vector<2x8xf32>
    %1626 = arith.mulf %1625, %1618 : vector<2x8xf32>
    %1627 = arith.addf %1626, %1624 : vector<2x8xf32>
    %cst_506 = arith.constant 1.000000e+00 : f32
    %1628 = vector.broadcast %cst_506 : f32 to vector<2x8xf32>
    %1629 = arith.cmpf ogt, %1618, %1628 : vector<2x8xf32>
    %cst_507 = arith.constant 1.000000e+00 : f32
    %1630 = vector.broadcast %cst_507 : f32 to vector<2x8xf32>
    %1631 = arith.subf %1627, %1630 : vector<2x8xf32>
    %1632 = arith.select %1629, %1631, %1627 : vector<2x8xi1>, vector<2x8xf32>
    %cst_508 = arith.constant 1.000000e+00 : f32
    %1633 = vector.broadcast %cst_508 : f32 to vector<2x8xf32>
    %1634 = arith.cmpf ogt, %1632, %1633 : vector<2x8xf32>
    %1635 = arith.extui %1634 : vector<2x8xi1> to vector<2x8xi32>
    %1636 = arith.sitofp %1635 : vector<2x8xi32> to vector<2x8xf32>
    %1637 = arith.addf %1623, %1636 : vector<2x8xf32>
    %cst_509 = arith.constant 0.949999988 : f32
    %1638 = vector.broadcast %cst_509 : f32 to vector<2x32xf32>
    %1639 = arith.mulf %1638, %1573 : vector<2x32xf32>
    %1640 = arith.addf %1639, %6 : vector<2x32xf32>
    %cst_510 = arith.constant 1.000000e+00 : f32
    %1641 = vector.broadcast %cst_510 : f32 to vector<2x32xf32>
    %1642 = arith.cmpf ogt, %1573, %1641 : vector<2x32xf32>
    %cst_511 = arith.constant 1.000000e+00 : f32
    %1643 = vector.broadcast %cst_511 : f32 to vector<2x32xf32>
    %1644 = arith.subf %1640, %1643 : vector<2x32xf32>
    %1645 = arith.select %1642, %1644, %1640 : vector<2x32xi1>, vector<2x32xf32>
    %cst_512 = arith.constant 1.000000e+00 : f32
    %1646 = vector.broadcast %cst_512 : f32 to vector<2x32xf32>
    %1647 = arith.cmpf ogt, %1645, %1646 : vector<2x32xf32>
    %1648 = arith.extui %1647 : vector<2x32xi1> to vector<2x32xi32>
    %1649 = arith.sitofp %1648 : vector<2x32xi32> to vector<2x32xf32>
    %cst_513 = arith.constant 0.949999988 : f32
    %1650 = vector.broadcast %cst_513 : f32 to vector<2x32xf32>
    %1651 = arith.mulf %1650, %1645 : vector<2x32xf32>
    %1652 = arith.addf %1651, %6 : vector<2x32xf32>
    %cst_514 = arith.constant 1.000000e+00 : f32
    %1653 = vector.broadcast %cst_514 : f32 to vector<2x32xf32>
    %1654 = arith.cmpf ogt, %1645, %1653 : vector<2x32xf32>
    %cst_515 = arith.constant 1.000000e+00 : f32
    %1655 = vector.broadcast %cst_515 : f32 to vector<2x32xf32>
    %1656 = arith.subf %1652, %1655 : vector<2x32xf32>
    %1657 = arith.select %1654, %1656, %1652 : vector<2x32xi1>, vector<2x32xf32>
    %cst_516 = arith.constant 1.000000e+00 : f32
    %1658 = vector.broadcast %cst_516 : f32 to vector<2x32xf32>
    %1659 = arith.cmpf ogt, %1657, %1658 : vector<2x32xf32>
    %1660 = arith.extui %1659 : vector<2x32xi1> to vector<2x32xi32>
    %1661 = arith.sitofp %1660 : vector<2x32xi32> to vector<2x32xf32>
    %cst_517 = arith.constant 0.949999988 : f32
    %1662 = vector.broadcast %cst_517 : f32 to vector<2x32xf32>
    %1663 = arith.mulf %1662, %1657 : vector<2x32xf32>
    %1664 = arith.addf %1663, %6 : vector<2x32xf32>
    %cst_518 = arith.constant 1.000000e+00 : f32
    %1665 = vector.broadcast %cst_518 : f32 to vector<2x32xf32>
    %1666 = arith.cmpf ogt, %1657, %1665 : vector<2x32xf32>
    %cst_519 = arith.constant 1.000000e+00 : f32
    %1667 = vector.broadcast %cst_519 : f32 to vector<2x32xf32>
    %1668 = arith.subf %1664, %1667 : vector<2x32xf32>
    %1669 = arith.select %1666, %1668, %1664 : vector<2x32xi1>, vector<2x32xf32>
    %cst_520 = arith.constant 1.000000e+00 : f32
    %1670 = vector.broadcast %cst_520 : f32 to vector<2x32xf32>
    %1671 = arith.cmpf ogt, %1669, %1670 : vector<2x32xf32>
    %1672 = arith.extui %1671 : vector<2x32xi1> to vector<2x32xi32>
    %1673 = arith.sitofp %1672 : vector<2x32xi32> to vector<2x32xf32>
    %cst_521 = arith.constant 0.949999988 : f32
    %1674 = vector.broadcast %cst_521 : f32 to vector<2x32xf32>
    %1675 = arith.mulf %1674, %1669 : vector<2x32xf32>
    %1676 = arith.addf %1675, %6 : vector<2x32xf32>
    %cst_522 = arith.constant 1.000000e+00 : f32
    %1677 = vector.broadcast %cst_522 : f32 to vector<2x32xf32>
    %1678 = arith.cmpf ogt, %1669, %1677 : vector<2x32xf32>
    %cst_523 = arith.constant 1.000000e+00 : f32
    %1679 = vector.broadcast %cst_523 : f32 to vector<2x32xf32>
    %1680 = arith.subf %1676, %1679 : vector<2x32xf32>
    %1681 = arith.select %1678, %1680, %1676 : vector<2x32xi1>, vector<2x32xf32>
    %cst_524 = arith.constant 1.000000e+00 : f32
    %1682 = vector.broadcast %cst_524 : f32 to vector<2x32xf32>
    %1683 = arith.cmpf ogt, %1681, %1682 : vector<2x32xf32>
    %1684 = arith.extui %1683 : vector<2x32xi1> to vector<2x32xi32>
    %1685 = arith.sitofp %1684 : vector<2x32xi32> to vector<2x32xf32>
    %1686 = tpu.concatenate %1649, %1661, %1673, %1685 in 0 : vector<2x32xf32>, vector<2x32xf32>, vector<2x32xf32>, vector<2x32xf32> -> vector<8x32xf32>
    %cst_525 = arith.constant dense<0.000000e+00> : vector<8x8xf32>
    %1687 = tpu.matmul %1686, %10, %cst_525 {dimension_numbers = #tpu.dot_dimension_numbers<[1], [0], [0], [1], [0, 0, 1, 1], [], []>} : vector<8x32xf32>, vector<32x8xf32>, vector<8x8xf32> -> vector<8x8xf32>
    %1688 = vector.broadcast %13 : vector<1x8xf32> to vector<8x8xf32>
    %1689 = arith.addf %1687, %1688 : vector<8x8xf32>
    %1690 = vector.extract_strided_slice %1689 {offsets = [0, 0], sizes = [2, 8], strides = [1, 1]} : vector<8x8xf32> to vector<2x8xf32>
    %cst_526 = arith.constant 0.949999988 : f32
    %1691 = vector.broadcast %cst_526 : f32 to vector<2x8xf32>
    %1692 = arith.mulf %1691, %1632 : vector<2x8xf32>
    %1693 = arith.addf %1692, %1690 : vector<2x8xf32>
    %cst_527 = arith.constant 1.000000e+00 : f32
    %1694 = vector.broadcast %cst_527 : f32 to vector<2x8xf32>
    %1695 = arith.cmpf ogt, %1632, %1694 : vector<2x8xf32>
    %cst_528 = arith.constant 1.000000e+00 : f32
    %1696 = vector.broadcast %cst_528 : f32 to vector<2x8xf32>
    %1697 = arith.subf %1693, %1696 : vector<2x8xf32>
    %1698 = arith.select %1695, %1697, %1693 : vector<2x8xi1>, vector<2x8xf32>
    %cst_529 = arith.constant 1.000000e+00 : f32
    %1699 = vector.broadcast %cst_529 : f32 to vector<2x8xf32>
    %1700 = arith.cmpf ogt, %1698, %1699 : vector<2x8xf32>
    %1701 = arith.extui %1700 : vector<2x8xi1> to vector<2x8xi32>
    %1702 = arith.sitofp %1701 : vector<2x8xi32> to vector<2x8xf32>
    %1703 = arith.addf %1637, %1702 : vector<2x8xf32>
    %1704 = vector.extract_strided_slice %1689 {offsets = [2, 0], sizes = [2, 8], strides = [1, 1]} : vector<8x8xf32> to vector<2x8xf32>
    %cst_530 = arith.constant 0.949999988 : f32
    %1705 = vector.broadcast %cst_530 : f32 to vector<2x8xf32>
    %1706 = arith.mulf %1705, %1698 : vector<2x8xf32>
    %1707 = arith.addf %1706, %1704 : vector<2x8xf32>
    %cst_531 = arith.constant 1.000000e+00 : f32
    %1708 = vector.broadcast %cst_531 : f32 to vector<2x8xf32>
    %1709 = arith.cmpf ogt, %1698, %1708 : vector<2x8xf32>
    %cst_532 = arith.constant 1.000000e+00 : f32
    %1710 = vector.broadcast %cst_532 : f32 to vector<2x8xf32>
    %1711 = arith.subf %1707, %1710 : vector<2x8xf32>
    %1712 = arith.select %1709, %1711, %1707 : vector<2x8xi1>, vector<2x8xf32>
    %cst_533 = arith.constant 1.000000e+00 : f32
    %1713 = vector.broadcast %cst_533 : f32 to vector<2x8xf32>
    %1714 = arith.cmpf ogt, %1712, %1713 : vector<2x8xf32>
    %1715 = arith.extui %1714 : vector<2x8xi1> to vector<2x8xi32>
    %1716 = arith.sitofp %1715 : vector<2x8xi32> to vector<2x8xf32>
    %1717 = arith.addf %1703, %1716 : vector<2x8xf32>
    %1718 = vector.extract_strided_slice %1689 {offsets = [4, 0], sizes = [2, 8], strides = [1, 1]} : vector<8x8xf32> to vector<2x8xf32>
    %cst_534 = arith.constant 0.949999988 : f32
    %1719 = vector.broadcast %cst_534 : f32 to vector<2x8xf32>
    %1720 = arith.mulf %1719, %1712 : vector<2x8xf32>
    %1721 = arith.addf %1720, %1718 : vector<2x8xf32>
    %cst_535 = arith.constant 1.000000e+00 : f32
    %1722 = vector.broadcast %cst_535 : f32 to vector<2x8xf32>
    %1723 = arith.cmpf ogt, %1712, %1722 : vector<2x8xf32>
    %cst_536 = arith.constant 1.000000e+00 : f32
    %1724 = vector.broadcast %cst_536 : f32 to vector<2x8xf32>
    %1725 = arith.subf %1721, %1724 : vector<2x8xf32>
    %1726 = arith.select %1723, %1725, %1721 : vector<2x8xi1>, vector<2x8xf32>
    %cst_537 = arith.constant 1.000000e+00 : f32
    %1727 = vector.broadcast %cst_537 : f32 to vector<2x8xf32>
    %1728 = arith.cmpf ogt, %1726, %1727 : vector<2x8xf32>
    %1729 = arith.extui %1728 : vector<2x8xi1> to vector<2x8xi32>
    %1730 = arith.sitofp %1729 : vector<2x8xi32> to vector<2x8xf32>
    %1731 = arith.addf %1717, %1730 : vector<2x8xf32>
    %1732 = vector.extract_strided_slice %1689 {offsets = [6, 0], sizes = [2, 8], strides = [1, 1]} : vector<8x8xf32> to vector<2x8xf32>
    %cst_538 = arith.constant 0.949999988 : f32
    %1733 = vector.broadcast %cst_538 : f32 to vector<2x8xf32>
    %1734 = arith.mulf %1733, %1726 : vector<2x8xf32>
    %1735 = arith.addf %1734, %1732 : vector<2x8xf32>
    %cst_539 = arith.constant 1.000000e+00 : f32
    %1736 = vector.broadcast %cst_539 : f32 to vector<2x8xf32>
    %1737 = arith.cmpf ogt, %1726, %1736 : vector<2x8xf32>
    %cst_540 = arith.constant 1.000000e+00 : f32
    %1738 = vector.broadcast %cst_540 : f32 to vector<2x8xf32>
    %1739 = arith.subf %1735, %1738 : vector<2x8xf32>
    %1740 = arith.select %1737, %1739, %1735 : vector<2x8xi1>, vector<2x8xf32>
    %cst_541 = arith.constant 1.000000e+00 : f32
    %1741 = vector.broadcast %cst_541 : f32 to vector<2x8xf32>
    %1742 = arith.cmpf ogt, %1740, %1741 : vector<2x8xf32>
    %1743 = arith.extui %1742 : vector<2x8xi1> to vector<2x8xi32>
    %1744 = arith.sitofp %1743 : vector<2x8xi32> to vector<2x8xf32>
    %1745 = arith.addf %1731, %1744 : vector<2x8xf32>
    %cst_542 = arith.constant 0.949999988 : f32
    %1746 = vector.broadcast %cst_542 : f32 to vector<2x32xf32>
    %1747 = arith.mulf %1746, %1681 : vector<2x32xf32>
    %1748 = arith.addf %1747, %6 : vector<2x32xf32>
    %cst_543 = arith.constant 1.000000e+00 : f32
    %1749 = vector.broadcast %cst_543 : f32 to vector<2x32xf32>
    %1750 = arith.cmpf ogt, %1681, %1749 : vector<2x32xf32>
    %cst_544 = arith.constant 1.000000e+00 : f32
    %1751 = vector.broadcast %cst_544 : f32 to vector<2x32xf32>
    %1752 = arith.subf %1748, %1751 : vector<2x32xf32>
    %1753 = arith.select %1750, %1752, %1748 : vector<2x32xi1>, vector<2x32xf32>
    %cst_545 = arith.constant 1.000000e+00 : f32
    %1754 = vector.broadcast %cst_545 : f32 to vector<2x32xf32>
    %1755 = arith.cmpf ogt, %1753, %1754 : vector<2x32xf32>
    %1756 = arith.extui %1755 : vector<2x32xi1> to vector<2x32xi32>
    %1757 = arith.sitofp %1756 : vector<2x32xi32> to vector<2x32xf32>
    %cst_546 = arith.constant 0.949999988 : f32
    %1758 = vector.broadcast %cst_546 : f32 to vector<2x32xf32>
    %1759 = arith.mulf %1758, %1753 : vector<2x32xf32>
    %1760 = arith.addf %1759, %6 : vector<2x32xf32>
    %cst_547 = arith.constant 1.000000e+00 : f32
    %1761 = vector.broadcast %cst_547 : f32 to vector<2x32xf32>
    %1762 = arith.cmpf ogt, %1753, %1761 : vector<2x32xf32>
    %cst_548 = arith.constant 1.000000e+00 : f32
    %1763 = vector.broadcast %cst_548 : f32 to vector<2x32xf32>
    %1764 = arith.subf %1760, %1763 : vector<2x32xf32>
    %1765 = arith.select %1762, %1764, %1760 : vector<2x32xi1>, vector<2x32xf32>
    %cst_549 = arith.constant 1.000000e+00 : f32
    %1766 = vector.broadcast %cst_549 : f32 to vector<2x32xf32>
    %1767 = arith.cmpf ogt, %1765, %1766 : vector<2x32xf32>
    %1768 = arith.extui %1767 : vector<2x32xi1> to vector<2x32xi32>
    %1769 = arith.sitofp %1768 : vector<2x32xi32> to vector<2x32xf32>
    %cst_550 = arith.constant 0.949999988 : f32
    %1770 = vector.broadcast %cst_550 : f32 to vector<2x32xf32>
    %1771 = arith.mulf %1770, %1765 : vector<2x32xf32>
    %1772 = arith.addf %1771, %6 : vector<2x32xf32>
    %cst_551 = arith.constant 1.000000e+00 : f32
    %1773 = vector.broadcast %cst_551 : f32 to vector<2x32xf32>
    %1774 = arith.cmpf ogt, %1765, %1773 : vector<2x32xf32>
    %cst_552 = arith.constant 1.000000e+00 : f32
    %1775 = vector.broadcast %cst_552 : f32 to vector<2x32xf32>
    %1776 = arith.subf %1772, %1775 : vector<2x32xf32>
    %1777 = arith.select %1774, %1776, %1772 : vector<2x32xi1>, vector<2x32xf32>
    %cst_553 = arith.constant 1.000000e+00 : f32
    %1778 = vector.broadcast %cst_553 : f32 to vector<2x32xf32>
    %1779 = arith.cmpf ogt, %1777, %1778 : vector<2x32xf32>
    %1780 = arith.extui %1779 : vector<2x32xi1> to vector<2x32xi32>
    %1781 = arith.sitofp %1780 : vector<2x32xi32> to vector<2x32xf32>
    %cst_554 = arith.constant 0.949999988 : f32
    %1782 = vector.broadcast %cst_554 : f32 to vector<2x32xf32>
    %1783 = arith.mulf %1782, %1777 : vector<2x32xf32>
    %1784 = arith.addf %1783, %6 : vector<2x32xf32>
    %cst_555 = arith.constant 1.000000e+00 : f32
    %1785 = vector.broadcast %cst_555 : f32 to vector<2x32xf32>
    %1786 = arith.cmpf ogt, %1777, %1785 : vector<2x32xf32>
    %cst_556 = arith.constant 1.000000e+00 : f32
    %1787 = vector.broadcast %cst_556 : f32 to vector<2x32xf32>
    %1788 = arith.subf %1784, %1787 : vector<2x32xf32>
    %1789 = arith.select %1786, %1788, %1784 : vector<2x32xi1>, vector<2x32xf32>
    %cst_557 = arith.constant 1.000000e+00 : f32
    %1790 = vector.broadcast %cst_557 : f32 to vector<2x32xf32>
    %1791 = arith.cmpf ogt, %1789, %1790 : vector<2x32xf32>
    %1792 = arith.extui %1791 : vector<2x32xi1> to vector<2x32xi32>
    %1793 = arith.sitofp %1792 : vector<2x32xi32> to vector<2x32xf32>
    %1794 = tpu.concatenate %1757, %1769, %1781, %1793 in 0 : vector<2x32xf32>, vector<2x32xf32>, vector<2x32xf32>, vector<2x32xf32> -> vector<8x32xf32>
    %cst_558 = arith.constant dense<0.000000e+00> : vector<8x8xf32>
    %1795 = tpu.matmul %1794, %10, %cst_558 {dimension_numbers = #tpu.dot_dimension_numbers<[1], [0], [0], [1], [0, 0, 1, 1], [], []>} : vector<8x32xf32>, vector<32x8xf32>, vector<8x8xf32> -> vector<8x8xf32>
    %1796 = vector.broadcast %13 : vector<1x8xf32> to vector<8x8xf32>
    %1797 = arith.addf %1795, %1796 : vector<8x8xf32>
    %1798 = vector.extract_strided_slice %1797 {offsets = [0, 0], sizes = [2, 8], strides = [1, 1]} : vector<8x8xf32> to vector<2x8xf32>
    %cst_559 = arith.constant 0.949999988 : f32
    %1799 = vector.broadcast %cst_559 : f32 to vector<2x8xf32>
    %1800 = arith.mulf %1799, %1740 : vector<2x8xf32>
    %1801 = arith.addf %1800, %1798 : vector<2x8xf32>
    %cst_560 = arith.constant 1.000000e+00 : f32
    %1802 = vector.broadcast %cst_560 : f32 to vector<2x8xf32>
    %1803 = arith.cmpf ogt, %1740, %1802 : vector<2x8xf32>
    %cst_561 = arith.constant 1.000000e+00 : f32
    %1804 = vector.broadcast %cst_561 : f32 to vector<2x8xf32>
    %1805 = arith.subf %1801, %1804 : vector<2x8xf32>
    %1806 = arith.select %1803, %1805, %1801 : vector<2x8xi1>, vector<2x8xf32>
    %cst_562 = arith.constant 1.000000e+00 : f32
    %1807 = vector.broadcast %cst_562 : f32 to vector<2x8xf32>
    %1808 = arith.cmpf ogt, %1806, %1807 : vector<2x8xf32>
    %1809 = arith.extui %1808 : vector<2x8xi1> to vector<2x8xi32>
    %1810 = arith.sitofp %1809 : vector<2x8xi32> to vector<2x8xf32>
    %1811 = arith.addf %1745, %1810 : vector<2x8xf32>
    %1812 = vector.extract_strided_slice %1797 {offsets = [2, 0], sizes = [2, 8], strides = [1, 1]} : vector<8x8xf32> to vector<2x8xf32>
    %cst_563 = arith.constant 0.949999988 : f32
    %1813 = vector.broadcast %cst_563 : f32 to vector<2x8xf32>
    %1814 = arith.mulf %1813, %1806 : vector<2x8xf32>
    %1815 = arith.addf %1814, %1812 : vector<2x8xf32>
    %cst_564 = arith.constant 1.000000e+00 : f32
    %1816 = vector.broadcast %cst_564 : f32 to vector<2x8xf32>
    %1817 = arith.cmpf ogt, %1806, %1816 : vector<2x8xf32>
    %cst_565 = arith.constant 1.000000e+00 : f32
    %1818 = vector.broadcast %cst_565 : f32 to vector<2x8xf32>
    %1819 = arith.subf %1815, %1818 : vector<2x8xf32>
    %1820 = arith.select %1817, %1819, %1815 : vector<2x8xi1>, vector<2x8xf32>
    %cst_566 = arith.constant 1.000000e+00 : f32
    %1821 = vector.broadcast %cst_566 : f32 to vector<2x8xf32>
    %1822 = arith.cmpf ogt, %1820, %1821 : vector<2x8xf32>
    %1823 = arith.extui %1822 : vector<2x8xi1> to vector<2x8xi32>
    %1824 = arith.sitofp %1823 : vector<2x8xi32> to vector<2x8xf32>
    %1825 = arith.addf %1811, %1824 : vector<2x8xf32>
    %1826 = vector.extract_strided_slice %1797 {offsets = [4, 0], sizes = [2, 8], strides = [1, 1]} : vector<8x8xf32> to vector<2x8xf32>
    %cst_567 = arith.constant 0.949999988 : f32
    %1827 = vector.broadcast %cst_567 : f32 to vector<2x8xf32>
    %1828 = arith.mulf %1827, %1820 : vector<2x8xf32>
    %1829 = arith.addf %1828, %1826 : vector<2x8xf32>
    %cst_568 = arith.constant 1.000000e+00 : f32
    %1830 = vector.broadcast %cst_568 : f32 to vector<2x8xf32>
    %1831 = arith.cmpf ogt, %1820, %1830 : vector<2x8xf32>
    %cst_569 = arith.constant 1.000000e+00 : f32
    %1832 = vector.broadcast %cst_569 : f32 to vector<2x8xf32>
    %1833 = arith.subf %1829, %1832 : vector<2x8xf32>
    %1834 = arith.select %1831, %1833, %1829 : vector<2x8xi1>, vector<2x8xf32>
    %cst_570 = arith.constant 1.000000e+00 : f32
    %1835 = vector.broadcast %cst_570 : f32 to vector<2x8xf32>
    %1836 = arith.cmpf ogt, %1834, %1835 : vector<2x8xf32>
    %1837 = arith.extui %1836 : vector<2x8xi1> to vector<2x8xi32>
    %1838 = arith.sitofp %1837 : vector<2x8xi32> to vector<2x8xf32>
    %1839 = arith.addf %1825, %1838 : vector<2x8xf32>
    %1840 = vector.extract_strided_slice %1797 {offsets = [6, 0], sizes = [2, 8], strides = [1, 1]} : vector<8x8xf32> to vector<2x8xf32>
    %cst_571 = arith.constant 0.949999988 : f32
    %1841 = vector.broadcast %cst_571 : f32 to vector<2x8xf32>
    %1842 = arith.mulf %1841, %1834 : vector<2x8xf32>
    %1843 = arith.addf %1842, %1840 : vector<2x8xf32>
    %cst_572 = arith.constant 1.000000e+00 : f32
    %1844 = vector.broadcast %cst_572 : f32 to vector<2x8xf32>
    %1845 = arith.cmpf ogt, %1834, %1844 : vector<2x8xf32>
    %cst_573 = arith.constant 1.000000e+00 : f32
    %1846 = vector.broadcast %cst_573 : f32 to vector<2x8xf32>
    %1847 = arith.subf %1843, %1846 : vector<2x8xf32>
    %1848 = arith.select %1845, %1847, %1843 : vector<2x8xi1>, vector<2x8xf32>
    %cst_574 = arith.constant 1.000000e+00 : f32
    %1849 = vector.broadcast %cst_574 : f32 to vector<2x8xf32>
    %1850 = arith.cmpf ogt, %1848, %1849 : vector<2x8xf32>
    %1851 = arith.extui %1850 : vector<2x8xi1> to vector<2x8xi32>
    %1852 = arith.sitofp %1851 : vector<2x8xi32> to vector<2x8xf32>
    %1853 = arith.addf %1839, %1852 : vector<2x8xf32>
    %cst_575 = arith.constant 0.949999988 : f32
    %1854 = vector.broadcast %cst_575 : f32 to vector<2x32xf32>
    %1855 = arith.mulf %1854, %1789 : vector<2x32xf32>
    %1856 = arith.addf %1855, %6 : vector<2x32xf32>
    %cst_576 = arith.constant 1.000000e+00 : f32
    %1857 = vector.broadcast %cst_576 : f32 to vector<2x32xf32>
    %1858 = arith.cmpf ogt, %1789, %1857 : vector<2x32xf32>
    %cst_577 = arith.constant 1.000000e+00 : f32
    %1859 = vector.broadcast %cst_577 : f32 to vector<2x32xf32>
    %1860 = arith.subf %1856, %1859 : vector<2x32xf32>
    %1861 = arith.select %1858, %1860, %1856 : vector<2x32xi1>, vector<2x32xf32>
    %cst_578 = arith.constant 1.000000e+00 : f32
    %1862 = vector.broadcast %cst_578 : f32 to vector<2x32xf32>
    %1863 = arith.cmpf ogt, %1861, %1862 : vector<2x32xf32>
    %1864 = arith.extui %1863 : vector<2x32xi1> to vector<2x32xi32>
    %1865 = arith.sitofp %1864 : vector<2x32xi32> to vector<2x32xf32>
    %cst_579 = arith.constant 0.949999988 : f32
    %1866 = vector.broadcast %cst_579 : f32 to vector<2x32xf32>
    %1867 = arith.mulf %1866, %1861 : vector<2x32xf32>
    %1868 = arith.addf %1867, %6 : vector<2x32xf32>
    %cst_580 = arith.constant 1.000000e+00 : f32
    %1869 = vector.broadcast %cst_580 : f32 to vector<2x32xf32>
    %1870 = arith.cmpf ogt, %1861, %1869 : vector<2x32xf32>
    %cst_581 = arith.constant 1.000000e+00 : f32
    %1871 = vector.broadcast %cst_581 : f32 to vector<2x32xf32>
    %1872 = arith.subf %1868, %1871 : vector<2x32xf32>
    %1873 = arith.select %1870, %1872, %1868 : vector<2x32xi1>, vector<2x32xf32>
    %cst_582 = arith.constant 1.000000e+00 : f32
    %1874 = vector.broadcast %cst_582 : f32 to vector<2x32xf32>
    %1875 = arith.cmpf ogt, %1873, %1874 : vector<2x32xf32>
    %1876 = arith.extui %1875 : vector<2x32xi1> to vector<2x32xi32>
    %1877 = arith.sitofp %1876 : vector<2x32xi32> to vector<2x32xf32>
    %cst_583 = arith.constant 0.949999988 : f32
    %1878 = vector.broadcast %cst_583 : f32 to vector<2x32xf32>
    %1879 = arith.mulf %1878, %1873 : vector<2x32xf32>
    %1880 = arith.addf %1879, %6 : vector<2x32xf32>
    %cst_584 = arith.constant 1.000000e+00 : f32
    %1881 = vector.broadcast %cst_584 : f32 to vector<2x32xf32>
    %1882 = arith.cmpf ogt, %1873, %1881 : vector<2x32xf32>
    %cst_585 = arith.constant 1.000000e+00 : f32
    %1883 = vector.broadcast %cst_585 : f32 to vector<2x32xf32>
    %1884 = arith.subf %1880, %1883 : vector<2x32xf32>
    %1885 = arith.select %1882, %1884, %1880 : vector<2x32xi1>, vector<2x32xf32>
    %cst_586 = arith.constant 1.000000e+00 : f32
    %1886 = vector.broadcast %cst_586 : f32 to vector<2x32xf32>
    %1887 = arith.cmpf ogt, %1885, %1886 : vector<2x32xf32>
    %1888 = arith.extui %1887 : vector<2x32xi1> to vector<2x32xi32>
    %1889 = arith.sitofp %1888 : vector<2x32xi32> to vector<2x32xf32>
    %cst_587 = arith.constant 0.949999988 : f32
    %1890 = vector.broadcast %cst_587 : f32 to vector<2x32xf32>
    %1891 = arith.mulf %1890, %1885 : vector<2x32xf32>
    %1892 = arith.addf %1891, %6 : vector<2x32xf32>
    %cst_588 = arith.constant 1.000000e+00 : f32
    %1893 = vector.broadcast %cst_588 : f32 to vector<2x32xf32>
    %1894 = arith.cmpf ogt, %1885, %1893 : vector<2x32xf32>
    %cst_589 = arith.constant 1.000000e+00 : f32
    %1895 = vector.broadcast %cst_589 : f32 to vector<2x32xf32>
    %1896 = arith.subf %1892, %1895 : vector<2x32xf32>
    %1897 = arith.select %1894, %1896, %1892 : vector<2x32xi1>, vector<2x32xf32>
    %cst_590 = arith.constant 1.000000e+00 : f32
    %1898 = vector.broadcast %cst_590 : f32 to vector<2x32xf32>
    %1899 = arith.cmpf ogt, %1897, %1898 : vector<2x32xf32>
    %1900 = arith.extui %1899 : vector<2x32xi1> to vector<2x32xi32>
    %1901 = arith.sitofp %1900 : vector<2x32xi32> to vector<2x32xf32>
    %1902 = tpu.concatenate %1865, %1877, %1889, %1901 in 0 : vector<2x32xf32>, vector<2x32xf32>, vector<2x32xf32>, vector<2x32xf32> -> vector<8x32xf32>
    %cst_591 = arith.constant dense<0.000000e+00> : vector<8x8xf32>
    %1903 = tpu.matmul %1902, %10, %cst_591 {dimension_numbers = #tpu.dot_dimension_numbers<[1], [0], [0], [1], [0, 0, 1, 1], [], []>} : vector<8x32xf32>, vector<32x8xf32>, vector<8x8xf32> -> vector<8x8xf32>
    %1904 = vector.broadcast %13 : vector<1x8xf32> to vector<8x8xf32>
    %1905 = arith.addf %1903, %1904 : vector<8x8xf32>
    %1906 = vector.extract_strided_slice %1905 {offsets = [0, 0], sizes = [2, 8], strides = [1, 1]} : vector<8x8xf32> to vector<2x8xf32>
    %cst_592 = arith.constant 0.949999988 : f32
    %1907 = vector.broadcast %cst_592 : f32 to vector<2x8xf32>
    %1908 = arith.mulf %1907, %1848 : vector<2x8xf32>
    %1909 = arith.addf %1908, %1906 : vector<2x8xf32>
    %cst_593 = arith.constant 1.000000e+00 : f32
    %1910 = vector.broadcast %cst_593 : f32 to vector<2x8xf32>
    %1911 = arith.cmpf ogt, %1848, %1910 : vector<2x8xf32>
    %cst_594 = arith.constant 1.000000e+00 : f32
    %1912 = vector.broadcast %cst_594 : f32 to vector<2x8xf32>
    %1913 = arith.subf %1909, %1912 : vector<2x8xf32>
    %1914 = arith.select %1911, %1913, %1909 : vector<2x8xi1>, vector<2x8xf32>
    %cst_595 = arith.constant 1.000000e+00 : f32
    %1915 = vector.broadcast %cst_595 : f32 to vector<2x8xf32>
    %1916 = arith.cmpf ogt, %1914, %1915 : vector<2x8xf32>
    %1917 = arith.extui %1916 : vector<2x8xi1> to vector<2x8xi32>
    %1918 = arith.sitofp %1917 : vector<2x8xi32> to vector<2x8xf32>
    %1919 = arith.addf %1853, %1918 : vector<2x8xf32>
    %1920 = vector.extract_strided_slice %1905 {offsets = [2, 0], sizes = [2, 8], strides = [1, 1]} : vector<8x8xf32> to vector<2x8xf32>
    %cst_596 = arith.constant 0.949999988 : f32
    %1921 = vector.broadcast %cst_596 : f32 to vector<2x8xf32>
    %1922 = arith.mulf %1921, %1914 : vector<2x8xf32>
    %1923 = arith.addf %1922, %1920 : vector<2x8xf32>
    %cst_597 = arith.constant 1.000000e+00 : f32
    %1924 = vector.broadcast %cst_597 : f32 to vector<2x8xf32>
    %1925 = arith.cmpf ogt, %1914, %1924 : vector<2x8xf32>
    %cst_598 = arith.constant 1.000000e+00 : f32
    %1926 = vector.broadcast %cst_598 : f32 to vector<2x8xf32>
    %1927 = arith.subf %1923, %1926 : vector<2x8xf32>
    %1928 = arith.select %1925, %1927, %1923 : vector<2x8xi1>, vector<2x8xf32>
    %cst_599 = arith.constant 1.000000e+00 : f32
    %1929 = vector.broadcast %cst_599 : f32 to vector<2x8xf32>
    %1930 = arith.cmpf ogt, %1928, %1929 : vector<2x8xf32>
    %1931 = arith.extui %1930 : vector<2x8xi1> to vector<2x8xi32>
    %1932 = arith.sitofp %1931 : vector<2x8xi32> to vector<2x8xf32>
    %1933 = arith.addf %1919, %1932 : vector<2x8xf32>
    %1934 = vector.extract_strided_slice %1905 {offsets = [4, 0], sizes = [2, 8], strides = [1, 1]} : vector<8x8xf32> to vector<2x8xf32>
    %cst_600 = arith.constant 0.949999988 : f32
    %1935 = vector.broadcast %cst_600 : f32 to vector<2x8xf32>
    %1936 = arith.mulf %1935, %1928 : vector<2x8xf32>
    %1937 = arith.addf %1936, %1934 : vector<2x8xf32>
    %cst_601 = arith.constant 1.000000e+00 : f32
    %1938 = vector.broadcast %cst_601 : f32 to vector<2x8xf32>
    %1939 = arith.cmpf ogt, %1928, %1938 : vector<2x8xf32>
    %cst_602 = arith.constant 1.000000e+00 : f32
    %1940 = vector.broadcast %cst_602 : f32 to vector<2x8xf32>
    %1941 = arith.subf %1937, %1940 : vector<2x8xf32>
    %1942 = arith.select %1939, %1941, %1937 : vector<2x8xi1>, vector<2x8xf32>
    %cst_603 = arith.constant 1.000000e+00 : f32
    %1943 = vector.broadcast %cst_603 : f32 to vector<2x8xf32>
    %1944 = arith.cmpf ogt, %1942, %1943 : vector<2x8xf32>
    %1945 = arith.extui %1944 : vector<2x8xi1> to vector<2x8xi32>
    %1946 = arith.sitofp %1945 : vector<2x8xi32> to vector<2x8xf32>
    %1947 = arith.addf %1933, %1946 : vector<2x8xf32>
    %1948 = vector.extract_strided_slice %1905 {offsets = [6, 0], sizes = [2, 8], strides = [1, 1]} : vector<8x8xf32> to vector<2x8xf32>
    %cst_604 = arith.constant 0.949999988 : f32
    %1949 = vector.broadcast %cst_604 : f32 to vector<2x8xf32>
    %1950 = arith.mulf %1949, %1942 : vector<2x8xf32>
    %1951 = arith.addf %1950, %1948 : vector<2x8xf32>
    %cst_605 = arith.constant 1.000000e+00 : f32
    %1952 = vector.broadcast %cst_605 : f32 to vector<2x8xf32>
    %1953 = arith.cmpf ogt, %1942, %1952 : vector<2x8xf32>
    %cst_606 = arith.constant 1.000000e+00 : f32
    %1954 = vector.broadcast %cst_606 : f32 to vector<2x8xf32>
    %1955 = arith.subf %1951, %1954 : vector<2x8xf32>
    %1956 = arith.select %1953, %1955, %1951 : vector<2x8xi1>, vector<2x8xf32>
    %cst_607 = arith.constant 1.000000e+00 : f32
    %1957 = vector.broadcast %cst_607 : f32 to vector<2x8xf32>
    %1958 = arith.cmpf ogt, %1956, %1957 : vector<2x8xf32>
    %1959 = arith.extui %1958 : vector<2x8xi1> to vector<2x8xi32>
    %1960 = arith.sitofp %1959 : vector<2x8xi32> to vector<2x8xf32>
    %1961 = arith.addf %1947, %1960 : vector<2x8xf32>
    %cst_608 = arith.constant 0.949999988 : f32
    %1962 = vector.broadcast %cst_608 : f32 to vector<2x32xf32>
    %1963 = arith.mulf %1962, %1897 : vector<2x32xf32>
    %1964 = arith.addf %1963, %6 : vector<2x32xf32>
    %cst_609 = arith.constant 1.000000e+00 : f32
    %1965 = vector.broadcast %cst_609 : f32 to vector<2x32xf32>
    %1966 = arith.cmpf ogt, %1897, %1965 : vector<2x32xf32>
    %cst_610 = arith.constant 1.000000e+00 : f32
    %1967 = vector.broadcast %cst_610 : f32 to vector<2x32xf32>
    %1968 = arith.subf %1964, %1967 : vector<2x32xf32>
    %1969 = arith.select %1966, %1968, %1964 : vector<2x32xi1>, vector<2x32xf32>
    %cst_611 = arith.constant 1.000000e+00 : f32
    %1970 = vector.broadcast %cst_611 : f32 to vector<2x32xf32>
    %1971 = arith.cmpf ogt, %1969, %1970 : vector<2x32xf32>
    %1972 = arith.extui %1971 : vector<2x32xi1> to vector<2x32xi32>
    %1973 = arith.sitofp %1972 : vector<2x32xi32> to vector<2x32xf32>
    %cst_612 = arith.constant 0.949999988 : f32
    %1974 = vector.broadcast %cst_612 : f32 to vector<2x32xf32>
    %1975 = arith.mulf %1974, %1969 : vector<2x32xf32>
    %1976 = arith.addf %1975, %6 : vector<2x32xf32>
    %cst_613 = arith.constant 1.000000e+00 : f32
    %1977 = vector.broadcast %cst_613 : f32 to vector<2x32xf32>
    %1978 = arith.cmpf ogt, %1969, %1977 : vector<2x32xf32>
    %cst_614 = arith.constant 1.000000e+00 : f32
    %1979 = vector.broadcast %cst_614 : f32 to vector<2x32xf32>
    %1980 = arith.subf %1976, %1979 : vector<2x32xf32>
    %1981 = arith.select %1978, %1980, %1976 : vector<2x32xi1>, vector<2x32xf32>
    %cst_615 = arith.constant 1.000000e+00 : f32
    %1982 = vector.broadcast %cst_615 : f32 to vector<2x32xf32>
    %1983 = arith.cmpf ogt, %1981, %1982 : vector<2x32xf32>
    %1984 = arith.extui %1983 : vector<2x32xi1> to vector<2x32xi32>
    %1985 = arith.sitofp %1984 : vector<2x32xi32> to vector<2x32xf32>
    %cst_616 = arith.constant 0.949999988 : f32
    %1986 = vector.broadcast %cst_616 : f32 to vector<2x32xf32>
    %1987 = arith.mulf %1986, %1981 : vector<2x32xf32>
    %1988 = arith.addf %1987, %6 : vector<2x32xf32>
    %cst_617 = arith.constant 1.000000e+00 : f32
    %1989 = vector.broadcast %cst_617 : f32 to vector<2x32xf32>
    %1990 = arith.cmpf ogt, %1981, %1989 : vector<2x32xf32>
    %cst_618 = arith.constant 1.000000e+00 : f32
    %1991 = vector.broadcast %cst_618 : f32 to vector<2x32xf32>
    %1992 = arith.subf %1988, %1991 : vector<2x32xf32>
    %1993 = arith.select %1990, %1992, %1988 : vector<2x32xi1>, vector<2x32xf32>
    %cst_619 = arith.constant 1.000000e+00 : f32
    %1994 = vector.broadcast %cst_619 : f32 to vector<2x32xf32>
    %1995 = arith.cmpf ogt, %1993, %1994 : vector<2x32xf32>
    %1996 = arith.extui %1995 : vector<2x32xi1> to vector<2x32xi32>
    %1997 = arith.sitofp %1996 : vector<2x32xi32> to vector<2x32xf32>
    %cst_620 = arith.constant 0.949999988 : f32
    %1998 = vector.broadcast %cst_620 : f32 to vector<2x32xf32>
    %1999 = arith.mulf %1998, %1993 : vector<2x32xf32>
    %2000 = arith.addf %1999, %6 : vector<2x32xf32>
    %cst_621 = arith.constant 1.000000e+00 : f32
    %2001 = vector.broadcast %cst_621 : f32 to vector<2x32xf32>
    %2002 = arith.cmpf ogt, %1993, %2001 : vector<2x32xf32>
    %cst_622 = arith.constant 1.000000e+00 : f32
    %2003 = vector.broadcast %cst_622 : f32 to vector<2x32xf32>
    %2004 = arith.subf %2000, %2003 : vector<2x32xf32>
    %2005 = arith.select %2002, %2004, %2000 : vector<2x32xi1>, vector<2x32xf32>
    %cst_623 = arith.constant 1.000000e+00 : f32
    %2006 = vector.broadcast %cst_623 : f32 to vector<2x32xf32>
    %2007 = arith.cmpf ogt, %2005, %2006 : vector<2x32xf32>
    %2008 = arith.extui %2007 : vector<2x32xi1> to vector<2x32xi32>
    %2009 = arith.sitofp %2008 : vector<2x32xi32> to vector<2x32xf32>
    %2010 = tpu.concatenate %1973, %1985, %1997, %2009 in 0 : vector<2x32xf32>, vector<2x32xf32>, vector<2x32xf32>, vector<2x32xf32> -> vector<8x32xf32>
    %cst_624 = arith.constant dense<0.000000e+00> : vector<8x8xf32>
    %2011 = tpu.matmul %2010, %10, %cst_624 {dimension_numbers = #tpu.dot_dimension_numbers<[1], [0], [0], [1], [0, 0, 1, 1], [], []>} : vector<8x32xf32>, vector<32x8xf32>, vector<8x8xf32> -> vector<8x8xf32>
    %2012 = vector.broadcast %13 : vector<1x8xf32> to vector<8x8xf32>
    %2013 = arith.addf %2011, %2012 : vector<8x8xf32>
    %2014 = vector.extract_strided_slice %2013 {offsets = [0, 0], sizes = [2, 8], strides = [1, 1]} : vector<8x8xf32> to vector<2x8xf32>
    %cst_625 = arith.constant 0.949999988 : f32
    %2015 = vector.broadcast %cst_625 : f32 to vector<2x8xf32>
    %2016 = arith.mulf %2015, %1956 : vector<2x8xf32>
    %2017 = arith.addf %2016, %2014 : vector<2x8xf32>
    %cst_626 = arith.constant 1.000000e+00 : f32
    %2018 = vector.broadcast %cst_626 : f32 to vector<2x8xf32>
    %2019 = arith.cmpf ogt, %1956, %2018 : vector<2x8xf32>
    %cst_627 = arith.constant 1.000000e+00 : f32
    %2020 = vector.broadcast %cst_627 : f32 to vector<2x8xf32>
    %2021 = arith.subf %2017, %2020 : vector<2x8xf32>
    %2022 = arith.select %2019, %2021, %2017 : vector<2x8xi1>, vector<2x8xf32>
    %cst_628 = arith.constant 1.000000e+00 : f32
    %2023 = vector.broadcast %cst_628 : f32 to vector<2x8xf32>
    %2024 = arith.cmpf ogt, %2022, %2023 : vector<2x8xf32>
    %2025 = arith.extui %2024 : vector<2x8xi1> to vector<2x8xi32>
    %2026 = arith.sitofp %2025 : vector<2x8xi32> to vector<2x8xf32>
    %2027 = arith.addf %1961, %2026 : vector<2x8xf32>
    %2028 = vector.extract_strided_slice %2013 {offsets = [2, 0], sizes = [2, 8], strides = [1, 1]} : vector<8x8xf32> to vector<2x8xf32>
    %cst_629 = arith.constant 0.949999988 : f32
    %2029 = vector.broadcast %cst_629 : f32 to vector<2x8xf32>
    %2030 = arith.mulf %2029, %2022 : vector<2x8xf32>
    %2031 = arith.addf %2030, %2028 : vector<2x8xf32>
    %cst_630 = arith.constant 1.000000e+00 : f32
    %2032 = vector.broadcast %cst_630 : f32 to vector<2x8xf32>
    %2033 = arith.cmpf ogt, %2022, %2032 : vector<2x8xf32>
    %cst_631 = arith.constant 1.000000e+00 : f32
    %2034 = vector.broadcast %cst_631 : f32 to vector<2x8xf32>
    %2035 = arith.subf %2031, %2034 : vector<2x8xf32>
    %2036 = arith.select %2033, %2035, %2031 : vector<2x8xi1>, vector<2x8xf32>
    %cst_632 = arith.constant 1.000000e+00 : f32
    %2037 = vector.broadcast %cst_632 : f32 to vector<2x8xf32>
    %2038 = arith.cmpf ogt, %2036, %2037 : vector<2x8xf32>
    %2039 = arith.extui %2038 : vector<2x8xi1> to vector<2x8xi32>
    %2040 = arith.sitofp %2039 : vector<2x8xi32> to vector<2x8xf32>
    %2041 = arith.addf %2027, %2040 : vector<2x8xf32>
    %2042 = vector.extract_strided_slice %2013 {offsets = [4, 0], sizes = [2, 8], strides = [1, 1]} : vector<8x8xf32> to vector<2x8xf32>
    %cst_633 = arith.constant 0.949999988 : f32
    %2043 = vector.broadcast %cst_633 : f32 to vector<2x8xf32>
    %2044 = arith.mulf %2043, %2036 : vector<2x8xf32>
    %2045 = arith.addf %2044, %2042 : vector<2x8xf32>
    %cst_634 = arith.constant 1.000000e+00 : f32
    %2046 = vector.broadcast %cst_634 : f32 to vector<2x8xf32>
    %2047 = arith.cmpf ogt, %2036, %2046 : vector<2x8xf32>
    %cst_635 = arith.constant 1.000000e+00 : f32
    %2048 = vector.broadcast %cst_635 : f32 to vector<2x8xf32>
    %2049 = arith.subf %2045, %2048 : vector<2x8xf32>
    %2050 = arith.select %2047, %2049, %2045 : vector<2x8xi1>, vector<2x8xf32>
    %cst_636 = arith.constant 1.000000e+00 : f32
    %2051 = vector.broadcast %cst_636 : f32 to vector<2x8xf32>
    %2052 = arith.cmpf ogt, %2050, %2051 : vector<2x8xf32>
    %2053 = arith.extui %2052 : vector<2x8xi1> to vector<2x8xi32>
    %2054 = arith.sitofp %2053 : vector<2x8xi32> to vector<2x8xf32>
    %2055 = arith.addf %2041, %2054 : vector<2x8xf32>
    %2056 = vector.extract_strided_slice %2013 {offsets = [6, 0], sizes = [2, 8], strides = [1, 1]} : vector<8x8xf32> to vector<2x8xf32>
    %cst_637 = arith.constant 0.949999988 : f32
    %2057 = vector.broadcast %cst_637 : f32 to vector<2x8xf32>
    %2058 = arith.mulf %2057, %2050 : vector<2x8xf32>
    %2059 = arith.addf %2058, %2056 : vector<2x8xf32>
    %cst_638 = arith.constant 1.000000e+00 : f32
    %2060 = vector.broadcast %cst_638 : f32 to vector<2x8xf32>
    %2061 = arith.cmpf ogt, %2050, %2060 : vector<2x8xf32>
    %cst_639 = arith.constant 1.000000e+00 : f32
    %2062 = vector.broadcast %cst_639 : f32 to vector<2x8xf32>
    %2063 = arith.subf %2059, %2062 : vector<2x8xf32>
    %2064 = arith.select %2061, %2063, %2059 : vector<2x8xi1>, vector<2x8xf32>
    %cst_640 = arith.constant 1.000000e+00 : f32
    %2065 = vector.broadcast %cst_640 : f32 to vector<2x8xf32>
    %2066 = arith.cmpf ogt, %2064, %2065 : vector<2x8xf32>
    %2067 = arith.extui %2066 : vector<2x8xi1> to vector<2x8xi32>
    %2068 = arith.sitofp %2067 : vector<2x8xi32> to vector<2x8xf32>
    %2069 = arith.addf %2055, %2068 : vector<2x8xf32>
    %cst_641 = arith.constant 0.949999988 : f32
    %2070 = vector.broadcast %cst_641 : f32 to vector<2x32xf32>
    %2071 = arith.mulf %2070, %2005 : vector<2x32xf32>
    %2072 = arith.addf %2071, %6 : vector<2x32xf32>
    %cst_642 = arith.constant 1.000000e+00 : f32
    %2073 = vector.broadcast %cst_642 : f32 to vector<2x32xf32>
    %2074 = arith.cmpf ogt, %2005, %2073 : vector<2x32xf32>
    %cst_643 = arith.constant 1.000000e+00 : f32
    %2075 = vector.broadcast %cst_643 : f32 to vector<2x32xf32>
    %2076 = arith.subf %2072, %2075 : vector<2x32xf32>
    %2077 = arith.select %2074, %2076, %2072 : vector<2x32xi1>, vector<2x32xf32>
    %cst_644 = arith.constant 1.000000e+00 : f32
    %2078 = vector.broadcast %cst_644 : f32 to vector<2x32xf32>
    %2079 = arith.cmpf ogt, %2077, %2078 : vector<2x32xf32>
    %2080 = arith.extui %2079 : vector<2x32xi1> to vector<2x32xi32>
    %2081 = arith.sitofp %2080 : vector<2x32xi32> to vector<2x32xf32>
    %cst_645 = arith.constant 0.949999988 : f32
    %2082 = vector.broadcast %cst_645 : f32 to vector<2x32xf32>
    %2083 = arith.mulf %2082, %2077 : vector<2x32xf32>
    %2084 = arith.addf %2083, %6 : vector<2x32xf32>
    %cst_646 = arith.constant 1.000000e+00 : f32
    %2085 = vector.broadcast %cst_646 : f32 to vector<2x32xf32>
    %2086 = arith.cmpf ogt, %2077, %2085 : vector<2x32xf32>
    %cst_647 = arith.constant 1.000000e+00 : f32
    %2087 = vector.broadcast %cst_647 : f32 to vector<2x32xf32>
    %2088 = arith.subf %2084, %2087 : vector<2x32xf32>
    %2089 = arith.select %2086, %2088, %2084 : vector<2x32xi1>, vector<2x32xf32>
    %cst_648 = arith.constant 1.000000e+00 : f32
    %2090 = vector.broadcast %cst_648 : f32 to vector<2x32xf32>
    %2091 = arith.cmpf ogt, %2089, %2090 : vector<2x32xf32>
    %2092 = arith.extui %2091 : vector<2x32xi1> to vector<2x32xi32>
    %2093 = arith.sitofp %2092 : vector<2x32xi32> to vector<2x32xf32>
    %cst_649 = arith.constant 0.949999988 : f32
    %2094 = vector.broadcast %cst_649 : f32 to vector<2x32xf32>
    %2095 = arith.mulf %2094, %2089 : vector<2x32xf32>
    %2096 = arith.addf %2095, %6 : vector<2x32xf32>
    %cst_650 = arith.constant 1.000000e+00 : f32
    %2097 = vector.broadcast %cst_650 : f32 to vector<2x32xf32>
    %2098 = arith.cmpf ogt, %2089, %2097 : vector<2x32xf32>
    %cst_651 = arith.constant 1.000000e+00 : f32
    %2099 = vector.broadcast %cst_651 : f32 to vector<2x32xf32>
    %2100 = arith.subf %2096, %2099 : vector<2x32xf32>
    %2101 = arith.select %2098, %2100, %2096 : vector<2x32xi1>, vector<2x32xf32>
    %cst_652 = arith.constant 1.000000e+00 : f32
    %2102 = vector.broadcast %cst_652 : f32 to vector<2x32xf32>
    %2103 = arith.cmpf ogt, %2101, %2102 : vector<2x32xf32>
    %2104 = arith.extui %2103 : vector<2x32xi1> to vector<2x32xi32>
    %2105 = arith.sitofp %2104 : vector<2x32xi32> to vector<2x32xf32>
    %cst_653 = arith.constant 0.949999988 : f32
    %2106 = vector.broadcast %cst_653 : f32 to vector<2x32xf32>
    %2107 = arith.mulf %2106, %2101 : vector<2x32xf32>
    %2108 = arith.addf %2107, %6 : vector<2x32xf32>
    %cst_654 = arith.constant 1.000000e+00 : f32
    %2109 = vector.broadcast %cst_654 : f32 to vector<2x32xf32>
    %2110 = arith.cmpf ogt, %2101, %2109 : vector<2x32xf32>
    %cst_655 = arith.constant 1.000000e+00 : f32
    %2111 = vector.broadcast %cst_655 : f32 to vector<2x32xf32>
    %2112 = arith.subf %2108, %2111 : vector<2x32xf32>
    %2113 = arith.select %2110, %2112, %2108 : vector<2x32xi1>, vector<2x32xf32>
    %cst_656 = arith.constant 1.000000e+00 : f32
    %2114 = vector.broadcast %cst_656 : f32 to vector<2x32xf32>
    %2115 = arith.cmpf ogt, %2113, %2114 : vector<2x32xf32>
    %2116 = arith.extui %2115 : vector<2x32xi1> to vector<2x32xi32>
    %2117 = arith.sitofp %2116 : vector<2x32xi32> to vector<2x32xf32>
    %2118 = tpu.concatenate %2081, %2093, %2105, %2117 in 0 : vector<2x32xf32>, vector<2x32xf32>, vector<2x32xf32>, vector<2x32xf32> -> vector<8x32xf32>
    %cst_657 = arith.constant dense<0.000000e+00> : vector<8x8xf32>
    %2119 = tpu.matmul %2118, %10, %cst_657 {dimension_numbers = #tpu.dot_dimension_numbers<[1], [0], [0], [1], [0, 0, 1, 1], [], []>} : vector<8x32xf32>, vector<32x8xf32>, vector<8x8xf32> -> vector<8x8xf32>
    %2120 = vector.broadcast %13 : vector<1x8xf32> to vector<8x8xf32>
    %2121 = arith.addf %2119, %2120 : vector<8x8xf32>
    %2122 = vector.extract_strided_slice %2121 {offsets = [0, 0], sizes = [2, 8], strides = [1, 1]} : vector<8x8xf32> to vector<2x8xf32>
    %cst_658 = arith.constant 0.949999988 : f32
    %2123 = vector.broadcast %cst_658 : f32 to vector<2x8xf32>
    %2124 = arith.mulf %2123, %2064 : vector<2x8xf32>
    %2125 = arith.addf %2124, %2122 : vector<2x8xf32>
    %cst_659 = arith.constant 1.000000e+00 : f32
    %2126 = vector.broadcast %cst_659 : f32 to vector<2x8xf32>
    %2127 = arith.cmpf ogt, %2064, %2126 : vector<2x8xf32>
    %cst_660 = arith.constant 1.000000e+00 : f32
    %2128 = vector.broadcast %cst_660 : f32 to vector<2x8xf32>
    %2129 = arith.subf %2125, %2128 : vector<2x8xf32>
    %2130 = arith.select %2127, %2129, %2125 : vector<2x8xi1>, vector<2x8xf32>
    %cst_661 = arith.constant 1.000000e+00 : f32
    %2131 = vector.broadcast %cst_661 : f32 to vector<2x8xf32>
    %2132 = arith.cmpf ogt, %2130, %2131 : vector<2x8xf32>
    %2133 = arith.extui %2132 : vector<2x8xi1> to vector<2x8xi32>
    %2134 = arith.sitofp %2133 : vector<2x8xi32> to vector<2x8xf32>
    %2135 = arith.addf %2069, %2134 : vector<2x8xf32>
    %2136 = vector.extract_strided_slice %2121 {offsets = [2, 0], sizes = [2, 8], strides = [1, 1]} : vector<8x8xf32> to vector<2x8xf32>
    %cst_662 = arith.constant 0.949999988 : f32
    %2137 = vector.broadcast %cst_662 : f32 to vector<2x8xf32>
    %2138 = arith.mulf %2137, %2130 : vector<2x8xf32>
    %2139 = arith.addf %2138, %2136 : vector<2x8xf32>
    %cst_663 = arith.constant 1.000000e+00 : f32
    %2140 = vector.broadcast %cst_663 : f32 to vector<2x8xf32>
    %2141 = arith.cmpf ogt, %2130, %2140 : vector<2x8xf32>
    %cst_664 = arith.constant 1.000000e+00 : f32
    %2142 = vector.broadcast %cst_664 : f32 to vector<2x8xf32>
    %2143 = arith.subf %2139, %2142 : vector<2x8xf32>
    %2144 = arith.select %2141, %2143, %2139 : vector<2x8xi1>, vector<2x8xf32>
    %cst_665 = arith.constant 1.000000e+00 : f32
    %2145 = vector.broadcast %cst_665 : f32 to vector<2x8xf32>
    %2146 = arith.cmpf ogt, %2144, %2145 : vector<2x8xf32>
    %2147 = arith.extui %2146 : vector<2x8xi1> to vector<2x8xi32>
    %2148 = arith.sitofp %2147 : vector<2x8xi32> to vector<2x8xf32>
    %2149 = arith.addf %2135, %2148 : vector<2x8xf32>
    %2150 = vector.extract_strided_slice %2121 {offsets = [4, 0], sizes = [2, 8], strides = [1, 1]} : vector<8x8xf32> to vector<2x8xf32>
    %cst_666 = arith.constant 0.949999988 : f32
    %2151 = vector.broadcast %cst_666 : f32 to vector<2x8xf32>
    %2152 = arith.mulf %2151, %2144 : vector<2x8xf32>
    %2153 = arith.addf %2152, %2150 : vector<2x8xf32>
    %cst_667 = arith.constant 1.000000e+00 : f32
    %2154 = vector.broadcast %cst_667 : f32 to vector<2x8xf32>
    %2155 = arith.cmpf ogt, %2144, %2154 : vector<2x8xf32>
    %cst_668 = arith.constant 1.000000e+00 : f32
    %2156 = vector.broadcast %cst_668 : f32 to vector<2x8xf32>
    %2157 = arith.subf %2153, %2156 : vector<2x8xf32>
    %2158 = arith.select %2155, %2157, %2153 : vector<2x8xi1>, vector<2x8xf32>
    %cst_669 = arith.constant 1.000000e+00 : f32
    %2159 = vector.broadcast %cst_669 : f32 to vector<2x8xf32>
    %2160 = arith.cmpf ogt, %2158, %2159 : vector<2x8xf32>
    %2161 = arith.extui %2160 : vector<2x8xi1> to vector<2x8xi32>
    %2162 = arith.sitofp %2161 : vector<2x8xi32> to vector<2x8xf32>
    %2163 = arith.addf %2149, %2162 : vector<2x8xf32>
    %2164 = vector.extract_strided_slice %2121 {offsets = [6, 0], sizes = [2, 8], strides = [1, 1]} : vector<8x8xf32> to vector<2x8xf32>
    %cst_670 = arith.constant 0.949999988 : f32
    %2165 = vector.broadcast %cst_670 : f32 to vector<2x8xf32>
    %2166 = arith.mulf %2165, %2158 : vector<2x8xf32>
    %2167 = arith.addf %2166, %2164 : vector<2x8xf32>
    %cst_671 = arith.constant 1.000000e+00 : f32
    %2168 = vector.broadcast %cst_671 : f32 to vector<2x8xf32>
    %2169 = arith.cmpf ogt, %2158, %2168 : vector<2x8xf32>
    %cst_672 = arith.constant 1.000000e+00 : f32
    %2170 = vector.broadcast %cst_672 : f32 to vector<2x8xf32>
    %2171 = arith.subf %2167, %2170 : vector<2x8xf32>
    %2172 = arith.select %2169, %2171, %2167 : vector<2x8xi1>, vector<2x8xf32>
    %cst_673 = arith.constant 1.000000e+00 : f32
    %2173 = vector.broadcast %cst_673 : f32 to vector<2x8xf32>
    %2174 = arith.cmpf ogt, %2172, %2173 : vector<2x8xf32>
    %2175 = arith.extui %2174 : vector<2x8xi1> to vector<2x8xi32>
    %2176 = arith.sitofp %2175 : vector<2x8xi32> to vector<2x8xf32>
    %2177 = arith.addf %2163, %2176 : vector<2x8xf32>
    %cst_674 = arith.constant 0.949999988 : f32
    %2178 = vector.broadcast %cst_674 : f32 to vector<2x32xf32>
    %2179 = arith.mulf %2178, %2113 : vector<2x32xf32>
    %2180 = arith.addf %2179, %6 : vector<2x32xf32>
    %cst_675 = arith.constant 1.000000e+00 : f32
    %2181 = vector.broadcast %cst_675 : f32 to vector<2x32xf32>
    %2182 = arith.cmpf ogt, %2113, %2181 : vector<2x32xf32>
    %cst_676 = arith.constant 1.000000e+00 : f32
    %2183 = vector.broadcast %cst_676 : f32 to vector<2x32xf32>
    %2184 = arith.subf %2180, %2183 : vector<2x32xf32>
    %2185 = arith.select %2182, %2184, %2180 : vector<2x32xi1>, vector<2x32xf32>
    %cst_677 = arith.constant 1.000000e+00 : f32
    %2186 = vector.broadcast %cst_677 : f32 to vector<2x32xf32>
    %2187 = arith.cmpf ogt, %2185, %2186 : vector<2x32xf32>
    %2188 = arith.extui %2187 : vector<2x32xi1> to vector<2x32xi32>
    %2189 = arith.sitofp %2188 : vector<2x32xi32> to vector<2x32xf32>
    %cst_678 = arith.constant 0.949999988 : f32
    %2190 = vector.broadcast %cst_678 : f32 to vector<2x32xf32>
    %2191 = arith.mulf %2190, %2185 : vector<2x32xf32>
    %2192 = arith.addf %2191, %6 : vector<2x32xf32>
    %cst_679 = arith.constant 1.000000e+00 : f32
    %2193 = vector.broadcast %cst_679 : f32 to vector<2x32xf32>
    %2194 = arith.cmpf ogt, %2185, %2193 : vector<2x32xf32>
    %cst_680 = arith.constant 1.000000e+00 : f32
    %2195 = vector.broadcast %cst_680 : f32 to vector<2x32xf32>
    %2196 = arith.subf %2192, %2195 : vector<2x32xf32>
    %2197 = arith.select %2194, %2196, %2192 : vector<2x32xi1>, vector<2x32xf32>
    %cst_681 = arith.constant 1.000000e+00 : f32
    %2198 = vector.broadcast %cst_681 : f32 to vector<2x32xf32>
    %2199 = arith.cmpf ogt, %2197, %2198 : vector<2x32xf32>
    %2200 = arith.extui %2199 : vector<2x32xi1> to vector<2x32xi32>
    %2201 = arith.sitofp %2200 : vector<2x32xi32> to vector<2x32xf32>
    %cst_682 = arith.constant 0.949999988 : f32
    %2202 = vector.broadcast %cst_682 : f32 to vector<2x32xf32>
    %2203 = arith.mulf %2202, %2197 : vector<2x32xf32>
    %2204 = arith.addf %2203, %6 : vector<2x32xf32>
    %cst_683 = arith.constant 1.000000e+00 : f32
    %2205 = vector.broadcast %cst_683 : f32 to vector<2x32xf32>
    %2206 = arith.cmpf ogt, %2197, %2205 : vector<2x32xf32>
    %cst_684 = arith.constant 1.000000e+00 : f32
    %2207 = vector.broadcast %cst_684 : f32 to vector<2x32xf32>
    %2208 = arith.subf %2204, %2207 : vector<2x32xf32>
    %2209 = arith.select %2206, %2208, %2204 : vector<2x32xi1>, vector<2x32xf32>
    %cst_685 = arith.constant 1.000000e+00 : f32
    %2210 = vector.broadcast %cst_685 : f32 to vector<2x32xf32>
    %2211 = arith.cmpf ogt, %2209, %2210 : vector<2x32xf32>
    %2212 = arith.extui %2211 : vector<2x32xi1> to vector<2x32xi32>
    %2213 = arith.sitofp %2212 : vector<2x32xi32> to vector<2x32xf32>
    %cst_686 = arith.constant 0.949999988 : f32
    %2214 = vector.broadcast %cst_686 : f32 to vector<2x32xf32>
    %2215 = arith.mulf %2214, %2209 : vector<2x32xf32>
    %2216 = arith.addf %2215, %6 : vector<2x32xf32>
    %cst_687 = arith.constant 1.000000e+00 : f32
    %2217 = vector.broadcast %cst_687 : f32 to vector<2x32xf32>
    %2218 = arith.cmpf ogt, %2209, %2217 : vector<2x32xf32>
    %cst_688 = arith.constant 1.000000e+00 : f32
    %2219 = vector.broadcast %cst_688 : f32 to vector<2x32xf32>
    %2220 = arith.subf %2216, %2219 : vector<2x32xf32>
    %2221 = arith.select %2218, %2220, %2216 : vector<2x32xi1>, vector<2x32xf32>
    %cst_689 = arith.constant 1.000000e+00 : f32
    %2222 = vector.broadcast %cst_689 : f32 to vector<2x32xf32>
    %2223 = arith.cmpf ogt, %2221, %2222 : vector<2x32xf32>
    %2224 = arith.extui %2223 : vector<2x32xi1> to vector<2x32xi32>
    %2225 = arith.sitofp %2224 : vector<2x32xi32> to vector<2x32xf32>
    %2226 = tpu.concatenate %2189, %2201, %2213, %2225 in 0 : vector<2x32xf32>, vector<2x32xf32>, vector<2x32xf32>, vector<2x32xf32> -> vector<8x32xf32>
    %cst_690 = arith.constant dense<0.000000e+00> : vector<8x8xf32>
    %2227 = tpu.matmul %2226, %10, %cst_690 {dimension_numbers = #tpu.dot_dimension_numbers<[1], [0], [0], [1], [0, 0, 1, 1], [], []>} : vector<8x32xf32>, vector<32x8xf32>, vector<8x8xf32> -> vector<8x8xf32>
    %2228 = vector.broadcast %13 : vector<1x8xf32> to vector<8x8xf32>
    %2229 = arith.addf %2227, %2228 : vector<8x8xf32>
    %2230 = vector.extract_strided_slice %2229 {offsets = [0, 0], sizes = [2, 8], strides = [1, 1]} : vector<8x8xf32> to vector<2x8xf32>
    %cst_691 = arith.constant 0.949999988 : f32
    %2231 = vector.broadcast %cst_691 : f32 to vector<2x8xf32>
    %2232 = arith.mulf %2231, %2172 : vector<2x8xf32>
    %2233 = arith.addf %2232, %2230 : vector<2x8xf32>
    %cst_692 = arith.constant 1.000000e+00 : f32
    %2234 = vector.broadcast %cst_692 : f32 to vector<2x8xf32>
    %2235 = arith.cmpf ogt, %2172, %2234 : vector<2x8xf32>
    %cst_693 = arith.constant 1.000000e+00 : f32
    %2236 = vector.broadcast %cst_693 : f32 to vector<2x8xf32>
    %2237 = arith.subf %2233, %2236 : vector<2x8xf32>
    %2238 = arith.select %2235, %2237, %2233 : vector<2x8xi1>, vector<2x8xf32>
    %cst_694 = arith.constant 1.000000e+00 : f32
    %2239 = vector.broadcast %cst_694 : f32 to vector<2x8xf32>
    %2240 = arith.cmpf ogt, %2238, %2239 : vector<2x8xf32>
    %2241 = arith.extui %2240 : vector<2x8xi1> to vector<2x8xi32>
    %2242 = arith.sitofp %2241 : vector<2x8xi32> to vector<2x8xf32>
    %2243 = arith.addf %2177, %2242 : vector<2x8xf32>
    %2244 = vector.extract_strided_slice %2229 {offsets = [2, 0], sizes = [2, 8], strides = [1, 1]} : vector<8x8xf32> to vector<2x8xf32>
    %cst_695 = arith.constant 0.949999988 : f32
    %2245 = vector.broadcast %cst_695 : f32 to vector<2x8xf32>
    %2246 = arith.mulf %2245, %2238 : vector<2x8xf32>
    %2247 = arith.addf %2246, %2244 : vector<2x8xf32>
    %cst_696 = arith.constant 1.000000e+00 : f32
    %2248 = vector.broadcast %cst_696 : f32 to vector<2x8xf32>
    %2249 = arith.cmpf ogt, %2238, %2248 : vector<2x8xf32>
    %cst_697 = arith.constant 1.000000e+00 : f32
    %2250 = vector.broadcast %cst_697 : f32 to vector<2x8xf32>
    %2251 = arith.subf %2247, %2250 : vector<2x8xf32>
    %2252 = arith.select %2249, %2251, %2247 : vector<2x8xi1>, vector<2x8xf32>
    %cst_698 = arith.constant 1.000000e+00 : f32
    %2253 = vector.broadcast %cst_698 : f32 to vector<2x8xf32>
    %2254 = arith.cmpf ogt, %2252, %2253 : vector<2x8xf32>
    %2255 = arith.extui %2254 : vector<2x8xi1> to vector<2x8xi32>
    %2256 = arith.sitofp %2255 : vector<2x8xi32> to vector<2x8xf32>
    %2257 = arith.addf %2243, %2256 : vector<2x8xf32>
    %2258 = vector.extract_strided_slice %2229 {offsets = [4, 0], sizes = [2, 8], strides = [1, 1]} : vector<8x8xf32> to vector<2x8xf32>
    %cst_699 = arith.constant 0.949999988 : f32
    %2259 = vector.broadcast %cst_699 : f32 to vector<2x8xf32>
    %2260 = arith.mulf %2259, %2252 : vector<2x8xf32>
    %2261 = arith.addf %2260, %2258 : vector<2x8xf32>
    %cst_700 = arith.constant 1.000000e+00 : f32
    %2262 = vector.broadcast %cst_700 : f32 to vector<2x8xf32>
    %2263 = arith.cmpf ogt, %2252, %2262 : vector<2x8xf32>
    %cst_701 = arith.constant 1.000000e+00 : f32
    %2264 = vector.broadcast %cst_701 : f32 to vector<2x8xf32>
    %2265 = arith.subf %2261, %2264 : vector<2x8xf32>
    %2266 = arith.select %2263, %2265, %2261 : vector<2x8xi1>, vector<2x8xf32>
    %cst_702 = arith.constant 1.000000e+00 : f32
    %2267 = vector.broadcast %cst_702 : f32 to vector<2x8xf32>
    %2268 = arith.cmpf ogt, %2266, %2267 : vector<2x8xf32>
    %2269 = arith.extui %2268 : vector<2x8xi1> to vector<2x8xi32>
    %2270 = arith.sitofp %2269 : vector<2x8xi32> to vector<2x8xf32>
    %2271 = arith.addf %2257, %2270 : vector<2x8xf32>
    %2272 = vector.extract_strided_slice %2229 {offsets = [6, 0], sizes = [2, 8], strides = [1, 1]} : vector<8x8xf32> to vector<2x8xf32>
    %cst_703 = arith.constant 0.949999988 : f32
    %2273 = vector.broadcast %cst_703 : f32 to vector<2x8xf32>
    %2274 = arith.mulf %2273, %2266 : vector<2x8xf32>
    %2275 = arith.addf %2274, %2272 : vector<2x8xf32>
    %cst_704 = arith.constant 1.000000e+00 : f32
    %2276 = vector.broadcast %cst_704 : f32 to vector<2x8xf32>
    %2277 = arith.cmpf ogt, %2266, %2276 : vector<2x8xf32>
    %cst_705 = arith.constant 1.000000e+00 : f32
    %2278 = vector.broadcast %cst_705 : f32 to vector<2x8xf32>
    %2279 = arith.subf %2275, %2278 : vector<2x8xf32>
    %2280 = arith.select %2277, %2279, %2275 : vector<2x8xi1>, vector<2x8xf32>
    %cst_706 = arith.constant 1.000000e+00 : f32
    %2281 = vector.broadcast %cst_706 : f32 to vector<2x8xf32>
    %2282 = arith.cmpf ogt, %2280, %2281 : vector<2x8xf32>
    %2283 = arith.extui %2282 : vector<2x8xi1> to vector<2x8xi32>
    %2284 = arith.sitofp %2283 : vector<2x8xi32> to vector<2x8xf32>
    %2285 = arith.addf %2271, %2284 : vector<2x8xf32>
    %cst_707 = arith.constant 0.949999988 : f32
    %2286 = vector.broadcast %cst_707 : f32 to vector<2x32xf32>
    %2287 = arith.mulf %2286, %2221 : vector<2x32xf32>
    %2288 = arith.addf %2287, %6 : vector<2x32xf32>
    %cst_708 = arith.constant 1.000000e+00 : f32
    %2289 = vector.broadcast %cst_708 : f32 to vector<2x32xf32>
    %2290 = arith.cmpf ogt, %2221, %2289 : vector<2x32xf32>
    %cst_709 = arith.constant 1.000000e+00 : f32
    %2291 = vector.broadcast %cst_709 : f32 to vector<2x32xf32>
    %2292 = arith.subf %2288, %2291 : vector<2x32xf32>
    %2293 = arith.select %2290, %2292, %2288 : vector<2x32xi1>, vector<2x32xf32>
    %cst_710 = arith.constant 1.000000e+00 : f32
    %2294 = vector.broadcast %cst_710 : f32 to vector<2x32xf32>
    %2295 = arith.cmpf ogt, %2293, %2294 : vector<2x32xf32>
    %2296 = arith.extui %2295 : vector<2x32xi1> to vector<2x32xi32>
    %2297 = arith.sitofp %2296 : vector<2x32xi32> to vector<2x32xf32>
    %cst_711 = arith.constant 0.949999988 : f32
    %2298 = vector.broadcast %cst_711 : f32 to vector<2x32xf32>
    %2299 = arith.mulf %2298, %2293 : vector<2x32xf32>
    %2300 = arith.addf %2299, %6 : vector<2x32xf32>
    %cst_712 = arith.constant 1.000000e+00 : f32
    %2301 = vector.broadcast %cst_712 : f32 to vector<2x32xf32>
    %2302 = arith.cmpf ogt, %2293, %2301 : vector<2x32xf32>
    %cst_713 = arith.constant 1.000000e+00 : f32
    %2303 = vector.broadcast %cst_713 : f32 to vector<2x32xf32>
    %2304 = arith.subf %2300, %2303 : vector<2x32xf32>
    %2305 = arith.select %2302, %2304, %2300 : vector<2x32xi1>, vector<2x32xf32>
    %cst_714 = arith.constant 1.000000e+00 : f32
    %2306 = vector.broadcast %cst_714 : f32 to vector<2x32xf32>
    %2307 = arith.cmpf ogt, %2305, %2306 : vector<2x32xf32>
    %2308 = arith.extui %2307 : vector<2x32xi1> to vector<2x32xi32>
    %2309 = arith.sitofp %2308 : vector<2x32xi32> to vector<2x32xf32>
    %cst_715 = arith.constant 0.949999988 : f32
    %2310 = vector.broadcast %cst_715 : f32 to vector<2x32xf32>
    %2311 = arith.mulf %2310, %2305 : vector<2x32xf32>
    %2312 = arith.addf %2311, %6 : vector<2x32xf32>
    %cst_716 = arith.constant 1.000000e+00 : f32
    %2313 = vector.broadcast %cst_716 : f32 to vector<2x32xf32>
    %2314 = arith.cmpf ogt, %2305, %2313 : vector<2x32xf32>
    %cst_717 = arith.constant 1.000000e+00 : f32
    %2315 = vector.broadcast %cst_717 : f32 to vector<2x32xf32>
    %2316 = arith.subf %2312, %2315 : vector<2x32xf32>
    %2317 = arith.select %2314, %2316, %2312 : vector<2x32xi1>, vector<2x32xf32>
    %cst_718 = arith.constant 1.000000e+00 : f32
    %2318 = vector.broadcast %cst_718 : f32 to vector<2x32xf32>
    %2319 = arith.cmpf ogt, %2317, %2318 : vector<2x32xf32>
    %2320 = arith.extui %2319 : vector<2x32xi1> to vector<2x32xi32>
    %2321 = arith.sitofp %2320 : vector<2x32xi32> to vector<2x32xf32>
    %cst_719 = arith.constant 0.949999988 : f32
    %2322 = vector.broadcast %cst_719 : f32 to vector<2x32xf32>
    %2323 = arith.mulf %2322, %2317 : vector<2x32xf32>
    %2324 = arith.addf %2323, %6 : vector<2x32xf32>
    %cst_720 = arith.constant 1.000000e+00 : f32
    %2325 = vector.broadcast %cst_720 : f32 to vector<2x32xf32>
    %2326 = arith.cmpf ogt, %2317, %2325 : vector<2x32xf32>
    %cst_721 = arith.constant 1.000000e+00 : f32
    %2327 = vector.broadcast %cst_721 : f32 to vector<2x32xf32>
    %2328 = arith.subf %2324, %2327 : vector<2x32xf32>
    %2329 = arith.select %2326, %2328, %2324 : vector<2x32xi1>, vector<2x32xf32>
    %cst_722 = arith.constant 1.000000e+00 : f32
    %2330 = vector.broadcast %cst_722 : f32 to vector<2x32xf32>
    %2331 = arith.cmpf ogt, %2329, %2330 : vector<2x32xf32>
    %2332 = arith.extui %2331 : vector<2x32xi1> to vector<2x32xi32>
    %2333 = arith.sitofp %2332 : vector<2x32xi32> to vector<2x32xf32>
    %2334 = tpu.concatenate %2297, %2309, %2321, %2333 in 0 : vector<2x32xf32>, vector<2x32xf32>, vector<2x32xf32>, vector<2x32xf32> -> vector<8x32xf32>
    %cst_723 = arith.constant dense<0.000000e+00> : vector<8x8xf32>
    %2335 = tpu.matmul %2334, %10, %cst_723 {dimension_numbers = #tpu.dot_dimension_numbers<[1], [0], [0], [1], [0, 0, 1, 1], [], []>} : vector<8x32xf32>, vector<32x8xf32>, vector<8x8xf32> -> vector<8x8xf32>
    %2336 = vector.broadcast %13 : vector<1x8xf32> to vector<8x8xf32>
    %2337 = arith.addf %2335, %2336 : vector<8x8xf32>
    %2338 = vector.extract_strided_slice %2337 {offsets = [0, 0], sizes = [2, 8], strides = [1, 1]} : vector<8x8xf32> to vector<2x8xf32>
    %cst_724 = arith.constant 0.949999988 : f32
    %2339 = vector.broadcast %cst_724 : f32 to vector<2x8xf32>
    %2340 = arith.mulf %2339, %2280 : vector<2x8xf32>
    %2341 = arith.addf %2340, %2338 : vector<2x8xf32>
    %cst_725 = arith.constant 1.000000e+00 : f32
    %2342 = vector.broadcast %cst_725 : f32 to vector<2x8xf32>
    %2343 = arith.cmpf ogt, %2280, %2342 : vector<2x8xf32>
    %cst_726 = arith.constant 1.000000e+00 : f32
    %2344 = vector.broadcast %cst_726 : f32 to vector<2x8xf32>
    %2345 = arith.subf %2341, %2344 : vector<2x8xf32>
    %2346 = arith.select %2343, %2345, %2341 : vector<2x8xi1>, vector<2x8xf32>
    %cst_727 = arith.constant 1.000000e+00 : f32
    %2347 = vector.broadcast %cst_727 : f32 to vector<2x8xf32>
    %2348 = arith.cmpf ogt, %2346, %2347 : vector<2x8xf32>
    %2349 = arith.extui %2348 : vector<2x8xi1> to vector<2x8xi32>
    %2350 = arith.sitofp %2349 : vector<2x8xi32> to vector<2x8xf32>
    %2351 = arith.addf %2285, %2350 : vector<2x8xf32>
    %2352 = vector.extract_strided_slice %2337 {offsets = [2, 0], sizes = [2, 8], strides = [1, 1]} : vector<8x8xf32> to vector<2x8xf32>
    %cst_728 = arith.constant 0.949999988 : f32
    %2353 = vector.broadcast %cst_728 : f32 to vector<2x8xf32>
    %2354 = arith.mulf %2353, %2346 : vector<2x8xf32>
    %2355 = arith.addf %2354, %2352 : vector<2x8xf32>
    %cst_729 = arith.constant 1.000000e+00 : f32
    %2356 = vector.broadcast %cst_729 : f32 to vector<2x8xf32>
    %2357 = arith.cmpf ogt, %2346, %2356 : vector<2x8xf32>
    %cst_730 = arith.constant 1.000000e+00 : f32
    %2358 = vector.broadcast %cst_730 : f32 to vector<2x8xf32>
    %2359 = arith.subf %2355, %2358 : vector<2x8xf32>
    %2360 = arith.select %2357, %2359, %2355 : vector<2x8xi1>, vector<2x8xf32>
    %cst_731 = arith.constant 1.000000e+00 : f32
    %2361 = vector.broadcast %cst_731 : f32 to vector<2x8xf32>
    %2362 = arith.cmpf ogt, %2360, %2361 : vector<2x8xf32>
    %2363 = arith.extui %2362 : vector<2x8xi1> to vector<2x8xi32>
    %2364 = arith.sitofp %2363 : vector<2x8xi32> to vector<2x8xf32>
    %2365 = arith.addf %2351, %2364 : vector<2x8xf32>
    %2366 = vector.extract_strided_slice %2337 {offsets = [4, 0], sizes = [2, 8], strides = [1, 1]} : vector<8x8xf32> to vector<2x8xf32>
    %cst_732 = arith.constant 0.949999988 : f32
    %2367 = vector.broadcast %cst_732 : f32 to vector<2x8xf32>
    %2368 = arith.mulf %2367, %2360 : vector<2x8xf32>
    %2369 = arith.addf %2368, %2366 : vector<2x8xf32>
    %cst_733 = arith.constant 1.000000e+00 : f32
    %2370 = vector.broadcast %cst_733 : f32 to vector<2x8xf32>
    %2371 = arith.cmpf ogt, %2360, %2370 : vector<2x8xf32>
    %cst_734 = arith.constant 1.000000e+00 : f32
    %2372 = vector.broadcast %cst_734 : f32 to vector<2x8xf32>
    %2373 = arith.subf %2369, %2372 : vector<2x8xf32>
    %2374 = arith.select %2371, %2373, %2369 : vector<2x8xi1>, vector<2x8xf32>
    %cst_735 = arith.constant 1.000000e+00 : f32
    %2375 = vector.broadcast %cst_735 : f32 to vector<2x8xf32>
    %2376 = arith.cmpf ogt, %2374, %2375 : vector<2x8xf32>
    %2377 = arith.extui %2376 : vector<2x8xi1> to vector<2x8xi32>
    %2378 = arith.sitofp %2377 : vector<2x8xi32> to vector<2x8xf32>
    %2379 = arith.addf %2365, %2378 : vector<2x8xf32>
    %2380 = vector.extract_strided_slice %2337 {offsets = [6, 0], sizes = [2, 8], strides = [1, 1]} : vector<8x8xf32> to vector<2x8xf32>
    %cst_736 = arith.constant 0.949999988 : f32
    %2381 = vector.broadcast %cst_736 : f32 to vector<2x8xf32>
    %2382 = arith.mulf %2381, %2374 : vector<2x8xf32>
    %2383 = arith.addf %2382, %2380 : vector<2x8xf32>
    %cst_737 = arith.constant 1.000000e+00 : f32
    %2384 = vector.broadcast %cst_737 : f32 to vector<2x8xf32>
    %2385 = arith.cmpf ogt, %2374, %2384 : vector<2x8xf32>
    %cst_738 = arith.constant 1.000000e+00 : f32
    %2386 = vector.broadcast %cst_738 : f32 to vector<2x8xf32>
    %2387 = arith.subf %2383, %2386 : vector<2x8xf32>
    %2388 = arith.select %2385, %2387, %2383 : vector<2x8xi1>, vector<2x8xf32>
    %cst_739 = arith.constant 1.000000e+00 : f32
    %2389 = vector.broadcast %cst_739 : f32 to vector<2x8xf32>
    %2390 = arith.cmpf ogt, %2388, %2389 : vector<2x8xf32>
    %2391 = arith.extui %2390 : vector<2x8xi1> to vector<2x8xi32>
    %2392 = arith.sitofp %2391 : vector<2x8xi32> to vector<2x8xf32>
    %2393 = arith.addf %2379, %2392 : vector<2x8xf32>
    %cst_740 = arith.constant 0.949999988 : f32
    %2394 = vector.broadcast %cst_740 : f32 to vector<2x32xf32>
    %2395 = arith.mulf %2394, %2329 : vector<2x32xf32>
    %2396 = arith.addf %2395, %6 : vector<2x32xf32>
    %cst_741 = arith.constant 1.000000e+00 : f32
    %2397 = vector.broadcast %cst_741 : f32 to vector<2x32xf32>
    %2398 = arith.cmpf ogt, %2329, %2397 : vector<2x32xf32>
    %cst_742 = arith.constant 1.000000e+00 : f32
    %2399 = vector.broadcast %cst_742 : f32 to vector<2x32xf32>
    %2400 = arith.subf %2396, %2399 : vector<2x32xf32>
    %2401 = arith.select %2398, %2400, %2396 : vector<2x32xi1>, vector<2x32xf32>
    %cst_743 = arith.constant 1.000000e+00 : f32
    %2402 = vector.broadcast %cst_743 : f32 to vector<2x32xf32>
    %2403 = arith.cmpf ogt, %2401, %2402 : vector<2x32xf32>
    %2404 = arith.extui %2403 : vector<2x32xi1> to vector<2x32xi32>
    %2405 = arith.sitofp %2404 : vector<2x32xi32> to vector<2x32xf32>
    %cst_744 = arith.constant 0.949999988 : f32
    %2406 = vector.broadcast %cst_744 : f32 to vector<2x32xf32>
    %2407 = arith.mulf %2406, %2401 : vector<2x32xf32>
    %2408 = arith.addf %2407, %6 : vector<2x32xf32>
    %cst_745 = arith.constant 1.000000e+00 : f32
    %2409 = vector.broadcast %cst_745 : f32 to vector<2x32xf32>
    %2410 = arith.cmpf ogt, %2401, %2409 : vector<2x32xf32>
    %cst_746 = arith.constant 1.000000e+00 : f32
    %2411 = vector.broadcast %cst_746 : f32 to vector<2x32xf32>
    %2412 = arith.subf %2408, %2411 : vector<2x32xf32>
    %2413 = arith.select %2410, %2412, %2408 : vector<2x32xi1>, vector<2x32xf32>
    %cst_747 = arith.constant 1.000000e+00 : f32
    %2414 = vector.broadcast %cst_747 : f32 to vector<2x32xf32>
    %2415 = arith.cmpf ogt, %2413, %2414 : vector<2x32xf32>
    %2416 = arith.extui %2415 : vector<2x32xi1> to vector<2x32xi32>
    %2417 = arith.sitofp %2416 : vector<2x32xi32> to vector<2x32xf32>
    %cst_748 = arith.constant 0.949999988 : f32
    %2418 = vector.broadcast %cst_748 : f32 to vector<2x32xf32>
    %2419 = arith.mulf %2418, %2413 : vector<2x32xf32>
    %2420 = arith.addf %2419, %6 : vector<2x32xf32>
    %cst_749 = arith.constant 1.000000e+00 : f32
    %2421 = vector.broadcast %cst_749 : f32 to vector<2x32xf32>
    %2422 = arith.cmpf ogt, %2413, %2421 : vector<2x32xf32>
    %cst_750 = arith.constant 1.000000e+00 : f32
    %2423 = vector.broadcast %cst_750 : f32 to vector<2x32xf32>
    %2424 = arith.subf %2420, %2423 : vector<2x32xf32>
    %2425 = arith.select %2422, %2424, %2420 : vector<2x32xi1>, vector<2x32xf32>
    %cst_751 = arith.constant 1.000000e+00 : f32
    %2426 = vector.broadcast %cst_751 : f32 to vector<2x32xf32>
    %2427 = arith.cmpf ogt, %2425, %2426 : vector<2x32xf32>
    %2428 = arith.extui %2427 : vector<2x32xi1> to vector<2x32xi32>
    %2429 = arith.sitofp %2428 : vector<2x32xi32> to vector<2x32xf32>
    %cst_752 = arith.constant 0.949999988 : f32
    %2430 = vector.broadcast %cst_752 : f32 to vector<2x32xf32>
    %2431 = arith.mulf %2430, %2425 : vector<2x32xf32>
    %2432 = arith.addf %2431, %6 : vector<2x32xf32>
    %cst_753 = arith.constant 1.000000e+00 : f32
    %2433 = vector.broadcast %cst_753 : f32 to vector<2x32xf32>
    %2434 = arith.cmpf ogt, %2425, %2433 : vector<2x32xf32>
    %cst_754 = arith.constant 1.000000e+00 : f32
    %2435 = vector.broadcast %cst_754 : f32 to vector<2x32xf32>
    %2436 = arith.subf %2432, %2435 : vector<2x32xf32>
    %2437 = arith.select %2434, %2436, %2432 : vector<2x32xi1>, vector<2x32xf32>
    %cst_755 = arith.constant 1.000000e+00 : f32
    %2438 = vector.broadcast %cst_755 : f32 to vector<2x32xf32>
    %2439 = arith.cmpf ogt, %2437, %2438 : vector<2x32xf32>
    %2440 = arith.extui %2439 : vector<2x32xi1> to vector<2x32xi32>
    %2441 = arith.sitofp %2440 : vector<2x32xi32> to vector<2x32xf32>
    %2442 = tpu.concatenate %2405, %2417, %2429, %2441 in 0 : vector<2x32xf32>, vector<2x32xf32>, vector<2x32xf32>, vector<2x32xf32> -> vector<8x32xf32>
    %cst_756 = arith.constant dense<0.000000e+00> : vector<8x8xf32>
    %2443 = tpu.matmul %2442, %10, %cst_756 {dimension_numbers = #tpu.dot_dimension_numbers<[1], [0], [0], [1], [0, 0, 1, 1], [], []>} : vector<8x32xf32>, vector<32x8xf32>, vector<8x8xf32> -> vector<8x8xf32>
    %2444 = vector.broadcast %13 : vector<1x8xf32> to vector<8x8xf32>
    %2445 = arith.addf %2443, %2444 : vector<8x8xf32>
    %2446 = vector.extract_strided_slice %2445 {offsets = [0, 0], sizes = [2, 8], strides = [1, 1]} : vector<8x8xf32> to vector<2x8xf32>
    %cst_757 = arith.constant 0.949999988 : f32
    %2447 = vector.broadcast %cst_757 : f32 to vector<2x8xf32>
    %2448 = arith.mulf %2447, %2388 : vector<2x8xf32>
    %2449 = arith.addf %2448, %2446 : vector<2x8xf32>
    %cst_758 = arith.constant 1.000000e+00 : f32
    %2450 = vector.broadcast %cst_758 : f32 to vector<2x8xf32>
    %2451 = arith.cmpf ogt, %2388, %2450 : vector<2x8xf32>
    %cst_759 = arith.constant 1.000000e+00 : f32
    %2452 = vector.broadcast %cst_759 : f32 to vector<2x8xf32>
    %2453 = arith.subf %2449, %2452 : vector<2x8xf32>
    %2454 = arith.select %2451, %2453, %2449 : vector<2x8xi1>, vector<2x8xf32>
    %cst_760 = arith.constant 1.000000e+00 : f32
    %2455 = vector.broadcast %cst_760 : f32 to vector<2x8xf32>
    %2456 = arith.cmpf ogt, %2454, %2455 : vector<2x8xf32>
    %2457 = arith.extui %2456 : vector<2x8xi1> to vector<2x8xi32>
    %2458 = arith.sitofp %2457 : vector<2x8xi32> to vector<2x8xf32>
    %2459 = arith.addf %2393, %2458 : vector<2x8xf32>
    %2460 = vector.extract_strided_slice %2445 {offsets = [2, 0], sizes = [2, 8], strides = [1, 1]} : vector<8x8xf32> to vector<2x8xf32>
    %cst_761 = arith.constant 0.949999988 : f32
    %2461 = vector.broadcast %cst_761 : f32 to vector<2x8xf32>
    %2462 = arith.mulf %2461, %2454 : vector<2x8xf32>
    %2463 = arith.addf %2462, %2460 : vector<2x8xf32>
    %cst_762 = arith.constant 1.000000e+00 : f32
    %2464 = vector.broadcast %cst_762 : f32 to vector<2x8xf32>
    %2465 = arith.cmpf ogt, %2454, %2464 : vector<2x8xf32>
    %cst_763 = arith.constant 1.000000e+00 : f32
    %2466 = vector.broadcast %cst_763 : f32 to vector<2x8xf32>
    %2467 = arith.subf %2463, %2466 : vector<2x8xf32>
    %2468 = arith.select %2465, %2467, %2463 : vector<2x8xi1>, vector<2x8xf32>
    %cst_764 = arith.constant 1.000000e+00 : f32
    %2469 = vector.broadcast %cst_764 : f32 to vector<2x8xf32>
    %2470 = arith.cmpf ogt, %2468, %2469 : vector<2x8xf32>
    %2471 = arith.extui %2470 : vector<2x8xi1> to vector<2x8xi32>
    %2472 = arith.sitofp %2471 : vector<2x8xi32> to vector<2x8xf32>
    %2473 = arith.addf %2459, %2472 : vector<2x8xf32>
    %2474 = vector.extract_strided_slice %2445 {offsets = [4, 0], sizes = [2, 8], strides = [1, 1]} : vector<8x8xf32> to vector<2x8xf32>
    %cst_765 = arith.constant 0.949999988 : f32
    %2475 = vector.broadcast %cst_765 : f32 to vector<2x8xf32>
    %2476 = arith.mulf %2475, %2468 : vector<2x8xf32>
    %2477 = arith.addf %2476, %2474 : vector<2x8xf32>
    %cst_766 = arith.constant 1.000000e+00 : f32
    %2478 = vector.broadcast %cst_766 : f32 to vector<2x8xf32>
    %2479 = arith.cmpf ogt, %2468, %2478 : vector<2x8xf32>
    %cst_767 = arith.constant 1.000000e+00 : f32
    %2480 = vector.broadcast %cst_767 : f32 to vector<2x8xf32>
    %2481 = arith.subf %2477, %2480 : vector<2x8xf32>
    %2482 = arith.select %2479, %2481, %2477 : vector<2x8xi1>, vector<2x8xf32>
    %cst_768 = arith.constant 1.000000e+00 : f32
    %2483 = vector.broadcast %cst_768 : f32 to vector<2x8xf32>
    %2484 = arith.cmpf ogt, %2482, %2483 : vector<2x8xf32>
    %2485 = arith.extui %2484 : vector<2x8xi1> to vector<2x8xi32>
    %2486 = arith.sitofp %2485 : vector<2x8xi32> to vector<2x8xf32>
    %2487 = arith.addf %2473, %2486 : vector<2x8xf32>
    %2488 = vector.extract_strided_slice %2445 {offsets = [6, 0], sizes = [2, 8], strides = [1, 1]} : vector<8x8xf32> to vector<2x8xf32>
    %cst_769 = arith.constant 0.949999988 : f32
    %2489 = vector.broadcast %cst_769 : f32 to vector<2x8xf32>
    %2490 = arith.mulf %2489, %2482 : vector<2x8xf32>
    %2491 = arith.addf %2490, %2488 : vector<2x8xf32>
    %cst_770 = arith.constant 1.000000e+00 : f32
    %2492 = vector.broadcast %cst_770 : f32 to vector<2x8xf32>
    %2493 = arith.cmpf ogt, %2482, %2492 : vector<2x8xf32>
    %cst_771 = arith.constant 1.000000e+00 : f32
    %2494 = vector.broadcast %cst_771 : f32 to vector<2x8xf32>
    %2495 = arith.subf %2491, %2494 : vector<2x8xf32>
    %2496 = arith.select %2493, %2495, %2491 : vector<2x8xi1>, vector<2x8xf32>
    %cst_772 = arith.constant 1.000000e+00 : f32
    %2497 = vector.broadcast %cst_772 : f32 to vector<2x8xf32>
    %2498 = arith.cmpf ogt, %2496, %2497 : vector<2x8xf32>
    %2499 = arith.extui %2498 : vector<2x8xi1> to vector<2x8xi32>
    %2500 = arith.sitofp %2499 : vector<2x8xi32> to vector<2x8xf32>
    %2501 = arith.addf %2487, %2500 : vector<2x8xf32>
    %cst_773 = arith.constant 0.949999988 : f32
    %2502 = vector.broadcast %cst_773 : f32 to vector<2x32xf32>
    %2503 = arith.mulf %2502, %2437 : vector<2x32xf32>
    %2504 = arith.addf %2503, %6 : vector<2x32xf32>
    %cst_774 = arith.constant 1.000000e+00 : f32
    %2505 = vector.broadcast %cst_774 : f32 to vector<2x32xf32>
    %2506 = arith.cmpf ogt, %2437, %2505 : vector<2x32xf32>
    %cst_775 = arith.constant 1.000000e+00 : f32
    %2507 = vector.broadcast %cst_775 : f32 to vector<2x32xf32>
    %2508 = arith.subf %2504, %2507 : vector<2x32xf32>
    %2509 = arith.select %2506, %2508, %2504 : vector<2x32xi1>, vector<2x32xf32>
    %cst_776 = arith.constant 1.000000e+00 : f32
    %2510 = vector.broadcast %cst_776 : f32 to vector<2x32xf32>
    %2511 = arith.cmpf ogt, %2509, %2510 : vector<2x32xf32>
    %2512 = arith.extui %2511 : vector<2x32xi1> to vector<2x32xi32>
    %2513 = arith.sitofp %2512 : vector<2x32xi32> to vector<2x32xf32>
    %cst_777 = arith.constant 0.949999988 : f32
    %2514 = vector.broadcast %cst_777 : f32 to vector<2x32xf32>
    %2515 = arith.mulf %2514, %2509 : vector<2x32xf32>
    %2516 = arith.addf %2515, %6 : vector<2x32xf32>
    %cst_778 = arith.constant 1.000000e+00 : f32
    %2517 = vector.broadcast %cst_778 : f32 to vector<2x32xf32>
    %2518 = arith.cmpf ogt, %2509, %2517 : vector<2x32xf32>
    %cst_779 = arith.constant 1.000000e+00 : f32
    %2519 = vector.broadcast %cst_779 : f32 to vector<2x32xf32>
    %2520 = arith.subf %2516, %2519 : vector<2x32xf32>
    %2521 = arith.select %2518, %2520, %2516 : vector<2x32xi1>, vector<2x32xf32>
    %cst_780 = arith.constant 1.000000e+00 : f32
    %2522 = vector.broadcast %cst_780 : f32 to vector<2x32xf32>
    %2523 = arith.cmpf ogt, %2521, %2522 : vector<2x32xf32>
    %2524 = arith.extui %2523 : vector<2x32xi1> to vector<2x32xi32>
    %2525 = arith.sitofp %2524 : vector<2x32xi32> to vector<2x32xf32>
    %cst_781 = arith.constant 0.949999988 : f32
    %2526 = vector.broadcast %cst_781 : f32 to vector<2x32xf32>
    %2527 = arith.mulf %2526, %2521 : vector<2x32xf32>
    %2528 = arith.addf %2527, %6 : vector<2x32xf32>
    %cst_782 = arith.constant 1.000000e+00 : f32
    %2529 = vector.broadcast %cst_782 : f32 to vector<2x32xf32>
    %2530 = arith.cmpf ogt, %2521, %2529 : vector<2x32xf32>
    %cst_783 = arith.constant 1.000000e+00 : f32
    %2531 = vector.broadcast %cst_783 : f32 to vector<2x32xf32>
    %2532 = arith.subf %2528, %2531 : vector<2x32xf32>
    %2533 = arith.select %2530, %2532, %2528 : vector<2x32xi1>, vector<2x32xf32>
    %cst_784 = arith.constant 1.000000e+00 : f32
    %2534 = vector.broadcast %cst_784 : f32 to vector<2x32xf32>
    %2535 = arith.cmpf ogt, %2533, %2534 : vector<2x32xf32>
    %2536 = arith.extui %2535 : vector<2x32xi1> to vector<2x32xi32>
    %2537 = arith.sitofp %2536 : vector<2x32xi32> to vector<2x32xf32>
    %cst_785 = arith.constant 0.949999988 : f32
    %2538 = vector.broadcast %cst_785 : f32 to vector<2x32xf32>
    %2539 = arith.mulf %2538, %2533 : vector<2x32xf32>
    %2540 = arith.addf %2539, %6 : vector<2x32xf32>
    %cst_786 = arith.constant 1.000000e+00 : f32
    %2541 = vector.broadcast %cst_786 : f32 to vector<2x32xf32>
    %2542 = arith.cmpf ogt, %2533, %2541 : vector<2x32xf32>
    %cst_787 = arith.constant 1.000000e+00 : f32
    %2543 = vector.broadcast %cst_787 : f32 to vector<2x32xf32>
    %2544 = arith.subf %2540, %2543 : vector<2x32xf32>
    %2545 = arith.select %2542, %2544, %2540 : vector<2x32xi1>, vector<2x32xf32>
    %cst_788 = arith.constant 1.000000e+00 : f32
    %2546 = vector.broadcast %cst_788 : f32 to vector<2x32xf32>
    %2547 = arith.cmpf ogt, %2545, %2546 : vector<2x32xf32>
    %2548 = arith.extui %2547 : vector<2x32xi1> to vector<2x32xi32>
    %2549 = arith.sitofp %2548 : vector<2x32xi32> to vector<2x32xf32>
    %2550 = tpu.concatenate %2513, %2525, %2537, %2549 in 0 : vector<2x32xf32>, vector<2x32xf32>, vector<2x32xf32>, vector<2x32xf32> -> vector<8x32xf32>
    %cst_789 = arith.constant dense<0.000000e+00> : vector<8x8xf32>
    %2551 = tpu.matmul %2550, %10, %cst_789 {dimension_numbers = #tpu.dot_dimension_numbers<[1], [0], [0], [1], [0, 0, 1, 1], [], []>} : vector<8x32xf32>, vector<32x8xf32>, vector<8x8xf32> -> vector<8x8xf32>
    %2552 = vector.broadcast %13 : vector<1x8xf32> to vector<8x8xf32>
    %2553 = arith.addf %2551, %2552 : vector<8x8xf32>
    %2554 = vector.extract_strided_slice %2553 {offsets = [0, 0], sizes = [2, 8], strides = [1, 1]} : vector<8x8xf32> to vector<2x8xf32>
    %cst_790 = arith.constant 0.949999988 : f32
    %2555 = vector.broadcast %cst_790 : f32 to vector<2x8xf32>
    %2556 = arith.mulf %2555, %2496 : vector<2x8xf32>
    %2557 = arith.addf %2556, %2554 : vector<2x8xf32>
    %cst_791 = arith.constant 1.000000e+00 : f32
    %2558 = vector.broadcast %cst_791 : f32 to vector<2x8xf32>
    %2559 = arith.cmpf ogt, %2496, %2558 : vector<2x8xf32>
    %cst_792 = arith.constant 1.000000e+00 : f32
    %2560 = vector.broadcast %cst_792 : f32 to vector<2x8xf32>
    %2561 = arith.subf %2557, %2560 : vector<2x8xf32>
    %2562 = arith.select %2559, %2561, %2557 : vector<2x8xi1>, vector<2x8xf32>
    %cst_793 = arith.constant 1.000000e+00 : f32
    %2563 = vector.broadcast %cst_793 : f32 to vector<2x8xf32>
    %2564 = arith.cmpf ogt, %2562, %2563 : vector<2x8xf32>
    %2565 = arith.extui %2564 : vector<2x8xi1> to vector<2x8xi32>
    %2566 = arith.sitofp %2565 : vector<2x8xi32> to vector<2x8xf32>
    %2567 = arith.addf %2501, %2566 : vector<2x8xf32>
    %2568 = vector.extract_strided_slice %2553 {offsets = [2, 0], sizes = [2, 8], strides = [1, 1]} : vector<8x8xf32> to vector<2x8xf32>
    %cst_794 = arith.constant 0.949999988 : f32
    %2569 = vector.broadcast %cst_794 : f32 to vector<2x8xf32>
    %2570 = arith.mulf %2569, %2562 : vector<2x8xf32>
    %2571 = arith.addf %2570, %2568 : vector<2x8xf32>
    %cst_795 = arith.constant 1.000000e+00 : f32
    %2572 = vector.broadcast %cst_795 : f32 to vector<2x8xf32>
    %2573 = arith.cmpf ogt, %2562, %2572 : vector<2x8xf32>
    %cst_796 = arith.constant 1.000000e+00 : f32
    %2574 = vector.broadcast %cst_796 : f32 to vector<2x8xf32>
    %2575 = arith.subf %2571, %2574 : vector<2x8xf32>
    %2576 = arith.select %2573, %2575, %2571 : vector<2x8xi1>, vector<2x8xf32>
    %cst_797 = arith.constant 1.000000e+00 : f32
    %2577 = vector.broadcast %cst_797 : f32 to vector<2x8xf32>
    %2578 = arith.cmpf ogt, %2576, %2577 : vector<2x8xf32>
    %2579 = arith.extui %2578 : vector<2x8xi1> to vector<2x8xi32>
    %2580 = arith.sitofp %2579 : vector<2x8xi32> to vector<2x8xf32>
    %2581 = arith.addf %2567, %2580 : vector<2x8xf32>
    %2582 = vector.extract_strided_slice %2553 {offsets = [4, 0], sizes = [2, 8], strides = [1, 1]} : vector<8x8xf32> to vector<2x8xf32>
    %cst_798 = arith.constant 0.949999988 : f32
    %2583 = vector.broadcast %cst_798 : f32 to vector<2x8xf32>
    %2584 = arith.mulf %2583, %2576 : vector<2x8xf32>
    %2585 = arith.addf %2584, %2582 : vector<2x8xf32>
    %cst_799 = arith.constant 1.000000e+00 : f32
    %2586 = vector.broadcast %cst_799 : f32 to vector<2x8xf32>
    %2587 = arith.cmpf ogt, %2576, %2586 : vector<2x8xf32>
    %cst_800 = arith.constant 1.000000e+00 : f32
    %2588 = vector.broadcast %cst_800 : f32 to vector<2x8xf32>
    %2589 = arith.subf %2585, %2588 : vector<2x8xf32>
    %2590 = arith.select %2587, %2589, %2585 : vector<2x8xi1>, vector<2x8xf32>
    %cst_801 = arith.constant 1.000000e+00 : f32
    %2591 = vector.broadcast %cst_801 : f32 to vector<2x8xf32>
    %2592 = arith.cmpf ogt, %2590, %2591 : vector<2x8xf32>
    %2593 = arith.extui %2592 : vector<2x8xi1> to vector<2x8xi32>
    %2594 = arith.sitofp %2593 : vector<2x8xi32> to vector<2x8xf32>
    %2595 = arith.addf %2581, %2594 : vector<2x8xf32>
    %2596 = vector.extract_strided_slice %2553 {offsets = [6, 0], sizes = [2, 8], strides = [1, 1]} : vector<8x8xf32> to vector<2x8xf32>
    %cst_802 = arith.constant 0.949999988 : f32
    %2597 = vector.broadcast %cst_802 : f32 to vector<2x8xf32>
    %2598 = arith.mulf %2597, %2590 : vector<2x8xf32>
    %2599 = arith.addf %2598, %2596 : vector<2x8xf32>
    %cst_803 = arith.constant 1.000000e+00 : f32
    %2600 = vector.broadcast %cst_803 : f32 to vector<2x8xf32>
    %2601 = arith.cmpf ogt, %2590, %2600 : vector<2x8xf32>
    %cst_804 = arith.constant 1.000000e+00 : f32
    %2602 = vector.broadcast %cst_804 : f32 to vector<2x8xf32>
    %2603 = arith.subf %2599, %2602 : vector<2x8xf32>
    %2604 = arith.select %2601, %2603, %2599 : vector<2x8xi1>, vector<2x8xf32>
    %cst_805 = arith.constant 1.000000e+00 : f32
    %2605 = vector.broadcast %cst_805 : f32 to vector<2x8xf32>
    %2606 = arith.cmpf ogt, %2604, %2605 : vector<2x8xf32>
    %2607 = arith.extui %2606 : vector<2x8xi1> to vector<2x8xi32>
    %2608 = arith.sitofp %2607 : vector<2x8xi32> to vector<2x8xf32>
    %2609 = arith.addf %2595, %2608 : vector<2x8xf32>
    %cst_806 = arith.constant 0.949999988 : f32
    %2610 = vector.broadcast %cst_806 : f32 to vector<2x32xf32>
    %2611 = arith.mulf %2610, %2545 : vector<2x32xf32>
    %2612 = arith.addf %2611, %6 : vector<2x32xf32>
    %cst_807 = arith.constant 1.000000e+00 : f32
    %2613 = vector.broadcast %cst_807 : f32 to vector<2x32xf32>
    %2614 = arith.cmpf ogt, %2545, %2613 : vector<2x32xf32>
    %cst_808 = arith.constant 1.000000e+00 : f32
    %2615 = vector.broadcast %cst_808 : f32 to vector<2x32xf32>
    %2616 = arith.subf %2612, %2615 : vector<2x32xf32>
    %2617 = arith.select %2614, %2616, %2612 : vector<2x32xi1>, vector<2x32xf32>
    %cst_809 = arith.constant 1.000000e+00 : f32
    %2618 = vector.broadcast %cst_809 : f32 to vector<2x32xf32>
    %2619 = arith.cmpf ogt, %2617, %2618 : vector<2x32xf32>
    %2620 = arith.extui %2619 : vector<2x32xi1> to vector<2x32xi32>
    %2621 = arith.sitofp %2620 : vector<2x32xi32> to vector<2x32xf32>
    %cst_810 = arith.constant 0.949999988 : f32
    %2622 = vector.broadcast %cst_810 : f32 to vector<2x32xf32>
    %2623 = arith.mulf %2622, %2617 : vector<2x32xf32>
    %2624 = arith.addf %2623, %6 : vector<2x32xf32>
    %cst_811 = arith.constant 1.000000e+00 : f32
    %2625 = vector.broadcast %cst_811 : f32 to vector<2x32xf32>
    %2626 = arith.cmpf ogt, %2617, %2625 : vector<2x32xf32>
    %cst_812 = arith.constant 1.000000e+00 : f32
    %2627 = vector.broadcast %cst_812 : f32 to vector<2x32xf32>
    %2628 = arith.subf %2624, %2627 : vector<2x32xf32>
    %2629 = arith.select %2626, %2628, %2624 : vector<2x32xi1>, vector<2x32xf32>
    %cst_813 = arith.constant 1.000000e+00 : f32
    %2630 = vector.broadcast %cst_813 : f32 to vector<2x32xf32>
    %2631 = arith.cmpf ogt, %2629, %2630 : vector<2x32xf32>
    %2632 = arith.extui %2631 : vector<2x32xi1> to vector<2x32xi32>
    %2633 = arith.sitofp %2632 : vector<2x32xi32> to vector<2x32xf32>
    %cst_814 = arith.constant 0.949999988 : f32
    %2634 = vector.broadcast %cst_814 : f32 to vector<2x32xf32>
    %2635 = arith.mulf %2634, %2629 : vector<2x32xf32>
    %2636 = arith.addf %2635, %6 : vector<2x32xf32>
    %cst_815 = arith.constant 1.000000e+00 : f32
    %2637 = vector.broadcast %cst_815 : f32 to vector<2x32xf32>
    %2638 = arith.cmpf ogt, %2629, %2637 : vector<2x32xf32>
    %cst_816 = arith.constant 1.000000e+00 : f32
    %2639 = vector.broadcast %cst_816 : f32 to vector<2x32xf32>
    %2640 = arith.subf %2636, %2639 : vector<2x32xf32>
    %2641 = arith.select %2638, %2640, %2636 : vector<2x32xi1>, vector<2x32xf32>
    %cst_817 = arith.constant 1.000000e+00 : f32
    %2642 = vector.broadcast %cst_817 : f32 to vector<2x32xf32>
    %2643 = arith.cmpf ogt, %2641, %2642 : vector<2x32xf32>
    %2644 = arith.extui %2643 : vector<2x32xi1> to vector<2x32xi32>
    %2645 = arith.sitofp %2644 : vector<2x32xi32> to vector<2x32xf32>
    %cst_818 = arith.constant 0.949999988 : f32
    %2646 = vector.broadcast %cst_818 : f32 to vector<2x32xf32>
    %2647 = arith.mulf %2646, %2641 : vector<2x32xf32>
    %2648 = arith.addf %2647, %6 : vector<2x32xf32>
    %cst_819 = arith.constant 1.000000e+00 : f32
    %2649 = vector.broadcast %cst_819 : f32 to vector<2x32xf32>
    %2650 = arith.cmpf ogt, %2641, %2649 : vector<2x32xf32>
    %cst_820 = arith.constant 1.000000e+00 : f32
    %2651 = vector.broadcast %cst_820 : f32 to vector<2x32xf32>
    %2652 = arith.subf %2648, %2651 : vector<2x32xf32>
    %2653 = arith.select %2650, %2652, %2648 : vector<2x32xi1>, vector<2x32xf32>
    %cst_821 = arith.constant 1.000000e+00 : f32
    %2654 = vector.broadcast %cst_821 : f32 to vector<2x32xf32>
    %2655 = arith.cmpf ogt, %2653, %2654 : vector<2x32xf32>
    %2656 = arith.extui %2655 : vector<2x32xi1> to vector<2x32xi32>
    %2657 = arith.sitofp %2656 : vector<2x32xi32> to vector<2x32xf32>
    %2658 = tpu.concatenate %2621, %2633, %2645, %2657 in 0 : vector<2x32xf32>, vector<2x32xf32>, vector<2x32xf32>, vector<2x32xf32> -> vector<8x32xf32>
    %cst_822 = arith.constant dense<0.000000e+00> : vector<8x8xf32>
    %2659 = tpu.matmul %2658, %10, %cst_822 {dimension_numbers = #tpu.dot_dimension_numbers<[1], [0], [0], [1], [0, 0, 1, 1], [], []>} : vector<8x32xf32>, vector<32x8xf32>, vector<8x8xf32> -> vector<8x8xf32>
    %2660 = vector.broadcast %13 : vector<1x8xf32> to vector<8x8xf32>
    %2661 = arith.addf %2659, %2660 : vector<8x8xf32>
    %2662 = vector.extract_strided_slice %2661 {offsets = [0, 0], sizes = [2, 8], strides = [1, 1]} : vector<8x8xf32> to vector<2x8xf32>
    %cst_823 = arith.constant 0.949999988 : f32
    %2663 = vector.broadcast %cst_823 : f32 to vector<2x8xf32>
    %2664 = arith.mulf %2663, %2604 : vector<2x8xf32>
    %2665 = arith.addf %2664, %2662 : vector<2x8xf32>
    %cst_824 = arith.constant 1.000000e+00 : f32
    %2666 = vector.broadcast %cst_824 : f32 to vector<2x8xf32>
    %2667 = arith.cmpf ogt, %2604, %2666 : vector<2x8xf32>
    %cst_825 = arith.constant 1.000000e+00 : f32
    %2668 = vector.broadcast %cst_825 : f32 to vector<2x8xf32>
    %2669 = arith.subf %2665, %2668 : vector<2x8xf32>
    %2670 = arith.select %2667, %2669, %2665 : vector<2x8xi1>, vector<2x8xf32>
    %cst_826 = arith.constant 1.000000e+00 : f32
    %2671 = vector.broadcast %cst_826 : f32 to vector<2x8xf32>
    %2672 = arith.cmpf ogt, %2670, %2671 : vector<2x8xf32>
    %2673 = arith.extui %2672 : vector<2x8xi1> to vector<2x8xi32>
    %2674 = arith.sitofp %2673 : vector<2x8xi32> to vector<2x8xf32>
    %2675 = arith.addf %2609, %2674 : vector<2x8xf32>
    %2676 = vector.extract_strided_slice %2661 {offsets = [2, 0], sizes = [2, 8], strides = [1, 1]} : vector<8x8xf32> to vector<2x8xf32>
    %cst_827 = arith.constant 0.949999988 : f32
    %2677 = vector.broadcast %cst_827 : f32 to vector<2x8xf32>
    %2678 = arith.mulf %2677, %2670 : vector<2x8xf32>
    %2679 = arith.addf %2678, %2676 : vector<2x8xf32>
    %cst_828 = arith.constant 1.000000e+00 : f32
    %2680 = vector.broadcast %cst_828 : f32 to vector<2x8xf32>
    %2681 = arith.cmpf ogt, %2670, %2680 : vector<2x8xf32>
    %cst_829 = arith.constant 1.000000e+00 : f32
    %2682 = vector.broadcast %cst_829 : f32 to vector<2x8xf32>
    %2683 = arith.subf %2679, %2682 : vector<2x8xf32>
    %2684 = arith.select %2681, %2683, %2679 : vector<2x8xi1>, vector<2x8xf32>
    %cst_830 = arith.constant 1.000000e+00 : f32
    %2685 = vector.broadcast %cst_830 : f32 to vector<2x8xf32>
    %2686 = arith.cmpf ogt, %2684, %2685 : vector<2x8xf32>
    %2687 = arith.extui %2686 : vector<2x8xi1> to vector<2x8xi32>
    %2688 = arith.sitofp %2687 : vector<2x8xi32> to vector<2x8xf32>
    %2689 = arith.addf %2675, %2688 : vector<2x8xf32>
    %2690 = vector.extract_strided_slice %2661 {offsets = [4, 0], sizes = [2, 8], strides = [1, 1]} : vector<8x8xf32> to vector<2x8xf32>
    %cst_831 = arith.constant 0.949999988 : f32
    %2691 = vector.broadcast %cst_831 : f32 to vector<2x8xf32>
    %2692 = arith.mulf %2691, %2684 : vector<2x8xf32>
    %2693 = arith.addf %2692, %2690 : vector<2x8xf32>
    %cst_832 = arith.constant 1.000000e+00 : f32
    %2694 = vector.broadcast %cst_832 : f32 to vector<2x8xf32>
    %2695 = arith.cmpf ogt, %2684, %2694 : vector<2x8xf32>
    %cst_833 = arith.constant 1.000000e+00 : f32
    %2696 = vector.broadcast %cst_833 : f32 to vector<2x8xf32>
    %2697 = arith.subf %2693, %2696 : vector<2x8xf32>
    %2698 = arith.select %2695, %2697, %2693 : vector<2x8xi1>, vector<2x8xf32>
    %cst_834 = arith.constant 1.000000e+00 : f32
    %2699 = vector.broadcast %cst_834 : f32 to vector<2x8xf32>
    %2700 = arith.cmpf ogt, %2698, %2699 : vector<2x8xf32>
    %2701 = arith.extui %2700 : vector<2x8xi1> to vector<2x8xi32>
    %2702 = arith.sitofp %2701 : vector<2x8xi32> to vector<2x8xf32>
    %2703 = arith.addf %2689, %2702 : vector<2x8xf32>
    %2704 = vector.extract_strided_slice %2661 {offsets = [6, 0], sizes = [2, 8], strides = [1, 1]} : vector<8x8xf32> to vector<2x8xf32>
    %cst_835 = arith.constant 0.949999988 : f32
    %2705 = vector.broadcast %cst_835 : f32 to vector<2x8xf32>
    %2706 = arith.mulf %2705, %2698 : vector<2x8xf32>
    %2707 = arith.addf %2706, %2704 : vector<2x8xf32>
    %cst_836 = arith.constant 1.000000e+00 : f32
    %2708 = vector.broadcast %cst_836 : f32 to vector<2x8xf32>
    %2709 = arith.cmpf ogt, %2698, %2708 : vector<2x8xf32>
    %cst_837 = arith.constant 1.000000e+00 : f32
    %2710 = vector.broadcast %cst_837 : f32 to vector<2x8xf32>
    %2711 = arith.subf %2707, %2710 : vector<2x8xf32>
    %2712 = arith.select %2709, %2711, %2707 : vector<2x8xi1>, vector<2x8xf32>
    %cst_838 = arith.constant 1.000000e+00 : f32
    %2713 = vector.broadcast %cst_838 : f32 to vector<2x8xf32>
    %2714 = arith.cmpf ogt, %2712, %2713 : vector<2x8xf32>
    %2715 = arith.extui %2714 : vector<2x8xi1> to vector<2x8xi32>
    %2716 = arith.sitofp %2715 : vector<2x8xi32> to vector<2x8xf32>
    %2717 = arith.addf %2703, %2716 : vector<2x8xf32>
    %c0_839 = arith.constant 0 : index
    %c0_840 = arith.constant 0 : index
    %2718 = vector.load %arg2[%c0_839, %c0_840] : memref<4x1600xf32, #tpu.memory_space<vmem>>, vector<1x1600xf32>
    %2719 = vector.shape_cast %2718 : vector<1x1600xf32> to vector<1x1600xf32>
    %2720 = vector.broadcast %2719 : vector<1x1600xf32> to vector<2x1600xf32>
    %c1 = arith.constant 1 : index
    %c0_841 = arith.constant 0 : index
    %2721 = vector.load %arg2[%c1, %c0_841] : memref<4x1600xf32, #tpu.memory_space<vmem>>, vector<1x1600xf32>
    %2722 = vector.shape_cast %2721 : vector<1x1600xf32> to vector<1x1600xf32>
    %2723 = vector.broadcast %2722 : vector<1x1600xf32> to vector<2x1600xf32>
    %c2 = arith.constant 2 : index
    %c0_842 = arith.constant 0 : index
    %2724 = vector.load %arg2[%c2, %c0_842] : memref<4x1600xf32, #tpu.memory_space<vmem>>, vector<1x1600xf32>
    %2725 = vector.shape_cast %2724 : vector<1x1600xf32> to vector<1x1600xf32>
    %2726 = vector.broadcast %2725 : vector<1x1600xf32> to vector<2x1600xf32>
    %c3 = arith.constant 3 : index
    %c0_843 = arith.constant 0 : index
    %2727 = vector.load %arg2[%c3, %c0_843] : memref<4x1600xf32, #tpu.memory_space<vmem>>, vector<1x1600xf32>
    %c0_844 = arith.constant 0 : index
    %c0_845 = arith.constant 0 : index
    %c0_846 = arith.constant 0 : index
    %2728 = vector.load %arg1[%c0_844, %c0_845, %c0_846] : memref<4x2x1600xf32, #tpu.memory_space<vmem>>, vector<1x2x1600xf32>
    %2729 = vector.shape_cast %2728 : vector<1x2x1600xf32> to vector<2x1600xf32>
    %c1_847 = arith.constant 1 : index
    %c0_848 = arith.constant 0 : index
    %c0_849 = arith.constant 0 : index
    %2730 = vector.load %arg1[%c1_847, %c0_848, %c0_849] : memref<4x2x1600xf32, #tpu.memory_space<vmem>>, vector<1x2x1600xf32>
    %2731 = vector.shape_cast %2730 : vector<1x2x1600xf32> to vector<2x1600xf32>
    %c2_850 = arith.constant 2 : index
    %c0_851 = arith.constant 0 : index
    %c0_852 = arith.constant 0 : index
    %2732 = vector.load %arg1[%c2_850, %c0_851, %c0_852] : memref<4x2x1600xf32, #tpu.memory_space<vmem>>, vector<1x2x1600xf32>
    %2733 = vector.shape_cast %2732 : vector<1x2x1600xf32> to vector<2x1600xf32>
    %c3_853 = arith.constant 3 : index
    %c0_854 = arith.constant 0 : index
    %c0_855 = arith.constant 0 : index
    %2734 = vector.load %arg1[%c3_853, %c0_854, %c0_855] : memref<4x2x1600xf32, #tpu.memory_space<vmem>>, vector<1x2x1600xf32>
    %2735 = vector.shape_cast %2734 : vector<1x2x1600xf32> to vector<2x1600xf32>
    %2736 = arith.mulf %2729, %2720 : vector<2x1600xf32>
    %2737 = arith.mulf %2731, %2723 : vector<2x1600xf32>
    %2738 = arith.addf %2736, %2737 : vector<2x1600xf32>
    %2739 = arith.mulf %2733, %2726 : vector<2x1600xf32>
    %2740 = arith.addf %2738, %2739 : vector<2x1600xf32>
    %2741 = arith.mulf %2731, %2720 : vector<2x1600xf32>
    %2742 = arith.mulf %2733, %2723 : vector<2x1600xf32>
    %2743 = arith.addf %2741, %2742 : vector<2x1600xf32>
    %2744 = arith.mulf %2735, %2726 : vector<2x1600xf32>
    %2745 = arith.addf %2743, %2744 : vector<2x1600xf32>
    %2746 = arith.maximumf %2740, %2745 : vector<2x1600xf32>
    %2747 = vector.broadcast %2727 : vector<1x1600xf32> to vector<2x1600xf32>
    %2748 = arith.addf %2746, %2747 : vector<2x1600xf32>
    %cst_856 = arith.constant 0.000000e+00 : f32
    %2749 = vector.broadcast %cst_856 : f32 to vector<2x1600xf32>
    %2750 = arith.maximumf %2748, %2749 : vector<2x1600xf32>
    %cst_857 = arith.constant dense<0.000000e+00> : vector<2x8xf32>
    %2751 = tpu.matmul %2717, %12, %cst_857 {dimension_numbers = #tpu.dot_dimension_numbers<[1], [0], [0], [1], [0, 0, 1, 1], [], []>} : vector<2x8xf32>, vector<8x8xf32>, vector<2x8xf32> -> vector<2x8xf32>
    %cst_858 = arith.constant dense<0.000000e+00> : vector<2x8xf32>
    %2752 = tpu.matmul %9, %11, %cst_858 {dimension_numbers = #tpu.dot_dimension_numbers<[1], [0], [0], [1], [0, 0, 1, 1], [], []>} : vector<2x32xf32>, vector<32x8xf32>, vector<2x8xf32> -> vector<2x8xf32>
    %2753 = arith.addf %2751, %2752 : vector<2x8xf32>
    %c0_859 = arith.constant 0 : index
    %c0_860 = arith.constant 0 : index
    %2754 = vector.load %arg5[%c0_859, %c0_860] : memref<1600x8xf32, #tpu.memory_space<vmem>>, vector<1600x8xf32>
    %cst_861 = arith.constant dense<0.000000e+00> : vector<2x8xf32>
    %2755 = tpu.matmul %2750, %2754, %cst_861 {dimension_numbers = #tpu.dot_dimension_numbers<[1], [0], [0], [1], [0, 0, 1, 1], [], []>} : vector<2x1600xf32>, vector<1600x8xf32>, vector<2x8xf32> -> vector<2x8xf32>
    %2756 = arith.addf %2753, %2755 : vector<2x8xf32>
    %2757 = vector.broadcast %14 : vector<1x8xf32> to vector<2x8xf32>
    %2758 = arith.addf %2756, %2757 : vector<2x8xf32>
    %c0_862 = arith.constant 0 : index
    %c0_863 = arith.constant 0 : index
    %2759 = vector.load %arg6[%c0_862, %c0_863] : memref<2x8xf32, #tpu.memory_space<vmem>>, vector<2x8xf32>
    tpu.vector_store %arg6[%c0_862, %c0_863], %2758 {strides = array<i32>} : memref<2x8xf32, #tpu.memory_space<vmem>>, vector<2x8xf32>,
    return
  }
}

</mosaic_0001>

<bundles_post_ra>
// kernel: hybrid_forward.1
= control target key start
LH: loop header
LB: loop body
LE: loop exit
PB: predicated region body
PF: predicated region fallthrough
CT: control target
= control target key end

     0   :  { %vm35_vm0 = vcmask 1044480   ;;  %vm31_vm1 = vcmask 39936   ;;  %v6574_v1 = vmov 0.0   ;;  %vm6575_vm2 = vmmov 0   ;;  %s8606_s0 = inlined_call_operand.vmem [shape: f32[2,5], index: 0, kind: input, shape index: {}]   ;;  %s8607_s1 = inlined_call_operand.vmem [shape: f32[4,2,1600], index: 1, kind: input, shape index: {}]   ;;  %s8608_s2 = inlined_call_operand.vmem [shape: f32[4,1600], index: 2, kind: input, shape index: {}]   ;;  %s8609_s3 = inlined_call_operand.vmem [shape: f32[6,64], index: 3, kind: input, shape index: {}]   ;;  %s8610_s4 = inlined_call_operand.vmem [shape: f32[74,8], index: 4, kind: input, shape index: {}]   ;;  %s8611_s5 = inlined_call_operand.vmem [shape: f32[1600,8], index: 5, kind: input, shape index: {}]   ;;  %s8612_s6 = inlined_call_operand.hbm [shape: f32[2,8], index: 6, kind: output, shape index: {}]  }
   0x1   :  { %v25_v0 = vld [vmem:[%s8609_s3] sm:$0x1f]  ;;  %6221 = vmatprep.subr.mxu0 %v6574_v1  ;;  %6223 = vmatprep.mubr.msk.f32.mxu0 %vm6575_vm2, %v6574_v1 }
   0x2   :  { %v24_v2 = vld [vmem:[%s8606_s0] sm:$0x3] }
   0x3   :  { %11 = vsyncpa [#allocation3], 0  ;;  %6222 = vmatpush3.msk.msra.mxu0 %vm35_vm0, %v25_v0  ;;  %6226 = vmatprep.subr.mxu1 %v6574_v1  ;;  %v6632_v3 = vld [vmem:[%s8610_s4 + $0x18] sm:$0xff]  ;;  %v6637_v4 = vld [vmem:[%s8610_s4 + $0x10] sm:$0xff]  ;;  %s6576_s10 = smov 96   ;;  %vm158_vm6 = vcmask 1041408  }
   0x4   :  { %6224 = vmatmul.mubr.msk.f32.vlgmr.msra.gmra.mxu0 %vm31_vm1, %v24_v2  ;;  %6234 = vmatprep.mubr.msk.f32.mxu1 %vm6575_vm2, %v6574_v1  ;;  %v6645_v5 = vld [vmem:[%s8610_s4 + $0x8] sm:$0xff]  ;;  %v6654_v6 = vld [vmem:[%s8610_s4] sm:$0xff]  ;;  %vm160_vm8 = vcmask 1043456   ;;  %vm162_vm9 = vcmask 1045504   ;;  %vm168_vm10 = vcmask 261120   ;;  %s6578_s8 = smov [#allocation2]  }
   0x5   :  { %6259 = vmatprep.subr.mxu0 %v6574_v1  ;;  %6267 = vmatprep.mubr.msk.f32.mxu0 %vm6575_vm2, %v6574_v1  ;;  %v5416_v7 = vld [vmem:[%s8609_s3 + $0x5] ss:$0 sm:$0xff]  ;;  %s5408_s9 = sshll.u32 %s6578_s8, 4  ;;  %s5409_s9 = int_to_ptr.vmem [resolvable:$true] %s5408_s9 }
   0x6   :  { %6227 = vmatpush3.msra.mxu1 %v6632_v3  ;;  %6260 = vmatpush3.msra.mxu0 %v6632_v3  ;;  %p6557_p1 = scmp.lt.s32.totalorder %s5409_s9, %s5409_s9 }
   0x7   :  { %6228 = vmatprep.subr.mxu1 %v6574_v1  ;;  %6261 = vmatprep.subr.mxu0 %v6574_v1 }
   0x8   :  { %6229 = vmatpush3.msra.mxu1 %v6637_v4  ;;  %6262 = vmatpush3.msra.mxu0 %v6637_v4 }
   0x9   :  { %6230 = vmatprep.subr.mxu1 %v6574_v1  ;;  %6263 = vmatprep.subr.mxu0 %v6574_v1 }
   0xa   :  { %6231 = vmatpush3.msra.mxu1 %v6645_v5  ;;  %6264 = vmatpush3.msra.mxu0 %v6645_v5 }
   0xb   :  { %6232 = vmatprep.subr.mxu1 %v6574_v1  ;;  %6265 = vmatprep.subr.mxu0 %v6574_v1 }
   0xc   :  { %6233 = vmatpush3.msra.mxu1 %v6654_v6  ;;  %6266 = vmatpush3.msra.mxu0 %v6654_v6 }
   0xd   :  { %6237 = vmatprep.subr.mxu1 %v6574_v1  ;;  %6281 = vmatprep.subr.mxu0 %v6574_v1 }
  0xc4   :  { %v105_v8 = vpop.f32.mrf.mxu0 }
  0xc5   :  { %v6668_v9 = vadd.f32 %v5416_v7, %v105_v8 }
  0xc6   :  { %v6225_v10 = vpop.f32.mrf.mxu0 }
  0xc7   :  { %v109_v11 = vmax.f32 %v6668_v9, 0.0  ;;  %v128_v12 = vmul.f32 0.95, %v6668_v9  ;;  %vm125_vm3 = vcmp.gt.f32.partialorder %v6668_v9, 1.0 }
  0xc8   :  { %v5420_v29 = vsel %vm125_vm3, 1.0, %v6574_v1 }
  0xc9   :  { %4479 = vrot.lane.b32.xlu0 %v109_v11, %s6576_s10  ;;  %v129_v13 = vadd.f32 %v128_v12, %v6668_v9  ;;  %s6552_s10 = scalar_lea.vmem %s5409_s9, 32 }
  0xca   :  { %p6553_p0 = scmp.ne.s32.totalorder %s5409_s9, %s6552_s10  ;;  %p6558_p2 = scmp.lt.s32.totalorder %s6552_s10, %s6552_s10 }
  0xcb   :  { %v5421_v14 = vadd.f32 -1.0, %v129_v13 }
  0xcc   :  { %p6559_p3 = por %p6558_p2, %p6557_p1 }
  0xcd   :  { %v131_v15 = vsel %vm125_vm3, %v5421_v14, %v129_v13 }
  0xce   :  { %v135_v16 = vmul.f32 0.95, %v131_v15  ;;  %vm132_vm4 = vcmp.gt.f32.partialorder %v131_v15, 1.0  ;;  %p6560_p4 = pnand %p6559_p3, %p6553_p0 }
  0xcf   :  { %v5422_v21 = vsel %vm132_vm4, 1.0, %v6574_v1 }
  0xd0   :  { %v136_v17 = vadd.f32 %v135_v16, %v6668_v9  ;;  %v150_v25 = vrot.slane %v5422_v21, 6 }
  0xd2   :  { %v5423_v18 = vadd.f32 -1.0, %v136_v17  ;;  %v159_v32 = vsel %vm158_vm6, %v5420_v29, %v150_v25 }
  0xd4   :  { %v138_v19 = vsel %vm132_vm4, %v5423_v18, %v136_v17 }
  0xd5   :  { %vm139_vm5 = vcmp.gt.f32.partialorder %v138_v19, 1.0  ;;  %v142_v20 = vmul.f32 0.95, %v138_v19 }
  0xd6   :  { %v5424_v23 = vsel %vm139_vm5, 1.0, %v6574_v1 }
  0xd7   :  { %v143_v22 = vadd.f32 %v142_v20, %v6668_v9  ;;  %v153_v27 = vrot.slane %v5424_v23, 4 }
  0xd9   :  { %v5425_v24 = vadd.f32 -1.0, %v143_v22  ;;  %v161_v34 = vsel %vm160_vm8, %v159_v32, %v153_v27 }
  0xdb   :  { %v145_v26 = vsel %vm139_vm5, %v5425_v24, %v143_v22 }
  0xdc   :  { %vm146_vm7 = vcmp.gt.f32.partialorder %v145_v26, 1.0  ;;  %v280_v28 = vmul.f32 0.95, %v145_v26 }
  0xdd   :  { %v5426_v30 = vsel %vm146_vm7, 1.0, %v6574_v1 }
  0xde   :  { %v156_v31 = vrot.slane %v5426_v30, 2  ;;  %v281_v33 = vadd.f32 %v280_v28, %v6668_v9 }
  0xe0   :  { %v163_v35 = vsel %vm162_vm9, %v161_v34, %v156_v31  ;;  %v5437_v36 = vadd.f32 -1.0, %v281_v33 }
  0xe1   :  { %6235 = vmatmul.mubr.msk.f32.vlgmr.msra.gmra.mxu1 %vm168_vm10, %v163_v35 }
  0xe2   :  { %v283_v37 = vsel %vm146_vm7, %v5437_v36, %v281_v33  ;;  %6238 = vmatpush3.msra.mxu1 %v6632_v3  ;;  %6245 = vmatprep.mubr.msk.f32.mxu1 %vm6575_vm2, %v6574_v1 }
  0xe3   :  { %v287_v38 = vmul.f32 0.95, %v283_v37  ;;  %6239 = vmatprep.subr.mxu1 %v6574_v1  ;;  %vm284_vm11 = vcmp.gt.f32.partialorder %v283_v37, 1.0 }
  0xe4   :  { %6240 = vmatpush3.msra.mxu1 %v6637_v4  ;;  %v5438_v55 = vsel %vm284_vm11, 1.0, %v6574_v1 }
  0xe5   :  { %v288_v39 = vadd.f32 %v287_v38, %v6668_v9  ;;  %6241 = vmatprep.subr.mxu1 %v6574_v1 }
  0xe6   :  { %6242 = vmatpush3.msra.mxu1 %v6645_v5 }
  0xe7   :  { %v5439_v40 = vadd.f32 -1.0, %v288_v39  ;;  %6243 = vmatprep.subr.mxu1 %v6574_v1 }
  0xe8   :  { %6244 = vmatpush3.msra.mxu1 %v6654_v6 }
  0xe9   :  { %v290_v41 = vsel %vm284_vm11, %v5439_v40, %v288_v39  ;;  %6248 = vmatprep.subr.mxu1 %v6574_v1 }
  0xea   :  { %v294_v42 = vmul.f32 0.95, %v290_v41  ;;  %vm291_vm12 = vcmp.gt.f32.partialorder %v290_v41, 1.0 }
  0xeb   :  { %v5440_v47 = vsel %vm291_vm12, 1.0, %v6574_v1 }
  0xec   :  { %v295_v43 = vadd.f32 %v294_v42, %v6668_v9  ;;  %v309_v51 = vrot.slane %v5440_v47, 6 }
  0xee   :  { %v5441_v44 = vadd.f32 -1.0, %v295_v43  ;;  %v317_v58 = vsel %vm158_vm6, %v5438_v55, %v309_v51 }
  0xf0   :  { %v297_v45 = vsel %vm291_vm12, %v5441_v44, %v295_v43 }
  0xf1   :  { %vm298_vm13 = vcmp.gt.f32.partialorder %v297_v45, 1.0  ;;  %v301_v46 = vmul.f32 0.95, %v297_v45 }
  0xf2   :  { %v5442_v49 = vsel %vm298_vm13, 1.0, %v6574_v1 }
  0xf3   :  { %v302_v48 = vadd.f32 %v301_v46, %v6668_v9  ;;  %v312_v53 = vrot.slane %v5442_v49, 4 }
  0xf5   :  { %v5443_v50 = vadd.f32 -1.0, %v302_v48  ;;  %v318_v60 = vsel %vm160_vm8, %v317_v58, %v312_v53 }
  0xf7   :  { %v304_v52 = vsel %vm298_vm13, %v5443_v50, %v302_v48 }
  0xf8   :  { %vm305_vm14 = vcmp.gt.f32.partialorder %v304_v52, 1.0  ;;  %v432_v54 = vmul.f32 0.95, %v304_v52 }
  0xf9   :  { %v5444_v56 = vsel %vm305_vm14, 1.0, %v6574_v1 }
  0xfa   :  { %v315_v57 = vrot.slane %v5444_v56, 2  ;;  %v433_v59 = vadd.f32 %v432_v54, %v6668_v9 }
  0xfc   :  { %v319_v61 = vsel %vm162_vm9, %v318_v60, %v315_v57  ;;  %v5454_v62 = vadd.f32 -1.0, %v433_v59 }
  0xfd   :  { %6246 = vmatmul.mubr.msk.f32.vlgmr.msra.gmra.mxu1 %vm168_vm10, %v319_v61 }
  0xfe   :  { %v435_v63 = vsel %vm305_vm14, %v5454_v62, %v433_v59  ;;  %6249 = vmatpush3.msra.mxu1 %v6632_v3  ;;  %6256 = vmatprep.mubr.msk.f32.mxu1 %vm6575_vm2, %v6574_v1 }
  0xff   :  { %v439_v0 = vmul.f32 0.95, %v435_v63  ;;  %6250 = vmatprep.subr.mxu1 %v6574_v1  ;;  %vm436_vm15 = vcmp.gt.f32.partialorder %v435_v63, 1.0 }
 0x100   :  { %6251 = vmatpush3.msra.mxu1 %v6637_v4  ;;  %v5455_v23 = vsel %vm436_vm15, 1.0, %v6574_v1 }
 0x101   :  { %v440_v2 = vadd.f32 %v439_v0, %v6668_v9  ;;  %6252 = vmatprep.subr.mxu1 %v6574_v1 }
 0x102   :  { %6253 = vmatpush3.msra.mxu1 %v6645_v5 }
 0x103   :  { %v5456_v7 = vadd.f32 -1.0, %v440_v2  ;;  %6254 = vmatprep.subr.mxu1 %v6574_v1 }
 0x104   :  { %6255 = vmatpush3.msra.mxu1 %v6654_v6 }
 0x105   :  { %v442_v8 = vsel %vm436_vm15, %v5456_v7, %v440_v2  ;;  %6270 = vmatprep.subr.mxu1 %v6574_v1 }
 0x106   :  { %v446_v10 = vmul.f32 0.95, %v442_v8  ;;  %vm443_vm0 = vcmp.gt.f32.partialorder %v442_v8, 1.0 }
 0x107   :  { %v5457_v15 = vsel %vm443_vm0, 1.0, %v6574_v1 }
 0x108   :  { %v447_v11 = vadd.f32 %v446_v10, %v6668_v9  ;;  %v461_v19 = vrot.slane %v5457_v15, 6 }
 0x10a   :  { %v5458_v12 = vadd.f32 -1.0, %v447_v11  ;;  %v469_v26 = vsel %vm158_vm6, %v5455_v23, %v461_v19 }
 0x10c   :  { %v449_v13 = vsel %vm443_vm0, %v5458_v12, %v447_v11 }
 0x10d   :  { %vm450_vm1 = vcmp.gt.f32.partialorder %v449_v13, 1.0  ;;  %v453_v14 = vmul.f32 0.95, %v449_v13 }
 0x10e   :  { %v5459_v17 = vsel %vm450_vm1, 1.0, %v6574_v1 }
 0x10f   :  { %v454_v16 = vadd.f32 %v453_v14, %v6668_v9  ;;  %v464_v21 = vrot.slane %v5459_v17, 4 }
 0x111   :  { %v5460_v18 = vadd.f32 -1.0, %v454_v16  ;;  %v470_v28 = vsel %vm160_vm8, %v469_v26, %v464_v21 }
 0x113   :  { %v456_v20 = vsel %vm450_vm1, %v5460_v18, %v454_v16 }
 0x114   :  { %vm457_vm3 = vcmp.gt.f32.partialorder %v456_v20, 1.0  ;;  %v584_v22 = vmul.f32 0.95, %v456_v20 }
 0x115   :  { %v5461_v24 = vsel %vm457_vm3, 1.0, %v6574_v1 }
 0x116   :  { %v467_v25 = vrot.slane %v5461_v24, 2  ;;  %v585_v27 = vadd.f32 %v584_v22, %v6668_v9 }
 0x118   :  { %v471_v29 = vsel %vm162_vm9, %v470_v28, %v467_v25  ;;  %v5471_v30 = vadd.f32 -1.0, %v585_v27 }
 0x119   :  { %6257 = vmatmul.mubr.msk.f32.vlgmr.msra.gmra.mxu1 %vm168_vm10, %v471_v29 }
 0x11a   :  { %v587_v31 = vsel %vm457_vm3, %v5471_v30, %v585_v27  ;;  %6271 = vmatpush3.msra.mxu1 %v6632_v3  ;;  %6278 = vmatprep.mubr.msk.f32.mxu1 %vm6575_vm2, %v6574_v1 }
 0x11b   :  { %v591_v32 = vmul.f32 0.95, %v587_v31  ;;  %6272 = vmatprep.subr.mxu1 %v6574_v1  ;;  %vm588_vm4 = vcmp.gt.f32.partialorder %v587_v31, 1.0 }
 0x11c   :  { %6273 = vmatpush3.msra.mxu1 %v6637_v4  ;;  %v5472_v49 = vsel %vm588_vm4, 1.0, %v6574_v1 }
 0x11d   :  { %v592_v33 = vadd.f32 %v591_v32, %v6668_v9  ;;  %6274 = vmatprep.subr.mxu1 %v6574_v1 }
 0x11e   :  { %6275 = vmatpush3.msra.mxu1 %v6645_v5 }
 0x11f   :  { %v5473_v34 = vadd.f32 -1.0, %v592_v33  ;;  %6276 = vmatprep.subr.mxu1 %v6574_v1 }
 0x120   :  { %6277 = vmatpush3.msra.mxu1 %v6654_v6 }
 0x121   :  { %v594_v35 = vsel %vm588_vm4, %v5473_v34, %v592_v33  ;;  %6292 = vmatprep.subr.mxu1 %v6574_v1 }
 0x122   :  { %v598_v36 = vmul.f32 0.95, %v594_v35  ;;  %vm595_vm5 = vcmp.gt.f32.partialorder %v594_v35, 1.0 }
 0x123   :  { %v5474_v41 = vsel %vm595_vm5, 1.0, %v6574_v1 }
 0x124   :  { %v599_v37 = vadd.f32 %v598_v36, %v6668_v9  ;;  %v613_v45 = vrot.slane %v5474_v41, 6 }
 0x126   :  { %v5475_v38 = vadd.f32 -1.0, %v599_v37  ;;  %v621_v52 = vsel %vm158_vm6, %v5472_v49, %v613_v45 }
 0x128   :  { %v601_v39 = vsel %vm595_vm5, %v5475_v38, %v599_v37 }
 0x129   :  { %vm602_vm7 = vcmp.gt.f32.partialorder %v601_v39, 1.0  ;;  %v605_v40 = vmul.f32 0.95, %v601_v39 }
 0x12a   :  { %v5476_v43 = vsel %vm602_vm7, 1.0, %v6574_v1 }
 0x12b   :  { %v606_v42 = vadd.f32 %v605_v40, %v6668_v9  ;;  %v616_v47 = vrot.slane %v5476_v43, 4 }
 0x12d   :  { %v5477_v44 = vadd.f32 -1.0, %v606_v42  ;;  %v622_v54 = vsel %vm160_vm8, %v621_v52, %v616_v47 }
 0x12f   :  { %v608_v46 = vsel %vm602_vm7, %v5477_v44, %v606_v42 }
 0x130   :  { %vm609_vm11 = vcmp.gt.f32.partialorder %v608_v46, 1.0  ;;  %v736_v48 = vmul.f32 0.95, %v608_v46 }
 0x131   :  { %v5478_v50 = vsel %vm609_vm11, 1.0, %v6574_v1 }
 0x132   :  { %v619_v51 = vrot.slane %v5478_v50, 2  ;;  %v737_v53 = vadd.f32 %v736_v48, %v6668_v9 }
 0x134   :  { %v623_v55 = vsel %vm162_vm9, %v622_v54, %v619_v51  ;;  %v5488_v56 = vadd.f32 -1.0, %v737_v53 }
 0x135   :  { %6268 = vmatmul.mubr.msk.f32.vlgmr.msra.gmra.mxu0 %vm168_vm10, %v623_v55 }
 0x136   :  { %v739_v57 = vsel %vm609_vm11, %v5488_v56, %v737_v53  ;;  %6282 = vmatpush3.msra.mxu0 %v6632_v3  ;;  %6289 = vmatprep.mubr.msk.f32.mxu0 %vm6575_vm2, %v6574_v1 }
 0x137   :  { %v743_v58 = vmul.f32 0.95, %v739_v57  ;;  %6283 = vmatprep.subr.mxu0 %v6574_v1  ;;  %vm740_vm12 = vcmp.gt.f32.partialorder %v739_v57, 1.0 }
 0x138   :  { %6284 = vmatpush3.msra.mxu0 %v6637_v4  ;;  %v5489_v17 = vsel %vm740_vm12, 1.0, %v6574_v1 }
 0x139   :  { %v744_v59 = vadd.f32 %v743_v58, %v6668_v9  ;;  %6285 = vmatprep.subr.mxu0 %v6574_v1 }
 0x13a   :  { %6286 = vmatpush3.msra.mxu0 %v6645_v5 }
 0x13b   :  { %v5490_v60 = vadd.f32 -1.0, %v744_v59  ;;  %6287 = vmatprep.subr.mxu0 %v6574_v1 }
 0x13c   :  { %6288 = vmatpush3.msra.mxu0 %v6654_v6 }
 0x13d   :  { %v746_v61 = vsel %vm740_vm12, %v5490_v60, %v744_v59  ;;  %6303 = vmatprep.subr.mxu0 %v6574_v1 }
 0x13e   :  { %v750_v62 = vmul.f32 0.95, %v746_v61  ;;  %vm747_vm13 = vcmp.gt.f32.partialorder %v746_v61, 1.0 }
 0x13f   :  { %v5491_v8 = vsel %vm747_vm13, 1.0, %v6574_v1 }
 0x140   :  { %v751_v63 = vadd.f32 %v750_v62, %v6668_v9  ;;  %v765_v13 = vrot.slane %v5491_v8, 6 }
 0x142   :  { %v5492_v0 = vadd.f32 -1.0, %v751_v63  ;;  %v773_v20 = vsel %vm158_vm6, %v5489_v17, %v765_v13 }
 0x144   :  { %v753_v2 = vsel %vm747_vm13, %v5492_v0, %v751_v63 }
 0x145   :  { %vm754_vm14 = vcmp.gt.f32.partialorder %v753_v2, 1.0  ;;  %v757_v7 = vmul.f32 0.95, %v753_v2 }
 0x146   :  { %v5493_v11 = vsel %vm754_vm14, 1.0, %v6574_v1 }
 0x147   :  { %v758_v10 = vadd.f32 %v757_v7, %v6668_v9  ;;  %v768_v15 = vrot.slane %v5493_v11, 4 }
 0x149   :  { %v5494_v12 = vadd.f32 -1.0, %v758_v10  ;;  %v774_v22 = vsel %vm160_vm8, %v773_v20, %v768_v15 }
 0x14b   :  { %v760_v14 = vsel %vm754_vm14, %v5494_v12, %v758_v10 }
 0x14c   :  { %vm761_vm15 = vcmp.gt.f32.partialorder %v760_v14, 1.0  ;;  %v888_v16 = vmul.f32 0.95, %v760_v14 }
 0x14d   :  { %v5495_v18 = vsel %vm761_vm15, 1.0, %v6574_v1 }
 0x14e   :  { %v771_v19 = vrot.slane %v5495_v18, 2  ;;  %v889_v21 = vadd.f32 %v888_v16, %v6668_v9 }
 0x150   :  { %v775_v23 = vsel %vm162_vm9, %v774_v22, %v771_v19  ;;  %v5505_v24 = vadd.f32 -1.0, %v889_v21 }
 0x151   :  { %6279 = vmatmul.mubr.msk.f32.vlgmr.msra.gmra.mxu1 %vm168_vm10, %v775_v23 }
 0x152   :  { %v891_v25 = vsel %vm761_vm15, %v5505_v24, %v889_v21  ;;  %6293 = vmatpush3.msra.mxu1 %v6632_v3  ;;  %6300 = vmatprep.mubr.msk.f32.mxu1 %vm6575_vm2, %v6574_v1 }
 0x153   :  { %v895_v26 = vmul.f32 0.95, %v891_v25  ;;  %6294 = vmatprep.subr.mxu1 %v6574_v1  ;;  %vm892_vm0 = vcmp.gt.f32.partialorder %v891_v25, 1.0 }
 0x154   :  { %6295 = vmatpush3.msra.mxu1 %v6637_v4  ;;  %v5506_v43 = vsel %vm892_vm0, 1.0, %v6574_v1 }
 0x155   :  { %v896_v27 = vadd.f32 %v895_v26, %v6668_v9  ;;  %6296 = vmatprep.subr.mxu1 %v6574_v1 }
 0x156   :  { %6297 = vmatpush3.msra.mxu1 %v6645_v5 }
 0x157   :  { %v5507_v28 = vadd.f32 -1.0, %v896_v27  ;;  %6298 = vmatprep.subr.mxu1 %v6574_v1 }
 0x158   :  { %6299 = vmatpush3.msra.mxu1 %v6654_v6 }
 0x159   :  { %v898_v29 = vsel %vm892_vm0, %v5507_v28, %v896_v27  ;;  %6314 = vmatprep.subr.mxu1 %v6574_v1 }
 0x15a   :  { %v902_v30 = vmul.f32 0.95, %v898_v29  ;;  %vm899_vm1 = vcmp.gt.f32.partialorder %v898_v29, 1.0 }
 0x15b   :  { %v5508_v35 = vsel %vm899_vm1, 1.0, %v6574_v1 }
 0x15c   :  { %v903_v31 = vadd.f32 %v902_v30, %v6668_v9  ;;  %v917_v39 = vrot.slane %v5508_v35, 6 }
 0x15e   :  { %v5509_v32 = vadd.f32 -1.0, %v903_v31  ;;  %v925_v46 = vsel %vm158_vm6, %v5506_v43, %v917_v39 }
 0x160   :  { %v905_v33 = vsel %vm899_vm1, %v5509_v32, %v903_v31 }
 0x161   :  { %vm906_vm3 = vcmp.gt.f32.partialorder %v905_v33, 1.0  ;;  %v909_v34 = vmul.f32 0.95, %v905_v33  ;;  %v6852_v33 = vld [vmem:[%s8610_s4 + $0x48] ss:$0 sm:$0xff] }
 0x162   :  { %v5510_v37 = vsel %vm906_vm3, 1.0, %v6574_v1 }
 0x163   :  { %v910_v36 = vadd.f32 %v909_v34, %v6668_v9  ;;  %v920_v41 = vrot.slane %v5510_v37, 4 }
 0x165   :  { %v5511_v38 = vadd.f32 -1.0, %v910_v36  ;;  %v926_v48 = vsel %vm160_vm8, %v925_v46, %v920_v41 }
 0x167   :  { %v912_v40 = vsel %vm906_vm3, %v5511_v38, %v910_v36 }
 0x168   :  { %vm913_vm4 = vcmp.gt.f32.partialorder %v912_v40, 1.0  ;;  %v1040_v42 = vmul.f32 0.95, %v912_v40 }
 0x169   :  { %v5512_v44 = vsel %vm913_vm4, 1.0, %v6574_v1 }
 0x16a   :  { %v923_v45 = vrot.slane %v5512_v44, 2  ;;  %v1041_v47 = vadd.f32 %v1040_v42, %v6668_v9 }
 0x16c   :  { %v927_v49 = vsel %vm162_vm9, %v926_v48, %v923_v45  ;;  %v5522_v50 = vadd.f32 -1.0, %v1041_v47 }
 0x16d   :  { %6290 = vmatmul.mubr.msk.f32.vlgmr.msra.gmra.mxu0 %vm168_vm10, %v927_v49 }
 0x16e   :  { %v1043_v51 = vsel %vm913_vm4, %v5522_v50, %v1041_v47  ;;  %6304 = vmatpush3.msra.mxu0 %v6632_v3  ;;  %6311 = vmatprep.mubr.msk.f32.mxu0 %vm6575_vm2, %v6574_v1 }
 0x16f   :  { %v1047_v52 = vmul.f32 0.95, %v1043_v51  ;;  %6305 = vmatprep.subr.mxu0 %v6574_v1  ;;  %vm1044_vm5 = vcmp.gt.f32.partialorder %v1043_v51, 1.0 }
 0x170   :  { %6306 = vmatpush3.msra.mxu0 %v6637_v4  ;;  %v5523_v11 = vsel %vm1044_vm5, 1.0, %v6574_v1 }
 0x171   :  { %v1048_v53 = vadd.f32 %v1047_v52, %v6668_v9  ;;  %6307 = vmatprep.subr.mxu0 %v6574_v1 }
 0x172   :  { %6308 = vmatpush3.msra.mxu0 %v6645_v5 }
 0x173   :  { %v5524_v54 = vadd.f32 -1.0, %v1048_v53  ;;  %6309 = vmatprep.subr.mxu0 %v6574_v1 }
 0x174   :  { %6310 = vmatpush3.msra.mxu0 %v6654_v6 }
 0x175   :  { %v1050_v55 = vsel %vm1044_vm5, %v5524_v54, %v1048_v53  ;;  %6325 = vmatprep.subr.mxu0 %v6574_v1 }
 0x176   :  { %v1054_v56 = vmul.f32 0.95, %v1050_v55  ;;  %vm1051_vm7 = vcmp.gt.f32.partialorder %v1050_v55, 1.0 }
 0x177   :  { %v5525_v61 = vsel %vm1051_vm7, 1.0, %v6574_v1 }
 0x178   :  { %v1055_v57 = vadd.f32 %v1054_v56, %v6668_v9  ;;  %v1069_v2 = vrot.slane %v5525_v61, 6 }
 0x17a   :  { %v5526_v58 = vadd.f32 -1.0, %v1055_v57  ;;  %v1077_v14 = vsel %vm158_vm6, %v5523_v11, %v1069_v2 }
 0x17c   :  { %v1057_v59 = vsel %vm1051_vm7, %v5526_v58, %v1055_v57 }
 0x17d   :  { %vm1058_vm11 = vcmp.gt.f32.partialorder %v1057_v59, 1.0  ;;  %v1061_v60 = vmul.f32 0.95, %v1057_v59 }
 0x17e   :  { %v5527_v63 = vsel %vm1058_vm11, 1.0, %v6574_v1 }
 0x17f   :  { %v1062_v62 = vadd.f32 %v1061_v60, %v6668_v9  ;;  %v1072_v8 = vrot.slane %v5527_v63, 4 }
 0x181   :  { %v5528_v0 = vadd.f32 -1.0, %v1062_v62  ;;  %v1078_v16 = vsel %vm160_vm8, %v1077_v14, %v1072_v8 }
 0x183   :  { %v1064_v7 = vsel %vm1058_vm11, %v5528_v0, %v1062_v62 }
 0x184   :  { %vm1065_vm12 = vcmp.gt.f32.partialorder %v1064_v7, 1.0  ;;  %v1192_v10 = vmul.f32 0.95, %v1064_v7 }
 0x185   :  { %v5529_v12 = vsel %vm1065_vm12, 1.0, %v6574_v1 }
 0x186   :  { %v1075_v13 = vrot.slane %v5529_v12, 2  ;;  %v1193_v15 = vadd.f32 %v1192_v10, %v6668_v9 }
 0x188   :  { %v1079_v17 = vsel %vm162_vm9, %v1078_v16, %v1075_v13  ;;  %v5539_v18 = vadd.f32 -1.0, %v1193_v15 }
 0x189   :  { %6301 = vmatmul.mubr.msk.f32.vlgmr.msra.gmra.mxu1 %vm168_vm10, %v1079_v17 }
 0x18a   :  { %v1195_v19 = vsel %vm1065_vm12, %v5539_v18, %v1193_v15  ;;  %6315 = vmatpush3.msra.mxu1 %v6632_v3  ;;  %6322 = vmatprep.mubr.msk.f32.mxu1 %vm6575_vm2, %v6574_v1 }
 0x18b   :  { %v1199_v20 = vmul.f32 0.95, %v1195_v19  ;;  %6316 = vmatprep.subr.mxu1 %v6574_v1  ;;  %vm1196_vm13 = vcmp.gt.f32.partialorder %v1195_v19, 1.0 }
 0x18c   :  { %6317 = vmatpush3.msra.mxu1 %v6637_v4  ;;  %v5540_v41 = vsel %vm1196_vm13, 1.0, %v6574_v1 }
 0x18d   :  { %v1200_v21 = vadd.f32 %v1199_v20, %v6668_v9  ;;  %6318 = vmatprep.subr.mxu1 %v6574_v1 }
 0x18e   :  { %6319 = vmatpush3.msra.mxu1 %v6645_v5 }
 0x18f   :  { %v5541_v22 = vadd.f32 -1.0, %v1200_v21  ;;  %6320 = vmatprep.subr.mxu1 %v6574_v1 }
 0x190   :  { %6321 = vmatpush3.msra.mxu1 %v6654_v6 }
 0x191   :  { %v1202_v23 = vsel %vm1196_vm13, %v5541_v22, %v1200_v21  ;;  %6336 = vmatprep.subr.mxu1 %v6574_v1 }
 0x192   :  { %v1206_v24 = vmul.f32 0.95, %v1202_v23  ;;  %vm1203_vm14 = vcmp.gt.f32.partialorder %v1202_v23, 1.0 }
 0x193   :  { %v5542_v30 = vsel %vm1203_vm14, 1.0, %v6574_v1 }
 0x194   :  { %v1207_v25 = vadd.f32 %v1206_v24, %v6668_v9  ;;  %v1221_v35 = vrot.slane %v5542_v30, 6 }
 0x196   :  { %v5543_v26 = vadd.f32 -1.0, %v1207_v25  ;;  %v1229_v45 = vsel %vm158_vm6, %v5540_v41, %v1221_v35 }
 0x198   :  { %v1209_v27 = vsel %vm1203_vm14, %v5543_v26, %v1207_v25 }
 0x199   :  { %v1213_v28 = vmul.f32 0.95, %v1209_v27  ;;  %vm1210_vm15 = vcmp.gt.f32.partialorder %v1209_v27, 1.0 }
 0x19a   :  { %v5544_v31 = vsel %vm1210_vm15, 1.0, %v6574_v1 }
 0x19b   :  { %v1214_v29 = vadd.f32 %v1213_v28, %v6668_v9  ;;  %v1224_v36 = vrot.slane %v5544_v31, 4 }
 0x19d   :  { %v5545_v32 = vadd.f32 -1.0, %v1214_v29  ;;  %v1230_v48 = vsel %vm160_vm8, %v1229_v45, %v1224_v36 }
 0x19f   :  { %v1216_v34 = vsel %vm1210_vm15, %v5545_v32, %v1214_v29 }
 0x1a0   :  { %vm1217_vm0 = vcmp.gt.f32.partialorder %v1216_v34, 1.0  ;;  %v1344_v37 = vmul.f32 0.95, %v1216_v34 }
 0x1a1   :  { %v238_v38 = vpop.f32.mrf.mxu1  ;;  %v5546_v39 = vsel %vm1217_vm0, 1.0, %v6574_v1 }
 0x1a2   :  { %v239_v40 = vadd.f32 %v6852_v33, %v238_v38  ;;  %v1227_v42 = vrot.slane %v5546_v39, 2  ;;  %v1345_v43 = vadd.f32 %v1344_v37, %v6668_v9 }
 0x1a3   :  { %v6236_v44 = vpop.f32.mrf.mxu1 }
 0x1a4   :  { %v249_v46 = vmul.f32 0.95, %v239_v40  ;;  %v251_v47 = vrot.slane %v239_v40, 2  ;;  %v1231_v49 = vsel %vm162_vm9, %v1230_v48, %v1227_v42  ;;  %v5556_v50 = vadd.f32 -1.0, %v1345_v43 }
 0x1a5   :  { %6312 = vmatmul.mubr.msk.f32.vlgmr.msra.gmra.mxu0 %vm168_vm10, %v1231_v49  ;;  %vm245_vm1 = vcmp.gt.f32.partialorder %v239_v40, 1.0  ;;  %v261_v58 = vrot.slane %v239_v40, 4  ;;  %v271_v12 = vrot.slane %v239_v40, 6 }
 0x1a6   :  { %v253_v51 = vadd.f32 %v251_v47, %v249_v46  ;;  %v1347_v52 = vsel %vm1217_vm0, %v5556_v50, %v1345_v43  ;;  %6326 = vmatpush3.msra.mxu0 %v6632_v3  ;;  %6333 = vmatprep.mubr.msk.f32.mxu0 %vm6575_vm2, %v6574_v1  ;;  %v5430_v59 = vsel %vm245_vm1, 1.0, %v6574_v1 }
 0x1a7   :  { %v1351_v54 = vmul.f32 0.95, %v1347_v52  ;;  %6327 = vmatprep.subr.mxu0 %v6574_v1  ;;  %vm1348_vm4 = vcmp.gt.f32.partialorder %v1347_v52, 1.0 }
 0x1a8   :  { %v5431_v53 = vadd.f32 -1.0, %v253_v51  ;;  %6328 = vmatpush3.msra.mxu0 %v6637_v4  ;;  %v5557_v35 = vsel %vm1348_vm4, 1.0, %v6574_v1 }
 0x1a9   :  { %v1352_v56 = vadd.f32 %v1351_v54, %v6668_v9  ;;  %6329 = vmatprep.subr.mxu0 %v6574_v1 }
 0x1aa   :  { %v255_v55 = vsel %vm245_vm1, %v5431_v53, %v253_v51  ;;  %6330 = vmatpush3.msra.mxu0 %v6645_v5 }
 0x1ab   :  { %vm256_vm3 = vcmp.gt.f32.partialorder %v255_v55, 1.0  ;;  %v260_v57 = vmul.f32 0.95, %v255_v55  ;;  %v5558_v61 = vadd.f32 -1.0, %v1352_v56  ;;  %6331 = vmatprep.subr.mxu0 %v6574_v1 }
 0x1ac   :  { %v5432_v60 = vsel %vm256_vm3, 1.0, %v6574_v1  ;;  %6332 = vmatpush3.msra.mxu0 %v6654_v6 }
 0x1ad   :  { %v259_v62 = vadd.f32 %v5432_v60, %v5430_v59  ;;  %v263_v63 = vadd.f32 %v261_v58, %v260_v57  ;;  %v1354_v0 = vsel %vm1348_vm4, %v5558_v61, %v1352_v56  ;;  %6347 = vmatprep.subr.mxu0 %v6574_v1 }
 0x1ae   :  { %v1358_v7 = vmul.f32 0.95, %v1354_v0  ;;  %vm1355_vm7 = vcmp.gt.f32.partialorder %v1354_v0, 1.0 }
 0x1af   :  { %v5433_v2 = vadd.f32 -1.0, %v263_v63  ;;  %v5559_v21 = vsel %vm1355_vm7, 1.0, %v6574_v1 }
 0x1b0   :  { %v1359_v10 = vadd.f32 %v1358_v7, %v6668_v9  ;;  %v1373_v27 = vrot.slane %v5559_v21, 6 }
 0x1b1   :  { %v265_v8 = vsel %vm256_vm3, %v5433_v2, %v263_v63 }
 0x1b2   :  { %vm266_vm5 = vcmp.gt.f32.partialorder %v265_v8, 1.0  ;;  %v270_v11 = vmul.f32 0.95, %v265_v8  ;;  %v5560_v14 = vadd.f32 -1.0, %v1359_v10  ;;  %v1381_v39 = vsel %vm158_vm6, %v5557_v35, %v1373_v27 }
 0x1b3   :  { %v5434_v13 = vsel %vm266_vm5, 1.0, %v6574_v1 }
 0x1b4   :  { %v269_v15 = vadd.f32 %v5434_v13, %v259_v62  ;;  %v273_v16 = vadd.f32 %v271_v12, %v270_v11  ;;  %v1361_v17 = vsel %vm1355_vm7, %v5560_v14, %v1359_v10 }
 0x1b5   :  { %vm1362_vm11 = vcmp.gt.f32.partialorder %v1361_v17, 1.0  ;;  %v1365_v19 = vmul.f32 0.95, %v1361_v17 }
 0x1b6   :  { %v5435_v18 = vadd.f32 -1.0, %v273_v16  ;;  %v5561_v23 = vsel %vm1362_vm11, 1.0, %v6574_v1 }
 0x1b7   :  { %v1366_v22 = vadd.f32 %v1365_v19, %v6668_v9  ;;  %v1376_v29 = vrot.slane %v5561_v23, 4 }
 0x1b8   :  { %v275_v20 = vsel %vm266_vm5, %v5435_v18, %v273_v16 }
 0x1b9   :  { %vm276_vm12 = vcmp.gt.f32.partialorder %v275_v20, 1.0  ;;  %v5562_v25 = vadd.f32 -1.0, %v1366_v22  ;;  %v393_v32 = vmul.f32 0.95, %v275_v20  ;;  %v1382_v42 = vsel %vm160_vm8, %v1381_v39, %v1376_v29 }
 0x1ba   :  { %v5436_v24 = vsel %vm276_vm12, 1.0, %v6574_v1 }
 0x1bb   :  { %v279_v26 = vadd.f32 %v5436_v24, %v269_v15  ;;  %v1368_v28 = vsel %vm1362_vm11, %v5562_v25, %v1366_v22 }
 0x1bc   :  { %vm1369_vm13 = vcmp.gt.f32.partialorder %v1368_v28, 1.0  ;;  %v1496_v31 = vmul.f32 0.95, %v1368_v28 }
 0x1bd   :  { %v389_v30 = vpop.f32.mrf.mxu1  ;;  %v5563_v36 = vsel %vm1369_vm13, 1.0, %v6574_v1 }
 0x1be   :  { %v390_v34 = vadd.f32 %v6852_v33, %v389_v30  ;;  %v1379_v38 = vrot.slane %v5563_v36, 2  ;;  %v1497_v40 = vadd.f32 %v1496_v31, %v6668_v9 }
 0x1bf   :  { %v6247_v37 = vpop.f32.mrf.mxu1 }
 0x1c0   :  { %v394_v41 = vadd.f32 %v393_v32, %v390_v34  ;;  %v1383_v43 = vsel %vm162_vm9, %v1382_v42, %v1379_v38  ;;  %v5573_v44 = vadd.f32 -1.0, %v1497_v40  ;;  %v403_v50 = vrot.slane %v390_v34, 2 }
 0x1c1   :  { %6323 = vmatmul.mubr.msk.f32.vlgmr.msra.gmra.mxu1 %vm168_vm10, %v1383_v43  ;;  %v413_v61 = vrot.slane %v390_v34, 4  ;;  %v423_v14 = vrot.slane %v390_v34, 6 }
 0x1c2   :  { %v5446_v45 = vadd.f32 -1.0, %v394_v41  ;;  %v1499_v46 = vsel %vm1369_vm13, %v5573_v44, %v1497_v40  ;;  %6337 = vmatpush3.msra.mxu1 %v6632_v3  ;;  %6344 = vmatprep.mubr.msk.f32.mxu1 %vm6575_vm2, %v6574_v1 }
 0x1c3   :  { %v1503_v48 = vmul.f32 0.95, %v1499_v46  ;;  %6338 = vmatprep.subr.mxu1 %v6574_v1  ;;  %vm1500_vm15 = vcmp.gt.f32.partialorder %v1499_v46, 1.0 }
 0x1c4   :  { %v396_v47 = vsel %vm276_vm12, %v5446_v45, %v394_v41  ;;  %6339 = vmatpush3.msra.mxu1 %v6637_v4  ;;  %v5574_v28 = vsel %vm1500_vm15, 1.0, %v6574_v1 }
 0x1c5   :  { %vm397_vm14 = vcmp.gt.f32.partialorder %v396_v47, 1.0  ;;  %v401_v49 = vmul.f32 0.95, %v396_v47  ;;  %v1504_v52 = vadd.f32 %v1503_v48, %v6668_v9  ;;  %6340 = vmatprep.subr.mxu1 %v6574_v1 }
 0x1c6   :  { %v5447_v51 = vsel %vm397_vm14, 1.0, %v6574_v1  ;;  %6341 = vmatpush3.msra.mxu1 %v6645_v5 }
 0x1c7   :  { %v400_v53 = vadd.f32 %v5447_v51, %v279_v26  ;;  %v405_v54 = vadd.f32 %v403_v50, %v401_v49  ;;  %v5575_v55 = vadd.f32 -1.0, %v1504_v52  ;;  %6342 = vmatprep.subr.mxu1 %v6574_v1 }
 0x1c8   :  { %6343 = vmatpush3.msra.mxu1 %v6654_v6 }
 0x1c9   :  { %v5448_v56 = vadd.f32 -1.0, %v405_v54  ;;  %v1506_v57 = vsel %vm1500_vm15, %v5575_v55, %v1504_v52  ;;  %6358 = vmatprep.subr.mxu1 %v6574_v1 }
 0x1ca   :  { %v1510_v59 = vmul.f32 0.95, %v1506_v57  ;;  %vm1507_vm1 = vcmp.gt.f32.partialorder %v1506_v57, 1.0 }
 0x1cb   :  { %v407_v58 = vsel %vm397_vm14, %v5448_v56, %v405_v54  ;;  %v5576_v16 = vsel %vm1507_vm1, 1.0, %v6574_v1 }
 0x1cc   :  { %vm408_vm0 = vcmp.gt.f32.partialorder %v407_v58, 1.0  ;;  %v412_v60 = vmul.f32 0.95, %v407_v58  ;;  %v1511_v63 = vadd.f32 %v1510_v59, %v6668_v9  ;;  %v1525_v23 = vrot.slane %v5576_v16, 6 }
 0x1cd   :  { %v5449_v62 = vsel %vm408_vm0, 1.0, %v6574_v1 }
 0x1ce   :  { %v411_v0 = vadd.f32 %v5449_v62, %v400_v53  ;;  %v415_v2 = vadd.f32 %v413_v61, %v412_v60  ;;  %v5577_v7 = vadd.f32 -1.0, %v1511_v63  ;;  %v1533_v37 = vsel %vm158_vm6, %v5574_v28, %v1525_v23 }
 0x1d0   :  { %v5450_v8 = vadd.f32 -1.0, %v415_v2  ;;  %v1513_v10 = vsel %vm1507_vm1, %v5577_v7, %v1511_v63 }
 0x1d1   :  { %vm1514_vm3 = vcmp.gt.f32.partialorder %v1513_v10, 1.0  ;;  %v1517_v12 = vmul.f32 0.95, %v1513_v10 }
 0x1d2   :  { %v417_v11 = vsel %vm408_vm0, %v5450_v8, %v415_v2  ;;  %v5578_v20 = vsel %vm1514_vm3, 1.0, %v6574_v1 }
 0x1d3   :  { %vm418_vm4 = vcmp.gt.f32.partialorder %v417_v11, 1.0  ;;  %v422_v13 = vmul.f32 0.95, %v417_v11  ;;  %v1518_v17 = vadd.f32 %v1517_v12, %v6668_v9  ;;  %v1528_v25 = vrot.slane %v5578_v20, 4 }
 0x1d4   :  { %v5451_v15 = vsel %vm418_vm4, 1.0, %v6574_v1 }
 0x1d5   :  { %v421_v18 = vadd.f32 %v5451_v15, %v411_v0  ;;  %v425_v19 = vadd.f32 %v423_v14, %v422_v13  ;;  %v5579_v21 = vadd.f32 -1.0, %v1518_v17  ;;  %v1534_v41 = vsel %vm160_vm8, %v1533_v37, %v1528_v25 }
 0x1d7   :  { %v5452_v22 = vadd.f32 -1.0, %v425_v19  ;;  %v1520_v24 = vsel %vm1514_vm3, %v5579_v21, %v1518_v17 }
 0x1d8   :  { %vm1521_vm5 = vcmp.gt.f32.partialorder %v1520_v24, 1.0  ;;  %v1648_v29 = vmul.f32 0.95, %v1520_v24 }
 0x1d9   :  { %v427_v26 = vsel %vm418_vm4, %v5452_v22, %v425_v19  ;;  %v541_v27 = vpop.f32.mrf.mxu1  ;;  %v5580_v32 = vsel %vm1521_vm5, 1.0, %v6574_v1 }
 0x1da   :  { %vm428_vm7 = vcmp.gt.f32.partialorder %v427_v26, 1.0  ;;  %v545_v30 = vmul.f32 0.95, %v427_v26  ;;  %v542_v31 = vadd.f32 %v6852_v33, %v541_v27  ;;  %v1531_v36 = vrot.slane %v5580_v32, 2 }
 0x1db   :  { %v5453_v34 = vsel %vm428_vm7, 1.0, %v6574_v1  ;;  %v6258_v35 = vpop.f32.mrf.mxu1  ;;  %v1649_v38 = vadd.f32 %v1648_v29, %v6668_v9 }
 0x1dc   :  { %v431_v39 = vadd.f32 %v5453_v34, %v421_v18  ;;  %v546_v40 = vadd.f32 %v545_v30, %v542_v31  ;;  %v1535_v42 = vsel %vm162_vm9, %v1534_v41, %v1531_v36  ;;  %v555_v49 = vrot.slane %v542_v31, 2  ;;  %v6975_v41 = vld [vmem:[%s8610_s4 + $0x18] sm:$0xff] }
 0x1dd   :  { %v5590_v43 = vadd.f32 -1.0, %v1649_v38  ;;  %6334 = vmatmul.mubr.msk.f32.vlgmr.msra.gmra.mxu0 %vm168_vm10, %v1535_v42  ;;  %v565_v58 = vrot.slane %v542_v31, 4  ;;  %v575_v8 = vrot.slane %v542_v31, 6 }
 0x1de   :  { %v5463_v44 = vadd.f32 -1.0, %v546_v40  ;;  %6348 = vmatpush3.msra.mxu0 %v6632_v3  ;;  %6355 = vmatprep.mubr.msk.f32.mxu0 %vm6575_vm2, %v6574_v1 }
 0x1df   :  { %v1651_v45 = vsel %vm1521_vm5, %v5590_v43, %v1649_v38  ;;  %6349 = vmatprep.subr.mxu0 %v6574_v1 }
 0x1e0   :  { %v548_v46 = vsel %vm428_vm7, %v5463_v44, %v546_v40  ;;  %v1655_v47 = vmul.f32 0.95, %v1651_v45  ;;  %6350 = vmatpush3.msra.mxu0 %v6637_v4  ;;  %vm1652_vm12 = vcmp.gt.f32.partialorder %v1651_v45, 1.0 }
 0x1e1   :  { %vm549_vm11 = vcmp.gt.f32.partialorder %v548_v46, 1.0  ;;  %v553_v48 = vmul.f32 0.95, %v548_v46  ;;  %6351 = vmatprep.subr.mxu0 %v6574_v1  ;;  %v5591_v23 = vsel %vm1652_vm12, 1.0, %v6574_v1  ;;  %v6986_v46 = vld [vmem:[%s8610_s4 + $0x10] sm:$0xff] }
 0x1e2   :  { %v5464_v50 = vsel %vm549_vm11, 1.0, %v6574_v1  ;;  %v1656_v51 = vadd.f32 %v1655_v47, %v6668_v9  ;;  %6352 = vmatpush3.msra.mxu0 %v6645_v5 }
 0x1e3   :  { %v552_v3 = vadd.f32 %v5464_v50, %v431_v39  ;;  %v557_v52 = vadd.f32 %v555_v49, %v553_v48  ;;  %6353 = vmatprep.subr.mxu0 %v6574_v1 }
 0x1e4   :  { %v5592_v53 = vadd.f32 -1.0, %v1656_v51  ;;  %6354 = vmatpush3.msra.mxu0 %v6654_v6 }
 0x1e5   :  { %v5465_v54 = vadd.f32 -1.0, %v557_v52  ;;  %6369 = vmatprep.subr.mxu0 %v6574_v1 }
 0x1e6   :  { %v1658_v4 = vsel %vm1652_vm12, %v5592_v53, %v1656_v51  ;;  %v6996_v51 = vld [vmem:[%s8610_s4 + $0x8] sm:$0xff]  ;;  %v7003_v53 = vld [vmem:[%s8610_s4] sm:$0xff] }
 0x1e7   :  { %v559_v55 = vsel %vm549_vm11, %v5465_v54, %v557_v52  ;;  %v1662_v56 = vmul.f32 0.95, %v1658_v4  ;;  %vm1659_vm14 = vcmp.gt.f32.partialorder %v1658_v4, 1.0 }
 0x1e8   :  { %vm560_vm13 = vcmp.gt.f32.partialorder %v559_v55, 1.0  ;;  %v564_v57 = vmul.f32 0.95, %v559_v55  ;;  %v5593_v11 = vsel %vm1659_vm14, 1.0, %v6574_v1 }
 0x1e9   :  { %v5466_v59 = vsel %vm560_vm13, 1.0, %v6574_v1  ;;  %v1663_v5 = vadd.f32 %v1662_v56, %v6668_v9  ;;  %v1677_v18 = vrot.slane %v5593_v11, 6 }
 0x1ea   :  { %v563_v60 = vadd.f32 %v5466_v59, %v552_v3  ;;  %v567_v61 = vadd.f32 %v565_v58, %v564_v57 }
 0x1eb   :  { %v5594_v62 = vadd.f32 -1.0, %v1663_v5  ;;  %v1685_v31 = vsel %vm158_vm6, %v5591_v23, %v1677_v18 }
 0x1ec   :  { %v5467_v63 = vadd.f32 -1.0, %v567_v61 }
 0x1ed   :  { %v1665_v6 = vsel %vm1659_vm14, %v5594_v62, %v1663_v5 }
 0x1ee   :  { %v569_v0 = vsel %vm560_vm13, %v5467_v63, %v567_v61  ;;  %vm1666_vm15 = vcmp.gt.f32.partialorder %v1665_v6, 1.0  ;;  %v1669_v2 = vmul.f32 0.95, %v1665_v6 }
 0x1ef   :  { %vm570_vm0 = vcmp.gt.f32.partialorder %v569_v0, 1.0  ;;  %v574_v7 = vmul.f32 0.95, %v569_v0  ;;  %v5595_v15 = vsel %vm1666_vm15, 1.0, %v6574_v1 }
 0x1f0   :  { %v5468_v10 = vsel %vm570_vm0, 1.0, %v6574_v1  ;;  %v1670_v12 = vadd.f32 %v1669_v2, %v6668_v9  ;;  %v1680_v20 = vrot.slane %v5595_v15, 4 }
 0x1f1   :  { %v573_v13 = vadd.f32 %v5468_v10, %v563_v60  ;;  %v577_v14 = vadd.f32 %v575_v8, %v574_v7 }
 0x1f2   :  { %v5596_v16 = vadd.f32 -1.0, %v1670_v12  ;;  %v1686_v36 = vsel %vm160_vm8, %v1685_v31, %v1680_v20 }
 0x1f3   :  { %v5469_v17 = vadd.f32 -1.0, %v577_v14 }
 0x1f4   :  { %v1672_v19 = vsel %vm1666_vm15, %v5596_v16, %v1670_v12 }
 0x1f5   :  { %v579_v21 = vsel %vm570_vm0, %v5469_v17, %v577_v14  ;;  %v693_v22 = vpop.f32.mrf.mxu0  ;;  %vm1673_vm1 = vcmp.gt.f32.partialorder %v1672_v19, 1.0  ;;  %v1800_v24 = vmul.f32 0.95, %v1672_v19 }
 0x1f6   :  { %vm580_vm3 = vcmp.gt.f32.partialorder %v579_v21, 1.0  ;;  %v697_v25 = vmul.f32 0.95, %v579_v21  ;;  %v6959_v26 = vadd.f32 %v6852_v33, %v693_v22  ;;  %v5597_v27 = vsel %vm1673_vm1, 1.0, %v6574_v1 }
 0x1f7   :  { %v5470_v28 = vsel %vm580_vm3, 1.0, %v6574_v1  ;;  %v6269_v29 = vpop.f32.mrf.mxu0  ;;  %v1683_v30 = vrot.slane %v5597_v27, 2  ;;  %v1801_v32 = vadd.f32 %v1800_v24, %v6668_v9 }
 0x1f8   :  { %v583_v34 = vadd.f32 %v5470_v28, %v573_v13  ;;  %v698_v35 = vadd.f32 %v697_v25, %v6959_v26  ;;  %v707_v45 = vrot.slane %v6959_v26, 2  ;;  %v717_v57 = vrot.slane %v6959_v26, 4 }
 0x1f9   :  { %v1687_v37 = vsel %vm162_vm9, %v1686_v36, %v1683_v30  ;;  %v5607_v38 = vadd.f32 -1.0, %v1801_v32  ;;  %v727_v7 = vrot.slane %v6959_v26, 6 }
 0x1fa   :  { %v5480_v39 = vadd.f32 -1.0, %v698_v35  ;;  %6345 = vmatmul.mubr.msk.f32.vlgmr.msra.gmra.mxu1 %vm168_vm10, %v1687_v37 }
 0x1fb   :  { %v1803_v40 = vsel %vm1673_vm1, %v5607_v38, %v1801_v32  ;;  %6359 = vmatpush3.msra.mxu1 %v6975_v41  ;;  %6366 = vmatprep.mubr.msk.f32.mxu1 %vm6575_vm2, %v6574_v1 }
 0x1fc   :  { %v700_v42 = vsel %vm580_vm3, %v5480_v39, %v698_v35  ;;  %v1807_v43 = vmul.f32 0.95, %v1803_v40  ;;  %6360 = vmatprep.subr.mxu1 %v6574_v1  ;;  %vm1804_vm5 = vcmp.gt.f32.partialorder %v1803_v40, 1.0 }
 0x1fd   :  { %vm701_vm4 = vcmp.gt.f32.partialorder %v700_v42, 1.0  ;;  %v705_v44 = vmul.f32 0.95, %v700_v42  ;;  %6361 = vmatpush3.msra.mxu1 %v6986_v46  ;;  %v5608_v22 = vsel %vm1804_vm5, 1.0, %v6574_v1 }
 0x1fe   :  { %v5481_v47 = vsel %vm701_vm4, 1.0, %v6574_v1  ;;  %v1808_v48 = vadd.f32 %v1807_v43, %v6668_v9  ;;  %6362 = vmatprep.subr.mxu1 %v6574_v1 }
 0x1ff   :  { %v704_v49 = vadd.f32 %v5481_v47, %v583_v34  ;;  %v709_v50 = vadd.f32 %v707_v45, %v705_v44  ;;  %6363 = vmatpush3.msra.mxu1 %v6996_v51 }
 0x200   :  { %v5609_v3 = vadd.f32 -1.0, %v1808_v48  ;;  %6364 = vmatprep.subr.mxu1 %v6574_v1 }
 0x201   :  { %v5482_v52 = vadd.f32 -1.0, %v709_v50  ;;  %6365 = vmatpush3.msra.mxu1 %v7003_v53 }
 0x202   :  { %v1810_v54 = vsel %vm1804_vm5, %v5609_v3, %v1808_v48  ;;  %6380 = vmatprep.subr.mxu1 %v6574_v1 }
 0x203   :  { %v711_v4 = vsel %vm701_vm4, %v5482_v52, %v709_v50  ;;  %v1814_v55 = vmul.f32 0.95, %v1810_v54  ;;  %vm1811_vm11 = vcmp.gt.f32.partialorder %v1810_v54, 1.0 }
 0x204   :  { %vm712_vm7 = vcmp.gt.f32.partialorder %v711_v4, 1.0  ;;  %v716_v56 = vmul.f32 0.95, %v711_v4  ;;  %v5610_v10 = vsel %vm1811_vm11, 1.0, %v6574_v1 }
 0x205   :  { %v5483_v58 = vsel %vm712_vm7, 1.0, %v6574_v1  ;;  %v1815_v59 = vadd.f32 %v1814_v55, %v6668_v9  ;;  %v1829_v17 = vrot.slane %v5610_v10, 6 }
 0x206   :  { %v715_v5 = vadd.f32 %v5483_v58, %v704_v49  ;;  %v719_v60 = vadd.f32 %v717_v57, %v716_v56 }
 0x207   :  { %v5611_v61 = vadd.f32 -1.0, %v1815_v59  ;;  %v1837_v30 = vsel %vm158_vm6, %v5608_v22, %v1829_v17 }
 0x208   :  { %v5484_v62 = vadd.f32 -1.0, %v719_v60 }
 0x209   :  { %v1817_v63 = vsel %vm1811_vm11, %v5611_v61, %v1815_v59 }
 0x20a   :  { %v721_v6 = vsel %vm712_vm7, %v5484_v62, %v719_v60  ;;  %vm1818_vm12 = vcmp.gt.f32.partialorder %v1817_v63, 1.0  ;;  %v1821_v0 = vmul.f32 0.95, %v1817_v63 }
 0x20b   :  { %vm722_vm13 = vcmp.gt.f32.partialorder %v721_v6, 1.0  ;;  %v726_v2 = vmul.f32 0.95, %v721_v6  ;;  %v5612_v14 = vsel %vm1818_vm12, 1.0, %v6574_v1 }
 0x20c   :  { %v5485_v8 = vsel %vm722_vm13, 1.0, %v6574_v1  ;;  %v1822_v11 = vadd.f32 %v1821_v0, %v6668_v9  ;;  %v1832_v19 = vrot.slane %v5612_v14, 4 }
 0x20d   :  { %v725_v12 = vadd.f32 %v5485_v8, %v715_v5  ;;  %v729_v13 = vadd.f32 %v727_v7, %v726_v2 }
 0x20e   :  { %v5613_v15 = vadd.f32 -1.0, %v1822_v11  ;;  %v1838_v35 = vsel %vm160_vm8, %v1837_v30, %v1832_v19 }
 0x20f   :  { %v5486_v16 = vadd.f32 -1.0, %v729_v13 }
 0x210   :  { %v1824_v18 = vsel %vm1818_vm12, %v5613_v15, %v1822_v11 }
 0x211   :  { %v731_v20 = vsel %vm722_vm13, %v5486_v16, %v729_v13  ;;  %v845_v21 = vpop.f32.mrf.mxu1  ;;  %vm1825_vm14 = vcmp.gt.f32.partialorder %v1824_v18, 1.0  ;;  %v1952_v23 = vmul.f32 0.95, %v1824_v18 }
 0x212   :  { %vm732_vm15 = vcmp.gt.f32.partialorder %v731_v20, 1.0  ;;  %v849_v24 = vmul.f32 0.95, %v731_v20  ;;  %v846_v25 = vadd.f32 %v6852_v33, %v845_v21  ;;  %v5614_v26 = vsel %vm1825_vm14, 1.0, %v6574_v1 }
 0x213   :  { %v5487_v27 = vsel %vm732_vm15, 1.0, %v6574_v1  ;;  %v6280_v28 = vpop.f32.mrf.mxu1  ;;  %v1835_v29 = vrot.slane %v5614_v26, 2  ;;  %v1953_v31 = vadd.f32 %v1952_v23, %v6668_v9 }
 0x214   :  { %v735_v32 = vadd.f32 %v5487_v27, %v725_v12  ;;  %v850_v34 = vadd.f32 %v849_v24, %v846_v25  ;;  %v859_v44 = vrot.slane %v846_v25, 2  ;;  %v869_v56 = vrot.slane %v846_v25, 4 }
 0x215   :  { %v1839_v36 = vsel %vm162_vm9, %v1838_v35, %v1835_v29  ;;  %v5624_v37 = vadd.f32 -1.0, %v1953_v31  ;;  %v879_v2 = vrot.slane %v846_v25, 6 }
 0x216   :  { %v5497_v38 = vadd.f32 -1.0, %v850_v34  ;;  %6356 = vmatmul.mubr.msk.f32.vlgmr.msra.gmra.mxu0 %vm168_vm10, %v1839_v36 }
 0x217   :  { %v1955_v39 = vsel %vm1825_vm14, %v5624_v37, %v1953_v31  ;;  %6370 = vmatpush3.msra.mxu0 %v6975_v41  ;;  %6377 = vmatprep.mubr.msk.f32.mxu0 %vm6575_vm2, %v6574_v1 }
 0x218   :  { %v852_v40 = vsel %vm732_vm15, %v5497_v38, %v850_v34  ;;  %v1959_v42 = vmul.f32 0.95, %v1955_v39  ;;  %6371 = vmatprep.subr.mxu0 %v6574_v1  ;;  %vm1956_vm1 = vcmp.gt.f32.partialorder %v1955_v39, 1.0 }
 0x219   :  { %vm853_vm0 = vcmp.gt.f32.partialorder %v852_v40, 1.0  ;;  %v857_v43 = vmul.f32 0.95, %v852_v40  ;;  %6372 = vmatpush3.msra.mxu0 %v6986_v46  ;;  %v5625_v21 = vsel %vm1956_vm1, 1.0, %v6574_v1 }
 0x21a   :  { %v5498_v45 = vsel %vm853_vm0, 1.0, %v6574_v1  ;;  %v1960_v47 = vadd.f32 %v1959_v42, %v6668_v9  ;;  %6373 = vmatprep.subr.mxu0 %v6574_v1 }
 0x21b   :  { %v856_v48 = vadd.f32 %v5498_v45, %v735_v32  ;;  %v861_v49 = vadd.f32 %v859_v44, %v857_v43  ;;  %6374 = vmatpush3.msra.mxu0 %v6996_v51 }
 0x21c   :  { %v5626_v50 = vadd.f32 -1.0, %v1960_v47  ;;  %6375 = vmatprep.subr.mxu0 %v6574_v1 }
 0x21d   :  { %v5499_v3 = vadd.f32 -1.0, %v861_v49  ;;  %6376 = vmatpush3.msra.mxu0 %v7003_v53 }
 0x21e   :  { %v1962_v52 = vsel %vm1956_vm1, %v5626_v50, %v1960_v47  ;;  %6391 = vmatprep.subr.mxu0 %v6574_v1 }
 0x21f   :  { %v863_v54 = vsel %vm853_vm0, %v5499_v3, %v861_v49  ;;  %v1966_v4 = vmul.f32 0.95, %v1962_v52  ;;  %vm1963_vm4 = vcmp.gt.f32.partialorder %v1962_v52, 1.0 }
 0x220   :  { %vm864_vm3 = vcmp.gt.f32.partialorder %v863_v54, 1.0  ;;  %v868_v55 = vmul.f32 0.95, %v863_v54  ;;  %v5627_v8 = vsel %vm1963_vm4, 1.0, %v6574_v1 }
 0x221   :  { %v5500_v57 = vsel %vm864_vm3, 1.0, %v6574_v1  ;;  %v1967_v58 = vadd.f32 %v1966_v4, %v6668_v9  ;;  %v1981_v16 = vrot.slane %v5627_v8, 6 }
 0x222   :  { %v867_v59 = vadd.f32 %v5500_v57, %v856_v48  ;;  %v871_v5 = vadd.f32 %v869_v56, %v868_v55 }
 0x223   :  { %v5628_v60 = vadd.f32 -1.0, %v1967_v58  ;;  %v1989_v29 = vsel %vm158_vm6, %v5625_v21, %v1981_v16 }
 0x224   :  { %v5501_v61 = vadd.f32 -1.0, %v871_v5 }
 0x225   :  { %v1969_v62 = vsel %vm1963_vm4, %v5628_v60, %v1967_v58 }
 0x226   :  { %v873_v63 = vsel %vm864_vm3, %v5501_v61, %v871_v5  ;;  %vm1970_vm5 = vcmp.gt.f32.partialorder %v1969_v62, 1.0  ;;  %v1973_v6 = vmul.f32 0.95, %v1969_v62 }
 0x227   :  { %vm874_vm7 = vcmp.gt.f32.partialorder %v873_v63, 1.0  ;;  %v878_v0 = vmul.f32 0.95, %v873_v63  ;;  %v5629_v13 = vsel %vm1970_vm5, 1.0, %v6574_v1 }
 0x228   :  { %v5502_v7 = vsel %vm874_vm7, 1.0, %v6574_v1  ;;  %v1974_v10 = vadd.f32 %v1973_v6, %v6668_v9  ;;  %v1984_v18 = vrot.slane %v5629_v13, 4 }
 0x229   :  { %v877_v11 = vadd.f32 %v5502_v7, %v867_v59  ;;  %v881_v12 = vadd.f32 %v879_v2, %v878_v0 }
 0x22a   :  { %v5630_v14 = vadd.f32 -1.0, %v1974_v10  ;;  %v1990_v34 = vsel %vm160_vm8, %v1989_v29, %v1984_v18 }
 0x22b   :  { %v5503_v15 = vadd.f32 -1.0, %v881_v12 }
 0x22c   :  { %v1976_v17 = vsel %vm1970_vm5, %v5630_v14, %v1974_v10 }
 0x22d   :  { %v883_v19 = vsel %vm874_vm7, %v5503_v15, %v881_v12  ;;  %v997_v20 = vpop.f32.mrf.mxu0  ;;  %vm1977_vm11 = vcmp.gt.f32.partialorder %v1976_v17, 1.0  ;;  %v2104_v22 = vmul.f32 0.95, %v1976_v17 }
 0x22e   :  { %vm884_vm12 = vcmp.gt.f32.partialorder %v883_v19, 1.0  ;;  %v1001_v23 = vmul.f32 0.95, %v883_v19  ;;  %v998_v24 = vadd.f32 %v6852_v33, %v997_v20  ;;  %v5631_v25 = vsel %vm1977_vm11, 1.0, %v6574_v1 }
 0x22f   :  { %v5504_v26 = vsel %vm884_vm12, 1.0, %v6574_v1  ;;  %v6291_v27 = vpop.f32.mrf.mxu0  ;;  %v1987_v28 = vrot.slane %v5631_v25, 2  ;;  %v2105_v30 = vadd.f32 %v2104_v22, %v6668_v9 }
 0x230   :  { %v887_v31 = vadd.f32 %v5504_v26, %v877_v11  ;;  %v1002_v32 = vadd.f32 %v1001_v23, %v998_v24  ;;  %v1011_v43 = vrot.slane %v998_v24, 2  ;;  %v1021_v55 = vrot.slane %v998_v24, 4 }
 0x231   :  { %v1991_v35 = vsel %vm162_vm9, %v1990_v34, %v1987_v28  ;;  %v5641_v36 = vadd.f32 -1.0, %v2105_v30  ;;  %v1031_v0 = vrot.slane %v998_v24, 6 }
 0x232   :  { %v5514_v37 = vadd.f32 -1.0, %v1002_v32  ;;  %6367 = vmatmul.mubr.msk.f32.vlgmr.msra.gmra.mxu1 %vm168_vm10, %v1991_v35 }
 0x233   :  { %v2107_v38 = vsel %vm1977_vm11, %v5641_v36, %v2105_v30  ;;  %6381 = vmatpush3.msra.mxu1 %v6975_v41  ;;  %6388 = vmatprep.mubr.msk.f32.mxu1 %vm6575_vm2, %v6574_v1 }
 0x234   :  { %v1004_v39 = vsel %vm884_vm12, %v5514_v37, %v1002_v32  ;;  %v2111_v40 = vmul.f32 0.95, %v2107_v38  ;;  %6382 = vmatprep.subr.mxu1 %v6574_v1  ;;  %vm2108_vm14 = vcmp.gt.f32.partialorder %v2107_v38, 1.0 }
 0x235   :  { %vm1005_vm13 = vcmp.gt.f32.partialorder %v1004_v39, 1.0  ;;  %v1009_v42 = vmul.f32 0.95, %v1004_v39  ;;  %6383 = vmatpush3.msra.mxu1 %v6986_v46  ;;  %v5642_v20 = vsel %vm2108_vm14, 1.0, %v6574_v1 }
 0x236   :  { %v5515_v44 = vsel %vm1005_vm13, 1.0, %v6574_v1  ;;  %v2112_v45 = vadd.f32 %v2111_v40, %v6668_v9  ;;  %6384 = vmatprep.subr.mxu1 %v6574_v1 }
 0x237   :  { %v1008_v47 = vadd.f32 %v5515_v44, %v887_v31  ;;  %v1013_v48 = vadd.f32 %v1011_v43, %v1009_v42  ;;  %6385 = vmatpush3.msra.mxu1 %v6996_v51 }
 0x238   :  { %v5643_v49 = vadd.f32 -1.0, %v2112_v45  ;;  %6386 = vmatprep.subr.mxu1 %v6574_v1 }
 0x239   :  { %v5516_v50 = vadd.f32 -1.0, %v1013_v48  ;;  %6387 = vmatpush3.msra.mxu1 %v7003_v53 }
 0x23a   :  { %v2114_v3 = vsel %vm2108_vm14, %v5643_v49, %v2112_v45  ;;  %6402 = vmatprep.subr.mxu1 %v6574_v1 }
 0x23b   :  { %v1015_v52 = vsel %vm1005_vm13, %v5516_v50, %v1013_v48  ;;  %v2118_v54 = vmul.f32 0.95, %v2114_v3  ;;  %vm2115_vm0 = vcmp.gt.f32.partialorder %v2114_v3, 1.0 }
 0x23c   :  { %vm1016_vm15 = vcmp.gt.f32.partialorder %v1015_v52, 1.0  ;;  %v1020_v4 = vmul.f32 0.95, %v1015_v52  ;;  %v5644_v7 = vsel %vm2115_vm0, 1.0, %v6574_v1 }
 0x23d   :  { %v5517_v56 = vsel %vm1016_vm15, 1.0, %v6574_v1  ;;  %v2119_v57 = vadd.f32 %v2118_v54, %v6668_v9  ;;  %v2133_v15 = vrot.slane %v5644_v7, 6 }
 0x23e   :  { %v1019_v58 = vadd.f32 %v5517_v56, %v1008_v47  ;;  %v1023_v59 = vadd.f32 %v1021_v55, %v1020_v4 }
 0x23f   :  { %v5645_v5 = vadd.f32 -1.0, %v2119_v57  ;;  %v2141_v28 = vsel %vm158_vm6, %v5642_v20, %v2133_v15 }
 0x240   :  { %v5518_v60 = vadd.f32 -1.0, %v1023_v59 }
 0x241   :  { %v2121_v61 = vsel %vm2115_vm0, %v5645_v5, %v2119_v57 }
 0x242   :  { %v1025_v62 = vsel %vm1016_vm15, %v5518_v60, %v1023_v59  ;;  %vm2122_vm1 = vcmp.gt.f32.partialorder %v2121_v61, 1.0  ;;  %v2125_v63 = vmul.f32 0.95, %v2121_v61 }
 0x243   :  { %vm1026_vm3 = vcmp.gt.f32.partialorder %v1025_v62, 1.0  ;;  %v1030_v6 = vmul.f32 0.95, %v1025_v62  ;;  %v5646_v12 = vsel %vm2122_vm1, 1.0, %v6574_v1 }
 0x244   :  { %v5519_v2 = vsel %vm1026_vm3, 1.0, %v6574_v1  ;;  %v2126_v8 = vadd.f32 %v2125_v63, %v6668_v9  ;;  %v2136_v17 = vrot.slane %v5646_v12, 4 }
 0x245   :  { %v1029_v10 = vadd.f32 %v5519_v2, %v1019_v58  ;;  %v1033_v11 = vadd.f32 %v1031_v0, %v1030_v6 }
 0x246   :  { %v5647_v13 = vadd.f32 -1.0, %v2126_v8  ;;  %v2142_v32 = vsel %vm160_vm8, %v2141_v28, %v2136_v17 }
 0x247   :  { %v5520_v14 = vadd.f32 -1.0, %v1033_v11 }
 0x248   :  { %v2128_v16 = vsel %vm2122_vm1, %v5647_v13, %v2126_v8 }
 0x249   :  { %v1035_v18 = vsel %vm1026_vm3, %v5520_v14, %v1033_v11  ;;  %v1149_v19 = vpop.f32.mrf.mxu1  ;;  %vm2129_vm4 = vcmp.gt.f32.partialorder %v2128_v16, 1.0  ;;  %v2256_v21 = vmul.f32 0.95, %v2128_v16 }
 0x24a   :  { %vm1036_vm5 = vcmp.gt.f32.partialorder %v1035_v18, 1.0  ;;  %v1153_v22 = vmul.f32 0.95, %v1035_v18  ;;  %v1150_v23 = vadd.f32 %v6852_v33, %v1149_v19  ;;  %v5648_v24 = vsel %vm2129_vm4, 1.0, %v6574_v1 }
 0x24b   :  { %v5521_v25 = vsel %vm1036_vm5, 1.0, %v6574_v1  ;;  %v6302_v26 = vpop.f32.mrf.mxu1  ;;  %v2139_v27 = vrot.slane %v5648_v24, 2  ;;  %v2257_v29 = vadd.f32 %v2256_v21, %v6668_v9 }
 0x24c   :  { %v1039_v30 = vadd.f32 %v5521_v25, %v1029_v10  ;;  %v1154_v31 = vadd.f32 %v1153_v22, %v1150_v23  ;;  %v1163_v40 = vrot.slane %v1150_v23, 2  ;;  %v1173_v54 = vrot.slane %v1150_v23, 4 }
 0x24d   :  { %v2143_v34 = vsel %vm162_vm9, %v2142_v32, %v2139_v27  ;;  %v5658_v35 = vadd.f32 -1.0, %v2257_v29  ;;  %v1183_v63 = vrot.slane %v1150_v23, 6  ;;  %v7131_v23 = vld [vmem:[%s8610_s4 + $0x48] ss:$0 sm:$0xff] }
 0x24e   :  { %v5531_v33 = vadd.f32 -1.0, %v1154_v31  ;;  %6378 = vmatmul.mubr.msk.f32.vlgmr.msra.gmra.mxu0 %vm168_vm10, %v2143_v34 }
 0x24f   :  { %v2259_v36 = vsel %vm2129_vm4, %v5658_v35, %v2257_v29  ;;  %6392 = vmatpush3.msra.mxu0 %v6975_v41  ;;  %6399 = vmatprep.mubr.msk.f32.mxu0 %vm6575_vm2, %v6574_v1 }
 0x250   :  { %v1156_v37 = vsel %vm1036_vm5, %v5531_v33, %v1154_v31  ;;  %v2263_v38 = vmul.f32 0.95, %v2259_v36  ;;  %6393 = vmatprep.subr.mxu0 %v6574_v1  ;;  %vm2260_vm11 = vcmp.gt.f32.partialorder %v2259_v36, 1.0 }
 0x251   :  { %vm1157_vm7 = vcmp.gt.f32.partialorder %v1156_v37, 1.0  ;;  %v1161_v39 = vmul.f32 0.95, %v1156_v37  ;;  %6394 = vmatpush3.msra.mxu0 %v6986_v46  ;;  %v5659_v20 = vsel %vm2260_vm11, 1.0, %v6574_v1 }
 0x252   :  { %v5532_v42 = vsel %vm1157_vm7, 1.0, %v6574_v1  ;;  %v2264_v43 = vadd.f32 %v2263_v38, %v6668_v9  ;;  %6395 = vmatprep.subr.mxu0 %v6574_v1 }
 0x253   :  { %v1160_v44 = vadd.f32 %v5532_v42, %v1039_v30  ;;  %v1165_v45 = vadd.f32 %v1163_v40, %v1161_v39  ;;  %6396 = vmatpush3.msra.mxu0 %v6996_v51 }
 0x254   :  { %v5660_v47 = vadd.f32 -1.0, %v2264_v43  ;;  %6397 = vmatprep.subr.mxu0 %v6574_v1 }
 0x255   :  { %v5533_v48 = vadd.f32 -1.0, %v1165_v45  ;;  %6398 = vmatpush3.msra.mxu0 %v7003_v53 }
 0x256   :  { %v2266_v49 = vsel %vm2260_vm11, %v5660_v47, %v2264_v43  ;;  %6413 = vmatprep.subr.mxu0 %v6574_v1 }
 0x257   :  { %v1167_v50 = vsel %vm1157_vm7, %v5533_v48, %v1165_v45  ;;  %v2270_v3 = vmul.f32 0.95, %v2266_v49  ;;  %vm2267_vm13 = vcmp.gt.f32.partialorder %v2266_v49, 1.0 }
 0x258   :  { %vm1168_vm12 = vcmp.gt.f32.partialorder %v1167_v50, 1.0  ;;  %v1172_v52 = vmul.f32 0.95, %v1167_v50  ;;  %v5661_v8 = vsel %vm2267_vm13, 1.0, %v6574_v1 }
 0x259   :  { %v5534_v4 = vsel %vm1168_vm12, 1.0, %v6574_v1  ;;  %v2271_v55 = vadd.f32 %v2270_v3, %v6668_v9  ;;  %v2285_v14 = vrot.slane %v5661_v8, 6 }
 0x25a   :  { %v1171_v56 = vadd.f32 %v5534_v4, %v1160_v44  ;;  %v1175_v57 = vadd.f32 %v1173_v54, %v1172_v52 }
 0x25b   :  { %v5662_v58 = vadd.f32 -1.0, %v2271_v55  ;;  %v2293_v29 = vsel %vm158_vm6, %v5659_v20, %v2285_v14 }
 0x25c   :  { %v5535_v59 = vadd.f32 -1.0, %v1175_v57 }
 0x25d   :  { %v2273_v5 = vsel %vm2267_vm13, %v5662_v58, %v2271_v55 }
 0x25e   :  { %v1177_v60 = vsel %vm1168_vm12, %v5535_v59, %v1175_v57  ;;  %v2277_v61 = vmul.f32 0.95, %v2273_v5  ;;  %vm2274_vm15 = vcmp.gt.f32.partialorder %v2273_v5, 1.0 }
 0x25f   :  { %vm1178_vm14 = vcmp.gt.f32.partialorder %v1177_v60, 1.0  ;;  %v1182_v62 = vmul.f32 0.95, %v1177_v60  ;;  %v5663_v10 = vsel %vm2274_vm15, 1.0, %v6574_v1 }
 0x260   :  { %v5536_v6 = vsel %vm1178_vm14, 1.0, %v6574_v1  ;;  %v2278_v0 = vadd.f32 %v2277_v61, %v6668_v9  ;;  %v2288_v16 = vrot.slane %v5663_v10, 4 }
 0x261   :  { %v1181_v2 = vadd.f32 %v5536_v6, %v1171_v56  ;;  %v1185_v7 = vadd.f32 %v1183_v63, %v1182_v62 }
 0x262   :  { %v5664_v11 = vadd.f32 -1.0, %v2278_v0  ;;  %v2294_v31 = vsel %vm160_vm8, %v2293_v29, %v2288_v16 }
 0x263   :  { %v5537_v12 = vadd.f32 -1.0, %v1185_v7 }
 0x264   :  { %v2280_v13 = vsel %vm2274_vm15, %v5664_v11, %v2278_v0 }
 0x265   :  { %v1187_v15 = vsel %vm1178_vm14, %v5537_v12, %v1185_v7  ;;  %vm2281_vm0 = vcmp.gt.f32.partialorder %v2280_v13, 1.0  ;;  %v2408_v17 = vmul.f32 0.95, %v2280_v13  ;;  %v1301_v19 = vpop.f32.mrf.mxu0 }
 0x266   :  { %vm1188_vm1 = vcmp.gt.f32.partialorder %v1187_v15, 1.0  ;;  %v1305_v18 = vmul.f32 0.95, %v1187_v15  ;;  %v5665_v21 = vsel %vm2281_vm0, 1.0, %v6574_v1  ;;  %v1302_v24 = vadd.f32 %v7131_v23, %v1301_v19 }
 0x267   :  { %v5538_v22 = vsel %vm1188_vm1, 1.0, %v6574_v1  ;;  %v2291_v25 = vrot.slane %v5665_v21, 2  ;;  %v2409_v26 = vadd.f32 %v2408_v17, %v6668_v9  ;;  %v6313_v28 = vpop.f32.mrf.mxu0 }
 0x268   :  { %v1191_v27 = vadd.f32 %v5538_v22, %v1181_v2  ;;  %v1306_v30 = vadd.f32 %v1305_v18, %v1302_v24  ;;  %v1315_v39 = vrot.slane %v1302_v24, 2  ;;  %v1325_v52 = vrot.slane %v1302_v24, 4 }
 0x269   :  { %v2295_v32 = vsel %vm162_vm9, %v2294_v31, %v2291_v25  ;;  %v5675_v34 = vadd.f32 -1.0, %v2409_v26  ;;  %v1335_v62 = vrot.slane %v1302_v24, 6 }
 0x26a   :  { %v5548_v35 = vadd.f32 -1.0, %v1306_v30  ;;  %6389 = vmatmul.mubr.msk.f32.vlgmr.msra.gmra.mxu1 %vm168_vm10, %v2295_v32 }
 0x26b   :  { %v2411_v33 = vsel %vm2281_vm0, %v5675_v34, %v2409_v26  ;;  %6403 = vmatpush3.msra.mxu1 %v6975_v41  ;;  %6410 = vmatprep.mubr.msk.f32.mxu1 %vm6575_vm2, %v6574_v1 }
 0x26c   :  { %v1308_v36 = vsel %vm1188_vm1, %v5548_v35, %v1306_v30  ;;  %v2415_v37 = vmul.f32 0.95, %v2411_v33  ;;  %6404 = vmatprep.subr.mxu1 %v6574_v1  ;;  %vm2412_vm4 = vcmp.gt.f32.partialorder %v2411_v33, 1.0 }
 0x26d   :  { %vm1309_vm3 = vcmp.gt.f32.partialorder %v1308_v36, 1.0  ;;  %v1313_v38 = vmul.f32 0.95, %v1308_v36  ;;  %6405 = vmatpush3.msra.mxu1 %v6986_v46  ;;  %v5676_v17 = vsel %vm2412_vm4, 1.0, %v6574_v1 }
 0x26e   :  { %v5549_v40 = vsel %vm1309_vm3, 1.0, %v6574_v1  ;;  %v2416_v42 = vadd.f32 %v2415_v37, %v6668_v9  ;;  %6406 = vmatprep.subr.mxu1 %v6574_v1 }
 0x26f   :  { %v1312_v43 = vadd.f32 %v5549_v40, %v1191_v27  ;;  %v1317_v44 = vadd.f32 %v1315_v39, %v1313_v38  ;;  %6407 = vmatpush3.msra.mxu1 %v6996_v51 }
 0x270   :  { %v5677_v45 = vadd.f32 -1.0, %v2416_v42  ;;  %6408 = vmatprep.subr.mxu1 %v6574_v1 }
 0x271   :  { %v5550_v47 = vadd.f32 -1.0, %v1317_v44  ;;  %6409 = vmatpush3.msra.mxu1 %v7003_v53 }
 0x272   :  { %v2418_v48 = vsel %vm2412_vm4, %v5677_v45, %v2416_v42  ;;  %6424 = vmatprep.subr.mxu1 %v6574_v1 }
 0x273   :  { %v1319_v49 = vsel %vm1309_vm3, %v5550_v47, %v1317_v44  ;;  %v2422_v50 = vmul.f32 0.95, %v2418_v48  ;;  %vm2419_vm7 = vcmp.gt.f32.partialorder %v2418_v48, 1.0 }
 0x274   :  { %vm1320_vm5 = vcmp.gt.f32.partialorder %v1319_v49, 1.0  ;;  %v1324_v3 = vmul.f32 0.95, %v1319_v49  ;;  %v5678_v6 = vsel %vm2419_vm7, 1.0, %v6574_v1 }
 0x275   :  { %v5551_v54 = vsel %vm1320_vm5, 1.0, %v6574_v1  ;;  %v2423_v4 = vadd.f32 %v2422_v50, %v6668_v9  ;;  %v2437_v12 = vrot.slane %v5678_v6, 6 }
 0x276   :  { %v1323_v55 = vadd.f32 %v5551_v54, %v1312_v43  ;;  %v1327_v56 = vadd.f32 %v1325_v52, %v1324_v3 }
 0x277   :  { %v5679_v57 = vadd.f32 -1.0, %v2423_v4  ;;  %v2445_v26 = vsel %vm158_vm6, %v5676_v17, %v2437_v12 }
 0x278   :  { %v5552_v58 = vadd.f32 -1.0, %v1327_v56 }
 0x279   :  { %v2425_v59 = vsel %vm2419_vm7, %v5679_v57, %v2423_v4 }
 0x27a   :  { %v1329_v5 = vsel %vm1320_vm5, %v5552_v58, %v1327_v56  ;;  %vm2426_vm11 = vcmp.gt.f32.partialorder %v2425_v59, 1.0  ;;  %v2429_v60 = vmul.f32 0.95, %v2425_v59 }
 0x27b   :  { %vm1330_vm12 = vcmp.gt.f32.partialorder %v1329_v5, 1.0  ;;  %v1334_v61 = vmul.f32 0.95, %v1329_v5  ;;  %v5680_v8 = vsel %vm2426_vm11, 1.0, %v6574_v1 }
 0x27c   :  { %v5553_v63 = vsel %vm1330_vm12, 1.0, %v6574_v1  ;;  %v2430_v0 = vadd.f32 %v2429_v60, %v6668_v9  ;;  %v2440_v14 = vrot.slane %v5680_v8, 4 }
 0x27d   :  { %v1333_v2 = vadd.f32 %v5553_v63, %v1323_v55  ;;  %v1337_v7 = vadd.f32 %v1335_v62, %v1334_v61 }
 0x27e   :  { %v5681_v10 = vadd.f32 -1.0, %v2430_v0  ;;  %v2446_v30 = vsel %vm160_vm8, %v2445_v26, %v2440_v14 }
 0x27f   :  { %v5554_v11 = vadd.f32 -1.0, %v1337_v7 }
 0x280   :  { %v2432_v13 = vsel %vm2426_vm11, %v5681_v10, %v2430_v0 }
 0x281   :  { %v1339_v15 = vsel %vm1330_vm12, %v5554_v11, %v1337_v7  ;;  %v1453_v16 = vpop.f32.mrf.mxu1  ;;  %vm2433_vm13 = vcmp.gt.f32.partialorder %v2432_v13, 1.0  ;;  %v2560_v18 = vmul.f32 0.95, %v2432_v13 }
 0x282   :  { %vm1340_vm14 = vcmp.gt.f32.partialorder %v1339_v15, 1.0  ;;  %v1457_v19 = vmul.f32 0.95, %v1339_v15  ;;  %v1454_v20 = vadd.f32 %v7131_v23, %v1453_v16  ;;  %v5682_v21 = vsel %vm2433_vm13, 1.0, %v6574_v1 }
 0x283   :  { %v5555_v22 = vsel %vm1340_vm14, 1.0, %v6574_v1  ;;  %v6324_v24 = vpop.f32.mrf.mxu1  ;;  %v2443_v25 = vrot.slane %v5682_v21, 2  ;;  %v2561_v27 = vadd.f32 %v2560_v18, %v6668_v9 }
 0x284   :  { %v1343_v28 = vadd.f32 %v5555_v22, %v1333_v2  ;;  %v1458_v29 = vadd.f32 %v1457_v19, %v1454_v20  ;;  %v1467_v38 = vrot.slane %v1454_v20, 2  ;;  %v1477_v3 = vrot.slane %v1454_v20, 4 }
 0x285   :  { %v2447_v31 = vsel %vm162_vm9, %v2446_v30, %v2443_v25  ;;  %v5692_v32 = vadd.f32 -1.0, %v2561_v27  ;;  %v1487_v61 = vrot.slane %v1454_v20, 6 }
 0x286   :  { %v5565_v34 = vadd.f32 -1.0, %v1458_v29  ;;  %6400 = vmatmul.mubr.msk.f32.vlgmr.msra.gmra.mxu0 %vm168_vm10, %v2447_v31 }
 0x287   :  { %v2563_v35 = vsel %vm2433_vm13, %v5692_v32, %v2561_v27  ;;  %6414 = vmatpush3.msra.mxu0 %v6975_v41  ;;  %6421 = vmatprep.mubr.msk.f32.mxu0 %vm6575_vm2, %v6574_v1 }
 0x288   :  { %v1460_v33 = vsel %vm1340_vm14, %v5565_v34, %v1458_v29  ;;  %v2567_v36 = vmul.f32 0.95, %v2563_v35  ;;  %6415 = vmatprep.subr.mxu0 %v6574_v1  ;;  %vm2564_vm0 = vcmp.gt.f32.partialorder %v2563_v35, 1.0 }
 0x289   :  { %vm1461_vm15 = vcmp.gt.f32.partialorder %v1460_v33, 1.0  ;;  %v1465_v37 = vmul.f32 0.95, %v1460_v33  ;;  %6416 = vmatpush3.msra.mxu0 %v6986_v46  ;;  %v5693_v16 = vsel %vm2564_vm0, 1.0, %v6574_v1 }
 0x28a   :  { %v5566_v39 = vsel %vm1461_vm15, 1.0, %v6574_v1  ;;  %v2568_v40 = vadd.f32 %v2567_v36, %v6668_v9  ;;  %6417 = vmatprep.subr.mxu0 %v6574_v1 }
 0x28b   :  { %v1464_v42 = vadd.f32 %v5566_v39, %v1343_v28  ;;  %v1469_v43 = vadd.f32 %v1467_v38, %v1465_v37  ;;  %6418 = vmatpush3.msra.mxu0 %v6996_v51 }
 0x28c   :  { %v5694_v44 = vadd.f32 -1.0, %v2568_v40  ;;  %6419 = vmatprep.subr.mxu0 %v6574_v1 }
 0x28d   :  { %v5567_v45 = vadd.f32 -1.0, %v1469_v43  ;;  %6420 = vmatpush3.msra.mxu0 %v7003_v53 }
 0x28e   :  { %v2570_v47 = vsel %vm2564_vm0, %v5694_v44, %v2568_v40  ;;  %6435 = vmatprep.subr.mxu0 %v6574_v1 }
 0x28f   :  { %v1471_v48 = vsel %vm1461_vm15, %v5567_v45, %v1469_v43  ;;  %v2574_v49 = vmul.f32 0.95, %v2570_v47  ;;  %vm2571_vm3 = vcmp.gt.f32.partialorder %v2570_v47, 1.0 }
 0x290   :  { %vm1472_vm1 = vcmp.gt.f32.partialorder %v1471_v48, 1.0  ;;  %v1476_v50 = vmul.f32 0.95, %v1471_v48  ;;  %v5695_v63 = vsel %vm2571_vm3, 1.0, %v6574_v1 }
 0x291   :  { %v5568_v52 = vsel %vm1472_vm1, 1.0, %v6574_v1  ;;  %v2575_v54 = vadd.f32 %v2574_v49, %v6668_v9  ;;  %v2589_v11 = vrot.slane %v5695_v63, 6 }
 0x292   :  { %v1475_v4 = vadd.f32 %v5568_v52, %v1464_v42  ;;  %v1479_v55 = vadd.f32 %v1477_v3, %v1476_v50 }
 0x293   :  { %v5696_v56 = vadd.f32 -1.0, %v2575_v54  ;;  %v2597_v25 = vsel %vm158_vm6, %v5693_v16, %v2589_v11 }
 0x294   :  { %v5569_v57 = vadd.f32 -1.0, %v1479_v55 }
 0x295   :  { %v2577_v58 = vsel %vm2571_vm3, %v5696_v56, %v2575_v54 }
 0x296   :  { %v1481_v59 = vsel %vm1472_vm1, %v5569_v57, %v1479_v55  ;;  %vm2578_vm4 = vcmp.gt.f32.partialorder %v2577_v58, 1.0  ;;  %v2581_v5 = vmul.f32 0.95, %v2577_v58 }
 0x297   :  { %vm1482_vm5 = vcmp.gt.f32.partialorder %v1481_v59, 1.0  ;;  %v1486_v60 = vmul.f32 0.95, %v1481_v59  ;;  %v5697_v7 = vsel %vm2578_vm4, 1.0, %v6574_v1 }
 0x298   :  { %v5570_v62 = vsel %vm1482_vm5, 1.0, %v6574_v1  ;;  %v2582_v6 = vadd.f32 %v2581_v5, %v6668_v9  ;;  %v2592_v13 = vrot.slane %v5697_v7, 4 }
 0x299   :  { %v1485_v0 = vadd.f32 %v5570_v62, %v1475_v4  ;;  %v1489_v2 = vadd.f32 %v1487_v61, %v1486_v60 }
 0x29a   :  { %v5698_v8 = vadd.f32 -1.0, %v2582_v6  ;;  %v2598_v29 = vsel %vm160_vm8, %v2597_v25, %v2592_v13 }
 0x29b   :  { %v5571_v10 = vadd.f32 -1.0, %v1489_v2 }
 0x29c   :  { %v2584_v12 = vsel %vm2578_vm4, %v5698_v8, %v2582_v6 }
 0x29d   :  { %v1491_v14 = vsel %vm1482_vm5, %v5571_v10, %v1489_v2  ;;  %v1605_v15 = vpop.f32.mrf.mxu0  ;;  %vm2585_vm7 = vcmp.gt.f32.partialorder %v2584_v12, 1.0  ;;  %v2712_v17 = vmul.f32 0.95, %v2584_v12 }
 0x29e   :  { %vm1492_vm11 = vcmp.gt.f32.partialorder %v1491_v14, 1.0  ;;  %v1609_v18 = vmul.f32 0.95, %v1491_v14  ;;  %v1606_v19 = vadd.f32 %v7131_v23, %v1605_v15  ;;  %v5699_v20 = vsel %vm2585_vm7, 1.0, %v6574_v1 }
 0x29f   :  { %v5572_v21 = vsel %vm1492_vm11, 1.0, %v6574_v1  ;;  %v6335_v22 = vpop.f32.mrf.mxu0  ;;  %v2595_v24 = vrot.slane %v5699_v20, 2  ;;  %v2713_v26 = vadd.f32 %v2712_v17, %v6668_v9 }
 0x2a0   :  { %v1495_v27 = vadd.f32 %v5572_v21, %v1485_v0  ;;  %v1610_v28 = vadd.f32 %v1609_v18, %v1606_v19  ;;  %v1619_v37 = vrot.slane %v1606_v19, 2  ;;  %v1629_v48 = vrot.slane %v1606_v19, 4 }
 0x2a1   :  { %v2599_v30 = vsel %vm162_vm9, %v2598_v29, %v2595_v24  ;;  %v5709_v31 = vadd.f32 -1.0, %v2713_v26  ;;  %v1639_v57 = vrot.slane %v1606_v19, 6  ;;  %v7251_v29 = vld [vmem:[%s8610_s4 + $0x18] sm:$0xff] }
 0x2a2   :  { %v5582_v32 = vadd.f32 -1.0, %v1610_v28  ;;  %6411 = vmatmul.mubr.msk.f32.vlgmr.msra.gmra.mxu1 %vm168_vm10, %v2599_v30 }
 0x2a3   :  { %v2715_v34 = vsel %vm2585_vm7, %v5709_v31, %v2713_v26  ;;  %6425 = vmatpush3.msra.mxu1 %v6975_v41  ;;  %6432 = vmatprep.mubr.msk.f32.mxu1 %vm6575_vm2, %v6574_v1 }
 0x2a4   :  { %v1612_v35 = vsel %vm1492_vm11, %v5582_v32, %v1610_v28  ;;  %v2719_v33 = vmul.f32 0.95, %v2715_v34  ;;  %6426 = vmatprep.subr.mxu1 %v6574_v1  ;;  %vm2716_vm13 = vcmp.gt.f32.partialorder %v2715_v34, 1.0 }
 0x2a5   :  { %vm1613_vm12 = vcmp.gt.f32.partialorder %v1612_v35, 1.0  ;;  %v1617_v36 = vmul.f32 0.95, %v1612_v35  ;;  %6427 = vmatpush3.msra.mxu1 %v6986_v46  ;;  %v5710_v11 = vsel %vm2716_vm13, 1.0, %v6574_v1  ;;  %v7262_v35 = vld [vmem:[%s8610_s4 + $0x10] sm:$0xff] }
 0x2a6   :  { %v5583_v38 = vsel %vm1613_vm12, 1.0, %v6574_v1  ;;  %v2720_v39 = vadd.f32 %v2719_v33, %v6668_v9  ;;  %6428 = vmatprep.subr.mxu1 %v6574_v1 }
 0x2a7   :  { %v1616_v41 = vadd.f32 %v5583_v38, %v1495_v27  ;;  %v1621_v40 = vadd.f32 %v1619_v37, %v1617_v36  ;;  %6429 = vmatpush3.msra.mxu1 %v6996_v51 }
 0x2a8   :  { %v5711_v42 = vadd.f32 -1.0, %v2720_v39  ;;  %6430 = vmatprep.subr.mxu1 %v6574_v1 }
 0x2a9   :  { %v5584_v43 = vadd.f32 -1.0, %v1621_v40  ;;  %6431 = vmatpush3.msra.mxu1 %v7003_v53 }
 0x2aa   :  { %v2722_v46 = vsel %vm2716_vm13, %v5711_v42, %v2720_v39  ;;  %6446 = vmatprep.subr.mxu1 %v6574_v1  ;;  %v7272_v39 = vld [vmem:[%s8610_s4 + $0x8] sm:$0xff]  ;;  %v7279_v42 = vld [vmem:[%s8610_s4] sm:$0xff] }
 0x2ab   :  { %v1623_v44 = vsel %vm1613_vm12, %v5584_v43, %v1621_v40  ;;  %v2726_v45 = vmul.f32 0.95, %v2722_v46  ;;  %vm2723_vm15 = vcmp.gt.f32.partialorder %v2722_v46, 1.0 }
 0x2ac   :  { %vm1624_vm14 = vcmp.gt.f32.partialorder %v1623_v44, 1.0  ;;  %v1628_v47 = vmul.f32 0.95, %v1623_v44  ;;  %v5712_v59 = vsel %vm2723_vm15, 1.0, %v6574_v1 }
 0x2ad   :  { %v5585_v49 = vsel %vm1624_vm14, 1.0, %v6574_v1  ;;  %v2727_v51 = vadd.f32 %v2726_v45, %v6668_v9  ;;  %v2741_v0 = vrot.slane %v5712_v59, 6 }
 0x2ae   :  { %v1627_v50 = vadd.f32 %v5585_v49, %v1616_v41  ;;  %v1631_v3 = vadd.f32 %v1629_v48, %v1628_v47 }
 0x2af   :  { %v5713_v52 = vadd.f32 -1.0, %v2727_v51  ;;  %v2749_v19 = vsel %vm158_vm6, %v5710_v11, %v2741_v0 }
 0x2b0   :  { %v5586_v54 = vadd.f32 -1.0, %v1631_v3 }
 0x2b1   :  { %v2729_v53 = vsel %vm2723_vm15, %v5713_v52, %v2727_v51 }
 0x2b2   :  { %v1633_v4 = vsel %vm1624_vm14, %v5586_v54, %v1631_v3  ;;  %vm2730_vm0 = vcmp.gt.f32.partialorder %v2729_v53, 1.0  ;;  %v2733_v55 = vmul.f32 0.95, %v2729_v53 }
 0x2b3   :  { %vm1634_vm1 = vcmp.gt.f32.partialorder %v1633_v4, 1.0  ;;  %v1638_v56 = vmul.f32 0.95, %v1633_v4  ;;  %v5714_v62 = vsel %vm2730_vm0, 1.0, %v6574_v1 }
 0x2b4   :  { %v5587_v58 = vsel %vm1634_vm1, 1.0, %v6574_v1  ;;  %v2734_v5 = vadd.f32 %v2733_v55, %v6668_v9  ;;  %v2744_v7 = vrot.slane %v5714_v62, 4 }
 0x2b5   :  { %v1637_v60 = vadd.f32 %v5587_v58, %v1627_v50  ;;  %v1641_v61 = vadd.f32 %v1639_v57, %v1638_v56 }
 0x2b6   :  { %v5715_v63 = vadd.f32 -1.0, %v2734_v5  ;;  %v2750_v24 = vsel %vm160_vm8, %v2749_v19, %v2744_v7 }
 0x2b7   :  { %v5588_v6 = vadd.f32 -1.0, %v1641_v61 }
 0x2b8   :  { %v2736_v2 = vsel %vm2730_vm0, %v5715_v63, %v2734_v5 }
 0x2b9   :  { %v1643_v8 = vsel %vm1634_vm1, %v5588_v6, %v1641_v61  ;;  %vm2737_vm3 = vcmp.gt.f32.partialorder %v2736_v2, 1.0  ;;  %v2864_v12 = vmul.f32 0.95, %v2736_v2 }
 0x2ba   :  { %v1757_v10 = vpop.f32.mrf.mxu1  ;;  %vm1644_vm4 = vcmp.gt.f32.partialorder %v1643_v8, 1.0  ;;  %v1761_v13 = vmul.f32 0.95, %v1643_v8  ;;  %v5716_v15 = vsel %vm2737_vm3, 1.0, %v6574_v1 }
 0x2bb   :  { %v7235_v14 = vadd.f32 %v7131_v23, %v1757_v10  ;;  %v5589_v16 = vsel %vm1644_vm4, 1.0, %v6574_v1  ;;  %v2747_v18 = vrot.slane %v5716_v15, 2  ;;  %v2865_v20 = vadd.f32 %v2864_v12, %v6668_v9 }
 0x2bc   :  { %v6346_v17 = vpop.f32.mrf.mxu1  ;;  %v1647_v21 = vadd.f32 %v5589_v16, %v1637_v60 }
 0x2bd   :  { %v1762_v22 = vadd.f32 %v1761_v13, %v7235_v14  ;;  %v2751_v25 = vsel %vm162_vm9, %v2750_v24, %v2747_v18  ;;  %v5726_v26 = vadd.f32 -1.0, %v2865_v20  ;;  %v1771_v34 = vrot.slane %v7235_v14, 2 }
 0x2be   :  { %6422 = vmatmul.mubr.msk.f32.vlgmr.msra.gmra.mxu0 %vm168_vm10, %v2751_v25  ;;  %v1781_v47 = vrot.slane %v7235_v14, 4  ;;  %v1791_v56 = vrot.slane %v7235_v14, 6 }
 0x2bf   :  { %v5599_v27 = vadd.f32 -1.0, %v1762_v22  ;;  %v2867_v28 = vsel %vm2737_vm3, %v5726_v26, %v2865_v20  ;;  %6436 = vmatpush3.msra.mxu0 %v7251_v29  ;;  %6443 = vmatprep.mubr.msk.f32.mxu0 %vm6575_vm2, %v6574_v1 }
 0x2c0   :  { %v2871_v31 = vmul.f32 0.95, %v2867_v28  ;;  %6437 = vmatprep.subr.mxu0 %v6574_v1  ;;  %vm2868_vm7 = vcmp.gt.f32.partialorder %v2867_v28, 1.0 }
 0x2c1   :  { %v1764_v30 = vsel %vm1644_vm4, %v5599_v27, %v1762_v22  ;;  %6438 = vmatpush3.msra.mxu0 %v7262_v35  ;;  %v5727_v10 = vsel %vm2868_vm7, 1.0, %v6574_v1 }
 0x2c2   :  { %vm1765_vm5 = vcmp.gt.f32.partialorder %v1764_v30, 1.0  ;;  %v1769_v32 = vmul.f32 0.95, %v1764_v30  ;;  %v2872_v36 = vadd.f32 %v2871_v31, %v6668_v9  ;;  %6439 = vmatprep.subr.mxu0 %v6574_v1 }
 0x2c3   :  { %v5600_v33 = vsel %vm1765_vm5, 1.0, %v6574_v1  ;;  %6440 = vmatpush3.msra.mxu0 %v7272_v39 }
 0x2c4   :  { %v1768_v37 = vadd.f32 %v5600_v33, %v1647_v21  ;;  %v1773_v38 = vadd.f32 %v1771_v34, %v1769_v32  ;;  %v5728_v41 = vadd.f32 -1.0, %v2872_v36  ;;  %6441 = vmatprep.subr.mxu0 %v6574_v1 }
 0x2c5   :  { %6442 = vmatpush3.msra.mxu0 %v7279_v42 }
 0x2c6   :  { %v5601_v40 = vadd.f32 -1.0, %v1773_v38  ;;  %v2874_v43 = vsel %vm2868_vm7, %v5728_v41, %v2872_v36  ;;  %6457 = vmatprep.subr.mxu0 %v6574_v1 }
 0x2c7   :  { %v2878_v44 = vmul.f32 0.95, %v2874_v43  ;;  %vm2875_vm12 = vcmp.gt.f32.partialorder %v2874_v43, 1.0 }
 0x2c8   :  { %v1775_v46 = vsel %vm1765_vm5, %v5601_v40, %v1773_v38  ;;  %v5729_v58 = vsel %vm2875_vm12, 1.0, %v6574_v1 }
 0x2c9   :  { %vm1776_vm11 = vcmp.gt.f32.partialorder %v1775_v46, 1.0  ;;  %v1780_v45 = vmul.f32 0.95, %v1775_v46  ;;  %v2879_v49 = vadd.f32 %v2878_v44, %v6668_v9  ;;  %v2893_v6 = vrot.slane %v5729_v58, 6 }
 0x2ca   :  { %v5602_v48 = vsel %vm1776_vm11, 1.0, %v6574_v1 }
 0x2cb   :  { %v1783_v51 = vadd.f32 %v1781_v47, %v1780_v45  ;;  %v1779_v50 = vadd.f32 %v5602_v48, %v1768_v37  ;;  %v5730_v3 = vadd.f32 -1.0, %v2879_v49  ;;  %v2901_v18 = vsel %vm158_vm6, %v5727_v10, %v2893_v6 }
 0x2cd   :  { %v5603_v52 = vadd.f32 -1.0, %v1783_v51  ;;  %v2881_v54 = vsel %vm2875_vm12, %v5730_v3, %v2879_v49 }
 0x2ce   :  { %vm2882_vm13 = vcmp.gt.f32.partialorder %v2881_v54, 1.0  ;;  %v2885_v4 = vmul.f32 0.95, %v2881_v54 }
 0x2cf   :  { %v1785_v53 = vsel %vm1776_vm11, %v5603_v52, %v1783_v51  ;;  %v5731_v61 = vsel %vm2882_vm13, 1.0, %v6574_v1 }
 0x2d0   :  { %vm1786_vm14 = vcmp.gt.f32.partialorder %v1785_v53, 1.0  ;;  %v1790_v55 = vmul.f32 0.95, %v1785_v53  ;;  %v2886_v59 = vadd.f32 %v2885_v4, %v6668_v9  ;;  %v2896_v2 = vrot.slane %v5731_v61, 4 }
 0x2d1   :  { %v5604_v57 = vsel %vm1786_vm14, 1.0, %v6574_v1 }
 0x2d2   :  { %v1793_v5 = vadd.f32 %v1791_v56, %v1790_v55  ;;  %v1789_v60 = vadd.f32 %v5604_v57, %v1779_v50  ;;  %v5732_v62 = vadd.f32 -1.0, %v2886_v59  ;;  %v2902_v22 = vsel %vm160_vm8, %v2901_v18, %v2896_v2 }
 0x2d4   :  { %v5605_v63 = vadd.f32 -1.0, %v1793_v5  ;;  %v2888_v0 = vsel %vm2882_vm13, %v5732_v62, %v2886_v59 }
 0x2d5   :  { %vm2889_vm15 = vcmp.gt.f32.partialorder %v2888_v0, 1.0  ;;  %v3016_v11 = vmul.f32 0.95, %v2888_v0 }
 0x2d6   :  { %v1795_v7 = vsel %vm1786_vm14, %v5605_v63, %v1793_v5  ;;  %v1909_v8 = vpop.f32.mrf.mxu0  ;;  %v5733_v14 = vsel %vm2889_vm15, 1.0, %v6574_v1 }
 0x2d7   :  { %vm1796_vm0 = vcmp.gt.f32.partialorder %v1795_v7, 1.0  ;;  %v1910_v12 = vadd.f32 %v7131_v23, %v1909_v8  ;;  %v1913_v13 = vmul.f32 0.95, %v1795_v7  ;;  %v2899_v17 = vrot.slane %v5733_v14, 2 }
 0x2d8   :  { %v5606_v15 = vsel %vm1796_vm0, 1.0, %v6574_v1  ;;  %v6357_v16 = vpop.f32.mrf.mxu0  ;;  %v3017_v19 = vadd.f32 %v3016_v11, %v6668_v9 }
 0x2d9   :  { %v1799_v20 = vadd.f32 %v5606_v15, %v1789_v60  ;;  %v1914_v21 = vadd.f32 %v1913_v13, %v1910_v12  ;;  %v2903_v24 = vsel %vm162_vm9, %v2902_v22, %v2899_v17  ;;  %v1923_v32 = vrot.slane %v1910_v12, 2 }
 0x2da   :  { %v5743_v25 = vadd.f32 -1.0, %v3017_v19  ;;  %6433 = vmatmul.mubr.msk.f32.vlgmr.msra.gmra.mxu1 %vm168_vm10, %v2903_v24  ;;  %v1933_v45 = vrot.slane %v1910_v12, 4  ;;  %v1943_v55 = vrot.slane %v1910_v12, 6 }
 0x2db   :  { %v5616_v26 = vadd.f32 -1.0, %v1914_v21  ;;  %6447 = vmatpush3.msra.mxu1 %v7251_v29  ;;  %6454 = vmatprep.mubr.msk.f32.mxu1 %vm6575_vm2, %v6574_v1 }
 0x2dc   :  { %v3019_v27 = vsel %vm2889_vm15, %v5743_v25, %v3017_v19  ;;  %6448 = vmatprep.subr.mxu1 %v6574_v1 }
 0x2dd   :  { %v1916_v28 = vsel %vm1796_vm0, %v5616_v26, %v1914_v21  ;;  %v3023_v30 = vmul.f32 0.95, %v3019_v27  ;;  %6449 = vmatpush3.msra.mxu1 %v7262_v35  ;;  %vm3020_vm3 = vcmp.gt.f32.partialorder %v3019_v27, 1.0 }
 0x2de   :  { %vm1917_vm1 = vcmp.gt.f32.partialorder %v1916_v28, 1.0  ;;  %v1921_v31 = vmul.f32 0.95, %v1916_v28  ;;  %6450 = vmatprep.subr.mxu1 %v6574_v1  ;;  %v5744_v8 = vsel %vm3020_vm3, 1.0, %v6574_v1 }
 0x2df   :  { %v5617_v34 = vsel %vm1917_vm1, 1.0, %v6574_v1  ;;  %v3024_v33 = vadd.f32 %v3023_v30, %v6668_v9  ;;  %6451 = vmatpush3.msra.mxu1 %v7272_v39 }
 0x2e0   :  { %v1920_v36 = vadd.f32 %v5617_v34, %v1799_v20  ;;  %v1925_v37 = vadd.f32 %v1923_v32, %v1921_v31  ;;  %6452 = vmatprep.subr.mxu1 %v6574_v1 }
 0x2e1   :  { %v5745_v38 = vadd.f32 -1.0, %v3024_v33  ;;  %6453 = vmatpush3.msra.mxu1 %v7279_v42 }
 0x2e2   :  { %v5618_v41 = vadd.f32 -1.0, %v1925_v37  ;;  %6468 = vmatprep.subr.mxu1 %v6574_v1 }
 0x2e3   :  { %v3026_v40 = vsel %vm3020_vm3, %v5745_v38, %v3024_v33 }
 0x2e4   :  { %v1927_v43 = vsel %vm1917_vm1, %v5618_v41, %v1925_v37  ;;  %v3030_v46 = vmul.f32 0.95, %v3026_v40  ;;  %vm3027_vm5 = vcmp.gt.f32.partialorder %v3026_v40, 1.0 }
 0x2e5   :  { %vm1928_vm4 = vcmp.gt.f32.partialorder %v1927_v43, 1.0  ;;  %v1932_v44 = vmul.f32 0.95, %v1927_v43  ;;  %v5746_v57 = vsel %vm3027_vm5, 1.0, %v6574_v1 }
 0x2e6   :  { %v5619_v47 = vsel %vm1928_vm4, 1.0, %v6574_v1  ;;  %v3031_v48 = vadd.f32 %v3030_v46, %v6668_v9  ;;  %v3045_v63 = vrot.slane %v5746_v57, 6 }
 0x2e7   :  { %v1935_v49 = vadd.f32 %v1933_v45, %v1932_v44  ;;  %v1931_v51 = vadd.f32 %v5619_v47, %v1920_v36 }
 0x2e8   :  { %v5747_v50 = vadd.f32 -1.0, %v3031_v48  ;;  %v3053_v17 = vsel %vm158_vm6, %v5744_v8, %v3045_v63 }
 0x2e9   :  { %v5620_v3 = vadd.f32 -1.0, %v1935_v49 }
 0x2ea   :  { %v3033_v52 = vsel %vm3027_vm5, %v5747_v50, %v3031_v48 }
 0x2eb   :  { %v1937_v54 = vsel %vm1928_vm4, %v5620_v3, %v1935_v49  ;;  %vm3034_vm7 = vcmp.gt.f32.partialorder %v3033_v52, 1.0  ;;  %v3037_v53 = vmul.f32 0.95, %v3033_v52 }
 0x2ec   :  { %vm1938_vm11 = vcmp.gt.f32.partialorder %v1937_v54, 1.0  ;;  %v1942_v4 = vmul.f32 0.95, %v1937_v54  ;;  %v5748_v60 = vsel %vm3034_vm7, 1.0, %v6574_v1 }
 0x2ed   :  { %v5621_v56 = vsel %vm1938_vm11, 1.0, %v6574_v1  ;;  %v3038_v58 = vadd.f32 %v3037_v53, %v6668_v9  ;;  %v3048_v0 = vrot.slane %v5748_v60, 4 }
 0x2ee   :  { %v1945_v59 = vadd.f32 %v1943_v55, %v1942_v4  ;;  %v1941_v5 = vadd.f32 %v5621_v56, %v1931_v51 }
 0x2ef   :  { %v5749_v61 = vadd.f32 -1.0, %v3038_v58  ;;  %v3054_v21 = vsel %vm160_vm8, %v3053_v17, %v3048_v0 }
 0x2f0   :  { %v5622_v62 = vadd.f32 -1.0, %v1945_v59 }
 0x2f1   :  { %v3040_v6 = vsel %vm3034_vm7, %v5749_v61, %v3038_v58 }
 0x2f2   :  { %v1947_v2 = vsel %vm1938_vm11, %v5622_v62, %v1945_v59  ;;  %v2061_v7 = vpop.f32.mrf.mxu1  ;;  %vm3041_vm12 = vcmp.gt.f32.partialorder %v3040_v6, 1.0  ;;  %v3168_v10 = vmul.f32 0.95, %v3040_v6 }
 0x2f3   :  { %vm1948_vm13 = vcmp.gt.f32.partialorder %v1947_v2, 1.0  ;;  %v2062_v11 = vadd.f32 %v7131_v23, %v2061_v7  ;;  %v2065_v12 = vmul.f32 0.95, %v1947_v2  ;;  %v5750_v13 = vsel %vm3041_vm12, 1.0, %v6574_v1 }
 0x2f4   :  { %v5623_v14 = vsel %vm1948_vm13, 1.0, %v6574_v1  ;;  %v6368_v15 = vpop.f32.mrf.mxu1  ;;  %v3051_v16 = vrot.slane %v5750_v13, 2  ;;  %v3169_v18 = vadd.f32 %v3168_v10, %v6668_v9 }
 0x2f5   :  { %v1951_v19 = vadd.f32 %v5623_v14, %v1941_v5  ;;  %v2066_v20 = vadd.f32 %v2065_v12, %v2062_v11  ;;  %v2075_v31 = vrot.slane %v2062_v11, 2  ;;  %v2085_v44 = vrot.slane %v2062_v11, 4 }
 0x2f6   :  { %v3055_v22 = vsel %vm162_vm9, %v3054_v21, %v3051_v16  ;;  %v5760_v24 = vadd.f32 -1.0, %v3169_v18  ;;  %v2095_v4 = vrot.slane %v2062_v11, 6 }
 0x2f7   :  { %v5633_v25 = vadd.f32 -1.0, %v2066_v20  ;;  %6444 = vmatmul.mubr.msk.f32.vlgmr.msra.gmra.mxu0 %vm168_vm10, %v3055_v22 }
 0x2f8   :  { %v3171_v26 = vsel %vm3041_vm12, %v5760_v24, %v3169_v18  ;;  %6458 = vmatpush3.msra.mxu0 %v7251_v29  ;;  %6465 = vmatprep.mubr.msk.f32.mxu0 %vm6575_vm2, %v6574_v1 }
 0x2f9   :  { %v2068_v27 = vsel %vm1948_vm13, %v5633_v25, %v2066_v20  ;;  %v3175_v28 = vmul.f32 0.95, %v3171_v26  ;;  %6459 = vmatprep.subr.mxu0 %v6574_v1  ;;  %vm3172_vm15 = vcmp.gt.f32.partialorder %v3171_v26, 1.0 }
 0x2fa   :  { %vm2069_vm14 = vcmp.gt.f32.partialorder %v2068_v27, 1.0  ;;  %v2073_v30 = vmul.f32 0.95, %v2068_v27  ;;  %6460 = vmatpush3.msra.mxu0 %v7262_v35  ;;  %v5761_v7 = vsel %vm3172_vm15, 1.0, %v6574_v1 }
 0x2fb   :  { %v5634_v32 = vsel %vm2069_vm14, 1.0, %v6574_v1  ;;  %v3176_v34 = vadd.f32 %v3175_v28, %v6668_v9  ;;  %6461 = vmatprep.subr.mxu0 %v6574_v1 }
 0x2fc   :  { %v2072_v33 = vadd.f32 %v5634_v32, %v1951_v19  ;;  %v2077_v36 = vadd.f32 %v2075_v31, %v2073_v30  ;;  %6462 = vmatpush3.msra.mxu0 %v7272_v39 }
 0x2fd   :  { %v5762_v37 = vadd.f32 -1.0, %v3176_v34  ;;  %6463 = vmatprep.subr.mxu0 %v6574_v1 }
 0x2fe   :  { %v5635_v38 = vadd.f32 -1.0, %v2077_v36  ;;  %6464 = vmatpush3.msra.mxu0 %v7279_v42 }
 0x2ff   :  { %v3178_v41 = vsel %vm3172_vm15, %v5762_v37, %v3176_v34  ;;  %6479 = vmatprep.subr.mxu0 %v6574_v1 }
 0x300   :  { %v2079_v40 = vsel %vm2069_vm14, %v5635_v38, %v2077_v36  ;;  %v3182_v43 = vmul.f32 0.95, %v3178_v41  ;;  %vm3179_vm1 = vcmp.gt.f32.partialorder %v3178_v41, 1.0 }
 0x301   :  { %vm2080_vm0 = vcmp.gt.f32.partialorder %v2079_v40, 1.0  ;;  %v2084_v46 = vmul.f32 0.95, %v2079_v40  ;;  %v5763_v56 = vsel %vm3179_vm1, 1.0, %v6574_v1 }
 0x302   :  { %v5636_v45 = vsel %vm2080_vm0, 1.0, %v6574_v1  ;;  %v3183_v47 = vadd.f32 %v3182_v43, %v6668_v9  ;;  %v3197_v62 = vrot.slane %v5763_v56, 6 }
 0x303   :  { %v2087_v48 = vadd.f32 %v2085_v44, %v2084_v46  ;;  %v2083_v49 = vadd.f32 %v5636_v45, %v2072_v33 }
 0x304   :  { %v5764_v51 = vadd.f32 -1.0, %v3183_v47  ;;  %v3205_v16 = vsel %vm158_vm6, %v5761_v7, %v3197_v62 }
 0x305   :  { %v5637_v50 = vadd.f32 -1.0, %v2087_v48 }
 0x306   :  { %v3185_v3 = vsel %vm3179_vm1, %v5764_v51, %v3183_v47 }
 0x307   :  { %v2089_v52 = vsel %vm2080_vm0, %v5637_v50, %v2087_v48  ;;  %vm3186_vm3 = vcmp.gt.f32.partialorder %v3185_v3, 1.0  ;;  %v3189_v54 = vmul.f32 0.95, %v3185_v3 }
 0x308   :  { %v2094_v53 = vmul.f32 0.95, %v2089_v52  ;;  %vm2090_vm4 = vcmp.gt.f32.partialorder %v2089_v52, 1.0  ;;  %v5765_v5 = vsel %vm3186_vm3, 1.0, %v6574_v1 }
 0x309   :  { %v5638_v55 = vsel %vm2090_vm4, 1.0, %v6574_v1  ;;  %v3190_v57 = vadd.f32 %v3189_v54, %v6668_v9  ;;  %v3200_v6 = vrot.slane %v5765_v5, 4 }
 0x30a   :  { %v2097_v58 = vadd.f32 %v2095_v4, %v2094_v53  ;;  %v2093_v59 = vadd.f32 %v5638_v55, %v2083_v49 }
 0x30b   :  { %v5766_v60 = vadd.f32 -1.0, %v3190_v57  ;;  %v3206_v20 = vsel %vm160_vm8, %v3205_v16, %v3200_v6 }
 0x30c   :  { %v5639_v61 = vadd.f32 -1.0, %v2097_v58 }
 0x30d   :  { %v3192_v63 = vsel %vm3186_vm3, %v5766_v60, %v3190_v57 }
 0x30e   :  { %v2099_v0 = vsel %vm2090_vm4, %v5639_v61, %v2097_v58  ;;  %v2213_v2 = vpop.f32.mrf.mxu0  ;;  %vm3193_vm5 = vcmp.gt.f32.partialorder %v3192_v63, 1.0  ;;  %v3320_v8 = vmul.f32 0.95, %v3192_v63 }
 0x30f   :  { %vm2100_vm7 = vcmp.gt.f32.partialorder %v2099_v0, 1.0  ;;  %v2214_v10 = vadd.f32 %v7131_v23, %v2213_v2  ;;  %v2217_v11 = vmul.f32 0.95, %v2099_v0  ;;  %v5767_v12 = vsel %vm3193_vm5, 1.0, %v6574_v1 }
 0x310   :  { %v5640_v13 = vsel %vm2100_vm7, 1.0, %v6574_v1  ;;  %v6379_v14 = vpop.f32.mrf.mxu0  ;;  %v3203_v15 = vrot.slane %v5767_v12, 2  ;;  %v3321_v17 = vadd.f32 %v3320_v8, %v6668_v9 }
 0x311   :  { %v2103_v18 = vadd.f32 %v5640_v13, %v2093_v59  ;;  %v2218_v19 = vadd.f32 %v2217_v11, %v2214_v10  ;;  %v2227_v28 = vrot.slane %v2214_v10, 2  ;;  %v2237_v43 = vrot.slane %v2214_v10, 4  ;;  %v7407_v11 = vld [vmem:[%s8610_s4 + $0x48] ss:$0 sm:$0xff] }
 0x312   :  { %v3207_v21 = vsel %vm162_vm9, %v3206_v20, %v3203_v15  ;;  %v5777_v23 = vadd.f32 -1.0, %v3321_v17  ;;  %v2247_v54 = vrot.slane %v2214_v10, 6 }
 0x313   :  { %v5650_v22 = vadd.f32 -1.0, %v2218_v19  ;;  %6455 = vmatmul.mubr.msk.f32.vlgmr.msra.gmra.mxu1 %vm168_vm10, %v3207_v21 }
 0x314   :  { %v3323_v24 = vsel %vm3193_vm5, %v5777_v23, %v3321_v17  ;;  %6469 = vmatpush3.msra.mxu1 %v7251_v29  ;;  %6476 = vmatprep.mubr.msk.f32.mxu1 %vm6575_vm2, %v6574_v1 }
 0x315   :  { %v2220_v25 = vsel %vm2100_vm7, %v5650_v22, %v2218_v19  ;;  %v3327_v26 = vmul.f32 0.95, %v3323_v24  ;;  %6470 = vmatprep.subr.mxu1 %v6574_v1  ;;  %vm3324_vm12 = vcmp.gt.f32.partialorder %v3323_v24, 1.0 }
 0x316   :  { %vm2221_vm11 = vcmp.gt.f32.partialorder %v2220_v25, 1.0  ;;  %v2225_v27 = vmul.f32 0.95, %v2220_v25  ;;  %6471 = vmatpush3.msra.mxu1 %v7262_v35  ;;  %v5778_v7 = vsel %vm3324_vm12, 1.0, %v6574_v1 }
 0x317   :  { %v5651_v30 = vsel %vm2221_vm11, 1.0, %v6574_v1  ;;  %v3328_v31 = vadd.f32 %v3327_v26, %v6668_v9  ;;  %6472 = vmatprep.subr.mxu1 %v6574_v1 }
 0x318   :  { %v2224_v32 = vadd.f32 %v5651_v30, %v2103_v18  ;;  %v2229_v34 = vadd.f32 %v2227_v28, %v2225_v27  ;;  %6473 = vmatpush3.msra.mxu1 %v7272_v39 }
 0x319   :  { %v5779_v33 = vadd.f32 -1.0, %v3328_v31  ;;  %6474 = vmatprep.subr.mxu1 %v6574_v1 }
 0x31a   :  { %v5652_v36 = vadd.f32 -1.0, %v2229_v34  ;;  %6475 = vmatpush3.msra.mxu1 %v7279_v42 }
 0x31b   :  { %v3330_v37 = vsel %vm3324_vm12, %v5779_v33, %v3328_v31  ;;  %6490 = vmatprep.subr.mxu1 %v6574_v1 }
 0x31c   :  { %v2231_v38 = vsel %vm2221_vm11, %v5652_v36, %v2229_v34  ;;  %v3334_v41 = vmul.f32 0.95, %v3330_v37  ;;  %vm3331_vm14 = vcmp.gt.f32.partialorder %v3330_v37, 1.0 }
 0x31d   :  { %vm2232_vm13 = vcmp.gt.f32.partialorder %v2231_v38, 1.0  ;;  %v2236_v40 = vmul.f32 0.95, %v2231_v38  ;;  %v5780_v57 = vsel %vm3331_vm14, 1.0, %v6574_v1 }
 0x31e   :  { %v5653_v46 = vsel %vm2232_vm13, 1.0, %v6574_v1  ;;  %v3335_v44 = vadd.f32 %v3334_v41, %v6668_v9  ;;  %v3349_v61 = vrot.slane %v5780_v57, 6 }
 0x31f   :  { %v2235_v45 = vadd.f32 %v5653_v46, %v2224_v32  ;;  %v2239_v47 = vadd.f32 %v2237_v43, %v2236_v40 }
 0x320   :  { %v5781_v48 = vadd.f32 -1.0, %v3335_v44  ;;  %v3357_v17 = vsel %vm158_vm6, %v5778_v7, %v3349_v61 }
 0x321   :  { %v5654_v49 = vadd.f32 -1.0, %v2239_v47 }
 0x322   :  { %v3337_v51 = vsel %vm3331_vm14, %v5781_v48, %v3335_v44 }
 0x323   :  { %v2241_v50 = vsel %vm2232_vm13, %v5654_v49, %v2239_v47  ;;  %v3341_v3 = vmul.f32 0.95, %v3337_v51  ;;  %vm3338_vm0 = vcmp.gt.f32.partialorder %v3337_v51, 1.0 }
 0x324   :  { %v2246_v52 = vmul.f32 0.95, %v2241_v50  ;;  %vm2242_vm15 = vcmp.gt.f32.partialorder %v2241_v50, 1.0  ;;  %v5782_v58 = vsel %vm3338_vm0, 1.0, %v6574_v1 }
 0x325   :  { %v5655_v53 = vsel %vm2242_vm15, 1.0, %v6574_v1  ;;  %v3342_v4 = vadd.f32 %v3341_v3, %v6668_v9  ;;  %v3352_v63 = vrot.slane %v5782_v58, 4 }
 0x326   :  { %v2249_v55 = vadd.f32 %v2247_v54, %v2246_v52  ;;  %v2245_v56 = vadd.f32 %v5655_v53, %v2235_v45 }
 0x327   :  { %v5783_v59 = vadd.f32 -1.0, %v3342_v4  ;;  %v3358_v19 = vsel %vm160_vm8, %v3357_v17, %v3352_v63 }
 0x328   :  { %v5656_v5 = vadd.f32 -1.0, %v2249_v55 }
 0x329   :  { %v3344_v60 = vsel %vm3338_vm0, %v5783_v59, %v3342_v4 }
 0x32a   :  { %v2251_v62 = vsel %vm2242_vm15, %v5656_v5, %v2249_v55  ;;  %vm3345_vm1 = vcmp.gt.f32.partialorder %v3344_v60, 1.0  ;;  %v3472_v6 = vmul.f32 0.95, %v3344_v60  ;;  %v2365_v0 = vpop.f32.mrf.mxu1 }
 0x32b   :  { %vm2252_vm3 = vcmp.gt.f32.partialorder %v2251_v62, 1.0  ;;  %v2369_v2 = vmul.f32 0.95, %v2251_v62  ;;  %v5784_v8 = vsel %vm3345_vm1, 1.0, %v6574_v1  ;;  %v2366_v12 = vadd.f32 %v7407_v11, %v2365_v0 }
 0x32c   :  { %v5657_v10 = vsel %vm2252_vm3, 1.0, %v6574_v1  ;;  %v3355_v13 = vrot.slane %v5784_v8, 2  ;;  %v3473_v14 = vadd.f32 %v3472_v6, %v6668_v9  ;;  %v6390_v16 = vpop.f32.mrf.mxu1 }
 0x32d   :  { %v2255_v15 = vadd.f32 %v5657_v10, %v2245_v56  ;;  %v2370_v18 = vadd.f32 %v2369_v2, %v2366_v12  ;;  %v2379_v27 = vrot.slane %v2366_v12, 2  ;;  %v2389_v40 = vrot.slane %v2366_v12, 4 }
 0x32e   :  { %v3359_v20 = vsel %vm162_vm9, %v3358_v19, %v3355_v13  ;;  %v5794_v21 = vadd.f32 -1.0, %v3473_v14  ;;  %v2399_v52 = vrot.slane %v2366_v12, 6 }
 0x32f   :  { %v5667_v23 = vadd.f32 -1.0, %v2370_v18  ;;  %6466 = vmatmul.mubr.msk.f32.vlgmr.msra.gmra.mxu0 %vm168_vm10, %v3359_v20 }
 0x330   :  { %v3475_v22 = vsel %vm3345_vm1, %v5794_v21, %v3473_v14  ;;  %6480 = vmatpush3.msra.mxu0 %v7251_v29  ;;  %6487 = vmatprep.mubr.msk.f32.mxu0 %vm6575_vm2, %v6574_v1 }
 0x331   :  { %v2372_v24 = vsel %vm2252_vm3, %v5667_v23, %v2370_v18  ;;  %v3479_v25 = vmul.f32 0.95, %v3475_v22  ;;  %6481 = vmatprep.subr.mxu0 %v6574_v1  ;;  %vm3476_vm5 = vcmp.gt.f32.partialorder %v3475_v22, 1.0 }
 0x332   :  { %vm2373_vm4 = vcmp.gt.f32.partialorder %v2372_v24, 1.0  ;;  %v2377_v26 = vmul.f32 0.95, %v2372_v24  ;;  %6482 = vmatpush3.msra.mxu0 %v7262_v35  ;;  %v5795_v6 = vsel %vm3476_vm5, 1.0, %v6574_v1 }
 0x333   :  { %v5668_v28 = vsel %vm2373_vm4, 1.0, %v6574_v1  ;;  %v3480_v30 = vadd.f32 %v3479_v25, %v6668_v9  ;;  %6483 = vmatprep.subr.mxu0 %v6574_v1 }
 0x334   :  { %v2376_v31 = vadd.f32 %v5668_v28, %v2255_v15  ;;  %v2381_v32 = vadd.f32 %v2379_v27, %v2377_v26  ;;  %6484 = vmatpush3.msra.mxu0 %v7272_v39 }
 0x335   :  { %v5796_v34 = vadd.f32 -1.0, %v3480_v30  ;;  %6485 = vmatprep.subr.mxu0 %v6574_v1 }
 0x336   :  { %v5669_v33 = vadd.f32 -1.0, %v2381_v32  ;;  %6486 = vmatpush3.msra.mxu0 %v7279_v42 }
 0x337   :  { %v3482_v36 = vsel %vm3476_vm5, %v5796_v34, %v3480_v30  ;;  %6501 = vmatprep.subr.mxu0 %v6574_v1 }
 0x338   :  { %v2383_v37 = vsel %vm2373_vm4, %v5669_v33, %v2381_v32  ;;  %v3486_v38 = vmul.f32 0.95, %v3482_v36  ;;  %vm3483_vm11 = vcmp.gt.f32.partialorder %v3482_v36, 1.0 }
 0x339   :  { %vm2384_vm7 = vcmp.gt.f32.partialorder %v2383_v37, 1.0  ;;  %v2388_v41 = vmul.f32 0.95, %v2383_v37  ;;  %v5797_v53 = vsel %vm3483_vm11, 1.0, %v6574_v1 }
 0x33a   :  { %v5670_v43 = vsel %vm2384_vm7, 1.0, %v6574_v1  ;;  %v3487_v46 = vadd.f32 %v3486_v38, %v6668_v9  ;;  %v3501_v5 = vrot.slane %v5797_v53, 6 }
 0x33b   :  { %v2387_v44 = vadd.f32 %v5670_v43, %v2376_v31  ;;  %v2391_v45 = vadd.f32 %v2389_v40, %v2388_v41 }
 0x33c   :  { %v5798_v47 = vadd.f32 -1.0, %v3487_v46  ;;  %v3509_v14 = vsel %vm158_vm6, %v5795_v6, %v3501_v5 }
 0x33d   :  { %v5671_v48 = vadd.f32 -1.0, %v2391_v45 }
 0x33e   :  { %v3489_v49 = vsel %vm3483_vm11, %v5798_v47, %v3487_v46 }
 0x33f   :  { %v2393_v51 = vsel %vm2384_vm7, %v5671_v48, %v2391_v45  ;;  %vm3490_vm12 = vcmp.gt.f32.partialorder %v3489_v49, 1.0  ;;  %v3493_v50 = vmul.f32 0.95, %v3489_v49 }
 0x340   :  { %v2398_v3 = vmul.f32 0.95, %v2393_v51  ;;  %vm2394_vm13 = vcmp.gt.f32.partialorder %v2393_v51, 1.0  ;;  %v5799_v57 = vsel %vm3490_vm12, 1.0, %v6574_v1 }
 0x341   :  { %v5672_v54 = vsel %vm2394_vm13, 1.0, %v6574_v1  ;;  %v3494_v4 = vadd.f32 %v3493_v50, %v6668_v9  ;;  %v3504_v61 = vrot.slane %v5799_v57, 4 }
 0x342   :  { %v2401_v55 = vadd.f32 %v2399_v52, %v2398_v3  ;;  %v2397_v56 = vadd.f32 %v5672_v54, %v2387_v44 }
 0x343   :  { %v5800_v58 = vadd.f32 -1.0, %v3494_v4  ;;  %v3510_v18 = vsel %vm160_vm8, %v3509_v14, %v3504_v61  ;;  %v117_v14 = vld [vmem:[%s8610_s4 + $0x38] sm:$0xff] }
 0x344   :  { %v5673_v59 = vadd.f32 -1.0, %v2401_v55 }
 0x345   :  { %v3496_v60 = vsel %vm3490_vm12, %v5800_v58, %v3494_v4 }
 0x346   :  { %v2403_v62 = vsel %vm2394_vm13, %v5673_v59, %v2401_v55  ;;  %v2517_v63 = vpop.f32.mrf.mxu0  ;;  %vm3497_vm14 = vcmp.gt.f32.partialorder %v3496_v60, 1.0  ;;  %v3624_v0 = vmul.f32 0.95, %v3496_v60 }
 0x347   :  { %vm2404_vm15 = vcmp.gt.f32.partialorder %v2403_v62, 1.0  ;;  %v2518_v2 = vadd.f32 %v7407_v11, %v2517_v63  ;;  %v2521_v7 = vmul.f32 0.95, %v2403_v62  ;;  %v5801_v8 = vsel %vm3497_vm14, 1.0, %v6574_v1 }
 0x348   :  { %v5674_v10 = vsel %vm2404_vm15, 1.0, %v6574_v1  ;;  %v6401_v12 = vpop.f32.mrf.mxu0  ;;  %v3507_v13 = vrot.slane %v5801_v8, 2  ;;  %v3625_v15 = vadd.f32 %v3624_v0, %v6668_v9 }
 0x349   :  { %v2407_v16 = vadd.f32 %v5674_v10, %v2397_v56  ;;  %v2522_v17 = vadd.f32 %v2521_v7, %v2518_v2  ;;  %v2531_v26 = vrot.slane %v2518_v2, 2  ;;  %v2541_v37 = vrot.slane %v2518_v2, 4 }
 0x34a   :  { %v3511_v19 = vsel %vm162_vm9, %v3510_v18, %v3507_v13  ;;  %v5811_v20 = vadd.f32 -1.0, %v3625_v15  ;;  %v2551_v48 = vrot.slane %v2518_v2, 6  ;;  %v116_v18 = vld [vmem:[%s8610_s4 + $0x30] sm:$0xff] }
 0x34b   :  { %v5684_v21 = vadd.f32 -1.0, %v2522_v17  ;;  %6477 = vmatmul.mubr.msk.f32.vlgmr.msra.gmra.mxu1 %vm168_vm10, %v3511_v19 }
 0x34c   :  { %v3627_v23 = vsel %vm3497_vm14, %v5811_v20, %v3625_v15  ;;  %6491 = vmatpush3.msra.mxu1 %v7251_v29  ;;  %6498 = vmatprep.mubr.msk.f32.mxu1 %vm6575_vm2, %v6574_v1 }
 0x34d   :  { %v2524_v22 = vsel %vm2404_vm15, %v5684_v21, %v2522_v17  ;;  %v3631_v24 = vmul.f32 0.95, %v3627_v23  ;;  %6492 = vmatprep.subr.mxu1 %v6574_v1  ;;  %vm3628_vm1 = vcmp.gt.f32.partialorder %v3627_v23, 1.0  ;;  %v115_v23 = vld [vmem:[%s8610_s4 + $0x28] sm:$0xff] }
 0x34e   :  { %vm2525_vm0 = vcmp.gt.f32.partialorder %v2524_v22, 1.0  ;;  %v2529_v25 = vmul.f32 0.95, %v2524_v22  ;;  %6493 = vmatpush3.msra.mxu1 %v7262_v35  ;;  %v5812_v5 = vsel %vm3628_vm1, 1.0, %v6574_v1 }
 0x34f   :  { %v5685_v27 = vsel %vm2525_vm0, 1.0, %v6574_v1  ;;  %v3632_v28 = vadd.f32 %v3631_v24, %v6668_v9  ;;  %6494 = vmatprep.subr.mxu1 %v6574_v1 }
 0x350   :  { %v2528_v29 = vadd.f32 %v5685_v27, %v2407_v16  ;;  %v2533_v30 = vadd.f32 %v2531_v26, %v2529_v25  ;;  %6495 = vmatpush3.msra.mxu1 %v7272_v39  ;;  %v114_v27 = vld [vmem:[%s8610_s4 + $0x20] sm:$0xff] }
 0x351   :  { %v5813_v31 = vadd.f32 -1.0, %v3632_v28  ;;  %6496 = vmatprep.subr.mxu1 %v6574_v1 }
 0x352   :  { %v5686_v32 = vadd.f32 -1.0, %v2533_v30  ;;  %6497 = vmatpush3.msra.mxu1 %v7279_v42 }
 0x353   :  { %v3634_v35 = vsel %vm3628_vm1, %v5813_v31, %v3632_v28  ;;  %6512 = vmatprep.subr.mxu1 %v6574_v1  ;;  %v4480_v31 = vpop.permute.xlu0 %4479 }
 0x354   :  { %v2535_v34 = vsel %vm2525_vm0, %v5686_v32, %v2533_v30  ;;  %v3638_v33 = vmul.f32 0.95, %v3634_v35  ;;  %vm3635_vm4 = vcmp.gt.f32.partialorder %v3634_v35, 1.0 }
 0x355   :  { %vm2536_vm3 = vcmp.gt.f32.partialorder %v2535_v34, 1.0  ;;  %v2540_v36 = vmul.f32 0.95, %v2535_v34  ;;  %v5814_v51 = vsel %vm3635_vm4, 1.0, %v6574_v1 }
 0x356   :  { %v5687_v38 = vsel %vm2536_vm3, 1.0, %v6574_v1  ;;  %v3639_v39 = vadd.f32 %v3638_v33, %v6668_v9  ;;  %v3653_v55 = vrot.slane %v5814_v51, 6 }
 0x357   :  { %v2539_v41 = vadd.f32 %v5687_v38, %v2528_v29  ;;  %v2543_v40 = vadd.f32 %v2541_v37, %v2540_v36 }
 0x358   :  { %v5815_v43 = vadd.f32 -1.0, %v3639_v39  ;;  %v3661_v7 = vsel %vm158_vm6, %v5812_v5, %v3653_v55 }
 0x359   :  { %v5688_v46 = vadd.f32 -1.0, %v2543_v40 }
 0x35a   :  { %v3641_v42 = vsel %vm3635_vm4, %v5815_v43, %v3639_v39 }
 0x35b   :  { %v2545_v44 = vsel %vm2536_vm3, %v5688_v46, %v2543_v40  ;;  %vm3642_vm5 = vcmp.gt.f32.partialorder %v3641_v42, 1.0  ;;  %v3645_v45 = vmul.f32 0.95, %v3641_v42 }
 0x35c   :  { %v2550_v47 = vmul.f32 0.95, %v2545_v44  ;;  %vm2546_vm7 = vcmp.gt.f32.partialorder %v2545_v44, 1.0  ;;  %v5816_v54 = vsel %vm3642_vm5, 1.0, %v6574_v1 }
 0x35d   :  { %v5689_v49 = vsel %vm2546_vm7, 1.0, %v6574_v1  ;;  %v3646_v50 = vadd.f32 %v3645_v45, %v6668_v9  ;;  %v3656_v57 = vrot.slane %v5816_v54, 4 }
 0x35e   :  { %v2553_v3 = vadd.f32 %v2551_v48, %v2550_v47  ;;  %v2549_v52 = vadd.f32 %v5689_v49, %v2539_v41 }
 0x35f   :  { %v5817_v53 = vadd.f32 -1.0, %v3646_v50  ;;  %v3662_v13 = vsel %vm160_vm8, %v3661_v7, %v3656_v57 }
 0x360   :  { %v5690_v4 = vadd.f32 -1.0, %v2553_v3 }
 0x361   :  { %v3648_v56 = vsel %vm3642_vm5, %v5817_v53, %v3646_v50 }
 0x362   :  { %v2555_v58 = vsel %vm2546_vm7, %v5690_v4, %v2553_v3  ;;  %v2669_v59 = vpop.f32.mrf.mxu1  ;;  %vm3649_vm11 = vcmp.gt.f32.partialorder %v3648_v56, 1.0  ;;  %v3776_v60 = vmul.f32 0.95, %v3648_v56 }
 0x363   :  { %vm2556_vm12 = vcmp.gt.f32.partialorder %v2555_v58, 1.0  ;;  %v7476_v61 = vadd.f32 %v7407_v11, %v2669_v59  ;;  %v2673_v62 = vmul.f32 0.95, %v2555_v58  ;;  %v5818_v63 = vsel %vm3649_vm11, 1.0, %v6574_v1 }
 0x364   :  { %v5691_v6 = vsel %vm2556_vm12, 1.0, %v6574_v1  ;;  %v6412_v0 = vpop.f32.mrf.mxu1  ;;  %v3659_v2 = vrot.slane %v5818_v63, 2  ;;  %v3777_v8 = vadd.f32 %v3776_v60, %v6668_v9 }
 0x365   :  { %v2559_v10 = vadd.f32 %v5691_v6, %v2549_v52  ;;  %v2674_v12 = vadd.f32 %v2673_v62, %v7476_v61  ;;  %v2683_v24 = vrot.slane %v7476_v61, 2  ;;  %v2693_v37 = vrot.slane %v7476_v61, 4 }
 0x366   :  { %v3663_v15 = vsel %vm162_vm9, %v3662_v13, %v3659_v2  ;;  %v5828_v16 = vadd.f32 -1.0, %v3777_v8  ;;  %v2703_v48 = vrot.slane %v7476_v61, 6 }
 0x367   :  { %v5701_v17 = vadd.f32 -1.0, %v2674_v12  ;;  %6488 = vmatmul.mubr.msk.f32.vlgmr.msra.gmra.mxu0 %vm168_vm10, %v3663_v15 }
 0x368   :  { %v3779_v19 = vsel %vm3649_vm11, %v5828_v16, %v3777_v8  ;;  %6502 = vmatpush3.msra.mxu0 %v117_v14  ;;  %6509 = vmatprep.mubr.msk.f32.mxu0 %vm6575_vm2, %v6574_v1 }
 0x369   :  { %v2676_v20 = vsel %vm2556_vm12, %v5701_v17, %v2674_v12  ;;  %v3783_v21 = vmul.f32 0.95, %v3779_v19  ;;  %6503 = vmatprep.subr.mxu0 %v6574_v1  ;;  %vm3780_vm14 = vcmp.gt.f32.partialorder %v3779_v19, 1.0 }
 0x36a   :  { %vm2677_vm13 = vcmp.gt.f32.partialorder %v2676_v20, 1.0  ;;  %v2681_v22 = vmul.f32 0.95, %v2676_v20  ;;  %6504 = vmatpush3.msra.mxu0 %v116_v18  ;;  %v5829_v5 = vsel %vm3780_vm14, 1.0, %v6574_v1 }
 0x36b   :  { %v5702_v25 = vsel %vm2677_vm13, 1.0, %v6574_v1  ;;  %v3784_v26 = vadd.f32 %v3783_v21, %v6668_v9  ;;  %6505 = vmatprep.subr.mxu0 %v6574_v1 }
 0x36c   :  { %v2680_v28 = vadd.f32 %v5702_v25, %v2559_v10  ;;  %v2685_v29 = vadd.f32 %v2683_v24, %v2681_v22  ;;  %6506 = vmatpush3.msra.mxu0 %v115_v23 }
 0x36d   :  { %v5830_v30 = vadd.f32 -1.0, %v3784_v26  ;;  %6507 = vmatprep.subr.mxu0 %v6574_v1 }
 0x36e   :  { %v5703_v32 = vadd.f32 -1.0, %v2685_v29  ;;  %6508 = vmatpush3.msra.mxu0 %v114_v27 }
 0x36f   :  { %6510 = vmatmul.mubr.msk.f32.vlgmr.msra.gmra.mxu0 %vm168_vm10, %v4480_v31  ;;  %v3786_v35 = vsel %vm3780_vm14, %v5830_v30, %v3784_v26 }
 0x370   :  { %v2687_v34 = vsel %vm2677_vm13, %v5703_v32, %v2685_v29  ;;  %v3790_v33 = vmul.f32 0.95, %v3786_v35  ;;  %vm3787_vm0 = vcmp.gt.f32.partialorder %v3786_v35, 1.0 }
 0x371   :  { %vm2688_vm15 = vcmp.gt.f32.partialorder %v2687_v34, 1.0  ;;  %v2692_v36 = vmul.f32 0.95, %v2687_v34  ;;  %v5831_v51 = vsel %vm3787_vm0, 1.0, %v6574_v1 }
 0x372   :  { %v5704_v38 = vsel %vm2688_vm15, 1.0, %v6574_v1  ;;  %v3791_v39 = vadd.f32 %v3790_v33, %v6668_v9  ;;  %v3805_v55 = vrot.slane %v5831_v51, 6 }
 0x373   :  { %v2691_v41 = vadd.f32 %v5704_v38, %v2680_v28  ;;  %v2695_v40 = vadd.f32 %v2693_v37, %v2692_v36 }
 0x374   :  { %v5832_v43 = vadd.f32 -1.0, %v3791_v39  ;;  %v3813_v0 = vsel %vm158_vm6, %v5829_v5, %v3805_v55 }
 0x375   :  { %v5705_v46 = vadd.f32 -1.0, %v2695_v40 }
 0x376   :  { %v3793_v42 = vsel %vm3787_vm0, %v5832_v43, %v3791_v39 }
 0x377   :  { %v2697_v44 = vsel %vm2688_vm15, %v5705_v46, %v2695_v40  ;;  %vm3794_vm1 = vcmp.gt.f32.partialorder %v3793_v42, 1.0  ;;  %v3797_v45 = vmul.f32 0.95, %v3793_v42 }
 0x378   :  { %v2702_v47 = vmul.f32 0.95, %v2697_v44  ;;  %vm2698_vm3 = vcmp.gt.f32.partialorder %v2697_v44, 1.0  ;;  %v5833_v54 = vsel %vm3794_vm1, 1.0, %v6574_v1 }
 0x379   :  { %v5706_v49 = vsel %vm2698_vm3, 1.0, %v6574_v1  ;;  %v3798_v50 = vadd.f32 %v3797_v45, %v6668_v9  ;;  %v3808_v57 = vrot.slane %v5833_v54, 4 }
 0x37a   :  { %v2705_v3 = vadd.f32 %v2703_v48, %v2702_v47  ;;  %v2701_v52 = vadd.f32 %v5706_v49, %v2691_v41 }
 0x37b   :  { %v5834_v53 = vadd.f32 -1.0, %v3798_v50  ;;  %v3814_v8 = vsel %vm160_vm8, %v3813_v0, %v3808_v57 }
 0x37c   :  { %v5707_v4 = vadd.f32 -1.0, %v2705_v3 }
 0x37d   :  { %v3800_v56 = vsel %vm3794_vm1, %v5834_v53, %v3798_v50 }
 0x37e   :  { %v2707_v58 = vsel %vm2698_vm3, %v5707_v4, %v2705_v3  ;;  %v2821_v59 = vpop.f32.mrf.mxu0  ;;  %vm3801_vm4 = vcmp.gt.f32.partialorder %v3800_v56, 1.0 }
 0x37f   :  { %vm2708_vm5 = vcmp.gt.f32.partialorder %v2707_v58, 1.0  ;;  %v2822_v60 = vadd.f32 %v7407_v11, %v2821_v59  ;;  %v2825_v61 = vmul.f32 0.95, %v2707_v58  ;;  %v5835_v9 = vsel %vm3801_vm4, 1.0, %v6574_v1 }
 0x380   :  { %v5708_v62 = vsel %vm2708_vm5, 1.0, %v6574_v1  ;;  %v6423_v63 = vpop.f32.mrf.mxu0  ;;  %v3811_v6 = vrot.slane %v5835_v9, 2 }
 0x381   :  { %v2711_v2 = vadd.f32 %v5708_v62, %v2701_v52  ;;  %v2826_v7 = vadd.f32 %v2825_v61, %v2822_v60  ;;  %v2835_v15 = vrot.slane %v2822_v60, 2  ;;  %v2845_v23 = vrot.slane %v2822_v60, 4 }
 0x382   :  { %v3815_v10 = vsel %vm162_vm9, %v3814_v8, %v3811_v6  ;;  %v2855_v29 = vrot.slane %v2822_v60, 6 }
 0x383   :  { %v5718_v12 = vadd.f32 -1.0, %v2826_v7  ;;  %6499 = vmatmul.mubr.msk.f32.vlgmr.msra.gmra.mxu1 %vm168_vm10, %v3815_v10 }
 0x384   :  { %6514 = vmatprep.mubr.msk.f32.mxu1 %vm6575_vm2, %v6574_v1 }
 0x385   :  { %v2828_v13 = vsel %vm2708_vm5, %v5718_v12, %v2826_v7 }
 0x386   :  { %vm2829_vm7 = vcmp.gt.f32.partialorder %v2828_v13, 1.0  ;;  %v2833_v14 = vmul.f32 0.95, %v2828_v13 }
 0x387   :  { %v5719_v16 = vsel %vm2829_vm7, 1.0, %v6574_v1 }
 0x388   :  { %v2832_v17 = vadd.f32 %v5719_v16, %v2711_v2  ;;  %v2837_v18 = vadd.f32 %v2835_v15, %v2833_v14 }
 0x38a   :  { %v5720_v19 = vadd.f32 -1.0, %v2837_v18 }
 0x38c   :  { %v2839_v20 = vsel %vm2829_vm7, %v5720_v19, %v2837_v18 }
 0x38d   :  { %vm2840_vm6 = vcmp.gt.f32.partialorder %v2839_v20, 1.0  ;;  %v2844_v21 = vmul.f32 0.95, %v2839_v20 }
 0x38e   :  { %v5721_v22 = vsel %vm2840_vm6, 1.0, %v6574_v1 }
 0x38f   :  { %v2843_v24 = vadd.f32 %v5721_v22, %v2832_v17  ;;  %v2847_v25 = vadd.f32 %v2845_v23, %v2844_v21  ;;  %v4658_v21 = vld [vmem:[%s8611_s5 + $0xf8] sm:$0xff] }
 0x390   :  { %6002 = vmatprep.subr.mxu0 %v4658_v21  ;;  %v4642_v22 = vld [vmem:[%s8611_s5 + $0x78] sm:$0xff] }
 0x391   :  { %v5722_v26 = vadd.f32 -1.0, %v2847_v25  ;;  %6003 = vmatpush3.msra.mxu0 %v4642_v22 }
 0x393   :  { %v2849_v27 = vsel %vm2840_vm6, %v5722_v26, %v2847_v25  ;;  %v4657_v26 = vld [vmem:[%s8611_s5 + $0xf0] sm:$0xff] }
 0x394   :  { %v2854_v28 = vmul.f32 0.95, %v2849_v27  ;;  %vm2850_vm8 = vcmp.gt.f32.partialorder %v2849_v27, 1.0  ;;  %6004 = vmatprep.subr.mxu0 %v4657_v26  ;;  %v4641_v27 = vld [vmem:[%s8611_s5 + $0x70] sm:$0xff] }
 0x395   :  { %v5723_v30 = vsel %vm2850_vm8, 1.0, %v6574_v1  ;;  %6005 = vmatpush3.msra.mxu0 %v4641_v27  ;;  %v4634_v27 = vld [vmem:[%s8611_s5 + $0x38] sm:$0xff] }
 0x396   :  { %v2857_v31 = vadd.f32 %v2855_v29, %v2854_v28  ;;  %v2853_v32 = vadd.f32 %v5723_v30, %v2843_v24  ;;  %v3933_v28 = vlaneseq  ;;  %v4656_v30 = vld [vmem:[%s8611_s5 + $0xe8] sm:$0xff] }
 0x397   :  { %6006 = vmatprep.subr.mxu0 %v4656_v30 }
 0x398   :  { %v5724_v35 = vadd.f32 -1.0, %v2857_v31 }
 0x39a   :  { %v2859_v34 = vsel %vm2850_vm8, %v5724_v35, %v2857_v31  ;;  %v2973_v33 = vpop.f32.mrf.mxu1  ;;  %v4640_v31 = vld [vmem:[%s8611_s5 + $0x68] sm:$0xff] }
 0x39b   :  { %vm2860_vm9 = vcmp.gt.f32.partialorder %v2859_v34, 1.0  ;;  %v2974_v36 = vadd.f32 %v7407_v11, %v2973_v33  ;;  %v2977_v37 = vmul.f32 0.95, %v2859_v34  ;;  %6007 = vmatpush3.msra.mxu0 %v4640_v31  ;;  %v4655_v33 = vld [vmem:[%s8611_s5 + $0xe0] sm:$0xff] }
 0x39c   :  { %v5725_v38 = vsel %vm2860_vm9, 1.0, %v6574_v1  ;;  %v6434_v39 = vpop.f32.mrf.mxu1  ;;  %6008 = vmatprep.subr.mxu0 %v4655_v33  ;;  %v5852_v33 = vld [vmem:[%s8607_s1 + $0x1a] sm:$0xff] }
 0x39d   :  { %v2863_v41 = vadd.f32 %v5725_v38, %v2853_v32  ;;  %v2978_v40 = vadd.f32 %v2977_v37, %v2974_v36  ;;  %v2987_v44 = vrot.slane %v2974_v36, 2  ;;  %v2997_v3 = vrot.slane %v2974_v36, 4  ;;  %v4639_v37 = vld [vmem:[%s8611_s5 + $0x60] sm:$0xff] }
 0x39e   :  { %v3007_v57 = vrot.slane %v2974_v36, 6  ;;  %v7564_v32 = vshrl.u32 %v3933_v28, 7  ;;  %6009 = vmatpush3.msra.mxu0 %v4639_v37 }
 0x39f   :  { %v5735_v43 = vadd.f32 -1.0, %v2978_v40 }
 0x3a0   :  { %v7574_v38 = vsub.s32 0, %v7564_v32  ;;  %v7577_v39 = vsub.s32 1, %v7564_v32 }
 0x3a1   :  { %v2980_v46 = vsel %vm2860_vm9, %v5735_v43, %v2978_v40  ;;  %v4654_v40 = vld [vmem:[%s8611_s5 + $0xd8] sm:$0xff] }
 0x3a2   :  { %vm2981_vm10 = vcmp.gt.f32.partialorder %v2980_v46, 1.0  ;;  %v2985_v42 = vmul.f32 0.95, %v2980_v46  ;;  %v7587_v43 = vld [vmem:[%s8608_s2] ss:$4 sm:$0xff]  ;;  %v7590_v46 = vsub.s32 2, %v7564_v32  ;;  %6010 = vmatprep.subr.mxu0 %v4654_v40 }
 0x3a3   :  { %v5736_v45 = vsel %vm2981_vm10, 1.0, %v6574_v1  ;;  %v4633_v40 = vld [vmem:[%s8611_s5 + $0x30] sm:$0xff] }
 0x3a4   :  { %v2984_v47 = vadd.f32 %v5736_v45, %v2863_v41  ;;  %v2989_v48 = vadd.f32 %v2987_v44, %v2985_v42  ;;  %v7593_v42 = vsub.s32 3, %v7564_v32  ;;  %v6577_v44 = vmov 1983009808  }
 0x3a5   :  { %v4127_v45 = vunpack.c.l.s4 %v6577_v44  ;;  %v5856_v44 = vld [vmem:[%s8607_s1 + $0x34] sm:$0xff] }
 0x3a6   :  { %v5737_v49 = vadd.f32 -1.0, %v2989_v48 }
 0x3a8   :  { %v2991_v51 = vsel %vm2981_vm10, %v5737_v49, %v2989_v48  ;;  %v4638_v49 = vld [vmem:[%s8611_s5 + $0x58] sm:$0xff] }
 0x3a9   :  { %vm2992_vm11 = vcmp.gt.f32.partialorder %v2991_v51, 1.0  ;;  %v2996_v50 = vmul.f32 0.95, %v2991_v51  ;;  %v3936_v51 = vrot.slane %v7587_v43, %v7574_v38  ;;  %6011 = vmatpush3.msra.mxu0 %v4638_v49 }
 0x3aa   :  { %v5738_v52 = vsel %vm2992_vm11, 1.0, %v6574_v1 }
 0x3ab   :  { %v2995_v54 = vadd.f32 %v5738_v52, %v2984_v47  ;;  %v2999_v53 = vadd.f32 %v2997_v3, %v2996_v50  ;;  %v3940_v50 = vrot.slane %v7587_v43, %v7577_v39  ;;  %v7605_v3 = vld [vmem:[%s8608_s2 + $0x1] ss:$4 sm:$0xff] }
 0x3ac   :  { %v4653_v52 = vld [vmem:[%s8611_s5 + $0xd0] sm:$0xff] }
 0x3ad   :  { %v5739_v4 = vadd.f32 -1.0, %v2999_v53  ;;  %6012 = vmatprep.subr.mxu0 %v4653_v52  ;;  %v5860_v52 = vld [vmem:[%s8607_s1 + $0x4e] sm:$0xff] }
 0x3af   :  { %v3001_v55 = vsel %vm2992_vm11, %v5739_v4, %v2999_v53  ;;  %v3948_v53 = vrot.slane %v7587_v43, %v7593_v42  ;;  %v3994_v4 = vrot.slane %v7605_v3, %v7574_v38 }
 0x3b0   :  { %v3006_v56 = vmul.f32 0.95, %v3001_v55  ;;  %vm3002_vm12 = vcmp.gt.f32.partialorder %v3001_v55, 1.0  ;;  %v3998_v55 = vrot.slane %v7605_v3, %v7577_v39 }
 0x3b1   :  { %v5740_v58 = vsel %vm3002_vm12, 1.0, %v6574_v1 }
 0x3b2   :  { %v3009_v59 = vadd.f32 %v3007_v57, %v3006_v56  ;;  %v3005_v5 = vadd.f32 %v5740_v58, %v2995_v54  ;;  %v3944_v54 = vrot.slane %v7587_v43, %v7590_v46  ;;  %v7621_v56 = vld [vmem:[%s8608_s2 + $0x2] ss:$4 sm:$0xff] }
 0x3b3   :  { %v4637_v58 = vld [vmem:[%s8611_s5 + $0x50] sm:$0xff] }
 0x3b4   :  { %v5741_v60 = vadd.f32 -1.0, %v3009_v59  ;;  %6013 = vmatpush3.msra.mxu0 %v4637_v58 }
 0x3b6   :  { %v3011_v61 = vsel %vm3002_vm12, %v5741_v60, %v3009_v59  ;;  %v4002_v59 = vrot.slane %v7605_v3, %v7590_v46  ;;  %v4052_v60 = vrot.slane %v7621_v56, %v7574_v38 }
 0x3b7   :  { %v3125_v9 = vpop.f32.mrf.mxu0  ;;  %vm3012_vm13 = vcmp.gt.f32.partialorder %v3011_v61, 1.0  ;;  %v3129_v63 = vmul.f32 0.95, %v3011_v61  ;;  %v4652_v61 = vld [vmem:[%s8611_s5 + $0xc8] sm:$0xff] }
 0x3b8   :  { %v3126_v62 = vadd.f32 %v7407_v11, %v3125_v9  ;;  %v5742_v6 = vsel %vm3012_vm13, 1.0, %v6574_v1  ;;  %v4056_v9 = vrot.slane %v7621_v56, %v7577_v39  ;;  %6014 = vmatprep.subr.mxu0 %v4652_v61 }
 0x3b9   :  { %v6445_v0 = vpop.f32.mrf.mxu0  ;;  %v3015_v2 = vadd.f32 %v5742_v6, %v3005_v5  ;;  %v4006_v5 = vrot.slane %v7605_v3, %v7593_v42  ;;  %v4124_v6 = vcombine.low %v3936_v51, %v3940_v50  ;;  %v4648_v50 = vld [vmem:[%s8611_s5 + $0xa8] sm:$0xff] }
 0x3ba   :  { %v3130_v7 = vadd.f32 %v3129_v63, %v3126_v62  ;;  %v3139_v13 = vrot.slane %v3126_v62, 2  ;;  %v3149_v20 = vrot.slane %v3126_v62, 4  ;;  %v3159_v34 = vrot.slane %v3126_v62, 6 }
 0x3bb   :  { %v4060_v62 = vrot.slane %v7621_v56, %v7590_v46  ;;  %v4064_v63 = vrot.slane %v7621_v56, %v7593_v42 }
 0x3bc   :  { %v5752_v8 = vadd.f32 -1.0, %v3130_v7 }
 0x3bd   :  { %v4261_v21 = vcombine.low %v4060_v62, %v4064_v63 }
 0x3be   :  { %v3132_v10 = vsel %vm3012_vm13, %v5752_v8, %v3130_v7  ;;  %v4636_v7 = vld [vmem:[%s8611_s5 + $0x48] sm:$0xff]  ;;  %v4125_v8 = vcombine.low %v3944_v54, %v3948_v53 }
 0x3bf   :  { %vm3133_vm14 = vcmp.gt.f32.partialorder %v3132_v10, 1.0  ;;  %v3137_v12 = vmul.f32 0.95, %v3132_v10  ;;  %v4128_v10 = vunpack.c.0.s8 %v4127_v45  ;;  %6015 = vmatpush3.msra.mxu0 %v4636_v7 }
 0x3c0   :  { %v5753_v14 = vsel %vm3133_vm14, 1.0, %v6574_v1 }
 0x3c1   :  { %v3136_v15 = vadd.f32 %v5753_v14, %v3015_v2  ;;  %v3141_v16 = vadd.f32 %v3139_v13, %v3137_v12  ;;  %v4190_v12 = vcombine.low %v3994_v4, %v3998_v55 }
 0x3c3   :  { %v5754_v17 = vadd.f32 -1.0, %v3141_v16 }
 0x3c5   :  { %v3143_v18 = vsel %vm3133_vm14, %v5754_v17, %v3141_v16  ;;  %v4191_v16 = vcombine.low %v4002_v59, %v4006_v5 }
 0x3c6   :  { %vm3144_vm15 = vcmp.gt.f32.partialorder %v3143_v18, 1.0  ;;  %v3148_v19 = vmul.f32 0.95, %v3143_v18 }
 0x3c7   :  { %v5755_v23 = vsel %vm3144_vm15, 1.0, %v6574_v1 }
 0x3c8   :  { %v3147_v24 = vadd.f32 %v5755_v23, %v3136_v15  ;;  %v3151_v25 = vadd.f32 %v3149_v20, %v3148_v19  ;;  %v4651_v15 = vld [vmem:[%s8611_s5 + $0xc0] sm:$0xff]  ;;  %v7657_v20 = vsub.s32 %v4128_v10, %v7564_v32  ;;  %v4630_v10 = vld [vmem:[%s8611_s5 + $0x18] sm:$0xff] }
 0x3c9   :  { %6016 = vmatprep.subr.mxu0 %v4651_v15  ;;  %v4635_v19 = vld [vmem:[%s8611_s5 + $0x40] sm:$0xff] }
 0x3ca   :  { %v5756_v29 = vadd.f32 -1.0, %v3151_v25  ;;  %6017 = vmatpush3.msra.mxu0 %v4635_v19  ;;  %v4132_v28 = vrot.slane %v4124_v6, %v7657_v20  ;;  %v4198_v30 = vrot.slane %v4190_v12, %v7657_v20  ;;  %v4645_v12 = vld [vmem:[%s8611_s5 + $0x90] sm:$0xff] }
 0x3cb   :  { %v4629_v19 = vld [vmem:[%s8611_s5 + $0x10] sm:$0xff] }
 0x3cc   :  { %v3153_v35 = vsel %vm3144_vm15, %v5756_v29, %v3151_v25  ;;  %v7666_v25 = vld [vmem:[%s8608_s2 + $0x3] ss:$4 sm:$0xff]  ;;  %v4139_v29 = vrot.slane %v4125_v8, %v7657_v20 }
 0x3cd   :  { %v3158_v36 = vmul.f32 0.95, %v3153_v35  ;;  %vm3154_vm0 = vcmp.gt.f32.partialorder %v3153_v35, 1.0  ;;  %v4649_v35 = vld [vmem:[%s8611_s5 + $0xb0] sm:$0xff]  ;;  %v4367_v49 = vrot.slane %v7666_v25, %v7590_v46  ;;  %v4371_v4 = vrot.slane %v7666_v25, %v7593_v42  ;;  %v4646_v8 = vld [vmem:[%s8611_s5 + $0x98] sm:$0xff] }
 0x3ce   :  { %v5757_v41 = vsel %vm3154_vm0, 1.0, %v6574_v1  ;;  %v4140_v45 = vcombine.low %v4132_v28, %v4139_v29  ;;  %v4628_v29 = vld [vmem:[%s8611_s5 + $0x8] sm:$0xff] }
 0x3cf   :  { %v3161_v47 = vadd.f32 %v3159_v34, %v3158_v36  ;;  %v3157_v48 = vadd.f32 %v5757_v41, %v3147_v24  ;;  %v4650_v24 = vld [vmem:[%s8611_s5 + $0xb8] sm:$0xff]  ;;  %v4105_v34 = vld [vmem:[%s8607_s1] sm:$0xff]  ;;  %v4205_v36 = vrot.slane %v4191_v16, %v7657_v20  ;;  %v4275_v41 = vrot.slane %v4261_v21, %v7657_v20  ;;  %v4644_v21 = vld [vmem:[%s8611_s5 + $0x88] sm:$0xff] }
 0x3d0   :  { %6018 = vmatprep.subr.mxu0 %v4650_v24  ;;  %v4186_v58 = vmul.f32 %v4140_v45, %v4105_v34  ;;  %v4330_v59 = vmul.f32 %v5852_v33, %v4140_v45  ;;  %v4409_v16 = vcombine.low %v4367_v49, %v4371_v4 }
 0x3d1   :  { %v5758_v57 = vadd.f32 -1.0, %v3161_v47  ;;  %6019 = vmatpush3.msra.mxu0 %v4634_v27  ;;  %v4206_v54 = vcombine.low %v4198_v30, %v4205_v36 }
 0x3d2   :  { %6020 = vmatprep.subr.mxu0 %v4649_v35 }
 0x3d3   :  { %v3163_v0 = vsel %vm3154_vm0, %v5758_v57, %v3161_v47  ;;  %v3277_v2 = vpop.f32.mrf.mxu1  ;;  %v4359_v47 = vrot.slane %v7666_v25, %v7574_v38  ;;  %6021 = vmatpush3.msra.mxu0 %v4633_v40  ;;  %v4632_v57 = vld [vmem:[%s8611_s5 + $0x28] sm:$0xff]  ;;  %v4252_v61 = vmul.f32 %v5852_v33, %v4206_v54  ;;  %v4334_v62 = vmul.f32 %v5856_v44, %v4206_v54  ;;  %v4627_v40 = vld [vmem:[%s8611_s5] sm:$0xff] }
 0x3d4   :  { %vm3164_vm1 = vcmp.gt.f32.partialorder %v3163_v0, 1.0  ;;  %v7646_v13 = vadd.f32 %v7407_v11, %v3277_v2  ;;  %v3281_v14 = vmul.f32 0.95, %v3163_v0  ;;  %v4260_v11 = vcombine.low %v4052_v60, %v4056_v9  ;;  %6022 = vmatprep.subr.mxu0 %v4648_v50  ;;  %v4647_v60 = vld [vmem:[%s8611_s5 + $0xa0] sm:$0xff] }
 0x3d5   :  { %v5759_v17 = vsel %vm3164_vm1, 1.0, %v6574_v1  ;;  %v6456_v18 = vpop.f32.mrf.mxu1  ;;  %6023 = vmatpush3.msra.mxu0 %v4632_v57  ;;  %v4631_v0 = vld [vmem:[%s8611_s5 + $0x20] sm:$0xff]  ;;  %v4338_v15 = vadd.f32 %v4334_v62, %v4330_v59  ;;  %v4721_v57 = vld [vmem:[%s8611_s5 + $0x2f0] sm:$0xff]  ;;  %v7779_v59 = vsub.s32 6, %v7564_v32 }
 0x3d6   :  { %v3167_v23 = vadd.f32 %v5759_v17, %v3157_v48  ;;  %v3282_v22 = vadd.f32 %v3281_v14, %v7646_v13  ;;  %v3291_v26 = vrot.slane %v7646_v13, 2  ;;  %v4268_v37 = vrot.slane %v4260_v11, %v7657_v20  ;;  %6024 = vmatprep.subr.mxu0 %v4647_v60  ;;  %v118_v18 = vld [vmem:[%s8610_s4 + $0x40] sm:$0xff] }
 0x3d7   :  { %v4363_v48 = vrot.slane %v7666_v25, %v7577_v39  ;;  %6025 = vmatpush3.msra.mxu0 %v4631_v0  ;;  %v4256_v14 = vadd.f32 %v4252_v61, %v4186_v58  ;;  %6513 = vmatpush3.msra.mxu1 %v118_v18  ;;  %v3301_v28 = vrot.slane %v7646_v13, 4  ;;  %v3311_v50 = vrot.slane %v7646_v13, 6  ;;  %v4705_v61 = vld [vmem:[%s8611_s5 + $0x270] sm:$0xff]  ;;  %v7820_v18 = vld [vmem:[%s8610_s4 + $0x48] ss:$0 sm:$0xff] }
 0x3d8   :  { %v5769_v31 = vadd.f32 -1.0, %v3282_v22  ;;  %v4276_v53 = vcombine.low %v4268_v37, %v4275_v41  ;;  %6026 = vmatprep.subr.mxu0 %v4646_v8  ;;  %v7773_v58 = vsub.s32 4, %v7564_v32  ;;  %v7776_v13 = vsub.s32 5, %v7564_v32 }
 0x3d9   :  { %v4408_v7 = vcombine.low %v4359_v47, %v4363_v48  ;;  %6027 = vmatpush3.msra.mxu0 %v4630_v10  ;;  %v4722_v47 = vld [vmem:[%s8611_s5 + $0x2f8] sm:$0xff]  ;;  %v4018_v10 = vrot.slane %v7605_v3, %v7779_v59 }
 0x3da   :  { %v3284_v51 = vsel %vm3164_vm1, %v5769_v31, %v3282_v22  ;;  %v4322_v9 = vmul.f32 %v5856_v44, %v4276_v53  ;;  %v4342_v2 = vmul.f32 %v5860_v52, %v4276_v53  ;;  %6028 = vmatprep.subr.mxu0 %v4645_v12  ;;  %v4643_v31 = vld [vmem:[%s8611_s5 + $0x80] sm:$0xff]  ;;  %v3952_v62 = vrot.slane %v7587_v43, %v7773_v58 }
 0x3db   :  { %vm3285_vm3 = vcmp.gt.f32.partialorder %v3284_v51, 1.0  ;;  %v3289_v55 = vmul.f32 0.95, %v3284_v51  ;;  %v4416_v11 = vrot.slane %v4408_v7, %v7657_v20  ;;  %6029 = vmatpush3.msra.mxu0 %v4629_v19  ;;  %v4010_v7 = vrot.slane %v7605_v3, %v7773_v58 }
 0x3dc   :  { %v5770_v5 = vsel %vm3285_vm3, 1.0, %v6574_v1  ;;  %v4326_v22 = vadd.f32 %v4322_v9, %v4256_v14  ;;  %v4346_v24 = vadd.f32 %v4342_v2, %v4338_v15  ;;  %6030 = vmatprep.subr.mxu0 %v4644_v21  ;;  %v4720_v9 = vld [vmem:[%s8611_s5 + $0x2e8] sm:$0xff]  ;;  %v4014_v8 = vrot.slane %v7605_v3, %v7776_v13 }
 0x3dd   :  { %v3288_v63 = vadd.f32 %v5770_v5, %v3167_v23  ;;  %v3293_v6 = vadd.f32 %v3291_v26, %v3289_v55  ;;  %v4690_v23 = vld [vmem:[%s8611_s5 + $0x1f8] sm:$0xff]  ;;  %v4423_v26 = vrot.slane %v4409_v16, %v7657_v20  ;;  %6031 = vmatpush3.msra.mxu0 %v4628_v29  ;;  %v7782_v5 = vsub.s32 7, %v7564_v32  ;;  %v4704_v2 = vld [vmem:[%s8611_s5 + $0x268] sm:$0xff] }
 0x3de   :  { %6037 = vmatprep.subr.mxu1 %v4690_v23  ;;  %v4350_v35 = vmax.f32 %v4326_v22, %v4346_v24  ;;  %6032 = vmatprep.subr.mxu0 %v4643_v31  ;;  %v4706_v55 = vld [vmem:[%s8611_s5 + $0x278] sm:$0xff]  ;;  %v3960_v32 = vrot.slane %v7587_v43, %v7779_v59  ;;  %v4068_v16 = vrot.slane %v7621_v56, %v7773_v58  ;;  %v4717_v31 = vld [vmem:[%s8611_s5 + $0x2d0] sm:$0xff]  ;;  %vm4901_vm1 = vcmask 523264  }
 0x3df   :  { %v5771_v17 = vadd.f32 -1.0, %v3293_v6  ;;  %v4424_v34 = vcombine.low %v4416_v11, %v4423_v26  ;;  %6033 = vmatpush3.msra.mxu0 %v4627_v40  ;;  %v4022_v15 = vrot.slane %v7605_v3, %v7782_v5  ;;  %v4703_v11 = vld [vmem:[%s8611_s5 + $0x260] sm:$0xff]  ;;  %v4072_v3 = vrot.slane %v7621_v56, %v7776_v13  ;;  %v4718_v24 = vld [vmem:[%s8611_s5 + $0x2d8] sm:$0xff]  ;;  %v4106_v40 = vld [vmem:[%s8607_s1 + $0x8] sm:$0xff] }
 0x3e0   :  { %6072 = vmatprep.subr.mxu0 %v4722_v47  ;;  %v4076_v21 = vrot.slane %v7621_v56, %v7779_v59  ;;  %v4080_v26 = vrot.slane %v7621_v56, %v7782_v5 }
 0x3e1   :  { %v3295_v27 = vsel %vm3285_vm3, %v5771_v17, %v3293_v6  ;;  %v4470_v41 = vadd.f32 %v4424_v34, %v4350_v35  ;;  %v3964_v6 = vrot.slane %v7587_v43, %v7782_v5  ;;  %v4208_v56 = vcombine.low %v4018_v10, %v4022_v15 }
 0x3e2   :  { %vm3296_vm4 = vcmp.gt.f32.partialorder %v3295_v27, 1.0  ;;  %v3300_v30 = vmul.f32 0.95, %v3295_v27  ;;  %v4278_v47 = vcombine.low %v4076_v21, %v4080_v26  ;;  %v4697_v26 = vld [vmem:[%s8611_s5 + $0x230] sm:$0xff] }
 0x3e3   :  { %v5772_v33 = vsel %vm3296_vm4, 1.0, %v6574_v1  ;;  %v7755_v45 = vmax.f32 %v4470_v41, 0.0  ;;  %v4701_v41 = vld [vmem:[%s8611_s5 + $0x250] sm:$0xff] }
 0x3e4   :  { %v3299_v36 = vadd.f32 %v5772_v33, %v3288_v63  ;;  %v3303_v37 = vadd.f32 %v3301_v28, %v3300_v30  ;;  %v3956_v63 = vrot.slane %v7587_v43, %v7776_v13  ;;  %v4719_v43 = vld [vmem:[%s8611_s5 + $0x2e0] sm:$0xff]  ;;  %v4142_v28 = vcombine.low %v3960_v32, %v3964_v6  ;;  %v4702_v30 = vld [vmem:[%s8611_s5 + $0x258] sm:$0xff] }
 0x3e5   :  { %v4838_v49 = vrot.slane %v7755_v45, %v7657_v20  ;;  %v4207_v33 = vcombine.low %v4010_v7, %v4014_v8  ;;  %v4383_v8 = vrot.slane %v7666_v25, %v7779_v59 }
 0x3e6   :  { %v5773_v44 = vadd.f32 -1.0, %v3303_v37  ;;  %v4141_v27 = vcombine.low %v3952_v62, %v3956_v63  ;;  %v4156_v34 = vrot.slane %v4142_v28, %v7657_v20  ;;  %v4715_v62 = vld [vmem:[%s8611_s5 + $0x2c0] sm:$0xff]  ;;  %v5861_v63 = vld [vmem:[%s8607_s1 + $0x56] sm:$0xff] }
 0x3e7   :  { %v4846_v54 = vcombine.high %v4838_v49, %v4838_v49 }
 0x3e8   :  { %v3305_v48 = vsel %vm3296_vm4, %v5773_v44, %v3303_v37  ;;  %v4149_v35 = vrot.slane %v4141_v27, %v7657_v20  ;;  %v4277_v44 = vcombine.low %v4068_v16, %v4072_v3  ;;  %v4698_v16 = vld [vmem:[%s8611_s5 + $0x238] sm:$0xff]  ;;  %v4387_v3 = vrot.slane %v7666_v25, %v7782_v5 }
 0x3e9   :  { %v3310_v51 = vmul.f32 0.95, %v3305_v48  ;;  %vm3306_vm5 = vcmp.gt.f32.partialorder %v3305_v48, 1.0  ;;  %4968 = vmatprep.mubr.f32.mxu0 %v4846_v54  ;;  %v4716_v48 = vld [vmem:[%s8611_s5 + $0x2c8] sm:$0xff]  ;;  %v4375_v54 = vrot.slane %v7666_v25, %v7773_v58 }
 0x3ea   :  { %v5774_v52 = vsel %vm3306_vm5, 1.0, %v6574_v1  ;;  %4969 = vmatmul.mubr.f32.vlgmr.msra.gmra.mxu0 %v4838_v49  ;;  %v5853_v49 = vld [vmem:[%s8607_s1 + $0x22] sm:$0xff]  ;;  %v4426_v27 = vcombine.low %v4383_v8, %v4387_v3  ;;  %v4785_v8 = vld [vmem:[%s8611_s5 + $0x4f0] sm:$0xff] }
 0x3eb   :  { %v3313_v53 = vadd.f32 %v3311_v50, %v3310_v51  ;;  %v3309_v4 = vadd.f32 %v5774_v52, %v3299_v36  ;;  %6073 = vmatpush3.msra.mxu0 %v4706_v55  ;;  %v4157_v51 = vcombine.low %v4149_v35, %v4156_v34  ;;  %v4215_v50 = vrot.slane %v4207_v33, %v7657_v20  ;;  %v5857_v55 = vld [vmem:[%s8607_s1 + $0x3c] sm:$0xff]  ;;  %v4696_v34 = vld [vmem:[%s8611_s5 + $0x228] sm:$0xff] }
 0x3ec   :  { %6074 = vmatprep.subr.mxu0 %v4721_v57  ;;  %v4222_v52 = vrot.slane %v4208_v56, %v7657_v20  ;;  %v4285_v57 = vrot.slane %v4277_v44, %v7657_v20  ;;  %v4440_v33 = vrot.slane %v4426_v27, %v7657_v20  ;;  %v4695_v44 = vld [vmem:[%s8611_s5 + $0x220] sm:$0xff] }
 0x3ed   :  { %v5775_v60 = vadd.f32 -1.0, %v3313_v53  ;;  %6075 = vmatpush3.msra.mxu0 %v4705_v61  ;;  %v4379_v61 = vrot.slane %v7666_v25, %v7776_v13  ;;  %v4187_v32 = vmul.f32 %v4157_v51, %v4106_v40  ;;  %v4699_v13 = vld [vmem:[%s8611_s5 + $0x240] sm:$0xff]  ;;  %v4331_v7 = vmul.f32 %v5853_v49, %v4157_v51  ;;  %v4712_v25 = vld [vmem:[%s8611_s5 + $0x2a8] sm:$0xff]  ;;  %v4694_v51 = vld [vmem:[%s8611_s5 + $0x218] sm:$0xff] }
 0x3ee   :  { %6076 = vmatprep.subr.mxu0 %v4720_v9  ;;  %v4223_v6 = vcombine.low %v4215_v50, %v4222_v52  ;;  %v4709_v52 = vld [vmem:[%s8611_s5 + $0x290] sm:$0xff]  ;;  %v4783_v3 = vld [vmem:[%s8611_s5 + $0x4e0] sm:$0xff] }
 0x3ef   :  { %v3315_v0 = vsel %vm3306_vm5, %v5775_v60, %v3313_v53  ;;  %v3429_v12 = vpop.f32.mrf.mxu0  ;;  %6077 = vmatpush3.msra.mxu0 %v4704_v2  ;;  %v4292_v60 = vrot.slane %v4278_v47, %v7657_v20  ;;  %v4425_v59 = vcombine.low %v4375_v54, %v4379_v61  ;;  %v4692_v61 = vld [vmem:[%s8611_s5 + $0x208] sm:$0xff] }
 0x3f0   :  { %vm3316_vm7 = vcmp.gt.f32.partialorder %v3315_v0, 1.0  ;;  %v3433_v14 = vmul.f32 0.95, %v3315_v0  ;;  %v7823_v19 = vadd.f32 %v7820_v18, %v3429_v12  ;;  %6078 = vmatprep.subr.mxu0 %v4719_v43  ;;  %v4253_v43 = vmul.f32 %v5853_v49, %v4223_v6 }
 0x3f1   :  { %v5776_v17 = vsel %vm3316_vm7, 1.0, %v6574_v1  ;;  %v6467_v22 = vpop.f32.mrf.mxu0  ;;  %6079 = vmatpush3.msra.mxu0 %v4703_v11  ;;  %v4293_v2 = vcombine.low %v4285_v57, %v4292_v60  ;;  %v4335_v15 = vmul.f32 %v5857_v55, %v4223_v6  ;;  %v4433_v28 = vrot.slane %v4425_v59, %v7657_v20  ;;  %v4708_v60 = vld [vmem:[%s8611_s5 + $0x288] sm:$0xff] }
 0x3f2   :  { %v3319_v23 = vadd.f32 %v5776_v17, %v3309_v4  ;;  %v3434_v29 = vadd.f32 %v3433_v14, %v7823_v19  ;;  %v3443_v37 = vrot.slane %v7823_v19, 2  ;;  %6080 = vmatprep.subr.mxu0 %v4718_v24  ;;  %v4700_v4 = vld [vmem:[%s8611_s5 + $0x248] sm:$0xff]  ;;  %v4714_v14 = vld [vmem:[%s8611_s5 + $0x2b8] sm:$0xff]  ;;  %v4257_v22 = vadd.f32 %v4253_v43, %v4187_v32 }
 0x3f3   :  { %6081 = vmatpush3.msra.mxu0 %v4702_v30  ;;  %v4323_v17 = vmul.f32 %v5857_v55, %v4293_v2  ;;  %v4343_v11 = vmul.f32 %v5861_v63, %v4293_v2  ;;  %v4339_v24 = vadd.f32 %v4335_v15, %v4331_v7  ;;  %v3453_v35 = vrot.slane %v7823_v19, 4  ;;  %v4707_v63 = vld [vmem:[%s8611_s5 + $0x280] sm:$0xff]  ;;  %v4784_v15 = vld [vmem:[%s8611_s5 + $0x4e8] sm:$0xff] }
 0x3f4   :  { %v5786_v36 = vadd.f32 -1.0, %v3434_v29  ;;  %6082 = vmatprep.subr.mxu0 %v4717_v31  ;;  %v4441_v47 = vcombine.low %v4433_v28, %v4440_v33  ;;  %v3463_v57 = vrot.slane %v7823_v19, 6  ;;  %v4691_v19 = vld [vmem:[%s8611_s5 + $0x200] sm:$0xff] }
 0x3f5   :  { %6083 = vmatpush3.msra.mxu0 %v4701_v41  ;;  %v4327_v5 = vadd.f32 %v4323_v17, %v4257_v22  ;;  %v4347_v30 = vadd.f32 %v4343_v11, %v4339_v24  ;;  %v4768_v11 = vld [vmem:[%s8611_s5 + $0x468] sm:$0xff] }
 0x3f6   :  { %v3436_v53 = vsel %vm3316_vm7, %v5786_v36, %v3434_v29  ;;  %6084 = vmatprep.subr.mxu0 %v4716_v48  ;;  %v4711_v36 = vld [vmem:[%s8611_s5 + $0x2a0] sm:$0xff]  ;;  %v4710_v48 = vld [vmem:[%s8611_s5 + $0x298] sm:$0xff] }
 0x3f7   :  { %vm3437_vm6 = vcmp.gt.f32.partialorder %v3436_v53, 1.0  ;;  %v3441_v9 = vmul.f32 0.95, %v3436_v53  ;;  %6085 = vmatpush3.msra.mxu0 %v4700_v4  ;;  %v4693_v53 = vld [vmem:[%s8611_s5 + $0x210] sm:$0xff] }
 0x3f8   :  { %v5787_v0 = vsel %vm3437_vm6, 1.0, %v6574_v1  ;;  %6086 = vmatprep.subr.mxu0 %v4715_v62  ;;  %v8000_v22 = vld [vmem:[%s8608_s2 + $0x21] ss:$4 sm:$0x1f] }
 0x3f9   :  { %v3440_v10 = vadd.f32 %v5787_v0, %v3319_v23  ;;  %v3445_v12 = vadd.f32 %v3443_v37, %v3441_v9  ;;  %6087 = vmatpush3.msra.mxu0 %v4699_v13  ;;  %v4713_v23 = vld [vmem:[%s8611_s5 + $0x2b0] sm:$0xff]  ;;  %v4351_v37 = vmax.f32 %v4327_v5, %v4347_v30  ;;  %v4786_v0 = vld [vmem:[%s8611_s5 + $0x4f8] sm:$0xff]  ;;  %v4026_v28 = vrot.slane %v8000_v22, %v7574_v38 }
 0x3fa   :  { %6088 = vmatprep.subr.mxu0 %v4714_v14  ;;  %v4770_v13 = vld [vmem:[%s8611_s5 + $0x478] sm:$0xff]  ;;  %v4769_v14 = vld [vmem:[%s8611_s5 + $0x470] sm:$0xff]  ;;  %v4034_v30 = vrot.slane %v8000_v22, %v7590_v46 }
 0x3fb   :  { %v5788_v21 = vadd.f32 -1.0, %v3445_v12  ;;  %6089 = vmatpush3.msra.mxu0 %v4698_v16  ;;  %v4471_v50 = vadd.f32 %v4441_v47, %v4351_v37  ;;  %v7981_v16 = vld [vmem:[%s8608_s2 + $0x20] ss:$4 sm:$0x1f]  ;;  %v4782_v5 = vld [vmem:[%s8611_s5 + $0x4d8] sm:$0xff] }
 0x3fc   :  { %6090 = vmatprep.subr.mxu0 %v4713_v23  ;;  %v3968_v59 = vrot.slane %v7981_v16, %v7574_v38  ;;  %v3976_v23 = vrot.slane %v7981_v16, %v7590_v46  ;;  %v3980_v27 = vrot.slane %v7981_v16, %v7593_v42 }
 0x3fd   :  { %v3447_v29 = vsel %vm3437_vm6, %v5788_v21, %v3445_v12  ;;  %6091 = vmatpush3.msra.mxu0 %v4697_v26  ;;  %v7936_v4 = vmax.f32 %v4471_v50, 0.0  ;;  %v3972_v21 = vrot.slane %v7981_v16, %v7577_v39  ;;  %v4767_v26 = vld [vmem:[%s8611_s5 + $0x460] sm:$0xff]  ;;  %v4765_v50 = vld [vmem:[%s8611_s5 + $0x450] sm:$0xff] }
 0x3fe   :  { %vm3448_vm8 = vcmp.gt.f32.partialorder %v3447_v29, 1.0  ;;  %v3452_v31 = vmul.f32 0.95, %v3447_v29  ;;  %6092 = vmatprep.subr.mxu0 %v4712_v25  ;;  %v4030_v29 = vrot.slane %v8000_v22, %v7577_v39  ;;  %v8014_v25 = vld [vmem:[%s8608_s2 + $0x22] ss:$4 sm:$0x1f] }
 0x3ff   :  { %v5789_v56 = vsel %vm3448_vm8, 1.0, %v6574_v1  ;;  %6093 = vmatpush3.msra.mxu0 %v4696_v34  ;;  %v4855_v9 = vrot.slane %v7936_v4, %v7657_v20  ;;  %v4088_v34 = vrot.slane %v8014_v25, %v7577_v39  ;;  %v4096_v37 = vrot.slane %v8014_v25, %v7593_v42 }
 0x400   :  { %v7916_v41 = vadd.f32 %v5789_v56, %v3440_v10  ;;  %v3455_v40 = vadd.f32 %v3453_v35, %v3452_v31  ;;  %6094 = vmatprep.subr.mxu0 %v4711_v36  ;;  %v4038_v31 = vrot.slane %v8000_v22, %v7593_v42  ;;  %v4084_v35 = vrot.slane %v8014_v25, %v7574_v38  ;;  %v4766_v56 = vld [vmem:[%s8611_s5 + $0x458] sm:$0xff] }
 0x401   :  { %6095 = vmatpush3.msra.mxu0 %v4695_v44  ;;  %v4863_v32 = vcombine.high %v4855_v9, %v4855_v9  ;;  %v4092_v36 = vrot.slane %v8014_v25, %v7590_v46 }
 0x402   :  { %v5790_v49 = vadd.f32 -1.0, %v3455_v40  ;;  %6096 = vmatprep.subr.mxu0 %v4710_v48  ;;  %v4781_v48 = vld [vmem:[%s8611_s5 + $0x4d0] sm:$0xff] }
 0x403   :  { %6097 = vmatpush3.msra.mxu0 %v4694_v51  ;;  %5108 = vmatprep.mubr.f32.mxu0 %v4863_v32  ;;  %v4224_v51 = vcombine.low %v4026_v28, %v4030_v29  ;;  %v5854_v32 = vld [vmem:[%s8607_s1 + $0x2a] sm:$0xff]  ;;  %v5862_v28 = vld [vmem:[%s8607_s1 + $0x5e] sm:$0xff] }
 0x404   :  { %v7931_v54 = vsel %vm3448_vm8, %v5790_v49, %v3455_v40  ;;  %6098 = vmatprep.subr.mxu0 %v4709_v52  ;;  %v4158_v40 = vcombine.low %v3968_v59, %v3972_v21  ;;  %v4159_v49 = vcombine.low %v3976_v23, %v3980_v27  ;;  %v8049_v52 = vld [vmem:[%s8608_s2 + $0x23] ss:$4 sm:$0x1f]  ;;  %v4778_v59 = vld [vmem:[%s8611_s5 + $0x4b8] sm:$0xff]  ;;  %vm4553_vm8 = vcmask 64512  }
 0x405   :  { %v3462_v55 = vmul.f32 0.95, %v7931_v54  ;;  %6099 = vmatpush3.msra.mxu0 %v4693_v53  ;;  %vm3458_vm9 = vcmp.gt.f32.partialorder %v7931_v54, 1.0 }
 0x406   :  { %6100 = vmatprep.subr.mxu0 %v4708_v60  ;;  %v4166_v53 = vrot.slane %v4158_v40, %v7657_v20 }
 0x407   :  { %v3465_v62 = vadd.f32 %v3463_v57, %v3462_v55  ;;  %6101 = vmatpush3.msra.mxu0 %v4692_v61  ;;  %v4225_v55 = vcombine.low %v4034_v30, %v4038_v31  ;;  %v4294_v57 = vcombine.low %v4084_v35, %v4088_v34  ;;  %v4780_v61 = vld [vmem:[%s8611_s5 + $0x4c8] sm:$0xff]  ;;  %v4777_v30 = vld [vmem:[%s8611_s5 + $0x4b0] sm:$0xff] }
 0x408   :  { %6102 = vmatprep.subr.mxu0 %v4707_v63  ;;  %v4764_v63 = vld [vmem:[%s8611_s5 + $0x448] sm:$0xff] }
 0x409   :  { %v5792_v6 = vadd.f32 -1.0, %v3465_v62  ;;  %6103 = vmatpush3.msra.mxu0 %v4691_v19  ;;  %v4107_v19 = vld [vmem:[%s8607_s1 + $0x10] sm:$0xff] }
 0x40a   :  { %5109 = vmatmul.mubr.f32.vlgmr.msra.gmra.mxu0 %v4855_v9  ;;  %6142 = vmatprep.subr.mxu0 %v4786_v0  ;;  %v4173_v9 = vrot.slane %v4159_v49, %v7657_v20  ;;  %v4295_v0 = vcombine.low %v4092_v36, %v4096_v37  ;;  %v4761_v36 = vld [vmem:[%s8611_s5 + $0x430] sm:$0xff] }
 0x40b   :  { %v7963_v2 = vsel %vm3458_vm9, %v5792_v6, %v3465_v62  ;;  %v3581_v7 = vpop.f32.mrf.mxu1  ;;  %6143 = vmatpush3.msra.mxu0 %v4770_v13  ;;  %v4232_v62 = vrot.slane %v4224_v51, %v7657_v20  ;;  %v4239_v6 = vrot.slane %v4225_v55, %v7657_v20  ;;  %v4302_v13 = vrot.slane %v4294_v57, %v7657_v20  ;;  %v4775_v55 = vld [vmem:[%s8611_s5 + $0x4a0] sm:$0xff] }
 0x40c   :  { %v7969_v10 = vadd.f32 %v7820_v18, %v3581_v7  ;;  %v3585_v12 = vmul.f32 0.95, %v7963_v2  ;;  %6144 = vmatprep.subr.mxu0 %v4785_v8  ;;  %vm3468_vm10 = vcmp.gt.f32.partialorder %v7963_v2, 1.0  ;;  %v4391_v7 = vrot.slane %v8049_v52, %v7574_v38  ;;  %v4763_v38 = vld [vmem:[%s8611_s5 + $0x440] sm:$0xff] }
 0x40d   :  { %v6478_v43 = vpop.f32.mrf.mxu1  ;;  %6145 = vmatpush3.msra.mxu0 %v4769_v14  ;;  %v4174_v14 = vcombine.low %v4166_v53, %v4173_v9  ;;  %v4759_v9 = vld [vmem:[%s8611_s5 + $0x420] sm:$0xff] }
 0x40e   :  { %v3586_v17 = vadd.f32 %v3585_v12, %v7969_v10  ;;  %6146 = vmatprep.subr.mxu0 %v4784_v15  ;;  %v3595_v47 = vrot.slane %v7969_v10, 2  ;;  %v4779_v12 = vld [vmem:[%s8611_s5 + $0x4c0] sm:$0xff]  ;;  %v4395_v43 = vrot.slane %v8049_v52, %v7577_v39  ;;  %v4399_v15 = vrot.slane %v8049_v52, %v7590_v46 }
 0x40f   :  { %6147 = vmatpush3.msra.mxu0 %v4768_v11  ;;  %v4240_v11 = vcombine.low %v4232_v62, %v4239_v6  ;;  %v4403_v39 = vrot.slane %v8049_v52, %v7593_v42  ;;  %v4188_v21 = vmul.f32 %v4174_v14, %v4107_v19  ;;  %v4332_v23 = vmul.f32 %v5854_v32, %v4174_v14  ;;  %v4762_v42 = vld [vmem:[%s8611_s5 + $0x438] sm:$0xff] }
 0x410   :  { %v5803_v24 = vadd.f32 -1.0, %v3586_v17  ;;  %6148 = vmatprep.subr.mxu0 %v4783_v3  ;;  %v4309_v3 = vrot.slane %v4295_v0, %v7657_v20  ;;  %v3605_v27 = vrot.slane %v7969_v10, 4  ;;  %v4774_v19 = vld [vmem:[%s8611_s5 + $0x498] sm:$0xff] }
 0x411   :  { %6149 = vmatpush3.msra.mxu0 %v4767_v26  ;;  %v4254_v29 = vmul.f32 %v5854_v32, %v4240_v11  ;;  %v4443_v35 = vcombine.low %v4399_v15, %v4403_v39  ;;  %v4758_v6 = vld [vmem:[%s8611_s5 + $0x418] sm:$0xff] }
 0x412   :  { %v8029_v33 = vsel %vm3468_vm10, %v5803_v24, %v3586_v17  ;;  %6150 = vmatprep.subr.mxu0 %v4782_v5  ;;  %v5858_v17 = vld [vmem:[%s8607_s1 + $0x44] sm:$0xff]  ;;  %v4442_v24 = vcombine.low %v4391_v7, %v4395_v43  ;;  %v4310_v5 = vcombine.low %v4302_v13, %v4309_v3  ;;  %v4773_v13 = vld [vmem:[%s8611_s5 + $0x490] sm:$0xff] }
 0x413   :  { %v3593_v44 = vmul.f32 0.95, %v8029_v33  ;;  %6151 = vmatpush3.msra.mxu0 %v4766_v56  ;;  %vm3589_vm11 = vcmp.gt.f32.partialorder %v8029_v33, 1.0  ;;  %v4336_v31 = vmul.f32 %v5858_v17, %v4240_v11  ;;  %v4258_v37 = vadd.f32 %v4254_v29, %v4188_v21  ;;  %v4756_v43 = vld [vmem:[%s8611_s5 + $0x408] sm:$0xff] }
 0x414   :  { %6152 = vmatprep.subr.mxu0 %v4781_v48  ;;  %v4450_v34 = vrot.slane %v4442_v24, %v7657_v20  ;;  %v4324_v40 = vmul.f32 %v5858_v17, %v4310_v5  ;;  %v4344_v48 = vmul.f32 %v5862_v28, %v4310_v5  ;;  %v4457_v49 = vrot.slane %v4443_v35, %v7657_v20  ;;  %v4771_v17 = vld [vmem:[%s8611_s5 + $0x480] sm:$0xff] }
 0x415   :  { %v3597_v60 = vadd.f32 %v3595_v47, %v3593_v44  ;;  %6153 = vmatpush3.msra.mxu0 %v4765_v50  ;;  %v4776_v44 = vld [vmem:[%s8611_s5 + $0x4a8] sm:$0xff]  ;;  %v4340_v47 = vadd.f32 %v4336_v31, %v4332_v23  ;;  %v5804_v54 = vsel %vm3589_vm11, 1.0, %v6574_v1 }
 0x416   :  { %6154 = vmatprep.subr.mxu0 %v4780_v61  ;;  %v4760_v50 = vld [vmem:[%s8611_s5 + $0x428] sm:$0xff]  ;;  %v4328_v53 = vadd.f32 %v4324_v40, %v4258_v37  ;;  %v4042_v37 = vrot.slane %v8000_v22, %v7773_v58 }
 0x417   :  { %v5805_v8 = vadd.f32 -1.0, %v3597_v60  ;;  %6155 = vmatpush3.msra.mxu0 %v4764_v63  ;;  %v4348_v57 = vadd.f32 %v4344_v48, %v4340_v47  ;;  %v3615_v63 = vrot.slane %v7969_v10, 6  ;;  %v4757_v10 = vld [vmem:[%s8611_s5 + $0x410] sm:$0xff]  ;;  %v4100_v47 = vrot.slane %v8014_v25, %v7773_v58 }
 0x418   :  { %6156 = vmatprep.subr.mxu0 %v4779_v12  ;;  %v4772_v12 = vld [vmem:[%s8611_s5 + $0x488] sm:$0xff]  ;;  %v4247_v22 = vrot.slane %v4042_v37, %v7657_v20  ;;  %v4825_v25 = vld [vmem:[%s8611_s5 + $0x630] sm:$0xff] }
 0x419   :  { %v8089_v46 = vsel %vm3589_vm11, %v5805_v8, %v3597_v60  ;;  %6157 = vmatpush3.msra.mxu0 %v4763_v38  ;;  %v4458_v60 = vcombine.low %v4450_v34, %v4457_v49  ;;  %v4352_v32 = vmax.f32 %v4328_v53, %v4348_v57  ;;  %v4108_v49 = vld [vmem:[%s8607_s1 + $0x18] sm:$0x3] }
 0x41a   :  { %v3604_v26 = vmul.f32 0.95, %v8089_v46  ;;  %6158 = vmatprep.subr.mxu0 %v4778_v59  ;;  %vm3600_vm12 = vcmp.gt.f32.partialorder %v8089_v46, 1.0  ;;  %v4755_v59 = vld [vmem:[%s8611_s5 + $0x400] sm:$0xff] }
 0x41b   :  { %6159 = vmatpush3.msra.mxu0 %v4762_v42  ;;  %v4472_v7 = vadd.f32 %v4458_v60, %v4352_v32  ;;  %v5863_v60 = vld [vmem:[%s8607_s1 + $0x66] sm:$0x3]  ;;  %v5806_v2 = vsel %vm3600_vm12, 1.0, %v6574_v1 }
 0x41c   :  { %v3607_v56 = vadd.f32 %v3605_v27, %v3604_v26  ;;  %6160 = vmatprep.subr.mxu0 %v4777_v30 }
 0x41d   :  { %6161 = vmatpush3.msra.mxu0 %v4761_v36  ;;  %v8144_v14 = vmax.f32 %v4472_v7, 0.0  ;;  %v3984_v36 = vrot.slane %v7981_v16, %v7773_v58  ;;  %v5855_v16 = vld [vmem:[%s8607_s1 + $0x32] sm:$0x3] }
 0x41e   :  { %v5807_v51 = vadd.f32 -1.0, %v3607_v56  ;;  %6162 = vmatprep.subr.mxu0 %v4776_v44  ;;  %v4826_v44 = vld [vmem:[%s8611_s5 + $0x638] sm:$0xff] }
 0x41f   :  { %6163 = vmatpush3.msra.mxu0 %v4760_v50  ;;  %v4872_v11 = vrot.slane %v8144_v14, %v7657_v20  ;;  %v4181_v48 = vrot.slane %v3984_v36, %v7657_v20  ;;  %v5859_v50 = vld [vmem:[%s8607_s1 + $0x4c] sm:$0x3] }
 0x420   :  { %v8122_v61 = vsel %vm3600_vm12, %v5807_v51, %v3607_v56  ;;  %6164 = vmatprep.subr.mxu0 %v4775_v55  ;;  %v4317_v55 = vrot.slane %v4100_v47, %v7657_v20 }
 0x421   :  { %v3614_v62 = vmul.f32 0.95, %v8122_v61  ;;  %6165 = vmatpush3.msra.mxu0 %v4759_v9  ;;  %vm3610_vm13 = vcmp.gt.f32.partialorder %v8122_v61, 1.0  ;;  %v4880_v23 = vcombine.high %v4872_v11, %v4872_v11  ;;  %v4189_v53 = vmul.f32 %v4181_v48, %v4108_v49 }
 0x422   :  { %6166 = vmatprep.subr.mxu0 %v4774_v19  ;;  %v4333_v57 = vmul.f32 %v5855_v16, %v4181_v48  ;;  %v4255_v9 = vmul.f32 %v5855_v16, %v4247_v22  ;;  %v4824_v19 = vld [vmem:[%s8611_s5 + $0x628] sm:$0xff]  ;;  %v4325_v32 = vmul.f32 %v5859_v50, %v4317_v55  ;;  %v5808_v49 = vsel %vm3610_vm13, 1.0, %v6574_v1 }
 0x423   :  { %v3617_v0 = vadd.f32 %v3615_v63, %v3614_v62  ;;  %6167 = vmatpush3.msra.mxu0 %v4758_v6  ;;  %5248 = vmatprep.mubr.f32.mxu0 %v4880_v23  ;;  %v4337_v62 = vmul.f32 %v5859_v50, %v4247_v22  ;;  %v4345_v6 = vmul.f32 %v5863_v60, %v4317_v55 }
 0x424   :  { %6168 = vmatprep.subr.mxu0 %v4773_v13  ;;  %v4259_v7 = vadd.f32 %v4255_v9, %v4189_v53 }
 0x425   :  { %v5809_v8 = vadd.f32 -1.0, %v3617_v0  ;;  %6169 = vmatpush3.msra.mxu0 %v4757_v10  ;;  %v4823_v10 = vld [vmem:[%s8611_s5 + $0x620] sm:$0xff] }
 0x426   :  { %6170 = vmatprep.subr.mxu0 %v4772_v12  ;;  %v4407_v12 = vrot.slane %v8049_v52, %v7773_v58  ;;  %v4821_v58 = vld [vmem:[%s8611_s5 + $0x610] sm:$0xff] }
 0x427   :  { %v8152_v15 = vsel %vm3610_vm13, %v5809_v8, %v3617_v0  ;;  %v3733_v38 = vpop.f32.mrf.mxu0  ;;  %6171 = vmatpush3.msra.mxu0 %v4756_v43  ;;  %v4341_v8 = vadd.f32 %v4337_v62, %v4333_v57 }
 0x428   :  { %v8160_v3 = vadd.f32 %v7820_v18, %v3733_v38  ;;  %v3737_v39 = vmul.f32 0.95, %v8152_v15  ;;  %6172 = vmatprep.subr.mxu0 %v4771_v17  ;;  %vm3620_vm14 = vcmp.gt.f32.partialorder %v8152_v15, 1.0  ;;  %v4329_v38 = vadd.f32 %v4325_v32, %v4259_v7  ;;  %v4822_v17 = vld [vmem:[%s8611_s5 + $0x618] sm:$0xff] }
 0x429   :  { %v6489_v21 = vpop.f32.mrf.mxu0  ;;  %6173 = vmatpush3.msra.mxu0 %v4755_v59  ;;  %v5810_v22 = vsel %vm3620_vm14, 1.0, %v6574_v1  ;;  %v4831_v7 = vcombine.high %v7755_v45, %v7755_v45 }
 0x42a   :  { %v3738_v24 = vadd.f32 %v3737_v39, %v8160_v3  ;;  %5249 = vmatmul.mubr.f32.vlgmr.msra.gmra.mxu0 %v4872_v11  ;;  %6517 = vmatprep.subr.mxu0 %v6574_v1  ;;  %v3747_v28 = vrot.slane %v8160_v3, 2  ;;  %v3757_v56 = vrot.slane %v8160_v3, 4  ;;  %v3767_v13 = vrot.slane %v8160_v3, 6 }
 0x42b   :  { %6533 = vmatprep.mubr.msk.f32.mxu0 %vm6575_vm2, %v6574_v1  ;;  %6518 = vmatpush3.msra.mxu0 %v4826_v44  ;;  %v4349_v11 = vadd.f32 %v4345_v6, %v4341_v8  ;;  %v4465_v3 = vrot.slane %v4407_v12, %v7657_v20 }
 0x42c   :  { %v5820_v26 = vadd.f32 -1.0, %v3738_v24  ;;  %6519 = vmatprep.subr.mxu0 %v6574_v1 }
 0x42d   :  { %6520 = vmatpush3.msra.mxu0 %v4825_v25  ;;  %v4353_v52 = vmax.f32 %v4329_v38, %v4349_v11 }
 0x42e   :  { %v8173_v27 = vsel %vm3620_vm14, %v5820_v26, %v3738_v24  ;;  %6521 = vmatprep.subr.mxu0 %v6574_v1  ;;  %v4820_v26 = vld [vmem:[%s8611_s5 + $0x608] sm:$0xff] }
 0x42f   :  { %v3745_v42 = vmul.f32 0.95, %v8173_v27  ;;  %v8177_v29 = vpop.f32.mrf.mxu0  ;;  %vm3741_vm15 = vcmp.gt.f32.partialorder %v8173_v27, 1.0  ;;  %6522 = vmatpush3.msra.mxu0 %v4824_v19 }
 0x430   :  { %6523 = vmatprep.subr.mxu0 %v6574_v1  ;;  %v5821_v46 = vsel %vm3741_vm15, 1.0, %v6574_v1 }
 0x431   :  { %v3749_v5 = vadd.f32 %v3747_v28, %v3745_v42  ;;  %v6511_v30 = vpop.f32.mrf.mxu0  ;;  %6524 = vmatpush3.msra.mxu0 %v4823_v10  ;;  %v4819_v42 = vld [vmem:[%s8611_s5 + $0x600] sm:$0xff]  ;;  %v4473_v28 = vadd.f32 %v4465_v3, %v4353_v52 }
 0x432   :  { %6525 = vmatprep.subr.mxu0 %v6574_v1 }
 0x433   :  { %v5822_v31 = vadd.f32 -1.0, %v3749_v5  ;;  %6526 = vmatpush3.msra.mxu0 %v4822_v17  ;;  %v8292_v17 = vrot.slane %v4831_v7, %v7657_v20  ;;  %v4732_v7 = vld [vmem:[%s8611_s5 + $0x348] sm:$0xff] }
 0x434   :  { %6527 = vmatprep.subr.mxu0 %v6574_v1 }
 0x435   :  { %v8182_v35 = vsel %vm3741_vm15, %v5822_v31, %v3749_v5  ;;  %6528 = vmatpush3.msra.mxu0 %v4821_v58  ;;  %v5791_v5 = vsel %vm3458_vm9, 1.0, %v6574_v1  ;;  %v4847_v45 = vcombine.high %v8292_v17, %v8292_v17  ;;  %vm5400_vm9 = vcmask 58368  }
 0x436   :  { %v3756_v34 = vmul.f32 0.95, %v8182_v35  ;;  %vm3752_vm2 = vcmp.gt.f32.partialorder %v8182_v35, 1.0  ;;  %6529 = vmatprep.subr.mxu0 %v6574_v1 }
 0x437   :  { %6530 = vmatpush3.msra.mxu0 %v4820_v26  ;;  %v5823_v61 = vsel %vm3752_vm2, 1.0, %v6574_v1  ;;  %v4687_v26 = vld [vmem:[%s8611_s5 + $0x1e0] sm:$0xff] }
 0x438   :  { %v3759_v40 = vadd.f32 %v3757_v56, %v3756_v34  ;;  %6531 = vmatprep.subr.mxu0 %v6574_v1  ;;  %v4477_v34 = vmax.f32 %v4473_v28, 0.0  ;;  %v3461_v56 = vadd.f32 %v5791_v5, %v7916_v41  ;;  %v4686_v28 = vld [vmem:[%s8611_s5 + $0x1d8] sm:$0xff] }
 0x439   :  { %6532 = vmatpush3.msra.mxu0 %v4819_v42  ;;  %v4671_v42 = vld [vmem:[%s8611_s5 + $0x160] sm:$0xff]  ;;  %v4670_v5 = vld [vmem:[%s8611_s5 + $0x158] sm:$0xff] }
 0x43a   :  { %v5824_v51 = vadd.f32 -1.0, %v3759_v40  ;;  %v4888_v37 = vrot.slane %v4477_v34, %v7657_v20  ;;  %v4668_v34 = vld [vmem:[%s8611_s5 + $0x148] sm:$0xff] }
 0x43c   :  { %v8217_v63 = vsel %vm3752_vm2, %v5824_v51, %v3759_v40  ;;  %6534 = vmatmul.mubr.msk.f32.vlgmr.msra.gmra.mxu0 %vm4901_vm1, %v4888_v37  ;;  %v4666_v37 = vld [vmem:[%s8611_s5 + $0x138] sm:$0xff] }
 0x43d   :  { %v3766_v0 = vmul.f32 0.95, %v8217_v63  ;;  %vm3762_vm0 = vcmp.gt.f32.partialorder %v8217_v63, 1.0 }
 0x43e   :  { %v5825_v15 = vsel %vm3762_vm0, 1.0, %v6574_v1 }
 0x43f   :  { %v3769_v43 = vadd.f32 %v3767_v13, %v3766_v0 }
 0x441   :  { %v5826_v39 = vadd.f32 -1.0, %v3769_v43 }
 0x443   :  { %v3771_v59 = vsel %vm3762_vm0, %v5826_v39, %v3769_v43  ;;  %v3885_v21 = vpop.f32.mrf.mxu1 }
 0x444   :  { %v3886_v23 = vadd.f32 %v7820_v18, %v3885_v21  ;;  %v3889_v24 = vmul.f32 0.95, %v3771_v59  ;;  %v5793_v18 = vsel %vm3468_vm10, 1.0, %v6574_v1  ;;  %vm3772_vm3 = vcmp.gt.f32.partialorder %v3771_v59, 1.0  ;;  %v4674_v59 = vld [vmem:[%s8611_s5 + $0x178] sm:$0xff]  ;;  %v4689_v21 = vld [vmem:[%s8611_s5 + $0x1f0] sm:$0xff] }
 0x445   :  { %v6500_v30 = vpop.f32.mrf.mxu1  ;;  %v3471_v40 = vadd.f32 %v5793_v18, %v3461_v56  ;;  %v5827_v27 = vsel %vm3772_vm3, 1.0, %v6574_v1  ;;  %v4684_v18 = vld [vmem:[%s8611_s5 + $0x1c8] sm:$0xff]  ;;  %v4683_v56 = vld [vmem:[%s8611_s5 + $0x1c0] sm:$0xff] }
 0x446   :  { %v3890_v31 = vadd.f32 %v3889_v24, %v3886_v23  ;;  %v3899_v48 = vrot.slane %v3886_v23, 2  ;;  %v3909_v57 = vrot.slane %v3886_v23, 4  ;;  %v3919_v35 = vrot.slane %v3886_v23, 6  ;;  %v4673_v23 = vld [vmem:[%s8611_s5 + $0x170] sm:$0xff]  ;;  %v4672_v24 = vld [vmem:[%s8611_s5 + $0x168] sm:$0xff] }
 0x447   :  { %v3592_v41 = vadd.f32 %v5804_v54, %v3471_v40  ;;  %v4685_v30 = vld [vmem:[%s8611_s5 + $0x1d0] sm:$0xff]  ;;  %v4682_v54 = vld [vmem:[%s8611_s5 + $0x1b8] sm:$0xff] }
 0x448   :  { %v5837_v36 = vadd.f32 -1.0, %v3890_v31  ;;  %v4681_v40 = vld [vmem:[%s8611_s5 + $0x1b0] sm:$0xff] }
 0x449   :  { %v3603_v16 = vadd.f32 %v5806_v2, %v3592_v41  ;;  %v4680_v2 = vld [vmem:[%s8611_s5 + $0x1a8] sm:$0xff]  ;;  %v4663_v41 = vld [vmem:[%s8611_s5 + $0x120] sm:$0xff] }
 0x44a   :  { %v3892_v44 = vsel %vm3772_vm3, %v5837_v36, %v3890_v31  ;;  %v4669_v31 = vld [vmem:[%s8611_s5 + $0x150] sm:$0xff]  ;;  %v4667_v36 = vld [vmem:[%s8611_s5 + $0x140] sm:$0xff] }
 0x44b   :  { %v3897_v47 = vmul.f32 0.95, %v3892_v44  ;;  %v3613_v25 = vadd.f32 %v5808_v49, %v3603_v16  ;;  %vm3893_vm4 = vcmp.gt.f32.partialorder %v3892_v44, 1.0  ;;  %v4665_v44 = vld [vmem:[%s8611_s5 + $0x130] sm:$0xff]  ;;  %v4678_v49 = vld [vmem:[%s8611_s5 + $0x198] sm:$0xff] }
 0x44c   :  { %v5838_v0 = vsel %vm3893_vm4, 1.0, %v6574_v1  ;;  %v4662_v16 = vld [vmem:[%s8611_s5 + $0x118] sm:$0xff] }
 0x44d   :  { %v3901_v33 = vadd.f32 %v3899_v48, %v3897_v47  ;;  %v3623_v53 = vadd.f32 %v5810_v22, %v3613_v25  ;;  %v4664_v47 = vld [vmem:[%s8611_s5 + $0x128] sm:$0xff]  ;;  %v4679_v48 = vld [vmem:[%s8611_s5 + $0x1a0] sm:$0xff]  ;;  %v4677_v22 = vld [vmem:[%s8611_s5 + $0x190] sm:$0xff] }
 0x44f   :  { %v5839_v51 = vadd.f32 -1.0, %v3901_v33  ;;  %v3744_v60 = vadd.f32 %v5821_v46, %v3623_v53  ;;  %v4660_v46 = vld [vmem:[%s8611_s5 + $0x108] sm:$0xff]  ;;  %v4659_v53 = vld [vmem:[%s8611_s5 + $0x100] sm:$0xff] }
 0x451   :  { %v3903_v50 = vsel %vm3893_vm4, %v5839_v51, %v3901_v33  ;;  %v3755_v62 = vadd.f32 %v5823_v61, %v3744_v60  ;;  %v4848_v33 = vcombine.high %v7936_v4, %v7936_v4  ;;  %v4661_v51 = vld [vmem:[%s8611_s5 + $0x110] sm:$0xff]  ;;  %v4676_v4 = vld [vmem:[%s8611_s5 + $0x188] sm:$0xff]  ;;  %v4738_v61 = vld [vmem:[%s8611_s5 + $0x378] sm:$0xff] }
 0x452   :  { %v3908_v55 = vmul.f32 0.95, %v3903_v50  ;;  %vm3904_vm5 = vcmp.gt.f32.partialorder %v3903_v50, 1.0  ;;  %v4675_v50 = vld [vmem:[%s8611_s5 + $0x180] sm:$0xff]  ;;  %v4753_v60 = vld [vmem:[%s8611_s5 + $0x3f0] sm:$0xff] }
 0x453   :  { %v3765_v32 = vadd.f32 %v5825_v15, %v3755_v62  ;;  %v5840_v63 = vsel %vm3904_vm5, 1.0, %v6574_v1  ;;  %v8384_v25 = vrot.slane %v4848_v33, %v7657_v20  ;;  %v4752_v15 = vld [vmem:[%s8611_s5 + $0x3e8] sm:$0xff]  ;;  %v4795_v33 = vld [vmem:[%s8611_s5 + $0x540] sm:$0xff] }
 0x454   :  { %v3911_v9 = vadd.f32 %v3909_v57, %v3908_v55  ;;  %v4754_v55 = vld [vmem:[%s8611_s5 + $0x3f8] sm:$0xff]  ;;  %v4736_v62 = vld [vmem:[%s8611_s5 + $0x368] sm:$0xff] }
 0x455   :  { %v3775_v10 = vadd.f32 %v5827_v27, %v3765_v32  ;;  %v4864_v57 = vcombine.high %v8384_v25, %v8384_v25  ;;  %v4735_v27 = vld [vmem:[%s8611_s5 + $0x360] sm:$0xff]  ;;  %v4750_v32 = vld [vmem:[%s8611_s5 + $0x3d8] sm:$0xff] }
 0x456   :  { %v5841_v19 = vadd.f32 -1.0, %v3911_v9 }
 0x457   :  { %v3896_v12 = vadd.f32 %v5838_v0, %v3775_v10  ;;  %v4749_v0 = vld [vmem:[%s8611_s5 + $0x3d0] sm:$0xff]  ;;  %v4747_v10 = vld [vmem:[%s8611_s5 + $0x3c0] sm:$0xff] }
 0x458   :  { %v3913_v6 = vsel %vm3904_vm5, %v5841_v19, %v3911_v9  ;;  %v4737_v9 = vld [vmem:[%s8611_s5 + $0x370] sm:$0xff]  ;;  %v4751_v19 = vld [vmem:[%s8611_s5 + $0x3e0] sm:$0xff] }
 0x459   :  { %v3918_v13 = vmul.f32 0.95, %v3913_v6  ;;  %vm3914_vm7 = vcmp.gt.f32.partialorder %v3913_v6, 1.0  ;;  %v3907_v11 = vadd.f32 %v5840_v63, %v3896_v12  ;;  %v4734_v6 = vld [vmem:[%s8611_s5 + $0x358] sm:$0xff]  ;;  %v4731_v63 = vld [vmem:[%s8611_s5 + $0x340] sm:$0xff] }
 0x45a   :  { %v5842_v38 = vsel %vm3914_vm7, 1.0, %v6574_v1  ;;  %v4730_v12 = vld [vmem:[%s8611_s5 + $0x338] sm:$0xff] }
 0x45b   :  { %v3921_v8 = vadd.f32 %v3919_v35, %v3918_v13  ;;  %v3917_v39 = vadd.f32 %v5842_v38, %v3907_v11  ;;  %v4733_v13 = vld [vmem:[%s8611_s5 + $0x350] sm:$0xff]  ;;  %v4748_v35 = vld [vmem:[%s8611_s5 + $0x3c8] sm:$0xff] }
 0x45c   :  { %v4729_v38 = vld [vmem:[%s8611_s5 + $0x330] sm:$0xff]  ;;  %v4728_v11 = vld [vmem:[%s8611_s5 + $0x328] sm:$0xff] }
 0x45d   :  { %v5843_v43 = vadd.f32 -1.0, %v3921_v8 }
 0x45f   :  { %v3923_v3 = vsel %vm3914_vm7, %v5843_v43, %v3921_v8  ;;  %v4746_v8 = vld [vmem:[%s8611_s5 + $0x3b8] sm:$0xff]  ;;  %v4745_v43 = vld [vmem:[%s8611_s5 + $0x3b0] sm:$0xff] }
 0x460   :  { %vm3924_vm6 = vcmp.gt.f32.partialorder %v3923_v3, 1.0  ;;  %v4743_v3 = vld [vmem:[%s8611_s5 + $0x3a0] sm:$0xff] }
 0x461   :  { %v5844_v58 = vsel %vm3924_vm6, 1.0, %v6574_v1  ;;  %v4688_v1 = vld [vmem:[%s8611_s5 + $0x1e8] sm:$0xff] }
 0x462   :  { %v3927_v52 = vadd.f32 %v5844_v58, %v3917_v39  ;;  %v4727_v39 = vld [vmem:[%s8611_s5 + $0x320] sm:$0xff]  ;;  %v4742_v58 = vld [vmem:[%s8611_s5 + $0x398] sm:$0xff] }
 0x464   :  { %6515 = vmatmul.mubr.msk.f32.vlgmr.msra.gmra.mxu1 %vm4553_vm8, %v3927_v52  ;;  %v4726_v52 = vld [vmem:[%s8611_s5 + $0x318] sm:$0xff] }
 0x465   :  { %6038 = vmatpush3.msra.mxu1 %v4674_v59  ;;  %5038 = vmatprep.mubr.f32.mxu1 %v4847_v45  ;;  %v4865_v45 = vcombine.high %v8144_v14, %v8144_v14  ;;  %v4741_v59 = vld [vmem:[%s8611_s5 + $0x390] sm:$0xff]  ;;  %v4740_v14 = vld [vmem:[%s8611_s5 + $0x388] sm:$0xff] }
 0x466   :  { %6039 = vmatprep.subr.mxu1 %v4689_v21  ;;  %v4725_v21 = vld [vmem:[%s8611_s5 + $0x310] sm:$0xff] }
 0x467   :  { %6040 = vmatpush3.msra.mxu1 %v4673_v23  ;;  %v8488_v23 = vrot.slane %v4865_v45, %v7657_v20  ;;  %v4818_v20 = vld [vmem:[%s8611_s5 + $0x5f8] sm:$0xff] }
 0x468   :  { %6041 = vmatprep.subr.mxu1 %v4688_v1  ;;  %v4724_v1 = vld [vmem:[%s8611_s5 + $0x308] sm:$0xff] }
 0x469   :  { %6042 = vmatpush3.msra.mxu1 %v4672_v24  ;;  %v4739_v24 = vld [vmem:[%s8611_s5 + $0x380] sm:$0xff] }
 0x46a   :  { %6043 = vmatprep.subr.mxu1 %v4687_v26  ;;  %v4723_v26 = vld [vmem:[%s8611_s5 + $0x300] sm:$0xff] }
 0x46b   :  { %6044 = vmatpush3.msra.mxu1 %v4671_v42  ;;  %v4881_v42 = vcombine.high %v8488_v23, %v8488_v23 }
 0x46c   :  { %6045 = vmatprep.subr.mxu1 %v4686_v28  ;;  %v4802_v28 = vld [vmem:[%s8611_s5 + $0x578] sm:$0xff] }
 0x46d   :  { %6046 = vmatpush3.msra.mxu1 %v4670_v5  ;;  %v4817_v5 = vld [vmem:[%s8611_s5 + $0x5f0] sm:$0xff] }
 0x46e   :  { %6047 = vmatprep.subr.mxu1 %v4685_v30  ;;  %v4801_v30 = vld [vmem:[%s8611_s5 + $0x570] sm:$0xff] }
 0x46f   :  { %6048 = vmatpush3.msra.mxu1 %v4669_v31  ;;  %v4816_v31 = vld [vmem:[%s8611_s5 + $0x5e8] sm:$0xff] }
 0x470   :  { %6049 = vmatprep.subr.mxu1 %v4684_v18  ;;  %v4800_v18 = vld [vmem:[%s8611_s5 + $0x568] sm:$0xff] }
 0x471   :  { %6050 = vmatpush3.msra.mxu1 %v4668_v34  ;;  %v4815_v34 = vld [vmem:[%s8611_s5 + $0x5e0] sm:$0xff] }
 0x472   :  { %6051 = vmatprep.subr.mxu1 %v4683_v56  ;;  %v4799_v56 = vld [vmem:[%s8611_s5 + $0x560] sm:$0xff] }
 0x473   :  { %6052 = vmatpush3.msra.mxu1 %v4667_v36  ;;  %v4814_v36 = vld [vmem:[%s8611_s5 + $0x5d8] sm:$0xff] }
 0x474   :  { %6053 = vmatprep.subr.mxu1 %v4682_v54  ;;  %v4798_v54 = vld [vmem:[%s8611_s5 + $0x558] sm:$0xff] }
 0x475   :  { %6054 = vmatpush3.msra.mxu1 %v4666_v37  ;;  %v4813_v37 = vld [vmem:[%s8611_s5 + $0x5d0] sm:$0xff] }
 0x476   :  { %6055 = vmatprep.subr.mxu1 %v4681_v40  ;;  %v4797_v40 = vld [vmem:[%s8611_s5 + $0x550] sm:$0xff] }
 0x477   :  { %6056 = vmatpush3.msra.mxu1 %v4665_v44 }
 0x478   :  { %6057 = vmatprep.subr.mxu1 %v4680_v2  ;;  %v4812_v2 = vld [vmem:[%s8611_s5 + $0x5c8] sm:$0xff] }
 0x479   :  { %6058 = vmatpush3.msra.mxu1 %v4664_v47  ;;  %v4796_v47 = vld [vmem:[%s8611_s5 + $0x548] sm:$0xff] }
 0x47a   :  { %6059 = vmatprep.subr.mxu1 %v4679_v48 }
 0x47b   :  { %6060 = vmatpush3.msra.mxu1 %v4663_v41  ;;  %v4811_v41 = vld [vmem:[%s8611_s5 + $0x5c0] sm:$0xff] }
 0x47c   :  { %6061 = vmatprep.subr.mxu1 %v4678_v49 }
 0x47d   :  { %6062 = vmatpush3.msra.mxu1 %v4662_v16  ;;  %v4810_v16 = vld [vmem:[%s8611_s5 + $0x5b8] sm:$0xff] }
 0x47e   :  { %6063 = vmatprep.subr.mxu1 %v4677_v22  ;;  %v4794_v22 = vld [vmem:[%s8611_s5 + $0x538] sm:$0xff] }
 0x47f   :  { %6064 = vmatpush3.msra.mxu1 %v4661_v51  ;;  %v4809_v51 = vld [vmem:[%s8611_s5 + $0x5b0] sm:$0xff] }
 0x480   :  { %6065 = vmatprep.subr.mxu1 %v4676_v4  ;;  %v4793_v4 = vld [vmem:[%s8611_s5 + $0x530] sm:$0xff] }
 0x481   :  { %6066 = vmatpush3.msra.mxu1 %v4660_v46  ;;  %v4792_v46 = vld [vmem:[%s8611_s5 + $0x528] sm:$0xff] }
 0x482   :  { %6067 = vmatprep.subr.mxu1 %v4675_v50  ;;  %v4807_v50 = vld [vmem:[%s8611_s5 + $0x5a0] sm:$0xff] }
 0x483   :  { %6068 = vmatpush3.msra.mxu1 %v4659_v53  ;;  %v4791_v53 = vld [vmem:[%s8611_s5 + $0x520] sm:$0xff] }
 0x484   :  { %5039 = vmatmul.mubr.f32.vlgmr.msra.gmra.mxu1 %v8292_v17  ;;  %6107 = vmatprep.subr.mxu1 %v4754_v55  ;;  %v4744_v17 = vld [vmem:[%s8611_s5 + $0x3a8] sm:$0xff]  ;;  %v4806_v55 = vld [vmem:[%s8611_s5 + $0x598] sm:$0xff] }
 0x485   :  { %6108 = vmatpush3.msra.mxu1 %v4738_v61  ;;  %5178 = vmatprep.mubr.f32.mxu1 %v4864_v57  ;;  %v4790_v57 = vld [vmem:[%s8611_s5 + $0x518] sm:$0xff]  ;;  %v4805_v61 = vld [vmem:[%s8611_s5 + $0x590] sm:$0xff] }
 0x486   :  { %6109 = vmatprep.subr.mxu1 %v4753_v60  ;;  %v4789_v60 = vld [vmem:[%s8611_s5 + $0x510] sm:$0xff] }
 0x487   :  { %6110 = vmatpush3.msra.mxu1 %v4737_v9  ;;  %v4804_v9 = vld [vmem:[%s8611_s5 + $0x588] sm:$0xff] }
 0x488   :  { %6111 = vmatprep.subr.mxu1 %v4752_v15  ;;  %v4788_v15 = vld [vmem:[%s8611_s5 + $0x508] sm:$0xff] }
 0x489   :  { %6112 = vmatpush3.msra.mxu1 %v4736_v62  ;;  %v4803_v62 = vld [vmem:[%s8611_s5 + $0x580] sm:$0xff] }
 0x48a   :  { %6113 = vmatprep.subr.mxu1 %v4751_v19  ;;  %v4787_v19 = vld [vmem:[%s8611_s5 + $0x500] sm:$0xff] }
 0x48b   :  { %6114 = vmatpush3.msra.mxu1 %v4735_v27 }
 0x48c   :  { %6115 = vmatprep.subr.mxu1 %v4750_v32 }
 0x48d   :  { %6116 = vmatpush3.msra.mxu1 %v4734_v6 }
 0x48e   :  { %6117 = vmatprep.subr.mxu1 %v4749_v0 }
 0x48f   :  { %6118 = vmatpush3.msra.mxu1 %v4733_v13 }
 0x490   :  { %6119 = vmatprep.subr.mxu1 %v4748_v35 }
 0x491   :  { %6120 = vmatpush3.msra.mxu1 %v4732_v7 }
 0x492   :  { %6121 = vmatprep.subr.mxu1 %v4747_v10 }
 0x493   :  { %6122 = vmatpush3.msra.mxu1 %v4731_v63 }
 0x494   :  { %6123 = vmatprep.subr.mxu1 %v4746_v8 }
 0x495   :  { %6124 = vmatpush3.msra.mxu1 %v4730_v12 }
 0x496   :  { %6125 = vmatprep.subr.mxu1 %v4745_v43 }
 0x497   :  { %6126 = vmatpush3.msra.mxu1 %v4729_v38 }
 0x498   :  { %6127 = vmatprep.subr.mxu1 %v4744_v17 }
 0x499   :  { %6128 = vmatpush3.msra.mxu1 %v4728_v11 }
 0x49a   :  { %6129 = vmatprep.subr.mxu1 %v4743_v3 }
 0x49b   :  { %6130 = vmatpush3.msra.mxu1 %v4727_v39 }
 0x49c   :  { %6131 = vmatprep.subr.mxu1 %v4742_v58 }
 0x49d   :  { %6132 = vmatpush3.msra.mxu1 %v4726_v52 }
 0x49e   :  { %6133 = vmatprep.subr.mxu1 %v4741_v59 }
 0x49f   :  { %6134 = vmatpush3.msra.mxu1 %v4725_v21 }
 0x4a0   :  { %6135 = vmatprep.subr.mxu1 %v4740_v14 }
 0x4a1   :  { %6136 = vmatpush3.msra.mxu1 %v4724_v1 }
 0x4a2   :  { %6137 = vmatprep.subr.mxu1 %v4739_v24 }
 0x4a3   :  { %6138 = vmatpush3.msra.mxu1 %v4723_v26  ;;  %v5867_v26 = vld [vmem:[%s8610_s4 + $0x49] ss:$0 sm:$0xff] }
 0x4a4   :  { %5179 = vmatmul.mubr.f32.vlgmr.msra.gmra.mxu1 %v8384_v25  ;;  %6177 = vmatprep.subr.mxu1 %v4818_v20  ;;  %v4808_v25 = vld [vmem:[%s8611_s5 + $0x5a8] sm:$0xff] }
 0x4a5   :  { %6178 = vmatpush3.msra.mxu1 %v4802_v28  ;;  %5318 = vmatprep.mubr.f32.mxu1 %v4881_v42 }
 0x4a6   :  { %6179 = vmatprep.subr.mxu1 %v4817_v5 }
 0x4a7   :  { %6180 = vmatpush3.msra.mxu1 %v4801_v30 }
 0x4a8   :  { %6181 = vmatprep.subr.mxu1 %v4816_v31 }
 0x4a9   :  { %6182 = vmatpush3.msra.mxu1 %v4800_v18 }
 0x4aa   :  { %6183 = vmatprep.subr.mxu1 %v4815_v34  ;;  %v6034_v44 = vpop.f32.mrf.mxu0 }
 0x4ab   :  { %6184 = vmatpush3.msra.mxu1 %v4799_v56 }
 0x4ac   :  { %6185 = vmatprep.subr.mxu1 %v4814_v36  ;;  %v6035_v48 = vpop.f32.mrf.mxu0 }
 0x4ad   :  { %6186 = vmatpush3.msra.mxu1 %v4798_v54  ;;  %v6036_v49 = vadd.f32 %v6035_v48, %v6034_v44 }
 0x4ae   :  { %6187 = vmatprep.subr.mxu1 %v4813_v37 }
 0x4af   :  { %6188 = vmatpush3.msra.mxu1 %v4797_v40 }
 0x4b0   :  { %6189 = vmatprep.subr.mxu1 %v4812_v2 }
 0x4b1   :  { %6190 = vmatpush3.msra.mxu1 %v4796_v47 }
 0x4b2   :  { %6191 = vmatprep.subr.mxu1 %v4811_v41 }
 0x4b3   :  { %6192 = vmatpush3.msra.mxu1 %v4795_v33 }
 0x4b4   :  { %6193 = vmatprep.subr.mxu1 %v4810_v16 }
 0x4b5   :  { %6194 = vmatpush3.msra.mxu1 %v4794_v22 }
 0x4b6   :  { %6195 = vmatprep.subr.mxu1 %v4809_v51 }
 0x4b7   :  { %6196 = vmatpush3.msra.mxu1 %v4793_v4 }
 0x4b8   :  { %6197 = vmatprep.subr.mxu1 %v4808_v25 }
 0x4b9   :  { %6198 = vmatpush3.msra.mxu1 %v4792_v46 }
 0x4ba   :  { %6199 = vmatprep.subr.mxu1 %v4807_v50 }
 0x4bb   :  { %6200 = vmatpush3.msra.mxu1 %v4791_v53 }
 0x4bc   :  { %6201 = vmatprep.subr.mxu1 %v4806_v55 }
 0x4bd   :  { %6202 = vmatpush3.msra.mxu1 %v4790_v57 }
 0x4be   :  { %6203 = vmatprep.subr.mxu1 %v4805_v61 }
 0x4bf   :  { %6204 = vmatpush3.msra.mxu1 %v4789_v60 }
 0x4c0   :  { %6205 = vmatprep.subr.mxu1 %v4804_v9 }
 0x4c1   :  { %6206 = vmatpush3.msra.mxu1 %v4788_v15 }
 0x4c2   :  { %6207 = vmatprep.subr.mxu1 %v4803_v62 }
 0x4c3   :  { %6208 = vmatpush3.msra.mxu1 %v4787_v19 }
 0x4c4   :  { %5319 = vmatmul.mubr.f32.vlgmr.msra.gmra.mxu1 %v8488_v23 }
 0x4ca   :  { %v6104_v27 = vpop.f32.mrf.mxu0 }
 0x4cc   :  { %v6105_v32 = vpop.f32.mrf.mxu0 }
 0x4cd   :  { %v6106_v6 = vadd.f32 %v6105_v32, %v6104_v27 }
 0x4ea   :  { %v6174_v0 = vpop.f32.mrf.mxu0 }
 0x4ec   :  { %v6175_v13 = vpop.f32.mrf.mxu0 }
 0x4ed   :  { %v6176_v35 = vadd.f32 %v6175_v13, %v6174_v0 }
 0x4fc   :  { %v5390_v7 = vpop.f32.mrf.mxu0 }
 0x4fe   :  { %v6535_v10 = vpop.f32.mrf.mxu0 }
 0x524   :  { %v4623_v63 = vpop.f32.mrf.mxu1 }
 0x525   :  { %v4624_v1 = vadd.f32 %v4623_v63, %v8177_v29 }
 0x526   :  { %v6516_v8 = vpop.f32.mrf.mxu1 }
 0x544   :  { %v6069_v12 = vpop.f32.mrf.mxu1 }
 0x546   :  { %v6070_v43 = vpop.f32.mrf.mxu1 }
 0x547   :  { %v6071_v38 = vadd.f32 %v6070_v43, %v6069_v12 }
 0x549   :  { %v5041_v17 = vadd.f32 %v6071_v38, %v6036_v49 }
 0x54b   :  { %v5111_v11 = vadd.f32 %v6106_v6, %v5041_v17 }
 0x564   :  { %v6139_v3 = vpop.f32.mrf.mxu1 }
 0x566   :  { %v6140_v39 = vpop.f32.mrf.mxu1 }
 0x567   :  { %v6141_v58 = vadd.f32 %v6140_v39, %v6139_v3 }
 0x569   :  { %v5181_v45 = vadd.f32 %v6141_v58, %v5111_v11 }
 0x56b   :  { %v5251_v52 = vadd.f32 %v6176_v35, %v5181_v45 }
 0x584   :  { %v6209_v59 = vpop.f32.mrf.mxu1 }
 0x586   :  { %v6210_v21 = vpop.f32.mrf.mxu1 }
 0x587   :  { %v6211_v14 = vadd.f32 %v6210_v21, %v6209_v59 }
 0x589   :  { %v5321_v23 = vadd.f32 %v6211_v14, %v5251_v52 }
 0x58b   :  { %v5391_v24 = vadd.f32 %v5390_v7, %v5321_v23 }
 0x58d   :  { %v5394_v20 = vadd.f32 %v5391_v24, %v4624_v1 }
 0x58f   :  { %v5399_v42 = vadd.f32 %v5867_v26, %v5394_v20 }
 0x591   :  { %5401 = vst.msk [vmem:[#allocation2] sm:$0x3] %vm5400_vm9, %v5399_v42 }
 0x592   :  { %6563 = shalt.err (!%p6560_p4)
}
 0x593   :  { %5411 = dma.vmem_to_hbm [thread:$0]  %s5409_s9, 32, %s8612_s6, [#allocation3]  }
 0x594   :  { %6572 = dma.done.wait [#allocation3], 32  }
 0x595   :  { %6573 = vsyncadd [#allocation3], 4294967264 }
 0x596   :  { %5415 = vsyncpa [#allocation3], 1 }

</bundles_post_ra>
